<compile_context>
chip_gen: v7x
topology: tpu7x:2x2x1
jax: 0.10.0
libtpu: 0.0.40
codegen_flags: <defaults>
</compile_context>

<pallas_src>
import functools
import math

import jax
import jax.numpy as jnp
from jax.experimental import pallas as pl
from jax.experimental.pallas import tpu as pltpu


# ------------------------------ tiling helper ------------------------------


def _choose_tile(length, max_tile, align):
    """Largest tile <= max_tile that divides `length` and is a multiple of
    `align`; falls back to the full length (block == full dim is always legal)."""
    if length <= max_tile:
        return length
    t = (max_tile // align) * align
    while t >= align:
        if length % t == 0:
            return t
        t -= align
    return length


# ----------------------------- Pallas kernels ------------------------------


def _conv_k3_kernel(x_ref, xl_ref, xr_ref, w_ref, b_ref, *rest, has_res):
    # x_ref : (1, TL, Cin)   current L-tile
    # xl_ref: (1, 8, Cin)    8-row block whose row [7] is x[tile_start - 1]
    # xr_ref: (1, 8, Cin)    8-row block whose row [0] is x[tile_end]
    # w_ref : (3, Cin, Cout) kernel taps (VMEM-resident across the tile axis)
    # b_ref : (1, Cout)      f32 bias
    # res_ref (optional): (1, TL, Cout)
    # o_ref : (1, TL, Cout)
    if has_res:
        res_ref, o_ref = rest
    else:
        (o_ref,) = rest
    i = pl.program_id(1)
    nt = pl.num_programs(1)
    tl = x_ref.shape[1]
    cout = o_ref.shape[2]

    xc = x_ref[0]                                     # (TL, Cin)
    left = xl_ref[0][7:8, :]                          # (1, Cin)  x[tile_start-1]
    right = xr_ref[0][0:1, :]                         # (1, Cin)  x[tile_end]
    left = jnp.where(i == 0, jnp.zeros_like(left), left)          # 'same' zero pad
    right = jnp.where(i == nt - 1, jnp.zeros_like(right), right)

    xp = jnp.concatenate([left, xc, right], axis=0)   # (TL + 2, Cin)

    acc = jnp.broadcast_to(b_ref[...].astype(jnp.float32), (tl, cout))
    for k in range(3):                                # 3 MXU matmuls, f32 acc
        acc = acc + jnp.dot(xp[k:k + tl, :], w_ref[k],
                            preferred_element_type=jnp.float32)
    if has_res:
        acc = acc + res_ref[0].astype(jnp.float32)
    o_ref[0] = jnp.maximum(acc, 0.0).astype(o_ref.dtype)


def _conv_k3_selfres_pool_kernel(x_ref, xl_ref, xr_ref, w_ref, b_ref, o_ref):
    # Fused: maxpool1d_2( relu( conv_k3(x) + x ) ).
    # x_ref : (1, HT, 2, Cin)  HT pooled rows == 2*HT conv rows, pairs (even, odd)
    # xl_ref: (1, 1, 2, Cin)   pair containing conv row 2*tile_start - 1 (odd slot)
    # xr_ref: (1, 1, 2, Cin)   pair containing conv row 2*tile_end      (even slot)
    # o_ref : (1, HT, Cout)
    i = pl.program_id(1)
    nt = pl.num_programs(1)
    f32 = jnp.float32

    ev = x_ref[0, :, 0, :]                            # x rows 2j      (HT, Cin)
    od = x_ref[0, :, 1, :]                            # x rows 2j + 1  (HT, Cin)
    left = xl_ref[0][0, 1:2, :]                       # (1, Cin) = x[2*tile_start - 1]
    right = xr_ref[0][0, 0:1, :]                      # (1, Cin) = x[2*tile_end]
    left = jnp.where(i == 0, jnp.zeros_like(left), left)
    right = jnp.where(i == nt - 1, jnp.zeros_like(right), right)

    od_m1 = jnp.concatenate([left, od[:-1, :]], axis=0)   # x rows 2j - 1
    ev_p1 = jnp.concatenate([ev[1:, :], right], axis=0)   # x rows 2j + 2

    bias = b_ref[...].astype(f32)                     # (1, Cout)
    w0, w1, w2 = w_ref[0], w_ref[1], w_ref[2]

    # even conv rows 2j  : w0*x[2j-1] + w1*x[2j]   + w2*x[2j+1] + b + x[2j]
    acc_e = (jnp.dot(od_m1, w0, preferred_element_type=f32)
             + jnp.dot(ev, w1, preferred_element_type=f32)
             + jnp.dot(od, w2, preferred_element_type=f32)
             + bias + ev.astype(f32))
    # odd conv rows 2j+1 : w0*x[2j]   + w1*x[2j+1] + w2*x[2j+2] + b + x[2j+1]
    acc_o = (jnp.dot(ev, w0, preferred_element_type=f32)
             + jnp.dot(od, w1, preferred_element_type=f32)
             + jnp.dot(ev_p1, w2, preferred_element_type=f32)
             + bias + od.astype(f32))
    pooled = jnp.maximum(jnp.maximum(acc_e, 0.0), jnp.maximum(acc_o, 0.0))
    o_ref[0] = pooled.astype(o_ref.dtype)


# ------------------------------ call wrappers -------------------------------


def conv1d_k3_relu(x, w, b, res=None, *, tl_max=512):
    """relu(conv1d(x, w, b; k=3, pad=1) [+ res]).  x: (N, L, Cin) -> (N, L, Cout)."""
    N, L, cin = x.shape
    cout = w.shape[2]
    assert L % 8 == 0, "sequence length must be a multiple of 8"
    tl = _choose_tile(L, tl_max, 8)
    tb = tl // 8                      # tile size in 8-row halo blocks
    nhb = L // 8                      # number of 8-row halo blocks
    grid = (N, L // tl)
    b2 = b.reshape(1, cout).astype(jnp.float32)

    in_specs = [
        pl.BlockSpec((1, tl, cin), lambda n, i: (n, i, 0)),
        pl.BlockSpec((1, 8, cin),
                     lambda n, i: (n, jnp.maximum(i * tb - 1, 0), 0)),
        pl.BlockSpec((1, 8, cin),
                     lambda n, i: (n, jnp.minimum((i + 1) * tb, nhb - 1), 0)),
        pl.BlockSpec((3, cin, cout), lambda n, i: (0, 0, 0)),
        pl.BlockSpec((1, cout), lambda n, i: (0, 0)),
    ]
    args = [x, x, x, w, b2]
    if res is not None:
        in_specs.append(pl.BlockSpec((1, tl, cout), lambda n, i: (n, i, 0)))
        args.append(res)

    itm = x.dtype.itemsize
    cost = pl.CostEstimate(
        flops=int(2 * 3 * N * L * cin * cout),
        transcendentals=0,
        bytes_accessed=int(N * L * cin * itm
                           + 3 * cin * cout * w.dtype.itemsize + cout * 4
                           + N * L * cout * itm
                           + (0 if res is None else N * L * cout * itm)),
    )
    return pl.pallas_call(
        functools.partial(_conv_k3_kernel, has_res=res is not None),
        out_shape=jax.ShapeDtypeStruct((N, L, cout), x.dtype),
        grid=grid,
        in_specs=in_specs,
        out_specs=pl.BlockSpec((1, tl, cout), lambda n, i: (n, i, 0)),
        compiler_params=pltpu.CompilerParams(
            dimension_semantics=("parallel", "parallel")),
        cost_estimate=cost,
    )(*args)


def conv1d_k3_selfres_relu_pool(x, w, b, *, tl_max=512):
    """maxpool1d_2(relu(conv1d(x, w, b; k=3, pad=1) + x)).
    x: (N, L, Cin) -> (N, L//2, Cout) with Cin == Cout (self residual)."""
    N, L, cin = x.shape
    cout = w.shape[2]
    assert cin == cout and L % 2 == 0
    htot = L // 2
    ht = _choose_tile(htot, max(tl_max // 2, 8), 8)
    grid = (N, htot // ht)
    xpairs = x.reshape(N, htot, 2, cin)   # free row-major reshape (no HBM pass)
    b2 = b.reshape(1, cout).astype(jnp.float32)

    in_specs = [
        pl.BlockSpec((1, ht, 2, cin), lambda n, i: (n, i, 0, 0)),
        pl.BlockSpec((1, 1, 2, cin),
                     lambda n, i: (n, jnp.maximum(i * ht - 1, 0), 0, 0)),
        pl.BlockSpec((1, 1, 2, cin),
                     lambda n, i: (n, jnp.minimum((i + 1) * ht, htot - 1), 0, 0)),
        pl.BlockSpec((3, cin, cout), lambda n, i: (0, 0, 0)),
        pl.BlockSpec((1, cout), lambda n, i: (0, 0)),
    ]
    itm = x.dtype.itemsize
    cost = pl.CostEstimate(
        flops=int(2 * 3 * N * L * cin * cout),
        transcendentals=0,
        bytes_accessed=int(N * L * cin * itm
                           + 3 * cin * cout * w.dtype.itemsize + cout * 4
                           + N * htot * cout * itm),
    )
    return pl.pallas_call(
        _conv_k3_selfres_pool_kernel,
        out_shape=jax.ShapeDtypeStruct((N, htot, cout), x.dtype),
        grid=grid,
        in_specs=in_specs,
        out_specs=pl.BlockSpec((1, ht, cout), lambda n, i: (n, i, 0)),
        compiler_params=pltpu.CompilerParams(
            dimension_semantics=("parallel", "parallel")),
        cost_estimate=cost,
    )(xpairs, xpairs, xpairs, w, b2)


# --------------------------- parameters / model ----------------------------


def init_params(key, in_channels, dtype=jnp.bfloat16):
    """Weight layout (3, Cin, Cout) == PyTorch (Cout, Cin, 3) transposed."""
    dims = [(in_channels, 512), (512, 512), (512, 128), (128, 128),
            (128, 512), (512, 512), (512, 512)]
    params = []
    for cin, cout in dims:
        kw, kb, key = jax.random.split(key, 3)
        bound = 1.0 / math.sqrt(cin * 3.0)
        w = jax.random.uniform(kw, (3, cin, cout), jnp.float32, -bound, bound)
        b = jax.random.uniform(kb, (cout,), jnp.float32, -bound, bound)
        params.append((w.astype(dtype), b))
    return params


def forward(params, x_ncl, *, tl_max=512):
    """Pallas forward; x_ncl: (N, C_in, L) like PyTorch; returns (N, 512, L//4)."""
    x = jnp.transpose(x_ncl, (0, 2, 1)).astype(jnp.bfloat16)   # (N, L, C)
    (w1, b1), (w2, b2), (w3, b3), (w4, b4), (w5, b5), (w6, b6), (w7, b7) = params

    x = conv1d_k3_relu(x, w1, b1, tl_max=tl_max)               # con_1 + relu
    x = conv1d_k3_selfres_relu_pool(x, w2, b2, tl_max=tl_max)  # con_2 + res_1 + relu + pool
    x = conv1d_k3_relu(x, w3, b3, tl_max=tl_max)               # con_3 + relu
    x = conv1d_k3_selfres_relu_pool(x, w4, b4, tl_max=tl_max)  # con_4 + res_2 + relu + pool
    x = conv1d_k3_relu(x, w5, b5, tl_max=tl_max)               # con_5 + relu
    r3 = x
    x = conv1d_k3_relu(x, w6, b6, tl_max=tl_max)               # con_6 + relu
    x = conv1d_k3_relu(x, w7, b7, res=r3, tl_max=tl_max)       # con_7 + res_3 + relu
    return jnp.transpose(x, (0, 2, 1))                         # (N, 512, L//4)


# ------------------------- pure-JAX reference path --------------------------


def _conv_ref(x, w, b, res=None):
    # mirrors kernel numerics: bf16 inputs/weights, f32 accumulation, relu in f32
    N, L, _ = x.shape
    cout = w.shape[2]
    xp = jnp.pad(x, ((0, 0), (1, 1), (0, 0)))
    acc = jnp.broadcast_to(b[None, None, :].astype(jnp.float32), (N, L, cout))
    for k in range(3):
        acc = acc + jnp.einsum("nlc,co->nlo", xp[:, k:k + L, :], w[k],
                               preferred_element_type=jnp.float32)
    if res is not None:
        acc = acc + res.astype(jnp.float32)
    return jnp.maximum(acc, 0.0)          # f32


def _pool_ref(a):
    N, L, C = a.shape
    return jnp.max(a.reshape(N, L // 2, 2, C), axis=2)


def forward_ref(params, x_ncl):
    x = jnp.transpose(x_ncl, (0, 2, 1)).astype(jnp.bfloat16)
    (w1, b1), (w2, b2), (w3, b3), (w4, b4), (w5, b5), (w6, b6), (w7, b7) = params
    h = _conv_ref(x, w1, b1).astype(jnp.bfloat16)
    h = _pool_ref(_conv_ref(h, w2, b2, res=h)).astype(jnp.bfloat16)
    h = _conv_ref(h, w3, b3).astype(jnp.bfloat16)
    h = _pool_ref(_conv_ref(h, w4, b4, res=h)).astype(jnp.bfloat16)
    h = _conv_ref(h, w5, b5).astype(jnp.bfloat16)
    r3 = h
    h = _conv_ref(h, w6, b6).astype(jnp.bfloat16)
    h = _conv_ref(h, w7, b7, res=r3).astype(jnp.bfloat16)
    return jnp.transpose(h, (0, 2, 1))


# ----------------------------------- main -----------------------------------


if __name__ == "__main__":
    key = jax.random.PRNGKey(0)
    kx, kp = jax.random.split(key)

    N, C_in, L = 2, 4, 32               # small; every stage length is a multiple of 8
    x = jax.random.normal(kx, (N, C_in, L), jnp.float32)
    params = init_params(kp, C_in)

    # tl_max=16 forces multiple L-tiles so the halo / multi-tile path is exercised.
    fwd = jax.jit(functools.partial(forward, tl_max=16))
    out = jax.block_until_ready(fwd(params, x))
    assert out.shape == (N, 512, L // 4), out.shape

    ref = forward_ref(params, x)
    a = out.astype(jnp.float32)
    r = ref.astype(jnp.float32)
    max_err = float(jnp.max(jnp.abs(a - r)))
    assert jnp.allclose(a, r, atol=5e-2, rtol=5e-2), (
        f"mismatch vs reference (max abs err={max_err})")

    print("KERNEL_OK")
</pallas_src>

<mosaic_0001>
module attributes {stable_mosaic.version = 11 : i64} {
  func.func @_conv_k3_kernel(%arg0: i32, %arg1: i32, %arg2: memref<1x16x4xbf16, #tpu.memory_space<vmem>>, %arg3: memref<1x8x4xbf16, #tpu.memory_space<vmem>>, %arg4: memref<1x8x4xbf16, #tpu.memory_space<vmem>>, %arg5: memref<3x4x512xbf16, #tpu.memory_space<vmem>>, %arg6: memref<1x512xf32, #tpu.memory_space<vmem>>, %arg7: memref<1x16x512xbf16, #tpu.memory_space<vmem>>) attributes {dimension_semantics = [#tpu.dimension_semantics<parallel>, #tpu.dimension_semantics<parallel>], iteration_bounds = array<i64: 2, 2>, scalar_prefetch = 0 : i64, scratch_operands = 0 : i64, tpu.core_type = #tpu.core_type<tc>, window_params = [{transform_indices = @transform_0, window_bounds = array<i64: 1, 16, 4>}, {transform_indices = @transform_1, window_bounds = array<i64: 1, 8, 4>}, {transform_indices = @transform_2, window_bounds = array<i64: 1, 8, 4>}, {pipeline_mode = #tpu.pipeline_mode<synchronous>, transform_indices = @transform_3, window_bounds = array<i64: 3, 4, 512>}, {pipeline_mode = #tpu.pipeline_mode<synchronous>, transform_indices = @transform_4, window_bounds = array<i64: 1, 512>}, {transform_indices = @transform_5, window_bounds = array<i64: 1, 16, 512>}]} {
    %c0 = arith.constant 0 : index
    %c0_0 = arith.constant 0 : index
    %c0_1 = arith.constant 0 : index
    %0 = vector.load %arg2[%c0, %c0_0, %c0_1] : memref<1x16x4xbf16, #tpu.memory_space<vmem>>, vector<1x16x4xbf16>
    %1 = vector.shape_cast %0 : vector<1x16x4xbf16> to vector<16x4xbf16>
    %c0_2 = arith.constant 0 : index
    %c0_3 = arith.constant 0 : index
    %c0_4 = arith.constant 0 : index
    %2 = vector.load %arg3[%c0_2, %c0_3, %c0_4] : memref<1x8x4xbf16, #tpu.memory_space<vmem>>, vector<1x8x4xbf16>
    %3 = vector.shape_cast %2 : vector<1x8x4xbf16> to vector<8x4xbf16>
    %4 = vector.extract_strided_slice %3 {offsets = [7, 0], sizes = [1, 4], strides = [1, 1]} : vector<8x4xbf16> to vector<1x4xbf16>
    %c0_5 = arith.constant 0 : index
    %c0_6 = arith.constant 0 : index
    %c0_7 = arith.constant 0 : index
    %5 = vector.load %arg4[%c0_5, %c0_6, %c0_7] : memref<1x8x4xbf16, #tpu.memory_space<vmem>>, vector<1x8x4xbf16>
    %6 = vector.shape_cast %5 : vector<1x8x4xbf16> to vector<8x4xbf16>
    %7 = vector.extract_strided_slice %6 {offsets = [0, 0], sizes = [1, 4], strides = [1, 1]} : vector<8x4xbf16> to vector<1x4xbf16>
    %c0_i32 = arith.constant 0 : i32
    %8 = arith.cmpi eq, %arg1, %c0_i32 : i32
    %cst = arith.constant 0.000000e+00 : bf16
    %9 = vector.broadcast %cst : bf16 to vector<1x4xbf16>
    %10 = arith.select %8, %9, %4 : vector<1x4xbf16>
    %c1_i32 = arith.constant 1 : i32
    %11 = arith.cmpi eq, %arg1, %c1_i32 : i32
    %cst_8 = arith.constant 0.000000e+00 : bf16
    %12 = vector.broadcast %cst_8 : bf16 to vector<1x4xbf16>
    %13 = arith.select %11, %12, %7 : vector<1x4xbf16>
    %14 = tpu.concatenate %10, %1, %13 in 0 : vector<1x4xbf16>, vector<16x4xbf16>, vector<1x4xbf16> -> vector<18x4xbf16>
    %c0_9 = arith.constant 0 : index
    %c0_10 = arith.constant 0 : index
    %15 = vector.load %arg6[%c0_9, %c0_10] : memref<1x512xf32, #tpu.memory_space<vmem>>, vector<1x512xf32>
    %16 = vector.shape_cast %15 : vector<1x512xf32> to vector<1x512xf32>
    %17 = vector.broadcast %16 : vector<1x512xf32> to vector<16x512xf32>
    %18 = vector.extract_strided_slice %14 {offsets = [0, 0], sizes = [16, 4], strides = [1, 1]} : vector<18x4xbf16> to vector<16x4xbf16>
    %c0_11 = arith.constant 0 : index
    %c0_12 = arith.constant 0 : index
    %c0_13 = arith.constant 0 : index
    %19 = vector.load %arg5[%c0_11, %c0_12, %c0_13] : memref<3x4x512xbf16, #tpu.memory_space<vmem>>, vector<1x4x512xbf16>
    %20 = vector.shape_cast %19 : vector<1x4x512xbf16> to vector<4x512xbf16>
    %cst_14 = arith.constant dense<0.000000e+00> : vector<16x512xf32>
    %21 = tpu.matmul %18, %20, %cst_14 {dimension_numbers = #tpu.dot_dimension_numbers<[1], [0], [0], [1], [0, 0, 1, 1], [], []>} : vector<16x4xbf16>, vector<4x512xbf16>, vector<16x512xf32> -> vector<16x512xf32>
    %22 = arith.addf %17, %21 : vector<16x512xf32>
    %23 = vector.extract_strided_slice %14 {offsets = [1, 0], sizes = [16, 4], strides = [1, 1]} : vector<18x4xbf16> to vector<16x4xbf16>
    %c1 = arith.constant 1 : index
    %c0_15 = arith.constant 0 : index
    %c0_16 = arith.constant 0 : index
    %24 = vector.load %arg5[%c1, %c0_15, %c0_16] : memref<3x4x512xbf16, #tpu.memory_space<vmem>>, vector<1x4x512xbf16>
    %25 = vector.shape_cast %24 : vector<1x4x512xbf16> to vector<4x512xbf16>
    %cst_17 = arith.constant dense<0.000000e+00> : vector<16x512xf32>
    %26 = tpu.matmul %23, %25, %cst_17 {dimension_numbers = #tpu.dot_dimension_numbers<[1], [0], [0], [1], [0, 0, 1, 1], [], []>} : vector<16x4xbf16>, vector<4x512xbf16>, vector<16x512xf32> -> vector<16x512xf32>
    %27 = arith.addf %22, %26 : vector<16x512xf32>
    %28 = vector.extract_strided_slice %14 {offsets = [2, 0], sizes = [16, 4], strides = [1, 1]} : vector<18x4xbf16> to vector<16x4xbf16>
    %c2 = arith.constant 2 : index
    %c0_18 = arith.constant 0 : index
    %c0_19 = arith.constant 0 : index
    %29 = vector.load %arg5[%c2, %c0_18, %c0_19] : memref<3x4x512xbf16, #tpu.memory_space<vmem>>, vector<1x4x512xbf16>
    %30 = vector.shape_cast %29 : vector<1x4x512xbf16> to vector<4x512xbf16>
    %cst_20 = arith.constant dense<0.000000e+00> : vector<16x512xf32>
    %31 = tpu.matmul %28, %30, %cst_20 {dimension_numbers = #tpu.dot_dimension_numbers<[1], [0], [0], [1], [0, 0, 1, 1], [], []>} : vector<16x4xbf16>, vector<4x512xbf16>, vector<16x512xf32> -> vector<16x512xf32>
    %32 = arith.addf %27, %31 : vector<16x512xf32>
    %cst_21 = arith.constant 0.000000e+00 : f32
    %33 = vector.broadcast %cst_21 : f32 to vector<16x512xf32>
    %34 = arith.maximumf %32, %33 : vector<16x512xf32>
    %35 = arith.truncf %34 : vector<16x512xf32> to vector<16x512xbf16>
    %c0_22 = arith.constant 0 : index
    %c0_23 = arith.constant 0 : index
    %c0_24 = arith.constant 0 : index
    %36 = vector.load %arg7[%c0_22, %c0_23, %c0_24] : memref<1x16x512xbf16, #tpu.memory_space<vmem>>, vector<1x16x512xbf16>
    %37 = vector.shape_cast %36 : vector<1x16x512xbf16> to vector<16x512xbf16>
    %38 = vector.shape_cast %35 : vector<16x512xbf16> to vector<1x16x512xbf16>
    tpu.vector_store %arg7[%c0_22, %c0_23, %c0_24], %38 {strides = array<i32>} : memref<1x16x512xbf16, #tpu.memory_space<vmem>>, vector<1x16x512xbf16>,
    return
  }
  func.func @transform_0(%arg0: i32, %arg1: i32) -> (i32, i32, i32) {
    %c0_i32 = arith.constant 0 : i32
    %c0_i32_0 = arith.constant 0 : i32
    return %arg0, %arg1, %c0_i32 : i32, i32, i32
  }
  func.func @transform_1(%arg0: i32, %arg1: i32) -> (i32, i32, i32) {
    %c2_i32 = arith.constant 2 : i32
    %0 = arith.muli %arg1, %c2_i32 : i32
    %c1_i32 = arith.constant 1 : i32
    %1 = arith.subi %0, %c1_i32 : i32
    %c0_i32 = arith.constant 0 : i32
    %2 = arith.maxsi %1, %c0_i32 : i32
    %c0_i32_0 = arith.constant 0 : i32
    %c0_i32_1 = arith.constant 0 : i32
    return %arg0, %2, %c0_i32_0 : i32, i32, i32
  }
  func.func @transform_2(%arg0: i32, %arg1: i32) -> (i32, i32, i32) {
    %c1_i32 = arith.constant 1 : i32
    %0 = arith.addi %arg1, %c1_i32 : i32
    %c2_i32 = arith.constant 2 : i32
    %1 = arith.muli %0, %c2_i32 : i32
    %c3_i32 = arith.constant 3 : i32
    %2 = arith.minsi %1, %c3_i32 : i32
    %c0_i32 = arith.constant 0 : i32
    %c0_i32_0 = arith.constant 0 : i32
    return %arg0, %2, %c0_i32 : i32, i32, i32
  }
  func.func @transform_3(%arg0: i32, %arg1: i32) -> (i32, i32, i32) {
    %c0_i32 = arith.constant 0 : i32
    %c0_i32_0 = arith.constant 0 : i32
    %c0_i32_1 = arith.constant 0 : i32
    %c0_i32_2 = arith.constant 0 : i32
    return %c0_i32, %c0_i32_0, %c0_i32_1 : i32, i32, i32
  }
  func.func @transform_4(%arg0: i32, %arg1: i32) -> (i32, i32) {
    %c0_i32 = arith.constant 0 : i32
    %c0_i32_0 = arith.constant 0 : i32
    %c0_i32_1 = arith.constant 0 : i32
    return %c0_i32, %c0_i32_0 : i32, i32
  }
  func.func @transform_5(%arg0: i32, %arg1: i32) -> (i32, i32, i32) {
    %c0_i32 = arith.constant 0 : i32
    %c0_i32_0 = arith.constant 0 : i32
    return %arg0, %arg1, %c0_i32 : i32, i32, i32
  }
}

module attributes {stable_mosaic.version = 11 : i64} {
  func.func @_conv_k3_selfres_pool_kernel(%arg0: i32, %arg1: i32, %arg2: memref<1x8x2x512xbf16, #tpu.memory_space<vmem>>, %arg3: memref<1x1x2x512xbf16, #tpu.memory_space<vmem>>, %arg4: memref<1x1x2x512xbf16, #tpu.memory_space<vmem>>, %arg5: memref<3x512x512xbf16, #tpu.memory_space<vmem>>, %arg6: memref<1x512xf32, #tpu.memory_space<vmem>>, %arg7: memref<1x8x512xbf16, #tpu.memory_space<vmem>>) attributes {dimension_semantics = [#tpu.dimension_semantics<parallel>, #tpu.dimension_semantics<parallel>], iteration_bounds = array<i64: 2, 2>, scalar_prefetch = 0 : i64, scratch_operands = 0 : i64, tpu.core_type = #tpu.core_type<tc>, window_params = [{transform_indices = @transform_0, window_bounds = array<i64: 1, 8, 2, 512>}, {transform_indices = @transform_1, window_bounds = array<i64: 1, 1, 2, 512>}, {transform_indices = @transform_2, window_bounds = array<i64: 1, 1, 2, 512>}, {pipeline_mode = #tpu.pipeline_mode<synchronous>, transform_indices = @transform_3, window_bounds = array<i64: 3, 512, 512>}, {pipeline_mode = #tpu.pipeline_mode<synchronous>, transform_indices = @transform_4, window_bounds = array<i64: 1, 512>}, {transform_indices = @transform_5, window_bounds = array<i64: 1, 8, 512>}]} {
    %c0 = arith.constant 0 : index
    %c0_0 = arith.constant 0 : index
    %c0_1 = arith.constant 0 : index
    %c0_2 = arith.constant 0 : index
    %0 = vector.load %arg2[%c0, %c0_0, %c0_1, %c0_2] : memref<1x8x2x512xbf16, #tpu.memory_space<vmem>>, vector<1x8x1x512xbf16>
    %1 = vector.shape_cast %0 : vector<1x8x1x512xbf16> to vector<8x512xbf16>
    %c0_3 = arith.constant 0 : index
    %c0_4 = arith.constant 0 : index
    %c1 = arith.constant 1 : index
    %c0_5 = arith.constant 0 : index
    %2 = vector.load %arg2[%c0_3, %c0_4, %c1, %c0_5] : memref<1x8x2x512xbf16, #tpu.memory_space<vmem>>, vector<1x8x1x512xbf16>
    %3 = vector.shape_cast %2 : vector<1x8x1x512xbf16> to vector<8x512xbf16>
    %c0_6 = arith.constant 0 : index
    %c0_7 = arith.constant 0 : index
    %c0_8 = arith.constant 0 : index
    %c0_9 = arith.constant 0 : index
    %4 = vector.load %arg3[%c0_6, %c0_7, %c0_8, %c0_9] : memref<1x1x2x512xbf16, #tpu.memory_space<vmem>>, vector<1x1x2x512xbf16>
    %5 = vector.shape_cast %4 : vector<1x1x2x512xbf16> to vector<1x2x512xbf16>
    %6 = vector.extract_strided_slice %5 {offsets = [0, 1, 0], sizes = [1, 1, 512], strides = [1, 1, 1]} : vector<1x2x512xbf16> to vector<1x1x512xbf16>
    %7 = vector.shape_cast %6 : vector<1x1x512xbf16> to vector<1x512xbf16>
    %c0_10 = arith.constant 0 : index
    %c0_11 = arith.constant 0 : index
    %c0_12 = arith.constant 0 : index
    %c0_13 = arith.constant 0 : index
    %8 = vector.load %arg4[%c0_10, %c0_11, %c0_12, %c0_13] : memref<1x1x2x512xbf16, #tpu.memory_space<vmem>>, vector<1x1x2x512xbf16>
    %9 = vector.shape_cast %8 : vector<1x1x2x512xbf16> to vector<1x2x512xbf16>
    %10 = vector.extract_strided_slice %9 {offsets = [0, 0, 0], sizes = [1, 1, 512], strides = [1, 1, 1]} : vector<1x2x512xbf16> to vector<1x1x512xbf16>
    %11 = vector.shape_cast %10 : vector<1x1x512xbf16> to vector<1x512xbf16>
    %c0_i32 = arith.constant 0 : i32
    %12 = arith.cmpi eq, %arg1, %c0_i32 : i32
    %cst = arith.constant 0.000000e+00 : bf16
    %13 = vector.broadcast %cst : bf16 to vector<1x512xbf16>
    %14 = arith.select %12, %13, %7 : vector<1x512xbf16>
    %c1_i32 = arith.constant 1 : i32
    %15 = arith.cmpi eq, %arg1, %c1_i32 : i32
    %cst_14 = arith.constant 0.000000e+00 : bf16
    %16 = vector.broadcast %cst_14 : bf16 to vector<1x512xbf16>
    %17 = arith.select %15, %16, %11 : vector<1x512xbf16>
    %18 = vector.extract_strided_slice %3 {offsets = [0, 0], sizes = [7, 512], strides = [1, 1]} : vector<8x512xbf16> to vector<7x512xbf16>
    %19 = tpu.concatenate %14, %18 in 0 : vector<1x512xbf16>, vector<7x512xbf16> -> vector<8x512xbf16>
    %20 = vector.extract_strided_slice %1 {offsets = [1, 0], sizes = [7, 512], strides = [1, 1]} : vector<8x512xbf16> to vector<7x512xbf16>
    %21 = tpu.concatenate %20, %17 in 0 : vector<7x512xbf16>, vector<1x512xbf16> -> vector<8x512xbf16>
    %c0_15 = arith.constant 0 : index
    %c0_16 = arith.constant 0 : index
    %22 = vector.load %arg6[%c0_15, %c0_16] : memref<1x512xf32, #tpu.memory_space<vmem>>, vector<1x512xf32>
    %c0_17 = arith.constant 0 : index
    %c0_18 = arith.constant 0 : index
    %c0_19 = arith.constant 0 : index
    %23 = vector.load %arg5[%c0_17, %c0_18, %c0_19] : memref<3x512x512xbf16, #tpu.memory_space<vmem>>, vector<1x512x512xbf16>
    %24 = vector.shape_cast %23 : vector<1x512x512xbf16> to vector<512x512xbf16>
    %c1_20 = arith.constant 1 : index
    %c0_21 = arith.constant 0 : index
    %c0_22 = arith.constant 0 : index
    %25 = vector.load %arg5[%c1_20, %c0_21, %c0_22] : memref<3x512x512xbf16, #tpu.memory_space<vmem>>, vector<1x512x512xbf16>
    %26 = vector.shape_cast %25 : vector<1x512x512xbf16> to vector<512x512xbf16>
    %c2 = arith.constant 2 : index
    %c0_23 = arith.constant 0 : index
    %c0_24 = arith.constant 0 : index
    %27 = vector.load %arg5[%c2, %c0_23, %c0_24] : memref<3x512x512xbf16, #tpu.memory_space<vmem>>, vector<1x512x512xbf16>
    %28 = vector.shape_cast %27 : vector<1x512x512xbf16> to vector<512x512xbf16>
    %cst_25 = arith.constant dense<0.000000e+00> : vector<8x512xf32>
    %29 = tpu.matmul %19, %24, %cst_25 {dimension_numbers = #tpu.dot_dimension_numbers<[1], [0], [0], [1], [0, 0, 1, 1], [], []>} : vector<8x512xbf16>, vector<512x512xbf16>, vector<8x512xf32> -> vector<8x512xf32>
    %cst_26 = arith.constant dense<0.000000e+00> : vector<8x512xf32>
    %30 = tpu.matmul %1, %26, %cst_26 {dimension_numbers = #tpu.dot_dimension_numbers<[1], [0], [0], [1], [0, 0, 1, 1], [], []>} : vector<8x512xbf16>, vector<512x512xbf16>, vector<8x512xf32> -> vector<8x512xf32>
    %31 = arith.addf %29, %30 : vector<8x512xf32>
    %cst_27 = arith.constant dense<0.000000e+00> : vector<8x512xf32>
    %32 = tpu.matmul %3, %28, %cst_27 {dimension_numbers = #tpu.dot_dimension_numbers<[1], [0], [0], [1], [0, 0, 1, 1], [], []>} : vector<8x512xbf16>, vector<512x512xbf16>, vector<8x512xf32> -> vector<8x512xf32>
    %33 = arith.addf %31, %32 : vector<8x512xf32>
    %34 = vector.broadcast %22 : vector<1x512xf32> to vector<8x512xf32>
    %35 = arith.addf %33, %34 : vector<8x512xf32>
    %36 = arith.extf %1 : vector<8x512xbf16> to vector<8x512xf32>
    %37 = arith.addf %35, %36 : vector<8x512xf32>
    %cst_28 = arith.constant dense<0.000000e+00> : vector<8x512xf32>
    %38 = tpu.matmul %1, %24, %cst_28 {dimension_numbers = #tpu.dot_dimension_numbers<[1], [0], [0], [1], [0, 0, 1, 1], [], []>} : vector<8x512xbf16>, vector<512x512xbf16>, vector<8x512xf32> -> vector<8x512xf32>
    %cst_29 = arith.constant dense<0.000000e+00> : vector<8x512xf32>
    %39 = tpu.matmul %3, %26, %cst_29 {dimension_numbers = #tpu.dot_dimension_numbers<[1], [0], [0], [1], [0, 0, 1, 1], [], []>} : vector<8x512xbf16>, vector<512x512xbf16>, vector<8x512xf32> -> vector<8x512xf32>
    %40 = arith.addf %38, %39 : vector<8x512xf32>
    %cst_30 = arith.constant dense<0.000000e+00> : vector<8x512xf32>
    %41 = tpu.matmul %21, %28, %cst_30 {dimension_numbers = #tpu.dot_dimension_numbers<[1], [0], [0], [1], [0, 0, 1, 1], [], []>} : vector<8x512xbf16>, vector<512x512xbf16>, vector<8x512xf32> -> vector<8x512xf32>
    %42 = arith.addf %40, %41 : vector<8x512xf32>
    %43 = vector.broadcast %22 : vector<1x512xf32> to vector<8x512xf32>
    %44 = arith.addf %42, %43 : vector<8x512xf32>
    %45 = arith.extf %3 : vector<8x512xbf16> to vector<8x512xf32>
    %46 = arith.addf %44, %45 : vector<8x512xf32>
    %cst_31 = arith.constant 0.000000e+00 : f32
    %47 = vector.broadcast %cst_31 : f32 to vector<8x512xf32>
    %48 = arith.maximumf %37, %47 : vector<8x512xf32>
    %cst_32 = arith.constant 0.000000e+00 : f32
    %49 = vector.broadcast %cst_32 : f32 to vector<8x512xf32>
    %50 = arith.maximumf %46, %49 : vector<8x512xf32>
    %51 = arith.maximumf %48, %50 : vector<8x512xf32>
    %52 = arith.truncf %51 : vector<8x512xf32> to vector<8x512xbf16>
    %c0_33 = arith.constant 0 : index
    %c0_34 = arith.constant 0 : index
    %c0_35 = arith.constant 0 : index
    %53 = vector.load %arg7[%c0_33, %c0_34, %c0_35] : memref<1x8x512xbf16, #tpu.memory_space<vmem>>, vector<1x8x512xbf16>
    %54 = vector.shape_cast %53 : vector<1x8x512xbf16> to vector<8x512xbf16>
    %55 = vector.shape_cast %52 : vector<8x512xbf16> to vector<1x8x512xbf16>
    tpu.vector_store %arg7[%c0_33, %c0_34, %c0_35], %55 {strides = array<i32>} : memref<1x8x512xbf16, #tpu.memory_space<vmem>>, vector<1x8x512xbf16>,
    return
  }
  func.func @transform_0(%arg0: i32, %arg1: i32) -> (i32, i32, i32, i32) {
    %c0_i32 = arith.constant 0 : i32
    %c0_i32_0 = arith.constant 0 : i32
    %c0_i32_1 = arith.constant 0 : i32
    return %arg0, %arg1, %c0_i32, %c0_i32_0 : i32, i32, i32, i32
  }
  func.func @transform_1(%arg0: i32, %arg1: i32) -> (i32, i32, i32, i32) {
    %c8_i32 = arith.constant 8 : i32
    %0 = arith.muli %arg1, %c8_i32 : i32
    %c1_i32 = arith.constant 1 : i32
    %1 = arith.subi %0, %c1_i32 : i32
    %c0_i32 = arith.constant 0 : i32
    %2 = arith.maxsi %1, %c0_i32 : i32
    %c0_i32_0 = arith.constant 0 : i32
    %c0_i32_1 = arith.constant 0 : i32
    %c0_i32_2 = arith.constant 0 : i32
    return %arg0, %2, %c0_i32_0, %c0_i32_1 : i32, i32, i32, i32
  }
  func.func @transform_2(%arg0: i32, %arg1: i32) -> (i32, i32, i32, i32) {
    %c1_i32 = arith.constant 1 : i32
    %0 = arith.addi %arg1, %c1_i32 : i32
    %c8_i32 = arith.constant 8 : i32
    %1 = arith.muli %0, %c8_i32 : i32
    %c15_i32 = arith.constant 15 : i32
    %2 = arith.minsi %1, %c15_i32 : i32
    %c0_i32 = arith.constant 0 : i32
    %c0_i32_0 = arith.constant 0 : i32
    %c0_i32_1 = arith.constant 0 : i32
    return %arg0, %2, %c0_i32, %c0_i32_0 : i32, i32, i32, i32
  }
  func.func @transform_3(%arg0: i32, %arg1: i32) -> (i32, i32, i32) {
    %c0_i32 = arith.constant 0 : i32
    %c0_i32_0 = arith.constant 0 : i32
    %c0_i32_1 = arith.constant 0 : i32
    %c0_i32_2 = arith.constant 0 : i32
    return %c0_i32, %c0_i32_0, %c0_i32_1 : i32, i32, i32
  }
  func.func @transform_4(%arg0: i32, %arg1: i32) -> (i32, i32) {
    %c0_i32 = arith.constant 0 : i32
    %c0_i32_0 = arith.constant 0 : i32
    %c0_i32_1 = arith.constant 0 : i32
    return %c0_i32, %c0_i32_0 : i32, i32
  }
  func.func @transform_5(%arg0: i32, %arg1: i32) -> (i32, i32, i32) {
    %c0_i32 = arith.constant 0 : i32
    %c0_i32_0 = arith.constant 0 : i32
    return %arg0, %arg1, %c0_i32 : i32, i32, i32
  }
}

module attributes {stable_mosaic.version = 11 : i64} {
  func.func @_conv_k3_kernel(%arg0: i32, %arg1: i32, %arg2: memref<1x16x512xbf16, #tpu.memory_space<vmem>>, %arg3: memref<1x8x512xbf16, #tpu.memory_space<vmem>>, %arg4: memref<1x8x512xbf16, #tpu.memory_space<vmem>>, %arg5: memref<3x512x128xbf16, #tpu.memory_space<vmem>>, %arg6: memref<1x128xf32, #tpu.memory_space<vmem>>, %arg7: memref<1x16x128xbf16, #tpu.memory_space<vmem>>) attributes {dimension_semantics = [#tpu.dimension_semantics<parallel>, #tpu.dimension_semantics<parallel>], iteration_bounds = array<i64: 2, 1>, scalar_prefetch = 0 : i64, scratch_operands = 0 : i64, tpu.core_type = #tpu.core_type<tc>, window_params = [{transform_indices = @transform_0, window_bounds = array<i64: 1, 16, 512>}, {transform_indices = @transform_1, window_bounds = array<i64: 1, 8, 512>}, {transform_indices = @transform_2, window_bounds = array<i64: 1, 8, 512>}, {pipeline_mode = #tpu.pipeline_mode<synchronous>, transform_indices = @transform_3, window_bounds = array<i64: 3, 512, 128>}, {pipeline_mode = #tpu.pipeline_mode<synchronous>, transform_indices = @transform_4, window_bounds = array<i64: 1, 128>}, {transform_indices = @transform_5, window_bounds = array<i64: 1, 16, 128>}]} {
    %c0 = arith.constant 0 : index
    %c0_0 = arith.constant 0 : index
    %c0_1 = arith.constant 0 : index
    %0 = vector.load %arg2[%c0, %c0_0, %c0_1] : memref<1x16x512xbf16, #tpu.memory_space<vmem>>, vector<1x16x512xbf16>
    %1 = vector.shape_cast %0 : vector<1x16x512xbf16> to vector<16x512xbf16>
    %c0_2 = arith.constant 0 : index
    %c0_3 = arith.constant 0 : index
    %c0_4 = arith.constant 0 : index
    %2 = vector.load %arg3[%c0_2, %c0_3, %c0_4] : memref<1x8x512xbf16, #tpu.memory_space<vmem>>, vector<1x8x512xbf16>
    %3 = vector.shape_cast %2 : vector<1x8x512xbf16> to vector<8x512xbf16>
    %4 = vector.extract_strided_slice %3 {offsets = [7, 0], sizes = [1, 512], strides = [1, 1]} : vector<8x512xbf16> to vector<1x512xbf16>
    %c0_5 = arith.constant 0 : index
    %c0_6 = arith.constant 0 : index
    %c0_7 = arith.constant 0 : index
    %5 = vector.load %arg4[%c0_5, %c0_6, %c0_7] : memref<1x8x512xbf16, #tpu.memory_space<vmem>>, vector<1x8x512xbf16>
    %6 = vector.shape_cast %5 : vector<1x8x512xbf16> to vector<8x512xbf16>
    %7 = vector.extract_strided_slice %6 {offsets = [0, 0], sizes = [1, 512], strides = [1, 1]} : vector<8x512xbf16> to vector<1x512xbf16>
    %c0_i32 = arith.constant 0 : i32
    %8 = arith.cmpi eq, %arg1, %c0_i32 : i32
    %cst = arith.constant 0.000000e+00 : bf16
    %9 = vector.broadcast %cst : bf16 to vector<1x512xbf16>
    %10 = arith.select %8, %9, %4 : vector<1x512xbf16>
    %c0_i32_8 = arith.constant 0 : i32
    %11 = arith.cmpi eq, %arg1, %c0_i32_8 : i32
    %cst_9 = arith.constant 0.000000e+00 : bf16
    %12 = vector.broadcast %cst_9 : bf16 to vector<1x512xbf16>
    %13 = arith.select %11, %12, %7 : vector<1x512xbf16>
    %14 = tpu.concatenate %10, %1, %13 in 0 : vector<1x512xbf16>, vector<16x512xbf16>, vector<1x512xbf16> -> vector<18x512xbf16>
    %c0_10 = arith.constant 0 : index
    %c0_11 = arith.constant 0 : index
    %15 = vector.load %arg6[%c0_10, %c0_11] : memref<1x128xf32, #tpu.memory_space<vmem>>, vector<1x128xf32>
    %16 = vector.shape_cast %15 : vector<1x128xf32> to vector<1x128xf32>
    %17 = vector.broadcast %16 : vector<1x128xf32> to vector<16x128xf32>
    %18 = vector.extract_strided_slice %14 {offsets = [0, 0], sizes = [16, 512], strides = [1, 1]} : vector<18x512xbf16> to vector<16x512xbf16>
    %c0_12 = arith.constant 0 : index
    %c0_13 = arith.constant 0 : index
    %c0_14 = arith.constant 0 : index
    %19 = vector.load %arg5[%c0_12, %c0_13, %c0_14] : memref<3x512x128xbf16, #tpu.memory_space<vmem>>, vector<1x512x128xbf16>
    %20 = vector.shape_cast %19 : vector<1x512x128xbf16> to vector<512x128xbf16>
    %cst_15 = arith.constant dense<0.000000e+00> : vector<16x128xf32>
    %21 = tpu.matmul %18, %20, %cst_15 {dimension_numbers = #tpu.dot_dimension_numbers<[1], [0], [0], [1], [0, 0, 1, 1], [], []>} : vector<16x512xbf16>, vector<512x128xbf16>, vector<16x128xf32> -> vector<16x128xf32>
    %22 = arith.addf %17, %21 : vector<16x128xf32>
    %23 = vector.extract_strided_slice %14 {offsets = [1, 0], sizes = [16, 512], strides = [1, 1]} : vector<18x512xbf16> to vector<16x512xbf16>
    %c1 = arith.constant 1 : index
    %c0_16 = arith.constant 0 : index
    %c0_17 = arith.constant 0 : index
    %24 = vector.load %arg5[%c1, %c0_16, %c0_17] : memref<3x512x128xbf16, #tpu.memory_space<vmem>>, vector<1x512x128xbf16>
    %25 = vector.shape_cast %24 : vector<1x512x128xbf16> to vector<512x128xbf16>
    %cst_18 = arith.constant dense<0.000000e+00> : vector<16x128xf32>
    %26 = tpu.matmul %23, %25, %cst_18 {dimension_numbers = #tpu.dot_dimension_numbers<[1], [0], [0], [1], [0, 0, 1, 1], [], []>} : vector<16x512xbf16>, vector<512x128xbf16>, vector<16x128xf32> -> vector<16x128xf32>
    %27 = arith.addf %22, %26 : vector<16x128xf32>
    %28 = vector.extract_strided_slice %14 {offsets = [2, 0], sizes = [16, 512], strides = [1, 1]} : vector<18x512xbf16> to vector<16x512xbf16>
    %c2 = arith.constant 2 : index
    %c0_19 = arith.constant 0 : index
    %c0_20 = arith.constant 0 : index
    %29 = vector.load %arg5[%c2, %c0_19, %c0_20] : memref<3x512x128xbf16, #tpu.memory_space<vmem>>, vector<1x512x128xbf16>
    %30 = vector.shape_cast %29 : vector<1x512x128xbf16> to vector<512x128xbf16>
    %cst_21 = arith.constant dense<0.000000e+00> : vector<16x128xf32>
    %31 = tpu.matmul %28, %30, %cst_21 {dimension_numbers = #tpu.dot_dimension_numbers<[1], [0], [0], [1], [0, 0, 1, 1], [], []>} : vector<16x512xbf16>, vector<512x128xbf16>, vector<16x128xf32> -> vector<16x128xf32>
    %32 = arith.addf %27, %31 : vector<16x128xf32>
    %cst_22 = arith.constant 0.000000e+00 : f32
    %33 = vector.broadcast %cst_22 : f32 to vector<16x128xf32>
    %34 = arith.maximumf %32, %33 : vector<16x128xf32>
    %35 = arith.truncf %34 : vector<16x128xf32> to vector<16x128xbf16>
    %c0_23 = arith.constant 0 : index
    %c0_24 = arith.constant 0 : index
    %c0_25 = arith.constant 0 : index
    %36 = vector.load %arg7[%c0_23, %c0_24, %c0_25] : memref<1x16x128xbf16, #tpu.memory_space<vmem>>, vector<1x16x128xbf16>
    %37 = vector.shape_cast %36 : vector<1x16x128xbf16> to vector<16x128xbf16>
    %38 = vector.shape_cast %35 : vector<16x128xbf16> to vector<1x16x128xbf16>
    tpu.vector_store %arg7[%c0_23, %c0_24, %c0_25], %38 {strides = array<i32>} : memref<1x16x128xbf16, #tpu.memory_space<vmem>>, vector<1x16x128xbf16>,
    return
  }
  func.func @transform_0(%arg0: i32, %arg1: i32) -> (i32, i32, i32) {
    %c0_i32 = arith.constant 0 : i32
    %c0_i32_0 = arith.constant 0 : i32
    return %arg0, %arg1, %c0_i32 : i32, i32, i32
  }
  func.func @transform_1(%arg0: i32, %arg1: i32) -> (i32, i32, i32) {
    %c2_i32 = arith.constant 2 : i32
    %0 = arith.muli %arg1, %c2_i32 : i32
    %c1_i32 = arith.constant 1 : i32
    %1 = arith.subi %0, %c1_i32 : i32
    %c0_i32 = arith.constant 0 : i32
    %2 = arith.maxsi %1, %c0_i32 : i32
    %c0_i32_0 = arith.constant 0 : i32
    %c0_i32_1 = arith.constant 0 : i32
    return %arg0, %2, %c0_i32_0 : i32, i32, i32
  }
  func.func @transform_2(%arg0: i32, %arg1: i32) -> (i32, i32, i32) {
    %c1_i32 = arith.constant 1 : i32
    %0 = arith.addi %arg1, %c1_i32 : i32
    %c2_i32 = arith.constant 2 : i32
    %1 = arith.muli %0, %c2_i32 : i32
    %c1_i32_0 = arith.constant 1 : i32
    %2 = arith.minsi %1, %c1_i32_0 : i32
    %c0_i32 = arith.constant 0 : i32
    %c0_i32_1 = arith.constant 0 : i32
    return %arg0, %2, %c0_i32 : i32, i32, i32
  }
  func.func @transform_3(%arg0: i32, %arg1: i32) -> (i32, i32, i32) {
    %c0_i32 = arith.constant 0 : i32
    %c0_i32_0 = arith.constant 0 : i32
    %c0_i32_1 = arith.constant 0 : i32
    %c0_i32_2 = arith.constant 0 : i32
    return %c0_i32, %c0_i32_0, %c0_i32_1 : i32, i32, i32
  }
  func.func @transform_4(%arg0: i32, %arg1: i32) -> (i32, i32) {
    %c0_i32 = arith.constant 0 : i32
    %c0_i32_0 = arith.constant 0 : i32
    %c0_i32_1 = arith.constant 0 : i32
    return %c0_i32, %c0_i32_0 : i32, i32
  }
  func.func @transform_5(%arg0: i32, %arg1: i32) -> (i32, i32, i32) {
    %c0_i32 = arith.constant 0 : i32
    %c0_i32_0 = arith.constant 0 : i32
    return %arg0, %arg1, %c0_i32 : i32, i32, i32
  }
}

module attributes {stable_mosaic.version = 11 : i64} {
  func.func @_conv_k3_selfres_pool_kernel(%arg0: i32, %arg1: i32, %arg2: memref<1x8x2x128xbf16, #tpu.memory_space<vmem>>, %arg3: memref<1x1x2x128xbf16, #tpu.memory_space<vmem>>, %arg4: memref<1x1x2x128xbf16, #tpu.memory_space<vmem>>, %arg5: memref<3x128x128xbf16, #tpu.memory_space<vmem>>, %arg6: memref<1x128xf32, #tpu.memory_space<vmem>>, %arg7: memref<1x8x128xbf16, #tpu.memory_space<vmem>>) attributes {dimension_semantics = [#tpu.dimension_semantics<parallel>, #tpu.dimension_semantics<parallel>], iteration_bounds = array<i64: 2, 1>, scalar_prefetch = 0 : i64, scratch_operands = 0 : i64, tpu.core_type = #tpu.core_type<tc>, window_params = [{transform_indices = @transform_0, window_bounds = array<i64: 1, 8, 2, 128>}, {transform_indices = @transform_1, window_bounds = array<i64: 1, 1, 2, 128>}, {transform_indices = @transform_2, window_bounds = array<i64: 1, 1, 2, 128>}, {pipeline_mode = #tpu.pipeline_mode<synchronous>, transform_indices = @transform_3, window_bounds = array<i64: 3, 128, 128>}, {pipeline_mode = #tpu.pipeline_mode<synchronous>, transform_indices = @transform_4, window_bounds = array<i64: 1, 128>}, {transform_indices = @transform_5, window_bounds = array<i64: 1, 8, 128>}]} {
    %c0 = arith.constant 0 : index
    %c0_0 = arith.constant 0 : index
    %c0_1 = arith.constant 0 : index
    %c0_2 = arith.constant 0 : index
    %0 = vector.load %arg2[%c0, %c0_0, %c0_1, %c0_2] : memref<1x8x2x128xbf16, #tpu.memory_space<vmem>>, vector<1x8x1x128xbf16>
    %1 = vector.shape_cast %0 : vector<1x8x1x128xbf16> to vector<8x128xbf16>
    %c0_3 = arith.constant 0 : index
    %c0_4 = arith.constant 0 : index
    %c1 = arith.constant 1 : index
    %c0_5 = arith.constant 0 : index
    %2 = vector.load %arg2[%c0_3, %c0_4, %c1, %c0_5] : memref<1x8x2x128xbf16, #tpu.memory_space<vmem>>, vector<1x8x1x128xbf16>
    %3 = vector.shape_cast %2 : vector<1x8x1x128xbf16> to vector<8x128xbf16>
    %c0_6 = arith.constant 0 : index
    %c0_7 = arith.constant 0 : index
    %c0_8 = arith.constant 0 : index
    %c0_9 = arith.constant 0 : index
    %4 = vector.load %arg3[%c0_6, %c0_7, %c0_8, %c0_9] : memref<1x1x2x128xbf16, #tpu.memory_space<vmem>>, vector<1x1x2x128xbf16>
    %5 = vector.shape_cast %4 : vector<1x1x2x128xbf16> to vector<1x2x128xbf16>
    %6 = vector.extract_strided_slice %5 {offsets = [0, 1, 0], sizes = [1, 1, 128], strides = [1, 1, 1]} : vector<1x2x128xbf16> to vector<1x1x128xbf16>
    %7 = vector.shape_cast %6 : vector<1x1x128xbf16> to vector<1x128xbf16>
    %c0_10 = arith.constant 0 : index
    %c0_11 = arith.constant 0 : index
    %c0_12 = arith.constant 0 : index
    %c0_13 = arith.constant 0 : index
    %8 = vector.load %arg4[%c0_10, %c0_11, %c0_12, %c0_13] : memref<1x1x2x128xbf16, #tpu.memory_space<vmem>>, vector<1x1x2x128xbf16>
    %9 = vector.shape_cast %8 : vector<1x1x2x128xbf16> to vector<1x2x128xbf16>
    %10 = vector.extract_strided_slice %9 {offsets = [0, 0, 0], sizes = [1, 1, 128], strides = [1, 1, 1]} : vector<1x2x128xbf16> to vector<1x1x128xbf16>
    %11 = vector.shape_cast %10 : vector<1x1x128xbf16> to vector<1x128xbf16>
    %c0_i32 = arith.constant 0 : i32
    %12 = arith.cmpi eq, %arg1, %c0_i32 : i32
    %cst = arith.constant 0.000000e+00 : bf16
    %13 = vector.broadcast %cst : bf16 to vector<1x128xbf16>
    %14 = arith.select %12, %13, %7 : vector<1x128xbf16>
    %c0_i32_14 = arith.constant 0 : i32
    %15 = arith.cmpi eq, %arg1, %c0_i32_14 : i32
    %cst_15 = arith.constant 0.000000e+00 : bf16
    %16 = vector.broadcast %cst_15 : bf16 to vector<1x128xbf16>
    %17 = arith.select %15, %16, %11 : vector<1x128xbf16>
    %18 = vector.extract_strided_slice %3 {offsets = [0, 0], sizes = [7, 128], strides = [1, 1]} : vector<8x128xbf16> to vector<7x128xbf16>
    %19 = tpu.concatenate %14, %18 in 0 : vector<1x128xbf16>, vector<7x128xbf16> -> vector<8x128xbf16>
    %20 = vector.extract_strided_slice %1 {offsets = [1, 0], sizes = [7, 128], strides = [1, 1]} : vector<8x128xbf16> to vector<7x128xbf16>
    %21 = tpu.concatenate %20, %17 in 0 : vector<7x128xbf16>, vector<1x128xbf16> -> vector<8x128xbf16>
    %c0_16 = arith.constant 0 : index
    %c0_17 = arith.constant 0 : index
    %22 = vector.load %arg6[%c0_16, %c0_17] : memref<1x128xf32, #tpu.memory_space<vmem>>, vector<1x128xf32>
    %c0_18 = arith.constant 0 : index
    %c0_19 = arith.constant 0 : index
    %c0_20 = arith.constant 0 : index
    %23 = vector.load %arg5[%c0_18, %c0_19, %c0_20] : memref<3x128x128xbf16, #tpu.memory_space<vmem>>, vector<1x128x128xbf16>
    %24 = vector.shape_cast %23 : vector<1x128x128xbf16> to vector<128x128xbf16>
    %c1_21 = arith.constant 1 : index
    %c0_22 = arith.constant 0 : index
    %c0_23 = arith.constant 0 : index
    %25 = vector.load %arg5[%c1_21, %c0_22, %c0_23] : memref<3x128x128xbf16, #tpu.memory_space<vmem>>, vector<1x128x128xbf16>
    %26 = vector.shape_cast %25 : vector<1x128x128xbf16> to vector<128x128xbf16>
    %c2 = arith.constant 2 : index
    %c0_24 = arith.constant 0 : index
    %c0_25 = arith.constant 0 : index
    %27 = vector.load %arg5[%c2, %c0_24, %c0_25] : memref<3x128x128xbf16, #tpu.memory_space<vmem>>, vector<1x128x128xbf16>
    %28 = vector.shape_cast %27 : vector<1x128x128xbf16> to vector<128x128xbf16>
    %cst_26 = arith.constant dense<0.000000e+00> : vector<8x128xf32>
    %29 = tpu.matmul %19, %24, %cst_26 {dimension_numbers = #tpu.dot_dimension_numbers<[1], [0], [0], [1], [0, 0, 1, 1], [], []>} : vector<8x128xbf16>, vector<128x128xbf16>, vector<8x128xf32> -> vector<8x128xf32>
    %cst_27 = arith.constant dense<0.000000e+00> : vector<8x128xf32>
    %30 = tpu.matmul %1, %26, %cst_27 {dimension_numbers = #tpu.dot_dimension_numbers<[1], [0], [0], [1], [0, 0, 1, 1], [], []>} : vector<8x128xbf16>, vector<128x128xbf16>, vector<8x128xf32> -> vector<8x128xf32>
    %31 = arith.addf %29, %30 : vector<8x128xf32>
    %cst_28 = arith.constant dense<0.000000e+00> : vector<8x128xf32>
    %32 = tpu.matmul %3, %28, %cst_28 {dimension_numbers = #tpu.dot_dimension_numbers<[1], [0], [0], [1], [0, 0, 1, 1], [], []>} : vector<8x128xbf16>, vector<128x128xbf16>, vector<8x128xf32> -> vector<8x128xf32>
    %33 = arith.addf %31, %32 : vector<8x128xf32>
    %34 = vector.broadcast %22 : vector<1x128xf32> to vector<8x128xf32>
    %35 = arith.addf %33, %34 : vector<8x128xf32>
    %36 = arith.extf %1 : vector<8x128xbf16> to vector<8x128xf32>
    %37 = arith.addf %35, %36 : vector<8x128xf32>
    %cst_29 = arith.constant dense<0.000000e+00> : vector<8x128xf32>
    %38 = tpu.matmul %1, %24, %cst_29 {dimension_numbers = #tpu.dot_dimension_numbers<[1], [0], [0], [1], [0, 0, 1, 1], [], []>} : vector<8x128xbf16>, vector<128x128xbf16>, vector<8x128xf32> -> vector<8x128xf32>
    %cst_30 = arith.constant dense<0.000000e+00> : vector<8x128xf32>
    %39 = tpu.matmul %3, %26, %cst_30 {dimension_numbers = #tpu.dot_dimension_numbers<[1], [0], [0], [1], [0, 0, 1, 1], [], []>} : vector<8x128xbf16>, vector<128x128xbf16>, vector<8x128xf32> -> vector<8x128xf32>
    %40 = arith.addf %38, %39 : vector<8x128xf32>
    %cst_31 = arith.constant dense<0.000000e+00> : vector<8x128xf32>
    %41 = tpu.matmul %21, %28, %cst_31 {dimension_numbers = #tpu.dot_dimension_numbers<[1], [0], [0], [1], [0, 0, 1, 1], [], []>} : vector<8x128xbf16>, vector<128x128xbf16>, vector<8x128xf32> -> vector<8x128xf32>
    %42 = arith.addf %40, %41 : vector<8x128xf32>
    %43 = vector.broadcast %22 : vector<1x128xf32> to vector<8x128xf32>
    %44 = arith.addf %42, %43 : vector<8x128xf32>
    %45 = arith.extf %3 : vector<8x128xbf16> to vector<8x128xf32>
    %46 = arith.addf %44, %45 : vector<8x128xf32>
    %cst_32 = arith.constant 0.000000e+00 : f32
    %47 = vector.broadcast %cst_32 : f32 to vector<8x128xf32>
    %48 = arith.maximumf %37, %47 : vector<8x128xf32>
    %cst_33 = arith.constant 0.000000e+00 : f32
    %49 = vector.broadcast %cst_33 : f32 to vector<8x128xf32>
    %50 = arith.maximumf %46, %49 : vector<8x128xf32>
    %51 = arith.maximumf %48, %50 : vector<8x128xf32>
    %52 = arith.truncf %51 : vector<8x128xf32> to vector<8x128xbf16>
    %c0_34 = arith.constant 0 : index
    %c0_35 = arith.constant 0 : index
    %c0_36 = arith.constant 0 : index
    %53 = vector.load %arg7[%c0_34, %c0_35, %c0_36] : memref<1x8x128xbf16, #tpu.memory_space<vmem>>, vector<1x8x128xbf16>
    %54 = vector.shape_cast %53 : vector<1x8x128xbf16> to vector<8x128xbf16>
    %55 = vector.shape_cast %52 : vector<8x128xbf16> to vector<1x8x128xbf16>
    tpu.vector_store %arg7[%c0_34, %c0_35, %c0_36], %55 {strides = array<i32>} : memref<1x8x128xbf16, #tpu.memory_space<vmem>>, vector<1x8x128xbf16>,
    return
  }
  func.func @transform_0(%arg0: i32, %arg1: i32) -> (i32, i32, i32, i32) {
    %c0_i32 = arith.constant 0 : i32
    %c0_i32_0 = arith.constant 0 : i32
    %c0_i32_1 = arith.constant 0 : i32
    return %arg0, %arg1, %c0_i32, %c0_i32_0 : i32, i32, i32, i32
  }
  func.func @transform_1(%arg0: i32, %arg1: i32) -> (i32, i32, i32, i32) {
    %c8_i32 = arith.constant 8 : i32
    %0 = arith.muli %arg1, %c8_i32 : i32
    %c1_i32 = arith.constant 1 : i32
    %1 = arith.subi %0, %c1_i32 : i32
    %c0_i32 = arith.constant 0 : i32
    %2 = arith.maxsi %1, %c0_i32 : i32
    %c0_i32_0 = arith.constant 0 : i32
    %c0_i32_1 = arith.constant 0 : i32
    %c0_i32_2 = arith.constant 0 : i32
    return %arg0, %2, %c0_i32_0, %c0_i32_1 : i32, i32, i32, i32
  }
  func.func @transform_2(%arg0: i32, %arg1: i32) -> (i32, i32, i32, i32) {
    %c1_i32 = arith.constant 1 : i32
    %0 = arith.addi %arg1, %c1_i32 : i32
    %c8_i32 = arith.constant 8 : i32
    %1 = arith.muli %0, %c8_i32 : i32
    %c7_i32 = arith.constant 7 : i32
    %2 = arith.minsi %1, %c7_i32 : i32
    %c0_i32 = arith.constant 0 : i32
    %c0_i32_0 = arith.constant 0 : i32
    %c0_i32_1 = arith.constant 0 : i32
    return %arg0, %2, %c0_i32, %c0_i32_0 : i32, i32, i32, i32
  }
  func.func @transform_3(%arg0: i32, %arg1: i32) -> (i32, i32, i32) {
    %c0_i32 = arith.constant 0 : i32
    %c0_i32_0 = arith.constant 0 : i32
    %c0_i32_1 = arith.constant 0 : i32
    %c0_i32_2 = arith.constant 0 : i32
    return %c0_i32, %c0_i32_0, %c0_i32_1 : i32, i32, i32
  }
  func.func @transform_4(%arg0: i32, %arg1: i32) -> (i32, i32) {
    %c0_i32 = arith.constant 0 : i32
    %c0_i32_0 = arith.constant 0 : i32
    %c0_i32_1 = arith.constant 0 : i32
    return %c0_i32, %c0_i32_0 : i32, i32
  }
  func.func @transform_5(%arg0: i32, %arg1: i32) -> (i32, i32, i32) {
    %c0_i32 = arith.constant 0 : i32
    %c0_i32_0 = arith.constant 0 : i32
    return %arg0, %arg1, %c0_i32 : i32, i32, i32
  }
}

module attributes {stable_mosaic.version = 11 : i64} {
  func.func @_conv_k3_kernel(%arg0: i32, %arg1: i32, %arg2: memref<1x8x128xbf16, #tpu.memory_space<vmem>>, %arg3: memref<1x8x128xbf16, #tpu.memory_space<vmem>>, %arg4: memref<1x8x128xbf16, #tpu.memory_space<vmem>>, %arg5: memref<3x128x512xbf16, #tpu.memory_space<vmem>>, %arg6: memref<1x512xf32, #tpu.memory_space<vmem>>, %arg7: memref<1x8x512xbf16, #tpu.memory_space<vmem>>) attributes {dimension_semantics = [#tpu.dimension_semantics<parallel>, #tpu.dimension_semantics<parallel>], iteration_bounds = array<i64: 2, 1>, scalar_prefetch = 0 : i64, scratch_operands = 0 : i64, tpu.core_type = #tpu.core_type<tc>, window_params = [{transform_indices = @transform_0, window_bounds = array<i64: 1, 8, 128>}, {transform_indices = @transform_1, window_bounds = array<i64: 1, 8, 128>}, {transform_indices = @transform_2, window_bounds = array<i64: 1, 8, 128>}, {pipeline_mode = #tpu.pipeline_mode<synchronous>, transform_indices = @transform_3, window_bounds = array<i64: 3, 128, 512>}, {pipeline_mode = #tpu.pipeline_mode<synchronous>, transform_indices = @transform_4, window_bounds = array<i64: 1, 512>}, {transform_indices = @transform_5, window_bounds = array<i64: 1, 8, 512>}]} {
    %c0 = arith.constant 0 : index
    %c0_0 = arith.constant 0 : index
    %c0_1 = arith.constant 0 : index
    %0 = vector.load %arg2[%c0, %c0_0, %c0_1] : memref<1x8x128xbf16, #tpu.memory_space<vmem>>, vector<1x8x128xbf16>
    %1 = vector.shape_cast %0 : vector<1x8x128xbf16> to vector<8x128xbf16>
    %c0_2 = arith.constant 0 : index
    %c0_3 = arith.constant 0 : index
    %c0_4 = arith.constant 0 : index
    %2 = vector.load %arg3[%c0_2, %c0_3, %c0_4] : memref<1x8x128xbf16, #tpu.memory_space<vmem>>, vector<1x8x128xbf16>
    %3 = vector.shape_cast %2 : vector<1x8x128xbf16> to vector<8x128xbf16>
    %4 = vector.extract_strided_slice %3 {offsets = [7, 0], sizes = [1, 128], strides = [1, 1]} : vector<8x128xbf16> to vector<1x128xbf16>
    %c0_5 = arith.constant 0 : index
    %c0_6 = arith.constant 0 : index
    %c0_7 = arith.constant 0 : index
    %5 = vector.load %arg4[%c0_5, %c0_6, %c0_7] : memref<1x8x128xbf16, #tpu.memory_space<vmem>>, vector<1x8x128xbf16>
    %6 = vector.shape_cast %5 : vector<1x8x128xbf16> to vector<8x128xbf16>
    %7 = vector.extract_strided_slice %6 {offsets = [0, 0], sizes = [1, 128], strides = [1, 1]} : vector<8x128xbf16> to vector<1x128xbf16>
    %c0_i32 = arith.constant 0 : i32
    %8 = arith.cmpi eq, %arg1, %c0_i32 : i32
    %cst = arith.constant 0.000000e+00 : bf16
    %9 = vector.broadcast %cst : bf16 to vector<1x128xbf16>
    %10 = arith.select %8, %9, %4 : vector<1x128xbf16>
    %c0_i32_8 = arith.constant 0 : i32
    %11 = arith.cmpi eq, %arg1, %c0_i32_8 : i32
    %cst_9 = arith.constant 0.000000e+00 : bf16
    %12 = vector.broadcast %cst_9 : bf16 to vector<1x128xbf16>
    %13 = arith.select %11, %12, %7 : vector<1x128xbf16>
    %14 = tpu.concatenate %10, %1, %13 in 0 : vector<1x128xbf16>, vector<8x128xbf16>, vector<1x128xbf16> -> vector<10x128xbf16>
    %c0_10 = arith.constant 0 : index
    %c0_11 = arith.constant 0 : index
    %15 = vector.load %arg6[%c0_10, %c0_11] : memref<1x512xf32, #tpu.memory_space<vmem>>, vector<1x512xf32>
    %16 = vector.shape_cast %15 : vector<1x512xf32> to vector<1x512xf32>
    %17 = vector.broadcast %16 : vector<1x512xf32> to vector<8x512xf32>
    %18 = vector.extract_strided_slice %14 {offsets = [0, 0], sizes = [8, 128], strides = [1, 1]} : vector<10x128xbf16> to vector<8x128xbf16>
    %c0_12 = arith.constant 0 : index
    %c0_13 = arith.constant 0 : index
    %c0_14 = arith.constant 0 : index
    %19 = vector.load %arg5[%c0_12, %c0_13, %c0_14] : memref<3x128x512xbf16, #tpu.memory_space<vmem>>, vector<1x128x512xbf16>
    %20 = vector.shape_cast %19 : vector<1x128x512xbf16> to vector<128x512xbf16>
    %cst_15 = arith.constant dense<0.000000e+00> : vector<8x512xf32>
    %21 = tpu.matmul %18, %20, %cst_15 {dimension_numbers = #tpu.dot_dimension_numbers<[1], [0], [0], [1], [0, 0, 1, 1], [], []>} : vector<8x128xbf16>, vector<128x512xbf16>, vector<8x512xf32> -> vector<8x512xf32>
    %22 = arith.addf %17, %21 : vector<8x512xf32>
    %23 = vector.extract_strided_slice %14 {offsets = [1, 0], sizes = [8, 128], strides = [1, 1]} : vector<10x128xbf16> to vector<8x128xbf16>
    %c1 = arith.constant 1 : index
    %c0_16 = arith.constant 0 : index
    %c0_17 = arith.constant 0 : index
    %24 = vector.load %arg5[%c1, %c0_16, %c0_17] : memref<3x128x512xbf16, #tpu.memory_space<vmem>>, vector<1x128x512xbf16>
    %25 = vector.shape_cast %24 : vector<1x128x512xbf16> to vector<128x512xbf16>
    %cst_18 = arith.constant dense<0.000000e+00> : vector<8x512xf32>
    %26 = tpu.matmul %23, %25, %cst_18 {dimension_numbers = #tpu.dot_dimension_numbers<[1], [0], [0], [1], [0, 0, 1, 1], [], []>} : vector<8x128xbf16>, vector<128x512xbf16>, vector<8x512xf32> -> vector<8x512xf32>
    %27 = arith.addf %22, %26 : vector<8x512xf32>
    %28 = vector.extract_strided_slice %14 {offsets = [2, 0], sizes = [8, 128], strides = [1, 1]} : vector<10x128xbf16> to vector<8x128xbf16>
    %c2 = arith.constant 2 : index
    %c0_19 = arith.constant 0 : index
    %c0_20 = arith.constant 0 : index
    %29 = vector.load %arg5[%c2, %c0_19, %c0_20] : memref<3x128x512xbf16, #tpu.memory_space<vmem>>, vector<1x128x512xbf16>
    %30 = vector.shape_cast %29 : vector<1x128x512xbf16> to vector<128x512xbf16>
    %cst_21 = arith.constant dense<0.000000e+00> : vector<8x512xf32>
    %31 = tpu.matmul %28, %30, %cst_21 {dimension_numbers = #tpu.dot_dimension_numbers<[1], [0], [0], [1], [0, 0, 1, 1], [], []>} : vector<8x128xbf16>, vector<128x512xbf16>, vector<8x512xf32> -> vector<8x512xf32>
    %32 = arith.addf %27, %31 : vector<8x512xf32>
    %cst_22 = arith.constant 0.000000e+00 : f32
    %33 = vector.broadcast %cst_22 : f32 to vector<8x512xf32>
    %34 = arith.maximumf %32, %33 : vector<8x512xf32>
    %35 = arith.truncf %34 : vector<8x512xf32> to vector<8x512xbf16>
    %c0_23 = arith.constant 0 : index
    %c0_24 = arith.constant 0 : index
    %c0_25 = arith.constant 0 : index
    %36 = vector.load %arg7[%c0_23, %c0_24, %c0_25] : memref<1x8x512xbf16, #tpu.memory_space<vmem>>, vector<1x8x512xbf16>
    %37 = vector.shape_cast %36 : vector<1x8x512xbf16> to vector<8x512xbf16>
    %38 = vector.shape_cast %35 : vector<8x512xbf16> to vector<1x8x512xbf16>
    tpu.vector_store %arg7[%c0_23, %c0_24, %c0_25], %38 {strides = array<i32>} : memref<1x8x512xbf16, #tpu.memory_space<vmem>>, vector<1x8x512xbf16>,
    return
  }
  func.func @transform_0(%arg0: i32, %arg1: i32) -> (i32, i32, i32) {
    %c0_i32 = arith.constant 0 : i32
    %c0_i32_0 = arith.constant 0 : i32
    return %arg0, %arg1, %c0_i32 : i32, i32, i32
  }
  func.func @transform_1(%arg0: i32, %arg1: i32) -> (i32, i32, i32) {
    %c1_i32 = arith.constant 1 : i32
    %0 = arith.muli %arg1, %c1_i32 : i32
    %c1_i32_0 = arith.constant 1 : i32
    %1 = arith.subi %0, %c1_i32_0 : i32
    %c0_i32 = arith.constant 0 : i32
    %2 = arith.maxsi %1, %c0_i32 : i32
    %c0_i32_1 = arith.constant 0 : i32
    %c0_i32_2 = arith.constant 0 : i32
    return %arg0, %2, %c0_i32_1 : i32, i32, i32
  }
  func.func @transform_2(%arg0: i32, %arg1: i32) -> (i32, i32, i32) {
    %c1_i32 = arith.constant 1 : i32
    %0 = arith.addi %arg1, %c1_i32 : i32
    %c1_i32_0 = arith.constant 1 : i32
    %1 = arith.muli %0, %c1_i32_0 : i32
    %c0_i32 = arith.constant 0 : i32
    %2 = arith.minsi %1, %c0_i32 : i32
    %c0_i32_1 = arith.constant 0 : i32
    %c0_i32_2 = arith.constant 0 : i32
    return %arg0, %2, %c0_i32_1 : i32, i32, i32
  }
  func.func @transform_3(%arg0: i32, %arg1: i32) -> (i32, i32, i32) {
    %c0_i32 = arith.constant 0 : i32
    %c0_i32_0 = arith.constant 0 : i32
    %c0_i32_1 = arith.constant 0 : i32
    %c0_i32_2 = arith.constant 0 : i32
    return %c0_i32, %c0_i32_0, %c0_i32_1 : i32, i32, i32
  }
  func.func @transform_4(%arg0: i32, %arg1: i32) -> (i32, i32) {
    %c0_i32 = arith.constant 0 : i32
    %c0_i32_0 = arith.constant 0 : i32
    %c0_i32_1 = arith.constant 0 : i32
    return %c0_i32, %c0_i32_0 : i32, i32
  }
  func.func @transform_5(%arg0: i32, %arg1: i32) -> (i32, i32, i32) {
    %c0_i32 = arith.constant 0 : i32
    %c0_i32_0 = arith.constant 0 : i32
    return %arg0, %arg1, %c0_i32 : i32, i32, i32
  }
}

module attributes {stable_mosaic.version = 11 : i64} {
  func.func @_conv_k3_kernel(%arg0: i32, %arg1: i32, %arg2: memref<1x8x512xbf16, #tpu.memory_space<vmem>>, %arg3: memref<1x8x512xbf16, #tpu.memory_space<vmem>>, %arg4: memref<1x8x512xbf16, #tpu.memory_space<vmem>>, %arg5: memref<3x512x512xbf16, #tpu.memory_space<vmem>>, %arg6: memref<1x512xf32, #tpu.memory_space<vmem>>, %arg7: memref<1x8x512xbf16, #tpu.memory_space<vmem>>) attributes {dimension_semantics = [#tpu.dimension_semantics<parallel>, #tpu.dimension_semantics<parallel>], iteration_bounds = array<i64: 2, 1>, scalar_prefetch = 0 : i64, scratch_operands = 0 : i64, tpu.core_type = #tpu.core_type<tc>, window_params = [{transform_indices = @transform_0, window_bounds = array<i64: 1, 8, 512>}, {transform_indices = @transform_1, window_bounds = array<i64: 1, 8, 512>}, {transform_indices = @transform_2, window_bounds = array<i64: 1, 8, 512>}, {pipeline_mode = #tpu.pipeline_mode<synchronous>, transform_indices = @transform_3, window_bounds = array<i64: 3, 512, 512>}, {pipeline_mode = #tpu.pipeline_mode<synchronous>, transform_indices = @transform_4, window_bounds = array<i64: 1, 512>}, {transform_indices = @transform_5, window_bounds = array<i64: 1, 8, 512>}]} {
    %c0 = arith.constant 0 : index
    %c0_0 = arith.constant 0 : index
    %c0_1 = arith.constant 0 : index
    %0 = vector.load %arg2[%c0, %c0_0, %c0_1] : memref<1x8x512xbf16, #tpu.memory_space<vmem>>, vector<1x8x512xbf16>
    %1 = vector.shape_cast %0 : vector<1x8x512xbf16> to vector<8x512xbf16>
    %c0_2 = arith.constant 0 : index
    %c0_3 = arith.constant 0 : index
    %c0_4 = arith.constant 0 : index
    %2 = vector.load %arg3[%c0_2, %c0_3, %c0_4] : memref<1x8x512xbf16, #tpu.memory_space<vmem>>, vector<1x8x512xbf16>
    %3 = vector.shape_cast %2 : vector<1x8x512xbf16> to vector<8x512xbf16>
    %4 = vector.extract_strided_slice %3 {offsets = [7, 0], sizes = [1, 512], strides = [1, 1]} : vector<8x512xbf16> to vector<1x512xbf16>
    %c0_5 = arith.constant 0 : index
    %c0_6 = arith.constant 0 : index
    %c0_7 = arith.constant 0 : index
    %5 = vector.load %arg4[%c0_5, %c0_6, %c0_7] : memref<1x8x512xbf16, #tpu.memory_space<vmem>>, vector<1x8x512xbf16>
    %6 = vector.shape_cast %5 : vector<1x8x512xbf16> to vector<8x512xbf16>
    %7 = vector.extract_strided_slice %6 {offsets = [0, 0], sizes = [1, 512], strides = [1, 1]} : vector<8x512xbf16> to vector<1x512xbf16>
    %c0_i32 = arith.constant 0 : i32
    %8 = arith.cmpi eq, %arg1, %c0_i32 : i32
    %cst = arith.constant 0.000000e+00 : bf16
    %9 = vector.broadcast %cst : bf16 to vector<1x512xbf16>
    %10 = arith.select %8, %9, %4 : vector<1x512xbf16>
    %c0_i32_8 = arith.constant 0 : i32
    %11 = arith.cmpi eq, %arg1, %c0_i32_8 : i32
    %cst_9 = arith.constant 0.000000e+00 : bf16
    %12 = vector.broadcast %cst_9 : bf16 to vector<1x512xbf16>
    %13 = arith.select %11, %12, %7 : vector<1x512xbf16>
    %14 = tpu.concatenate %10, %1, %13 in 0 : vector<1x512xbf16>, vector<8x512xbf16>, vector<1x512xbf16> -> vector<10x512xbf16>
    %c0_10 = arith.constant 0 : index
    %c0_11 = arith.constant 0 : index
    %15 = vector.load %arg6[%c0_10, %c0_11] : memref<1x512xf32, #tpu.memory_space<vmem>>, vector<1x512xf32>
    %16 = vector.shape_cast %15 : vector<1x512xf32> to vector<1x512xf32>
    %17 = vector.broadcast %16 : vector<1x512xf32> to vector<8x512xf32>
    %18 = vector.extract_strided_slice %14 {offsets = [0, 0], sizes = [8, 512], strides = [1, 1]} : vector<10x512xbf16> to vector<8x512xbf16>
    %c0_12 = arith.constant 0 : index
    %c0_13 = arith.constant 0 : index
    %c0_14 = arith.constant 0 : index
    %19 = vector.load %arg5[%c0_12, %c0_13, %c0_14] : memref<3x512x512xbf16, #tpu.memory_space<vmem>>, vector<1x512x512xbf16>
    %20 = vector.shape_cast %19 : vector<1x512x512xbf16> to vector<512x512xbf16>
    %cst_15 = arith.constant dense<0.000000e+00> : vector<8x512xf32>
    %21 = tpu.matmul %18, %20, %cst_15 {dimension_numbers = #tpu.dot_dimension_numbers<[1], [0], [0], [1], [0, 0, 1, 1], [], []>} : vector<8x512xbf16>, vector<512x512xbf16>, vector<8x512xf32> -> vector<8x512xf32>
    %22 = arith.addf %17, %21 : vector<8x512xf32>
    %23 = vector.extract_strided_slice %14 {offsets = [1, 0], sizes = [8, 512], strides = [1, 1]} : vector<10x512xbf16> to vector<8x512xbf16>
    %c1 = arith.constant 1 : index
    %c0_16 = arith.constant 0 : index
    %c0_17 = arith.constant 0 : index
    %24 = vector.load %arg5[%c1, %c0_16, %c0_17] : memref<3x512x512xbf16, #tpu.memory_space<vmem>>, vector<1x512x512xbf16>
    %25 = vector.shape_cast %24 : vector<1x512x512xbf16> to vector<512x512xbf16>
    %cst_18 = arith.constant dense<0.000000e+00> : vector<8x512xf32>
    %26 = tpu.matmul %23, %25, %cst_18 {dimension_numbers = #tpu.dot_dimension_numbers<[1], [0], [0], [1], [0, 0, 1, 1], [], []>} : vector<8x512xbf16>, vector<512x512xbf16>, vector<8x512xf32> -> vector<8x512xf32>
    %27 = arith.addf %22, %26 : vector<8x512xf32>
    %28 = vector.extract_strided_slice %14 {offsets = [2, 0], sizes = [8, 512], strides = [1, 1]} : vector<10x512xbf16> to vector<8x512xbf16>
    %c2 = arith.constant 2 : index
    %c0_19 = arith.constant 0 : index
    %c0_20 = arith.constant 0 : index
    %29 = vector.load %arg5[%c2, %c0_19, %c0_20] : memref<3x512x512xbf16, #tpu.memory_space<vmem>>, vector<1x512x512xbf16>
    %30 = vector.shape_cast %29 : vector<1x512x512xbf16> to vector<512x512xbf16>
    %cst_21 = arith.constant dense<0.000000e+00> : vector<8x512xf32>
    %31 = tpu.matmul %28, %30, %cst_21 {dimension_numbers = #tpu.dot_dimension_numbers<[1], [0], [0], [1], [0, 0, 1, 1], [], []>} : vector<8x512xbf16>, vector<512x512xbf16>, vector<8x512xf32> -> vector<8x512xf32>
    %32 = arith.addf %27, %31 : vector<8x512xf32>
    %cst_22 = arith.constant 0.000000e+00 : f32
    %33 = vector.broadcast %cst_22 : f32 to vector<8x512xf32>
    %34 = arith.maximumf %32, %33 : vector<8x512xf32>
    %35 = arith.truncf %34 : vector<8x512xf32> to vector<8x512xbf16>
    %c0_23 = arith.constant 0 : index
    %c0_24 = arith.constant 0 : index
    %c0_25 = arith.constant 0 : index
    %36 = vector.load %arg7[%c0_23, %c0_24, %c0_25] : memref<1x8x512xbf16, #tpu.memory_space<vmem>>, vector<1x8x512xbf16>
    %37 = vector.shape_cast %36 : vector<1x8x512xbf16> to vector<8x512xbf16>
    %38 = vector.shape_cast %35 : vector<8x512xbf16> to vector<1x8x512xbf16>
    tpu.vector_store %arg7[%c0_23, %c0_24, %c0_25], %38 {strides = array<i32>} : memref<1x8x512xbf16, #tpu.memory_space<vmem>>, vector<1x8x512xbf16>,
    return
  }
  func.func @transform_0(%arg0: i32, %arg1: i32) -> (i32, i32, i32) {
    %c0_i32 = arith.constant 0 : i32
    %c0_i32_0 = arith.constant 0 : i32
    return %arg0, %arg1, %c0_i32 : i32, i32, i32
  }
  func.func @transform_1(%arg0: i32, %arg1: i32) -> (i32, i32, i32) {
    %c1_i32 = arith.constant 1 : i32
    %0 = arith.muli %arg1, %c1_i32 : i32
    %c1_i32_0 = arith.constant 1 : i32
    %1 = arith.subi %0, %c1_i32_0 : i32
    %c0_i32 = arith.constant 0 : i32
    %2 = arith.maxsi %1, %c0_i32 : i32
    %c0_i32_1 = arith.constant 0 : i32
    %c0_i32_2 = arith.constant 0 : i32
    return %arg0, %2, %c0_i32_1 : i32, i32, i32
  }
  func.func @transform_2(%arg0: i32, %arg1: i32) -> (i32, i32, i32) {
    %c1_i32 = arith.constant 1 : i32
    %0 = arith.addi %arg1, %c1_i32 : i32
    %c1_i32_0 = arith.constant 1 : i32
    %1 = arith.muli %0, %c1_i32_0 : i32
    %c0_i32 = arith.constant 0 : i32
    %2 = arith.minsi %1, %c0_i32 : i32
    %c0_i32_1 = arith.constant 0 : i32
    %c0_i32_2 = arith.constant 0 : i32
    return %arg0, %2, %c0_i32_1 : i32, i32, i32
  }
  func.func @transform_3(%arg0: i32, %arg1: i32) -> (i32, i32, i32) {
    %c0_i32 = arith.constant 0 : i32
    %c0_i32_0 = arith.constant 0 : i32
    %c0_i32_1 = arith.constant 0 : i32
    %c0_i32_2 = arith.constant 0 : i32
    return %c0_i32, %c0_i32_0, %c0_i32_1 : i32, i32, i32
  }
  func.func @transform_4(%arg0: i32, %arg1: i32) -> (i32, i32) {
    %c0_i32 = arith.constant 0 : i32
    %c0_i32_0 = arith.constant 0 : i32
    %c0_i32_1 = arith.constant 0 : i32
    return %c0_i32, %c0_i32_0 : i32, i32
  }
  func.func @transform_5(%arg0: i32, %arg1: i32) -> (i32, i32, i32) {
    %c0_i32 = arith.constant 0 : i32
    %c0_i32_0 = arith.constant 0 : i32
    return %arg0, %arg1, %c0_i32 : i32, i32, i32
  }
}

module attributes {stable_mosaic.version = 11 : i64} {
  func.func @_conv_k3_kernel(%arg0: i32, %arg1: i32, %arg2: memref<1x8x512xbf16, #tpu.memory_space<vmem>>, %arg3: memref<1x8x512xbf16, #tpu.memory_space<vmem>>, %arg4: memref<1x8x512xbf16, #tpu.memory_space<vmem>>, %arg5: memref<3x512x512xbf16, #tpu.memory_space<vmem>>, %arg6: memref<1x512xf32, #tpu.memory_space<vmem>>, %arg7: memref<1x8x512xbf16, #tpu.memory_space<vmem>>, %arg8: memref<1x8x512xbf16, #tpu.memory_space<vmem>>) attributes {dimension_semantics = [#tpu.dimension_semantics<parallel>, #tpu.dimension_semantics<parallel>], iteration_bounds = array<i64: 2, 1>, scalar_prefetch = 0 : i64, scratch_operands = 0 : i64, tpu.core_type = #tpu.core_type<tc>, window_params = [{transform_indices = @transform_0, window_bounds = array<i64: 1, 8, 512>}, {transform_indices = @transform_1, window_bounds = array<i64: 1, 8, 512>}, {transform_indices = @transform_2, window_bounds = array<i64: 1, 8, 512>}, {pipeline_mode = #tpu.pipeline_mode<synchronous>, transform_indices = @transform_3, window_bounds = array<i64: 3, 512, 512>}, {pipeline_mode = #tpu.pipeline_mode<synchronous>, transform_indices = @transform_4, window_bounds = array<i64: 1, 512>}, {transform_indices = @transform_5, window_bounds = array<i64: 1, 8, 512>}, {transform_indices = @transform_6, window_bounds = array<i64: 1, 8, 512>}]} {
    %c0 = arith.constant 0 : index
    %c0_0 = arith.constant 0 : index
    %c0_1 = arith.constant 0 : index
    %0 = vector.load %arg2[%c0, %c0_0, %c0_1] : memref<1x8x512xbf16, #tpu.memory_space<vmem>>, vector<1x8x512xbf16>
    %1 = vector.shape_cast %0 : vector<1x8x512xbf16> to vector<8x512xbf16>
    %c0_2 = arith.constant 0 : index
    %c0_3 = arith.constant 0 : index
    %c0_4 = arith.constant 0 : index
    %2 = vector.load %arg3[%c0_2, %c0_3, %c0_4] : memref<1x8x512xbf16, #tpu.memory_space<vmem>>, vector<1x8x512xbf16>
    %3 = vector.shape_cast %2 : vector<1x8x512xbf16> to vector<8x512xbf16>
    %4 = vector.extract_strided_slice %3 {offsets = [7, 0], sizes = [1, 512], strides = [1, 1]} : vector<8x512xbf16> to vector<1x512xbf16>
    %c0_5 = arith.constant 0 : index
    %c0_6 = arith.constant 0 : index
    %c0_7 = arith.constant 0 : index
    %5 = vector.load %arg4[%c0_5, %c0_6, %c0_7] : memref<1x8x512xbf16, #tpu.memory_space<vmem>>, vector<1x8x512xbf16>
    %6 = vector.shape_cast %5 : vector<1x8x512xbf16> to vector<8x512xbf16>
    %7 = vector.extract_strided_slice %6 {offsets = [0, 0], sizes = [1, 512], strides = [1, 1]} : vector<8x512xbf16> to vector<1x512xbf16>
    %c0_i32 = arith.constant 0 : i32
    %8 = arith.cmpi eq, %arg1, %c0_i32 : i32
    %cst = arith.constant 0.000000e+00 : bf16
    %9 = vector.broadcast %cst : bf16 to vector<1x512xbf16>
    %10 = arith.select %8, %9, %4 : vector<1x512xbf16>
    %c0_i32_8 = arith.constant 0 : i32
    %11 = arith.cmpi eq, %arg1, %c0_i32_8 : i32
    %cst_9 = arith.constant 0.000000e+00 : bf16
    %12 = vector.broadcast %cst_9 : bf16 to vector<1x512xbf16>
    %13 = arith.select %11, %12, %7 : vector<1x512xbf16>
    %14 = tpu.concatenate %10, %1, %13 in 0 : vector<1x512xbf16>, vector<8x512xbf16>, vector<1x512xbf16> -> vector<10x512xbf16>
    %c0_10 = arith.constant 0 : index
    %c0_11 = arith.constant 0 : index
    %15 = vector.load %arg6[%c0_10, %c0_11] : memref<1x512xf32, #tpu.memory_space<vmem>>, vector<1x512xf32>
    %16 = vector.shape_cast %15 : vector<1x512xf32> to vector<1x512xf32>
    %17 = vector.broadcast %16 : vector<1x512xf32> to vector<8x512xf32>
    %18 = vector.extract_strided_slice %14 {offsets = [0, 0], sizes = [8, 512], strides = [1, 1]} : vector<10x512xbf16> to vector<8x512xbf16>
    %c0_12 = arith.constant 0 : index
    %c0_13 = arith.constant 0 : index
    %c0_14 = arith.constant 0 : index
    %19 = vector.load %arg5[%c0_12, %c0_13, %c0_14] : memref<3x512x512xbf16, #tpu.memory_space<vmem>>, vector<1x512x512xbf16>
    %20 = vector.shape_cast %19 : vector<1x512x512xbf16> to vector<512x512xbf16>
    %cst_15 = arith.constant dense<0.000000e+00> : vector<8x512xf32>
    %21 = tpu.matmul %18, %20, %cst_15 {dimension_numbers = #tpu.dot_dimension_numbers<[1], [0], [0], [1], [0, 0, 1, 1], [], []>} : vector<8x512xbf16>, vector<512x512xbf16>, vector<8x512xf32> -> vector<8x512xf32>
    %22 = arith.addf %17, %21 : vector<8x512xf32>
    %23 = vector.extract_strided_slice %14 {offsets = [1, 0], sizes = [8, 512], strides = [1, 1]} : vector<10x512xbf16> to vector<8x512xbf16>
    %c1 = arith.constant 1 : index
    %c0_16 = arith.constant 0 : index
    %c0_17 = arith.constant 0 : index
    %24 = vector.load %arg5[%c1, %c0_16, %c0_17] : memref<3x512x512xbf16, #tpu.memory_space<vmem>>, vector<1x512x512xbf16>
    %25 = vector.shape_cast %24 : vector<1x512x512xbf16> to vector<512x512xbf16>
    %cst_18 = arith.constant dense<0.000000e+00> : vector<8x512xf32>
    %26 = tpu.matmul %23, %25, %cst_18 {dimension_numbers = #tpu.dot_dimension_numbers<[1], [0], [0], [1], [0, 0, 1, 1], [], []>} : vector<8x512xbf16>, vector<512x512xbf16>, vector<8x512xf32> -> vector<8x512xf32>
    %27 = arith.addf %22, %26 : vector<8x512xf32>
    %28 = vector.extract_strided_slice %14 {offsets = [2, 0], sizes = [8, 512], strides = [1, 1]} : vector<10x512xbf16> to vector<8x512xbf16>
    %c2 = arith.constant 2 : index
    %c0_19 = arith.constant 0 : index
    %c0_20 = arith.constant 0 : index
    %29 = vector.load %arg5[%c2, %c0_19, %c0_20] : memref<3x512x512xbf16, #tpu.memory_space<vmem>>, vector<1x512x512xbf16>
    %30 = vector.shape_cast %29 : vector<1x512x512xbf16> to vector<512x512xbf16>
    %cst_21 = arith.constant dense<0.000000e+00> : vector<8x512xf32>
    %31 = tpu.matmul %28, %30, %cst_21 {dimension_numbers = #tpu.dot_dimension_numbers<[1], [0], [0], [1], [0, 0, 1, 1], [], []>} : vector<8x512xbf16>, vector<512x512xbf16>, vector<8x512xf32> -> vector<8x512xf32>
    %32 = arith.addf %27, %31 : vector<8x512xf32>
    %c0_22 = arith.constant 0 : index
    %c0_23 = arith.constant 0 : index
    %c0_24 = arith.constant 0 : index
    %33 = vector.load %arg7[%c0_22, %c0_23, %c0_24] : memref<1x8x512xbf16, #tpu.memory_space<vmem>>, vector<1x8x512xbf16>
    %34 = vector.shape_cast %33 : vector<1x8x512xbf16> to vector<8x512xbf16>
    %35 = arith.extf %34 : vector<8x512xbf16> to vector<8x512xf32>
    %36 = arith.addf %32, %35 : vector<8x512xf32>
    %cst_25 = arith.constant 0.000000e+00 : f32
    %37 = vector.broadcast %cst_25 : f32 to vector<8x512xf32>
    %38 = arith.maximumf %36, %37 : vector<8x512xf32>
    %39 = arith.truncf %38 : vector<8x512xf32> to vector<8x512xbf16>
    %c0_26 = arith.constant 0 : index
    %c0_27 = arith.constant 0 : index
    %c0_28 = arith.constant 0 : index
    %40 = vector.load %arg8[%c0_26, %c0_27, %c0_28] : memref<1x8x512xbf16, #tpu.memory_space<vmem>>, vector<1x8x512xbf16>
    %41 = vector.shape_cast %40 : vector<1x8x512xbf16> to vector<8x512xbf16>
    %42 = vector.shape_cast %39 : vector<8x512xbf16> to vector<1x8x512xbf16>
    tpu.vector_store %arg8[%c0_26, %c0_27, %c0_28], %42 {strides = array<i32>} : memref<1x8x512xbf16, #tpu.memory_space<vmem>>, vector<1x8x512xbf16>,
    return
  }
  func.func @transform_0(%arg0: i32, %arg1: i32) -> (i32, i32, i32) {
    %c0_i32 = arith.constant 0 : i32
    %c0_i32_0 = arith.constant 0 : i32
    return %arg0, %arg1, %c0_i32 : i32, i32, i32
  }
  func.func @transform_1(%arg0: i32, %arg1: i32) -> (i32, i32, i32) {
    %c1_i32 = arith.constant 1 : i32
    %0 = arith.muli %arg1, %c1_i32 : i32
    %c1_i32_0 = arith.constant 1 : i32
    %1 = arith.subi %0, %c1_i32_0 : i32
    %c0_i32 = arith.constant 0 : i32
    %2 = arith.maxsi %1, %c0_i32 : i32
    %c0_i32_1 = arith.constant 0 : i32
    %c0_i32_2 = arith.constant 0 : i32
    return %arg0, %2, %c0_i32_1 : i32, i32, i32
  }
  func.func @transform_2(%arg0: i32, %arg1: i32) -> (i32, i32, i32) {
    %c1_i32 = arith.constant 1 : i32
    %0 = arith.addi %arg1, %c1_i32 : i32
    %c1_i32_0 = arith.constant 1 : i32
    %1 = arith.muli %0, %c1_i32_0 : i32
    %c0_i32 = arith.constant 0 : i32
    %2 = arith.minsi %1, %c0_i32 : i32
    %c0_i32_1 = arith.constant 0 : i32
    %c0_i32_2 = arith.constant 0 : i32
    return %arg0, %2, %c0_i32_1 : i32, i32, i32
  }
  func.func @transform_3(%arg0: i32, %arg1: i32) -> (i32, i32, i32) {
    %c0_i32 = arith.constant 0 : i32
    %c0_i32_0 = arith.constant 0 : i32
    %c0_i32_1 = arith.constant 0 : i32
    %c0_i32_2 = arith.constant 0 : i32
    return %c0_i32, %c0_i32_0, %c0_i32_1 : i32, i32, i32
  }
  func.func @transform_4(%arg0: i32, %arg1: i32) -> (i32, i32) {
    %c0_i32 = arith.constant 0 : i32
    %c0_i32_0 = arith.constant 0 : i32
    %c0_i32_1 = arith.constant 0 : i32
    return %c0_i32, %c0_i32_0 : i32, i32
  }
  func.func @transform_5(%arg0: i32, %arg1: i32) -> (i32, i32, i32) {
    %c0_i32 = arith.constant 0 : i32
    %c0_i32_0 = arith.constant 0 : i32
    return %arg0, %arg1, %c0_i32 : i32, i32, i32
  }
  func.func @transform_6(%arg0: i32, %arg1: i32) -> (i32, i32, i32) {
    %c0_i32 = arith.constant 0 : i32
    %c0_i32_0 = arith.constant 0 : i32
    return %arg0, %arg1, %c0_i32 : i32, i32, i32
  }
}

</mosaic_0001>

<bundles_post_ra>
// kernel: forward.7
= control target key start
LH: loop header
LB: loop body
LE: loop exit
PB: predicated region body
PF: predicated region fallthrough
CT: control target
= control target key end

     0   :  { %10 = vsyncpa [#allocation3], 0  ;;  %s1585_s0 = inlined_call_operand.vmem [shape: bf16[2,32,4], index: 0, kind: input, shape index: {}, may-alias: {0,1,2}]   ;;  %s1586_s1 = inlined_call_operand.vmem [shape: bf16[2,32,4], index: 1, kind: input, shape index: {}, may-alias: {0,1,2}]   ;;  %s1587_s2 = inlined_call_operand.vmem [shape: bf16[2,32,4], index: 2, kind: input, shape index: {}, may-alias: {0,1,2}]   ;;  %s1588_s3 = inlined_call_operand.hbm [shape: bf16[3,4,512], index: 3, kind: input, shape index: {}]   ;;  %s1589_s4 = inlined_call_operand.hbm [shape: f32[1,512], index: 4, kind: input, shape index: {}]   ;;  %s1590_s5 = inlined_call_operand.vmem [shape: bf16[2,32,512], index: 5, kind: output, shape index: {}]  }
   0x1   :  { %11 = vsyncpa [#allocation5], 0  ;;  %s1382_s18 = smov 0   ;;  %s1384_s19 = smov 0  }
   0x2   :  { %s1386_s20 = smov 0   ;;  %s1388_s21 = smov 0  }
   0x3   :  { %s1390_s22 = smov 0  }
   0x4 LB: > { %s1079_s23 = sadd.s32 4294967295, %s1344_s22   ;;  %s26_s24 = sadd.s32 1, %s1336_s20  ;;  %s1344_s22 = sphi %s1390_s22, %s17_s22   ;;  %s1340_s21 = sphi %s1388_s21, %s1603_s21   ;;  %s1336_s20 = sphi %s1386_s20, %s1602_s20   ;;  %s1332_s19 = sphi %s1384_s19, %s1601_s19   ;;  %s1328_s18 = sphi %s1382_s18, %s1600_s18  }
   0x5   : > { %p27_p0 = scmp.ge.s32.totalorder %s26_s24, 2  ;;  %s29_s25 = sadd.s32 1, %s1340_s21 }
   0x6   : > { %p1087_p1 = scmp.ge.s32.totalorder %s1344_s22, 1  ;;  %p204_p2 = scmp.lt.s32.totalorder %s1344_s22, 5 }
   0x7   : > { %s1605_s24 = smov (%p27_p0, %s26_s24), 0  ;;  %s1607_s25 = smov (!%p27_p0, %s29_s25), %s1340_s21 }
   0x8   : > { %p1415_p3 = pnand %p1087_p1, %p204_p2  ;;  %p31_p4 = scmp.ge.s32.totalorder %s1607_s25, 2 }
   0x9   : > { %p1419_p5 = scmp.eq.s32.totalorder %s1079_s23, 0  ;;  %s1346_s28 = smov [#allocation2]  }
   0xa   : > { %s1594_s26 = scalar_select %p1415_p3, 1, 0 }
   0xb   : > { %s1595_s27 = scalar_select %p1419_p5, 1, 0 }
   0xc   : > { %p1181_p6 = pneg %p1415_p3  ;;  %s1609_s25 = smov (%p31_p4, %s1607_s25), 0 }
   0xd   : > { %s216_s29 = sshll.u32 %s1346_s28, 4  ;;  %s1242_s8 = scalar_lea.hbm %s1588_s3, 384  ;;  %s217_s29 = int_to_ptr.vmem [resolvable:$true] %s216_s29 }
   0xe   : > { %p1429_p7 = pnand %p1419_p5, %p1181_p6  ;;  %p1243_p8 = scmp.ne.s32.totalorder %s1588_s3, %s1242_s8 }
   0xf   : > { %p1249_p12 = scmp.lt.u32.totalorder %s1242_s8, %s1588_s3 }
  0x10   : > { %p1244_p9 = pneg %p1429_p7 }
  0x12   : > { %p1245_p10 = pnand %p1244_p9, %p1243_p8 }
  0x14   : > { %p1246_p11 = pneg %p1245_p10 }
  0x16   : > { %p1251_p13 = pnand %p1249_p12, %p1246_p11 }
  0x18   : > { %1254 = shalt.err (!%p1251_p13)
}
  0x19   : > { %s1255_s13 = scalar_lea.vmem %s217_s29, 384  ;;  %p1263_p4 = scmp.lt.s32.totalorder %s217_s29, %s217_s29 }
  0x1a   : > { %p1256_p0 = scmp.ne.s32.totalorder %s217_s29, %s1255_s13  ;;  %p1264_p6 = scmp.lt.s32.totalorder %s1255_s13, %s1255_s13 }
  0x1c   : > { %p1258_p1 = pnand %p1256_p0, %p1244_p9  ;;  %p1265_p5 = por %p1264_p6, %p1263_p4 }
  0x1e   : > { %p1259_p2 = pneg %p1258_p1 }
  0x20   : > { %p1266_p3 = pnand %p1265_p5, %p1259_p2 }
  0x22   : > { %1269 = shalt.err (!%p1266_p3)
}
  0x23   : > { %s1347_s14 = smov 128   ;;  %s1348_s15 = smov 8  }
  0x24   : > { %1184 = dma.hbm_to_vmem [thread:$0]  (!%p1429_p7), %s1588_s3, 384, %s217_s29, [#allocation3], %s1347_s14, %s1347_s14, %s1348_s15  }
  0x25   : > { %s1349_s23 = smov [#allocation4]   ;;  %s1270_s8 = scalar_lea.hbm %s1589_s4, 64 }
  0x26   : > { %s230_s28 = sshll.u32 %s1349_s23, 4  ;;  %p1271_p3 = scmp.ne.s32.totalorder %s1589_s4, %s1270_s8  ;;  %s231_s28 = int_to_ptr.vmem [resolvable:$true] %s230_s28 }
  0x27   : > { %p1277_p10 = scmp.lt.u32.totalorder %s1270_s8, %s1589_s4 }
  0x28   : > { %p1273_p5 = pnand %p1271_p3, %p1244_p9 }
  0x2a   : > { %p1274_p8 = pneg %p1273_p5 }
  0x2c   : > { %p1279_p11 = pnand %p1277_p10, %p1274_p8 }
  0x2e   : > { %1282 = shalt.err (!%p1279_p11)
}
  0x2f   : > { %s1283_s29 = scalar_lea.vmem %s231_s28, 64  ;;  %p1291_p1 = scmp.lt.s32.totalorder %s231_s28, %s231_s28 }
  0x30   : > { %p1284_p12 = scmp.ne.s32.totalorder %s231_s28, %s1283_s29  ;;  %p1292_p2 = scmp.lt.s32.totalorder %s1283_s29, %s1283_s29 }
  0x32   : > { %p1286_p13 = pnand %p1284_p12, %p1244_p9  ;;  %p1293_p4 = por %p1292_p2, %p1291_p1 }
  0x34   : > { %p1287_p0 = pneg %p1286_p13 }
  0x36   : > { %p1294_p6 = pnand %p1293_p4, %p1287_p0 }
  0x38   : > { %1297 = shalt.err (!%p1294_p6)
}
  0x39   : > { %1187 = dma.hbm_to_vmem [thread:$0]  (!%p1429_p7), %s1589_s4, 64, %s231_s28, [#allocation5]  }
  0x3a   : > { %p1597_p3 = scmp.ne.s32.totalorder %s1594_s26, 0 }
  0x3b   : > { %p1598_p5 = scmp.ne.s32.totalorder (!%p1597_p3), %s1595_s27, 0 }
  0x3c   : > { %294 = sbr.rel (%p1597_p3) target bundleno = 343 (0x157), region = 40 }
  0x43   : > { %1319 = dma.done.wait (%p1598_p5), [#allocation3], 384  }
  0x44   : > { %1321 = vsyncadd (%p1598_p5), [#allocation3], 4294966912 }
  0x45   : > { %1323 = dma.done.wait (%p1598_p5), [#allocation5], 64  }
  0x46   : > { %1325 = vsyncadd (%p1598_p5), [#allocation5], 4294967232  ;;  %v463_v0 = vlaneseq  ;;  %v1350_v1 = vmov 1983009808   ;;  %v1351_v3 = vmov 0   ;;  %s1488_s26 = sshll.u32 %s1328_s18, 1 }
  0x47   : > { %v487_v2 = vunpack.c.l.s4 %v1350_v1  ;;  %551 = vmatprep.mubr.bf16.mxu0 %v1351_v3  ;;  %594 = vmatprep.mubr.bf16.mxu1 %v1351_v3  ;;  %p360_p7 = scmp.lt.s32.totalorder %s1332_s19, 1  ;;  %p362_p9 = scmp.lt.s32.totalorder %s1488_s26, 3  ;;  %v483_v7 = vld [vmem:[#allocation2] sm:$0xff]  ;;  %vm506_vm0 = vcmask 1041408   ;;  %v614_v8 = vld [vmem:[#allocation2 + $0x8] sm:$0xff]  ;;  %v755_v23 = vld [vmem:[#allocation2 + $0x10] sm:$0xff] }
  0x48   : > { %v1491_v4 = vshrl.u32 %v463_v0, 7  ;;  %s1098_s27 = sadd.s32 4294967295, %s1488_s26  ;;  %s1144_s23 = sadd.s32 2, %s1488_s26  ;;  %v485_v10 = vcombine.high %v483_v7, %v483_v7  ;;  %v628_v12 = vcombine.high %v614_v8, %v614_v8  ;;  %v763_v27 = vcombine.high %v755_v23, %v755_v23  ;;  %v461_v61 = vld [vmem:[#allocation4] sm:$0xf] }
  0x49   : > { %v488_v5 = vunpack.c.0.s8 %v487_v2  ;;  %s1611_s19 = smov (!%p360_p7, %s1332_s19), 1  ;;  %p371_p8 = scmp.gt.s32.totalorder %s1098_s27, 0  ;;  %vm456_vm3 = vcmask 1040384   ;;  %vm457_vm4 = vsmask.f32 256  ;;  %vm502_vm6 = vcmask 31744  }
  0x4a   : > { %s1499_s30 = scalar_select %p362_p9, %s1488_s26, 3  ;;  %vm458_vm5 = vmand %vm456_vm3, %vm457_vm4  ;;  %vm615_vm7 = vsmask.f32 7424  ;;  %vm758_vm8 = vcmask 1046528   ;;  %v465_v59 = vsub.s32 0, %v1491_v4  ;;  %v473_v60 = vsub.s32 2, %v1491_v4 }
  0x4b   : > { %v1502_v6 = vsub.s32 %v488_v5, %v1491_v4  ;;  %s1505_s15 = sshll.u32 %s1611_s19, 2  ;;  %p1099_p10 = scmp.lt.s32.totalorder %s1098_s27, 3  ;;  %v469_v62 = vsub.s32 1, %v1491_v4  ;;  %v477_v63 = vsub.s32 3, %v1491_v4 }
  0x4c   : > { %s365_s16 = sadd.s32 %s1505_s15, %s1499_s30  ;;  %p1515_p11 = scmp.lt.s32.totalorder %s1144_s23, 3  ;;  %v466_v0 = vrot.slane %v461_v61, %v465_v59  ;;  %v474_v1 = vrot.slane %v461_v61, %v473_v60 }
  0x4d   : > { %s1096_s17 = sshll.u32 %s365_s16, 2  ;;  %v492_v9 = vrot.slane %v483_v7, %v1502_v6  ;;  %v635_v11 = vrot.slane %v614_v8, %v1502_v6  ;;  %v499_v14 = vrot.slane %v485_v10, %v1502_v6  ;;  %v642_v17 = vrot.slane %v628_v12, %v1502_v6  ;;  %p417_p12 = scmp.eq.s32.totalorder %s1328_s18, 0 }
  0x4e   : > { %s367_s7 = scalar_lea.vmem %s1585_s0, %s1096_s17  ;;  %s1613_s23 = smov (!%p1515_p11, %s1144_s23), 3  ;;  %v770_v37 = vrot.slane %v755_v23, %v1502_v6  ;;  %v777_v38 = vrot.slane %v763_v27, %v1502_v6  ;;  %v470_v2 = vrot.slane %v461_v61, %v469_v62 }
  0x4f   : > { %s372_s9 = scalar_select %p371_p8, %s1098_s27, 0  ;;  %v500_v13 = vcombine.high %v492_v9, %v492_v9  ;;  %v508_v15 = vsel %vm506_vm0, %v492_v9, 0  ;;  %v643_v16 = vcombine.high %v635_v11, %v635_v11  ;;  %v501_v18 = vcombine.high %v499_v14, %v499_v14  ;;  %v1240_v20 = vld [vmem:[%s367_s7] sm:$0xff]  }
  0x50   : > { %v514_v19 = vsel %vm506_vm0, %v499_v14, 0  ;;  %s1617_s23 = smov (!%p1515_p11, %s1613_s23), 3  ;;  %v644_v21 = vcombine.high %v642_v17, %v642_v17  ;;  %p422_p13 = scmp.eq.s32.totalorder %s1328_s18, 1  ;;  %v441_v22 = vshrl.u32 %v1240_v20, 16  ;;  %v444_v30 = vshll.u32 %v1240_v20, 16 }
  0x51   : > { %s1615_s9 = smov (!%p1099_p10, %s372_s9), 3  ;;  %1119 = vmatprep.subr.msk.bf16.mxu0 %vm506_vm0, %v500_v13  ;;  %1121 = vmatprep.subr.msk.bf16.mxu1 %vm506_vm0, %v501_v18  ;;  %s394_s12 = sadd.s32 %s1505_s15, %s1617_s23  ;;  %v649_v42 = vsel %vm506_vm0, %v635_v11, 0  ;;  %v655_v43 = vsel %vm506_vm0, %v642_v17, 0  ;;  %v778_v45 = vcombine.high %v770_v37, %v770_v37  ;;  %v779_v46 = vcombine.high %v777_v38, %v777_v38 }
  0x52   : > { %520 = vmatpush1.bf16.msra.mxu0 %v508_v15  ;;  %s378_s10 = sadd.s32 %s1615_s9, %s1505_s15  ;;  %563 = vmatpush1.bf16.msra.mxu1 %v514_v19  ;;  %s1111_s26 = sshll.u32 %s394_s12, 2  ;;  %v443_v29 = vrot.slane %v441_v22, 7  ;;  %v784_v54 = vsel %vm506_vm0, %v770_v37, 0  ;;  %v790_v55 = vsel %vm506_vm0, %v777_v38, 0 }
  0x53   : > { %1123 = vmatprep.subr.msk.bf16.mxu0 %vm506_vm0, %v643_v16  ;;  %s1105_s11 = sshll.u32 %s378_s10, 2  ;;  %1125 = vmatprep.subr.msk.bf16.mxu1 %vm506_vm0, %v644_v21  ;;  %s396_s17 = scalar_lea.vmem %s1587_s2, %s1111_s26 }
  0x54   : > { %s380_s14 = scalar_lea.vmem %s1586_s1, %s1105_s11  ;;  %v416_v25 = vld [vmem:[%s396_s17] sm:$0xf]  ;;  %v446_v36 = vor.u32 %v444_v30, %v443_v29  ;;  %s1113_s18 = sshll.u32 %s1499_s30, 2 }
  0x55   : > { %s418_s28 = scalar_select %p417_p12, 1, 0  ;;  %v415_v24 = vld [vmem:[%s380_s14] sm:$0xf] }
  0x56   : > { %s423_s6 = scalar_select %p422_p13, 1, 0 }
  0x57   : > { %v419_v26 = vstv %s418_s28  ;;  %s1114_s15 = sshll.u32 %s1611_s19, 4 }
  0x58   : > { %vm420_vm1 = vcmp.eq.s32.totalorder %v419_v26, 1  ;;  %v424_v28 = vstv %s423_s6  ;;  %s408_s23 = sadd.s32 %s1114_s15, %s1113_s18 }
  0x59   : > { %v421_v31 = vsel %vm420_vm1, 0, %v415_v24  ;;  %vm425_vm2 = vcmp.eq.s32.totalorder %v424_v28, 1  ;;  %s1115_s7 = sshll.u32 %s408_s23, 2 }
  0x5a   : > { %v426_v32 = vsel %vm425_vm2, 0, %v416_v25  ;;  %v1116_v33 = vcombine.low %v421_v31, %v421_v31  ;;  %s410_s8 = scalar_lea.vmem %s1590_s5, %s1115_s7 }
  0x5b   : > { %v1118_v34 = vcombine.low %v426_v32, %v426_v32 }
  0x5c   : > { %v431_v35 = vshrl.u32 %v1116_v33, 16 }
  0x5d   : > { %v453_v39 = vshll.u32 %v1118_v34, 16 }
  0x5e   : > { %v433_v40 = vrot.slane %v431_v35, 3 }
  0x5f   : > { %v460_v41 = vsel %vm458_vm5, %v443_v29, %v453_v39 }
  0x60   : > { %v459_v44 = vsel %vm458_vm5, %v433_v40, %v446_v36  ;;  %v623_v49 = vshll.u32 %v460_v41, 16  ;;  %v760_v57 = vrot.slane %v460_v41, 1 }
  0x61   : > { %1120 = vmatmul.mubr.msk.bf16.vlgmr.msra.gmra.mrb[0].mxu0 %vm502_vm6, %v459_v44  ;;  %v618_v47 = vshll.u32 %v459_v44, 16  ;;  %1122 = vmatmul.mubr.msk.bf16.vlgmr.msra.gmra.mrb[0].mxu1 %vm502_vm6, %v459_v44  ;;  %v616_v48 = vshrl.u32 %v459_v44, 16  ;;  %v759_v56 = vrot.slane %v459_v44, 1 }
  0x62   : > { %661 = vmatpush1.bf16.msra.mxu0 %v649_v42  ;;  %704 = vmatpush1.bf16.msra.mxu1 %v655_v43  ;;  %v625_v52 = vrot.slane %v623_v49, 1 }
  0x63   : > { %692 = vmatprep.mubr.bf16.mxu0 %v1351_v3  ;;  %735 = vmatprep.mubr.bf16.mxu1 %v1351_v3  ;;  %v620_v50 = vrot.slane %v618_v47, 1  ;;  %v761_v58 = vsel %vm758_vm8, %v759_v56, %v760_v57 }
  0x64   : > { %1127 = vmatprep.subr.msk.bf16.mxu0 %vm506_vm0, %v778_v45  ;;  %1129 = vmatprep.subr.msk.bf16.mxu1 %vm506_vm0, %v779_v46 }
  0x65   : > { %v621_v51 = vor.u32 %v620_v50, %v616_v48 }
  0x67   : > { %v626_v53 = vsel %vm615_vm7, %v621_v51, %v625_v52 }
  0x6d   : > { %1124 = vmatmul.mubr.msk.bf16.vlgmr.msra.gmra.mrb[0].mxu0 %vm502_vm6, %v626_v53  ;;  %1126 = vmatmul.mubr.msk.bf16.vlgmr.msra.gmra.mrb[0].mxu1 %vm502_vm6, %v626_v53 }
  0x6e   : > { %796 = vmatpush1.bf16.msra.mxu0 %v784_v54  ;;  %839 = vmatpush1.bf16.msra.mxu1 %v790_v55 }
  0x6f   : > { %827 = vmatprep.mubr.bf16.mxu0 %v1351_v3  ;;  %870 = vmatprep.mubr.bf16.mxu1 %v1351_v3  ;;  %v478_v3 = vrot.slane %v461_v61, %v477_v63 }
  0x79   : > { %1128 = vmatmul.mubr.msk.bf16.vlgmr.msra.gmra.mrb[0].mxu0 %vm502_vm6, %v761_v58  ;;  %1130 = vmatmul.mubr.msk.bf16.vlgmr.msra.gmra.mrb[0].mxu1 %vm502_vm6, %v761_v58 }
 0x14c   : > { %v829_v5 = vpop.f32.mrb[0].mxu0  ;;  %v872_v6 = vpop.f32.mrb[0].mxu1 }
 0x14d   : > { %v1149_v7 = vadd.f32 %v829_v5, %v466_v0  ;;  %v1153_v8 = vadd.f32 %v872_v6, %v474_v1  ;;  %v831_v9 = vpop.f32.mrb[1].mxu0  ;;  %v874_v10 = vpop.f32.mrb[1].mxu1 }
 0x14e   : > { %v1150_v11 = vadd.f32 %v831_v9, %v470_v2  ;;  %v1154_v12 = vadd.f32 %v874_v10, %v478_v3  ;;  %v833_v13 = vpop.f32.mrb[2].mxu0  ;;  %v876_v14 = vpop.f32.mrb[2].mxu1 }
 0x14f   : > { %v889_v15 = vmax.f32 %v1149_v7, 0.0  ;;  %v891_v4 = vmax.f32 %v1153_v8, 0.0  ;;  %v1151_v16 = vadd.f32 %v833_v13, %v466_v0  ;;  %v1155_v17 = vadd.f32 %v876_v14, %v474_v1  ;;  %v835_v18 = vpop.f32.mrb[3].mxu0  ;;  %v878_v19 = vpop.f32.mrb[3].mxu1 }
 0x150   : > { %v890_v20 = vmax.f32 %v1150_v11, 0.0  ;;  %v892_v21 = vmax.f32 %v1154_v12, 0.0  ;;  %v1152_v22 = vadd.f32 %v835_v18, %v470_v2  ;;  %v1156_v23 = vadd.f32 %v878_v19, %v478_v3 }
 0x151   : > { %v893_v24 = vmax.f32 %v1151_v16, 0.0  ;;  %v895_v25 = vmax.f32 %v1155_v17, 0.0 }
 0x152   : > { %v1145_v26 = vpack.c.bf16 %v890_v20, %v889_v15  ;;  %v1146_v27 = vpack.c.bf16 %v892_v21, %v891_v4  ;;  %v894_v28 = vmax.f32 %v1152_v22, 0.0  ;;  %v896_v29 = vmax.f32 %v1156_v23, 0.0 }
 0x154   : > { %921 = vst [vmem:[%s410_s8] sm:$0xff] %v1145_v26  ;;  %922 = vst [vmem:[%s410_s8 + $0x8] sm:$0xff] %v1146_v27  ;;  %v1147_v30 = vpack.c.bf16 %v894_v28, %v893_v24  ;;  %v1148_v31 = vpack.c.bf16 %v896_v29, %v895_v25 }
 0x156   : > { %923 = vst [vmem:[%s410_s8 + $0x10] sm:$0xff] %v1147_v30  ;;  %924 = vst [vmem:[%s410_s8 + $0x18] sm:$0xff] %v1148_v31 }
 0x157 PF: > { %s17_s22 = sadd.s32 1, %s1344_s22   ;;  %s1600_s18 = smov %s1336_s20 }
 0x158   : > { %p14_p0 = scmp.ge.s32.totalorder %s17_s22, 6   ;;  %s1601_s19 = smov %s1340_s21 }
 0x159   : > { %s1602_s20 = smov %s1605_s24  ;;  %s1603_s21 = smov %s1609_s25 }
 0x15a   :  { %16 = sbr.rel (!%p14_p0) target bundleno = 4 (0x4), region = 87 }
 0x161   :  { %957 = vsyncpa [#allocation3], 1 }
 0x162   :  { %959 = vsyncpa [#allocation3 + $0x1], 1 }
 0x163   :  { %960 = vsyncpa [#allocation5], 1 }

// kernel: forward.10
= control target key start
LH: loop header
LB: loop body
LE: loop exit
PB: predicated region body
PF: predicated region fallthrough
CT: control target
= control target key end

     0   :  { %s1623_s18 = smov 0   ;;  %s1625_s19 = smov 0   ;;  %s2006_s0 = inlined_call_operand.vmem [shape: bf16[2,8,2,128], index: 0, kind: input, shape index: {}, may-alias: {0,1,2}]   ;;  %s2007_s1 = inlined_call_operand.vmem [shape: bf16[2,8,2,128], index: 1, kind: input, shape index: {}, may-alias: {0,1,2}]   ;;  %s2008_s2 = inlined_call_operand.vmem [shape: bf16[2,8,2,128], index: 2, kind: input, shape index: {}, may-alias: {0,1,2}]   ;;  %s2009_s3 = inlined_call_operand.vmem [shape: bf16[3,128,128], index: 3, kind: input, shape index: {}]   ;;  %s2010_s4 = inlined_call_operand.vmem [shape: f32[1,128], index: 4, kind: input, shape index: {}]   ;;  %s2011_s5 = inlined_call_operand.vmem [shape: bf16[2,8,128], index: 5, kind: output, shape index: {}]  }
   0x1   :  { %s1627_s20 = smov 0  }
   0x2 LB: > { %s27_s21 = sadd.s32 1, %s1583_s19  ;;  %p1275_p0 = scmp.ge.s32.totalorder %s1587_s20, 1  ;;  %s1587_s20 = sphi %s1627_s20, %s15_s20   ;;  %s1583_s19 = sphi %s1625_s19, %s2013_s19   ;;  %s1579_s18 = sphi %s1623_s18, %s2012_s18  }
   0x3   : > { %p29_p1 = scmp.ge.s32.totalorder %s27_s21, 2  ;;  %p267_p2 = scmp.lt.s32.totalorder %s1587_s20, 3 }
   0x5   : > { %s2015_s21 = smov (%p29_p1, %s27_s21), 0  ;;  %p268_p3 = pnand %p1275_p0, %p267_p2 }
   0x6   : > { %v1646_v0 = vld [vmem:[%s2009_s3 + $0x40] sm:$0xff] (!%p268_p3)   ;;  %v1589_v1 = vmov (!%p268_p3), 0.0   ;;  %v1659_v3 = vld [vmem:[%s2009_s3 + $0x48] sm:$0xff] (!%p268_p3)   ;;  %vm1590_vm0 = vmmov (!%p268_p3), 0   ;;  %v1677_v5 = vld [vmem:[%s2009_s3 + $0x50] sm:$0xff] (!%p268_p3)   ;;  %p323_p4 = scmp.lt.s32.totalorder (!%p268_p3), %s1579_s18, 1  ;;  %v393_v11 = vlaneseq (!%p268_p3) }
   0x7   : > { %271 = sbr.rel (%p268_p3) target bundleno = 330 (0x14a), region = 40  ;;  %1393 = vmatprep.subr.bf16.mxu0 (!%p268_p3), %v1589_v1  ;;  %1413 = vmatprep.subr.bf16.mxu1 (!%p268_p3), %v1589_v1  ;;  %v1653_v2 = vld [vmem:[%s2009_s3] sm:$0xff] (!%p268_p3)   ;;  %v1668_v4 = vld [vmem:[%s2009_s3 + $0x8] sm:$0xff] (!%p268_p3)   ;;  %v1685_v6 = vld [vmem:[%s2009_s3 + $0x10] sm:$0xff] (!%p268_p3)   ;;  %v1591_v14 = vmov (!%p268_p3), 1966171168  }
   0x8   : > { %1394 = vmatpush3.bf16.msra.mxu0 (!%p268_p3), %v1646_v0  ;;  %1409 = vmatprep.mubr.msk.bf16.mxu0 (!%p268_p3), %vm1590_vm0, %v1589_v1  ;;  %v1692_v7 = vld [vmem:[%s2009_s3 + $0x58] sm:$0xff] (!%p268_p3)   ;;  %v1709_v9 = vld [vmem:[%s2009_s3 + $0x60] sm:$0xff] (!%p268_p3)   ;;  %v1730_v12 = vld [vmem:[%s2009_s3 + $0x68] sm:$0xff] (!%p268_p3)   ;;  %v391_v15 = vunpack.c.l.s4 (!%p268_p3), %v1591_v14  ;;  %v1739_v16 = vshrl.u32 (!%p268_p3), %v393_v11, 7  ;;  %v1592_v22 = vmov (!%p268_p3), 1   ;;  %vm521_vm1 = vcmask (!%p268_p3), 1042434  }
   0x9   : > { %1414 = vmatpush3.bf16.msra.mxu1 (!%p268_p3), %v1653_v2  ;;  %1395 = vmatprep.subr.bf16.mxu0 (!%p268_p3), %v1589_v1  ;;  %v1702_v8 = vld [vmem:[%s2009_s3 + $0x18] sm:$0xff] (!%p268_p3)   ;;  %v1719_v10 = vld [vmem:[%s2009_s3 + $0x20] sm:$0xff] (!%p268_p3)   ;;  %v1737_v13 = vld [vmem:[%s2009_s3 + $0x28] sm:$0xff] (!%p268_p3)   ;;  %v1760_v23 = vpack.c.b16 (!%p268_p3), %v1592_v22, %v1592_v22  ;;  %vm524_vm2 = vcmask (!%p268_p3), 1043459   ;;  %vm527_vm3 = vcmask (!%p268_p3), 1044484   ;;  %vm561_vm4 = vcmask (!%p268_p3), 1041409  }
   0xa   : > { %1415 = vmatprep.subr.bf16.mxu1 (!%p268_p3), %v1589_v1  ;;  %1429 = vmatprep.mubr.msk.bf16.mxu1 (!%p268_p3), %vm1590_vm0, %v1589_v1  ;;  %v1746_v17 = vld [vmem:[%s2009_s3 + $0x70] sm:$0xff] (!%p268_p3)   ;;  %v392_v28 = vunpack.c.0.s8 (!%p268_p3), %v391_v15  ;;  %vm530_vm6 = vcmask (!%p268_p3), 1045509   ;;  %v1795_v36 = vld [vmem:[%s2009_s3 + $0x78] sm:$0xff] (!%p268_p3)   ;;  %vm533_vm7 = vcmask (!%p268_p3), 1046534   ;;  %vm536_vm8 = vcmask (!%p268_p3), 1047559  }
   0xb   : > { %v1765_v24 = vld [vmem:[%s2009_s3 + $0x30] sm:$0xff] (!%p268_p3)   ;;  %vm386_vm5 = vcmp.ne.s16.totalorder (!%p268_p3), %v1760_v23, 0  ;;  %v1815_v41 = vld [vmem:[%s2009_s3 + $0x38] sm:$0xff] (!%p268_p3)   ;;  %vm540_vm9 = vcmask (!%p268_p3), 1040384   ;;  %vm541_vm10 = vsmask.f32 (!%p268_p3), 256 }
   0xc   : > { %1396 = vmatpush3.bf16.msra.mxu0 (!%p268_p3), %v1659_v3  ;;  %v1779_v30 = vsub.s32 (!%p268_p3), %v392_v28, %v1739_v16  ;;  %vm595_vm11 = vcmask (!%p268_p3), 1043456   ;;  %vm542_vm12 = vmand (!%p268_p3), %vm540_vm9, %vm541_vm10  ;;  %vm596_vm13 = vsmask.f32 (!%p268_p3), 3328 }
   0xd   : > { %1416 = vmatpush3.bf16.msra.mxu1 (!%p268_p3), %v1668_v4  ;;  %1397 = vmatprep.subr.bf16.mxu0 (!%p268_p3), %v1589_v1  ;;  %vm597_vm14 = vmand (!%p268_p3), %vm595_vm11, %vm596_vm13 }
   0xe   : > { %1417 = vmatprep.subr.bf16.mxu1 %v1589_v1  ;;  %s2017_s18 = smov (!%p323_p4, %s1579_s18), 1 }
   0xf   : > { %s1712_s15 = sshll.u32 %s2017_s18, 3 }
  0x10   : > { %1398 = vmatpush3.bf16.msra.mxu0 %v1677_v5  ;;  %s329_s24 = scalar_lea.vmem %s2006_s0, %s1712_s15  ;;  %s355_s29 = sadd.s32 7, %s1712_s15 }
  0x11   : > { %1418 = vmatpush3.bf16.msra.mxu1 %v1685_v6  ;;  %1399 = vmatprep.subr.bf16.mxu0 %v1589_v1  ;;  %v1748_v18 = vld [vmem:[%s329_s24] sm:$0x1]  ;;  %v1750_v19 = vld [vmem:[%s329_s24 + $0x1] sm:$0x1]  ;;  %v1752_v20 = vld [vmem:[%s329_s24 + $0x2] sm:$0x1]  ;;  %s341_s9 = scalar_lea.vmem %s2007_s1, %s1712_s15  ;;  %s356_s17 = scalar_lea.vmem %s2008_s2, %s355_s29 }
  0x12   : > { %1419 = vmatprep.subr.bf16.mxu1 %v1589_v1  ;;  %v1754_v21 = vld [vmem:[%s329_s24 + $0x3] sm:$0x1]  ;;  %v1767_v25 = vld [vmem:[%s329_s24 + $0x4] sm:$0x1]  ;;  %v1769_v26 = vld [vmem:[%s329_s24 + $0x5] sm:$0x1]  ;;  %v421_v32 = vrot.slane %v1748_v18, %v1779_v30  ;;  %v435_v33 = vrot.slane %v1750_v19, %v1779_v30  ;;  %v449_v34 = vrot.slane %v1752_v20, %v1779_v30 }
  0x13   : > { %v1771_v27 = vld [vmem:[%s329_s24 + $0x6] sm:$0x1]  ;;  %v1774_v29 = vld [vmem:[%s329_s24 + $0x7] sm:$0x1]  ;;  %v378_v31 = vld [vmem:[%s341_s9] sm:$0x1]  ;;  %v463_v35 = vrot.slane %v1754_v21, %v1779_v30  ;;  %v477_v37 = vrot.slane %v1767_v25, %v1779_v30  ;;  %v491_v38 = vrot.slane %v1769_v26, %v1779_v30 }
  0x14   : > { %1400 = vmatpush3.bf16.msra.mxu0 %v1692_v7  ;;  %v505_v39 = vrot.slane %v1771_v27, %v1779_v30  ;;  %v551_v40 = vrot.slane %v1774_v29, %v1779_v30  ;;  %v428_v42 = vrot.slane %v421_v32, %v1779_v30  ;;  %v442_v43 = vrot.slane %v435_v33, %v1779_v30  ;;  %v379_v54 = vld [vmem:[%s356_s17] sm:$0x1]  ;;  %s1279_s17 = sshll.u32 %s2017_s18, 2 }
  0x15   : > { %1420 = vmatpush3.bf16.msra.mxu1 %v1702_v8  ;;  %1401 = vmatprep.subr.bf16.mxu0 %v1589_v1  ;;  %v456_v44 = vrot.slane %v449_v34, %v1779_v30  ;;  %v387_v45 = vsel %vm386_vm5, 0, %v378_v31  ;;  %v470_v46 = vrot.slane %v463_v35, %v1779_v30  ;;  %v484_v47 = vrot.slane %v477_v37, %v1779_v30  ;;  %s367_s15 = scalar_lea.vmem %s2011_s5, %s1279_s17 }
  0x16   : > { %1421 = vmatprep.subr.bf16.mxu1 %v1589_v1  ;;  %v498_v48 = vrot.slane %v491_v38, %v1779_v30  ;;  %v512_v49 = vrot.slane %v505_v39, %v1779_v30  ;;  %v1827_v50 = vunpack.c.l.b16 %v428_v42  ;;  %v1829_v51 = vunpack.c.l.b16 %v442_v43 }
  0x17   : > { %v515_v52 = vunpack.c.l.b16 %v456_v44  ;;  %v558_v53 = vrot.slane %v551_v40, %v1779_v30  ;;  %v516_v55 = vunpack.c.l.b16 %v470_v46  ;;  %v517_v56 = vunpack.c.l.b16 %v484_v47 }
  0x18   : > { %1402 = vmatpush3.bf16.msra.mxu0 %v1709_v9  ;;  %v518_v57 = vunpack.c.l.b16 %v498_v48  ;;  %v519_v58 = vunpack.c.l.b16 %v512_v49  ;;  %v520_v59 = vrot.slane %v1829_v51, 7  ;;  %v396_v62 = vrot.slane %v387_v45, %v1779_v30 }
  0x19   : > { %1422 = vmatpush3.bf16.msra.mxu1 %v1719_v10  ;;  %1403 = vmatprep.subr.bf16.mxu0 %v1589_v1  ;;  %v523_v60 = vrot.slane %v515_v52, 6  ;;  %v559_v61 = vunpack.c.l.b16 %v558_v53  ;;  %v526_v63 = vrot.slane %v516_v55, 5  ;;  %v529_v11 = vrot.slane %v517_v56, 4 }
  0x1a   : > { %1423 = vmatprep.subr.bf16.mxu1 %v1589_v1  ;;  %v388_v14 = vsel %vm386_vm5, 0, %v379_v54  ;;  %v532_v15 = vrot.slane %v518_v57, 3  ;;  %v650_v22 = vsel %vm561_vm4, %v520_v59, %v1827_v50  ;;  %v403_v28 = vrot.slane %v396_v62, %v1779_v30 }
  0x1b   : > { %v522_v31 = vsel %vm521_vm1, %v520_v59, %v1827_v50  ;;  %v535_v32 = vrot.slane %v519_v58, 2  ;;  %v651_v33 = vsel %vm521_vm1, %v523_v60, %v650_v22  ;;  %v656_v35 = vrot.slane %v559_v61, 1 }
  0x1c   : > { %1404 = vmatpush3.bf16.msra.mxu0 %v1730_v12  ;;  %v525_v34 = vsel %vm524_vm2, %v523_v60, %v522_v31  ;;  %v652_v23 = vsel %vm524_vm2, %v526_v63, %v651_v33  ;;  %v560_v40 = vrot.slane %v515_v52, 7  ;;  %v563_v42 = vrot.slane %v516_v55, 6  ;;  %v1864_v55 = vld [vmem:[%s2009_s3 + $0x80] sm:$0xff]   ;;  %v1559_v33 = vld [vmem:[%s2009_s3 + $0x90] sm:$0xff]  }
  0x1d   : > { %1424 = vmatpush3.bf16.msra.mxu1 %v1737_v13  ;;  %1405 = vmatprep.subr.bf16.mxu0 %v1589_v1  ;;  %v528_v37 = vsel %vm527_vm3, %v526_v63, %v525_v34  ;;  %v653_v38 = vsel %vm527_vm3, %v529_v11, %v652_v23  ;;  %v405_v44 = vshrl.u32 %v403_v28, 16  ;;  %v565_v46 = vrot.slane %v517_v56, 5 }
  0x1e   : > { %1425 = vmatprep.subr.bf16.mxu1 %v1589_v1  ;;  %v531_v39 = vsel %vm530_vm6, %v529_v11, %v528_v37  ;;  %v654_v43 = vsel %vm530_vm6, %v532_v15, %v653_v38  ;;  %v562_v49 = vsel %vm561_vm4, %v560_v40, %v1829_v51  ;;  %v582_v53 = vrot.slane %v388_v14, %v1779_v30  ;;  %v1563_v37 = vld [vmem:[%s2009_s3 + $0xb0] sm:$0xff]   ;;  %v1564_v38 = vld [vmem:[%s2009_s3 + $0xb8] sm:$0xff]  }
  0x1f   : > { %v534_v45 = vsel %vm533_vm7, %v532_v15, %v531_v39  ;;  %v655_v47 = vsel %vm533_vm7, %v535_v32, %v654_v43  ;;  %v567_v56 = vrot.slane %v518_v57, 4  ;;  %v564_v59 = vsel %vm521_vm1, %v563_v42, %v562_v49 }
  0x20   : > { %1406 = vmatpush3.bf16.msra.mxu0 %v1746_v17  ;;  %v537_v48 = vsel %vm536_vm8, %v535_v32, %v534_v45  ;;  %v657_v52 = vsel %vm536_vm8, %v656_v35, %v655_v47  ;;  %v569_v62 = vrot.slane %v519_v58, 3  ;;  %v566_v63 = vsel %vm524_vm2, %v565_v46, %v564_v59  ;;  %v1558_v58 = vld [vmem:[%s2009_s3 + $0x88] sm:$0xff]  }
  0x21   : > { %1426 = vmatpush3.bf16.msra.mxu1 %v1765_v24  ;;  %1407 = vmatprep.subr.bf16.mxu0 %v1589_v1  ;;  %v538_v54 = vpack.c.b16 %v537_v48, %v537_v48  ;;  %v1867_v60 = vpack.c.b16 %v657_v52, %v657_v52  ;;  %v589_v11 = vrot.slane %v582_v53, %v1779_v30  ;;  %v571_v14 = vrot.slane %v559_v61, 2  ;;  %v1562_v35 = vld [vmem:[%s2009_s3 + $0xa8] sm:$0xff]  }
  0x22   : > { %1427 = vmatprep.subr.bf16.mxu1 %v1589_v1  ;;  %v568_v22 = vsel %vm527_vm3, %v567_v56, %v566_v63  ;;  %v942_v48 = vunpack.c.l.bf16 %v1748_v18  ;;  %v943_v49 = vunpack.c.l.bf16 %v1750_v19  ;;  %v960_v53 = vsub.s32 0, %v1739_v16 }
  0x23   : > { %v543_v15 = vsel %vm542_vm12, %v405_v44, %v538_v54  ;;  %v570_v28 = vsel %vm530_vm6, %v569_v62, %v568_v22  ;;  %v591_v57 = vshll.u32 %v589_v11, 16  ;;  %v1123_v52 = vsub.s32 1, %v1739_v16 }
  0x24   : > { %1408 = vmatpush3.bf16.msra.mxu0 %v1795_v36  ;;  %v572_v30 = vsel %vm533_vm7, %v571_v14, %v570_v28  ;;  %v944_v54 = vunpack.c.l.bf16 %v1752_v20  ;;  %v945_v59 = vunpack.c.l.bf16 %v1754_v21  ;;  %v947_v16 = vunpack.c.l.bf16 %v1769_v26 }
  0x25   : > { %1428 = vmatpush3.bf16.msra.mxu1 %v1815_v41  ;;  %1433 = vmatprep.subr.bf16.mxu0 %v1589_v1  ;;  %v573_v61 = vpack.c.b16 %v572_v30, %v572_v30  ;;  %v593_v31 = vrot.slane %v591_v57, 5 }
  0x26   : > { %1453 = vmatprep.subr.bf16.mxu1 %v1589_v1  ;;  %v969_v63 = vrot.slane %v944_v54, %v960_v53  ;;  %v1132_v18 = vrot.slane %v944_v54, %v1123_v52  ;;  %v1136_v20 = vrot.slane %v945_v59, %v1123_v52 }
  0x27   : > { %1410 = vmatmul.mubr.bf16.vlgmr.msra.gmra.mrb[0].mxu0 %v1867_v60  ;;  %v1888_v32 = vsel %vm597_vm14, %v573_v61, %v593_v31  ;;  %v981_v61 = vrot.slane %v947_v16, %v960_v53 }
  0x28   : > { %1430 = vmatmul.mubr.bf16.vlgmr.msra.gmra.mrb[0].mxu1 %v543_v15  ;;  %1434 = vmatpush3.bf16.msra.mxu0 %v1864_v55  ;;  %v946_v15 = vunpack.c.l.bf16 %v1767_v25 }
  0x29   : > { %1454 = vmatpush3.bf16.msra.mxu1 %v1646_v0  ;;  %1435 = vmatprep.subr.bf16.mxu0 %v1589_v1  ;;  %v836_v0 = vrot.slane %v1827_v50, 1  ;;  %v1560_v50 = vld [vmem:[%s2009_s3 + $0x98] sm:$0xff]  }
  0x2a   : > { %1455 = vmatprep.subr.bf16.mxu1 %v1589_v1  ;;  %1449 = vmatprep.mubr.msk.bf16.mxu0 %vm1590_vm0, %v1589_v1  ;;  %v977_v28 = vrot.slane %v946_v15, %v960_v53  ;;  %v1140_v30 = vrot.slane %v946_v15, %v1123_v52 }
  0x2b   : > { %1469 = vmatprep.mubr.msk.bf16.mxu1 %vm1590_vm0, %v1589_v1  ;;  %v837_v34 = vsel %vm561_vm4, %v1829_v51, %v836_v0  ;;  %v1561_v51 = vld [vmem:[%s2009_s3 + $0xa0] sm:$0xff]   ;;  %v949_v0 = vunpack.c.l.bf16 %v1774_v29 }
  0x2c   : > { %1436 = vmatpush3.bf16.msra.mxu0 %v1558_v58 }
  0x2d   : > { %1456 = vmatpush3.bf16.msra.mxu1 %v1659_v3  ;;  %1437 = vmatprep.subr.bf16.mxu0 %v1589_v1  ;;  %v838_v3 = vsel %vm521_vm1, %v560_v40, %v837_v34 }
  0x2e   : > { %1457 = vmatprep.subr.bf16.mxu1 %v1589_v1  ;;  %v839_v23 = vsel %vm524_vm2, %v563_v42, %v838_v3  ;;  %v1336_v3 = vld [vmem:[%s2010_s4] ss:$0 sm:$0xff] }
  0x30   : > { %1438 = vmatpush3.bf16.msra.mxu0 %v1559_v33 }
  0x31   : > { %1458 = vmatpush3.bf16.msra.mxu1 %v1677_v5  ;;  %1439 = vmatprep.subr.bf16.mxu0 %v1589_v1  ;;  %v840_v5 = vsel %vm527_vm3, %v565_v46, %v839_v23 }
  0x32   : > { %1459 = vmatprep.subr.bf16.mxu1 %v1589_v1 }
  0x34   : > { %1440 = vmatpush3.bf16.msra.mxu0 %v1560_v50 }
  0x35   : > { %1460 = vmatpush3.bf16.msra.mxu1 %v1692_v7  ;;  %1441 = vmatprep.subr.bf16.mxu0 %v1589_v1  ;;  %v841_v7 = vsel %vm530_vm6, %v567_v56, %v840_v5  ;;  %v965_v56 = vrot.slane %v943_v49, %v960_v53 }
  0x36   : > { %1461 = vmatprep.subr.bf16.mxu1 %v1589_v1 }
  0x38   : > { %1442 = vmatpush3.bf16.msra.mxu0 %v1561_v51 }
  0x39   : > { %1462 = vmatpush3.bf16.msra.mxu1 %v1709_v9  ;;  %1443 = vmatprep.subr.bf16.mxu0 %v1589_v1  ;;  %v842_v9 = vsel %vm533_vm7, %v569_v62, %v841_v7  ;;  %v1128_v62 = vrot.slane %v943_v49, %v1123_v52  ;;  %v1152_v7 = vrot.slane %v949_v0, %v1123_v52 }
  0x3a   : > { %1463 = vmatprep.subr.bf16.mxu1 %v1589_v1  ;;  %v843_v39 = vsel %vm536_vm8, %v571_v14, %v842_v9  ;;  %v973_v14 = vrot.slane %v945_v59, %v960_v53 }
  0x3c   : > { %1444 = vmatpush3.bf16.msra.mxu0 %v1562_v35 }
  0x3d   : > { %1464 = vmatpush3.bf16.msra.mxu1 %v1730_v12  ;;  %1445 = vmatprep.subr.bf16.mxu0 %v1589_v1  ;;  %v844_v12 = vpack.c.b16 %v843_v39, %v843_v39 }
  0x3e   : > { %1465 = vmatprep.subr.bf16.mxu1 %v1589_v1 }
  0x40   : > { %1446 = vmatpush3.bf16.msra.mxu0 %v1563_v37 }
  0x41   : > { %1466 = vmatpush3.bf16.msra.mxu1 %v1746_v17  ;;  %1447 = vmatprep.subr.bf16.mxu0 %v1589_v1 }
  0x42   : > { %1467 = vmatprep.subr.bf16.mxu1 %v1589_v1 }
  0x44   : > { %1448 = vmatpush3.bf16.msra.mxu0 %v1564_v38 }
  0x45   : > { %1468 = vmatpush3.bf16.msra.mxu1 %v1795_v36  ;;  %1473 = vmatprep.subr.bf16.mxu0 %v1589_v1 }
  0x46   : > { %1493 = vmatprep.subr.bf16.mxu1 %v1589_v1 }
  0x47   : > { %1450 = vmatmul.mubr.bf16.vlgmr.msra.gmra.mrb[4].mxu0 %v844_v12 }
  0x48   : > { %1470 = vmatmul.mubr.bf16.vlgmr.msra.gmra.mrb[4].mxu1 %v844_v12  ;;  %1474 = vmatpush3.bf16.msra.mxu0 %v1653_v2 }
  0x49   : > { %1494 = vmatpush3.bf16.msra.mxu1 %v1864_v55  ;;  %1475 = vmatprep.subr.bf16.mxu0 %v1589_v1  ;;  %v961_v55 = vrot.slane %v942_v48, %v960_v53 }
  0x4a   : > { %1495 = vmatprep.subr.bf16.mxu1 %v1589_v1  ;;  %1489 = vmatprep.mubr.msk.bf16.mxu0 %vm1590_vm0, %v1589_v1 }
  0x4b   : > { %1509 = vmatprep.mubr.msk.bf16.mxu1 %vm1590_vm0, %v1589_v1  ;;  %v990_v11 = vsel %vm561_vm4, %v965_v56, %v961_v55 }
  0x4c   : > { %1476 = vmatpush3.bf16.msra.mxu0 %v1668_v4  ;;  %v991_v22 = vsel %vm521_vm1, %v969_v63, %v990_v11 }
  0x4d   : > { %1496 = vmatpush3.bf16.msra.mxu1 %v1558_v58  ;;  %1477 = vmatprep.subr.bf16.mxu0 %v1589_v1  ;;  %v992_v21 = vsel %vm524_vm2, %v973_v14, %v991_v22  ;;  %v948_v58 = vunpack.c.l.bf16 %v1771_v27  ;;  %v989_v27 = vrot.slane %v949_v0, %v960_v53 }
  0x4e   : > { %1497 = vmatprep.subr.bf16.mxu1 %v1589_v1  ;;  %v993_v31 = vsel %vm527_vm3, %v977_v28, %v992_v21 }
  0x4f   : > { %v994_v34 = vsel %vm530_vm6, %v981_v61, %v993_v31 }
  0x50   : > { %1478 = vmatpush3.bf16.msra.mxu0 %v1685_v6 }
  0x51   : > { %1498 = vmatpush3.bf16.msra.mxu1 %v1559_v33  ;;  %1479 = vmatprep.subr.bf16.mxu0 %v1589_v1  ;;  %v985_v33 = vrot.slane %v948_v58, %v960_v53 }
  0x52   : > { %1499 = vmatprep.subr.bf16.mxu1 %v1589_v1 }
  0x53   : > { %v995_v23 = vsel %vm533_vm7, %v985_v33, %v994_v34 }
  0x54   : > { %1480 = vmatpush3.bf16.msra.mxu0 %v1702_v8  ;;  %v996_v12 = vsel %vm536_vm8, %v989_v27, %v995_v23 }
  0x55   : > { %1500 = vmatpush3.bf16.msra.mxu1 %v1560_v50  ;;  %1481 = vmatprep.subr.bf16.mxu0 %v1589_v1  ;;  %v1148_v50 = vrot.slane %v948_v58, %v1123_v52 }
  0x56   : > { %1501 = vmatprep.subr.bf16.mxu1 %v1589_v1 }
  0x58   : > { %1482 = vmatpush3.bf16.msra.mxu0 %v1719_v10 }
  0x59   : > { %1502 = vmatpush3.bf16.msra.mxu1 %v1561_v51  ;;  %1483 = vmatprep.subr.bf16.mxu0 %v1589_v1 }
  0x5a   : > { %1503 = vmatprep.subr.bf16.mxu1 %v1589_v1 }
  0x5c   : > { %1484 = vmatpush3.bf16.msra.mxu0 %v1737_v13 }
  0x5d   : > { %1504 = vmatpush3.bf16.msra.mxu1 %v1562_v35  ;;  %1485 = vmatprep.subr.bf16.mxu0 %v1589_v1 }
  0x5e   : > { %1505 = vmatprep.subr.bf16.mxu1 %v1589_v1 }
  0x60   : > { %1486 = vmatpush3.bf16.msra.mxu0 %v1765_v24 }
  0x61   : > { %1506 = vmatpush3.bf16.msra.mxu1 %v1563_v37  ;;  %1487 = vmatprep.subr.bf16.mxu0 %v1589_v1 }
  0x62   : > { %1507 = vmatprep.subr.bf16.mxu1 %v1589_v1 }
  0x64   : > { %1488 = vmatpush3.bf16.msra.mxu0 %v1815_v41 }
  0x65   : > { %1508 = vmatpush3.bf16.msra.mxu1 %v1564_v38 }
  0x67   : > { %1490 = vmatmul.mubr.bf16.vlgmr.msra.gmra.mrb[8].mxu0 %v1867_v60  ;;  %v1124_v60 = vrot.slane %v942_v48, %v1123_v52 }
  0x68   : > { %1510 = vmatmul.mubr.bf16.vlgmr.msra.gmra.mrb[8].mxu1 %v1888_v32  ;;  %v1144_v32 = vrot.slane %v947_v16, %v1123_v52 }
  0x69   : > { %v1153_v19 = vsel %vm561_vm4, %v1128_v62, %v1124_v60 }
  0x6a   : > { %v1154_v57 = vsel %vm521_vm1, %v1132_v18, %v1153_v19 }
  0x6b   : > { %v1155_v25 = vsel %vm524_vm2, %v1136_v20, %v1154_v57 }
  0x6c   : > { %v1156_v26 = vsel %vm527_vm3, %v1140_v30, %v1155_v25 }
  0x6d   : > { %v1157_v51 = vsel %vm530_vm6, %v1144_v32, %v1156_v26 }
  0x6e   : > { %v1158_v9 = vsel %vm533_vm7, %v1148_v50, %v1157_v51 }
  0xfa   : > { %v742_v2 = vpop.f32.mrb[0].mxu0 }
  0xfb   : > { %v830_v4 = vpop.f32.mrb[0].mxu1  ;;  %v1411_v8 = vpop.f32.mrb[1].mxu0 }
  0xfc   : > { %v831_v6 = vadd.f32 %v830_v4, %v742_v2  ;;  %v1431_v10 = vpop.f32.mrb[1].mxu1  ;;  %v745_v13 = vpop.f32.mrb[2].mxu0 }
  0xfd   : > { %v833_v17 = vpop.f32.mrb[2].mxu1  ;;  %v1412_v24 = vpop.f32.mrb[3].mxu0  ;;  %v1159_v13 = vsel %vm536_vm8, %v1152_v7, %v1158_v9 }
  0xfe   : > { %v1432_v36 = vpop.f32.mrb[3].mxu1 }
 0x11a   : > { %v928_v40 = vpop.f32.mrb[4].mxu0 }
 0x11b   : > { %v1033_v42 = vpop.f32.mrb[4].mxu1  ;;  %v934_v43 = vadd.f32 %v928_v40, %v831_v6  ;;  %v1451_v1 = vpop.f32.mrb[5].mxu0 }
 0x11c   : > { %v1471_v44 = vpop.f32.mrb[5].mxu1  ;;  %v931_v41 = vpop.f32.mrb[6].mxu0 }
 0x11d   : > { %v1036_v45 = vpop.f32.mrb[6].mxu1  ;;  %v1452_v46 = vpop.f32.mrb[7].mxu0  ;;  %v941_v29 = vadd.f32 %v1336_v3, %v934_v43 }
 0x11e   : > { %v1472_v47 = vpop.f32.mrb[7].mxu1 }
 0x11f   : > { %v998_v17 = vadd.f32 %v996_v12, %v941_v29 }
 0x121   : > { %v1162_v40 = vmax.f32 %v998_v17, 0.0 }
 0x13a   : > { %v1073_v5 = vpop.f32.mrb[8].mxu0 }
 0x13b   : > { %v1113_v35 = vpop.f32.mrb[8].mxu1  ;;  %v1074_v37 = vadd.f32 %v1073_v5, %v1033_v42  ;;  %v1491_v38 = vpop.f32.mrb[9].mxu0 }
 0x13c   : > { %v1511_v39 = vpop.f32.mrb[9].mxu1  ;;  %v1076_v2 = vpop.f32.mrb[10].mxu0 }
 0x13d   : > { %v1116_v4 = vpop.f32.mrb[10].mxu1  ;;  %v1119_v6 = vadd.f32 %v1113_v35, %v1074_v37  ;;  %v1492_v8 = vpop.f32.mrb[11].mxu0 }
 0x13e   : > { %v1512_v10 = vpop.f32.mrb[11].mxu1 }
 0x13f   : > { %v1120_v24 = vadd.f32 %v1336_v3, %v1119_v6 }
 0x141   : > { %v1161_v36 = vadd.f32 %v1159_v13, %v1120_v24 }
 0x143   : > { %v1163_v43 = vmax.f32 %v1161_v36, 0.0 }
 0x145   : > { %v1164_v42 = vmax.f32 %v1162_v40, %v1163_v43 }
 0x147   : > { %v1165_v1 = vpack.c.bf16 %v1164_v42, %v1164_v42 }
 0x149   : > { %1166 = vst [vmem:[%s367_s15] sm:$0xf] %v1165_v1 }
 0x14a PF: > { %s15_s20 = sadd.s32 1, %s1587_s20   ;;  %s2012_s18 = smov %s1583_s19 }
 0x14b   : > { %p12_p5 = scmp.ge.s32.totalorder %s15_s20, 4   ;;  %s2013_s19 = smov %s2015_s21 }
 0x14d   :  { %14 = sbr.rel (!%p12_p5) target bundleno = 2 (0x2), region = 78 }

// kernel: forward.9
= control target key start
LH: loop header
LB: loop body
LE: loop exit
PB: predicated region body
PF: predicated region fallthrough
CT: control target
= control target key end

     0   :  { %s2358_s18 = smov 0   ;;  %s2360_s19 = smov 0   ;;  %s2775_s0 = inlined_call_operand.vmem [shape: bf16[2,16,512], index: 0, kind: input, shape index: {}, may-alias: {0,1,2}]   ;;  %s2776_s1 = inlined_call_operand.vmem [shape: bf16[2,16,512], index: 1, kind: input, shape index: {}, may-alias: {0,1,2}]   ;;  %s2777_s2 = inlined_call_operand.vmem [shape: bf16[2,16,512], index: 2, kind: input, shape index: {}, may-alias: {0,1,2}]   ;;  %s2778_s3 = inlined_call_operand.vmem [shape: bf16[3,512,128], index: 3, kind: input, shape index: {}]   ;;  %s2779_s4 = inlined_call_operand.vmem [shape: f32[1,128], index: 4, kind: input, shape index: {}]   ;;  %s2780_s5 = inlined_call_operand.vmem [shape: bf16[2,16,128], index: 5, kind: output, shape index: {}]  }
   0x1   :  { %s2362_s20 = smov 0  }
   0x2 LB: > { %s27_s1 = sadd.s32 1, %s2321_s19  ;;  %p1782_p0 = scmp.ge.s32.totalorder %s2325_s20, 1  ;;  %s2325_s20 = sphi %s2362_s20, %s15_s20   ;;  %s2321_s19 = sphi %s2360_s19, %s2784_s19   ;;  %s2317_s18 = sphi %s2358_s18, %s2783_s18  }
   0x3   : > { %p29_p1 = scmp.ge.s32.totalorder %s27_s1, 2  ;;  %p273_p2 = scmp.lt.s32.totalorder %s2325_s20, 3 }
   0x5   : > { %s2786_s1 = smov (%p29_p1, %s27_s1), 0  ;;  %p274_p3 = pnand %p1782_p0, %p273_p2 }
   0x6   : > { %v2201_v0 = vld [vmem:[%s2778_s3 + $0x40] sm:$0xff] (!%p274_p3)   ;;  %v2205_v4 = vld [vmem:[%s2778_s3 + $0x48] sm:$0xff] (!%p274_p3)   ;;  %v2209_v8 = vld [vmem:[%s2778_s3 + $0x50] sm:$0xff] (!%p274_p3)   ;;  %p337_p4 = scmp.lt.s32.totalorder (!%p274_p3), %s2317_s18, 1  ;;  %v2327_v26 = vmov (!%p274_p3), 0   ;;  %vm516_vm0 = vcmask (!%p274_p3), 1040384  }
   0x7   : > { %277 = sbr.rel (%p274_p3) target bundleno = 332 (0x14c), region = 40  ;;  %v2202_v1 = vld [vmem:[%s2778_s3 + $0xc0] sm:$0xff] (!%p274_p3)   ;;  %2044 = vmatprep.subr.bf16.mxu0 (!%p274_p3), %v2201_v0  ;;  %v2206_v5 = vld [vmem:[%s2778_s3 + $0xc8] sm:$0xff] (!%p274_p3)   ;;  %v2210_v9 = vld [vmem:[%s2778_s3 + $0xd0] sm:$0xff] (!%p274_p3)   ;;  %v2460_v27 = vcombine.high (!%p274_p3), %v2327_v26, %v2327_v26  ;;  %v2479_v33 = vcombine.low (!%p274_p3), %v2327_v26, %v2327_v26  ;;  %vm517_vm1 = vsmask.f32 (!%p274_p3), 256 }
   0x8   : > { %v2203_v2 = vld [vmem:[%s2778_s3] sm:$0xff] (!%p274_p3)   ;;  %2066 = vmatprep.subr.bf16.mxu1 (!%p274_p3), %v2202_v1  ;;  %v2207_v6 = vld [vmem:[%s2778_s3 + $0x8] sm:$0xff] (!%p274_p3)   ;;  %v2211_v10 = vld [vmem:[%s2778_s3 + $0x10] sm:$0xff] (!%p274_p3)   ;;  %vm939_vm3 = vsmask.f32 (!%p274_p3), 7424  ;;  %vm1341_vm4 = vcmask (!%p274_p3), 1046528  }
   0x9   : > { %v2204_v3 = vld [vmem:[%s2778_s3 + $0x80] sm:$0xff] (!%p274_p3)   ;;  %2045 = vmatpush3.bf16.msra.mxu0 (!%p274_p3), %v2203_v2  ;;  %v2208_v7 = vld [vmem:[%s2778_s3 + $0x88] sm:$0xff] (!%p274_p3)   ;;  %v2212_v11 = vld [vmem:[%s2778_s3 + $0x90] sm:$0xff] (!%p274_p3)   ;;  %v423_v32 = vshrl.u32 (!%p274_p3), %v2460_v27, 16  ;;  %v419_v38 = vshrl.u32 (!%p274_p3), %v2479_v33, 16 }
   0xa   : > { %2067 = vmatpush3.bf16.msra.mxu1 (!%p274_p3), %v2204_v3  ;;  %2046 = vmatprep.subr.bf16.mxu0 (!%p274_p3), %v2205_v4  ;;  %v2213_v12 = vld [vmem:[%s2778_s3 + $0x58] sm:$0xff] (!%p274_p3)   ;;  %v2217_v16 = vld [vmem:[%s2778_s3 + $0x60] sm:$0xff] (!%p274_p3)   ;;  %v2221_v20 = vld [vmem:[%s2778_s3 + $0x68] sm:$0xff] (!%p274_p3)   ;;  %v504_v3 = vshll.u32 (!%p274_p3), %v2460_v27, 16 }
   0xb   : > { %2068 = vmatprep.subr.bf16.mxu1 (!%p274_p3), %v2206_v5  ;;  %v2214_v13 = vld [vmem:[%s2778_s3 + $0xd8] sm:$0xff] (!%p274_p3)   ;;  %v2218_v17 = vld [vmem:[%s2778_s3 + $0xe0] sm:$0xff] (!%p274_p3)   ;;  %v2222_v21 = vld [vmem:[%s2778_s3 + $0xe8] sm:$0xff] (!%p274_p3)   ;;  %v425_v37 = vrot.slane (!%p274_p3), %v423_v32, 3  ;;  %v421_v51 = vrot.slane (!%p274_p3), %v419_v38, 3 }
   0xc   : > { %v2215_v14 = vld [vmem:[%s2778_s3 + $0x18] sm:$0xff] (!%p274_p3)   ;;  %v2219_v18 = vld [vmem:[%s2778_s3 + $0x20] sm:$0xff] (!%p274_p3)   ;;  %v2223_v22 = vld [vmem:[%s2778_s3 + $0x28] sm:$0xff] (!%p274_p3)  }
   0xd   : > { %2047 = vmatpush3.bf16.msra.mxu0 (!%p274_p3), %v2207_v6  ;;  %v2216_v15 = vld [vmem:[%s2778_s3 + $0x98] sm:$0xff] (!%p274_p3)   ;;  %v2220_v19 = vld [vmem:[%s2778_s3 + $0xa0] sm:$0xff] (!%p274_p3)   ;;  %v2224_v23 = vld [vmem:[%s2778_s3 + $0xa8] sm:$0xff] (!%p274_p3)  }
   0xe   : > { %2069 = vmatpush3.bf16.msra.mxu1 %v2208_v7  ;;  %2048 = vmatprep.subr.bf16.mxu0 %v2209_v8  ;;  %s2788_s18 = smov (!%p337_p4, %s2317_s18), 1  ;;  %v2225_v24 = vld [vmem:[%s2778_s3 + $0x70] sm:$0xff]   ;;  %v2229_v30 = vld [vmem:[%s2778_s3 + $0x78] sm:$0xff]   ;;  %v2239_v48 = vld [vmem:[%s2778_s3 + $0x140] sm:$0xff]  }
   0xf   : > { %2070 = vmatprep.subr.bf16.mxu1 %v2210_v9  ;;  %v2226_v25 = vld [vmem:[%s2778_s3 + $0xf0] sm:$0xff]   ;;  %s2032_s28 = sshll.u32 %s2788_s18, 5  ;;  %v2230_v31 = vld [vmem:[%s2778_s3 + $0xf8] sm:$0xff]   ;;  %v2240_v49 = vld [vmem:[%s2778_s3 + $0x1c0] sm:$0xff]   ;;  %s2036_s9 = sshll.u32 %s2788_s18, 3 }
  0x10   : > { %v2227_v28 = vld [vmem:[%s2778_s3 + $0x30] sm:$0xff]   ;;  %s345_s12 = scalar_lea.vmem %s2775_s0, %s2032_s28  ;;  %v2231_v34 = vld [vmem:[%s2778_s3 + $0x38] sm:$0xff]   ;;  %vm2495_vm2 = vmand %vm516_vm0, %vm517_vm1 }
  0x11   : > { %2049 = vmatpush3.bf16.msra.mxu0 %v2211_v10  ;;  %v2228_v29 = vld [vmem:[%s2778_s3 + $0xb0] sm:$0xff]   ;;  %v2232_v35 = vld [vmem:[%s2778_s3 + $0xb8] sm:$0xff]   ;;  %v2241_v59 = vld [vmem:[%s2778_s3 + $0x100] sm:$0xff]  }
  0x12   : > { %2071 = vmatpush3.bf16.msra.mxu1 %v2212_v11  ;;  %2050 = vmatprep.subr.bf16.mxu0 %v2213_v12  ;;  %v2233_v36 = vld [vmem:[%s345_s12 + $0x4] ss:$16 sps:$4 sm:$0xff]   ;;  %v2235_v41 = vld [vmem:[%s345_s12 + $0xc] ss:$16 sps:$4 sm:$0xff]   ;;  %v2237_v42 = vld [vmem:[%s345_s12] ss:$16 sps:$4 sm:$0xff]  }
  0x13   : > { %2072 = vmatprep.subr.bf16.mxu1 %v2214_v13  ;;  %v462_v39 = vshrl.u32 %v2233_v36, 16  ;;  %v465_v40 = vshll.u32 %v2233_v36, 16  ;;  %v2238_v43 = vld [vmem:[%s345_s12 + $0x8] ss:$16 sps:$4 sm:$0xff]   ;;  %v476_v45 = vshrl.u32 %v2235_v41, 16  ;;  %v479_v46 = vshll.u32 %v2235_v41, 16  ;;  %s389_s12 = scalar_lea.vmem %s2780_s5, %s2036_s9 }
  0x14   : > { %v455_v47 = vshrl.u32 %v2237_v42, 16  ;;  %v458_v52 = vshll.u32 %v2237_v42, 16  ;;  %v469_v53 = vshrl.u32 %v2238_v43, 16  ;;  %v472_v54 = vshll.u32 %v2238_v43, 16  ;;  %v2242_v1 = vld [vmem:[%s2778_s3 + $0x180] sm:$0xff]   ;;  %v2243_v2 = vld [vmem:[%s2778_s3 + $0x148] sm:$0xff]  }
  0x15   : > { %2051 = vmatpush3.bf16.msra.mxu0 %v2215_v14  ;;  %v464_v44 = vrot.slane %v462_v39, 7  ;;  %v478_v56 = vrot.slane %v476_v45, 7  ;;  %v2244_v8 = vld [vmem:[%s2778_s3 + $0x1c8] sm:$0xff]   ;;  %v2252_v27 = vld [vmem:[%s2778_s3 + $0x1d8] sm:$0xff]   ;;  %v2256_v36 = vld [vmem:[%s2778_s3 + $0x1e0] sm:$0xff]  }
  0x16   : > { %2073 = vmatpush3.bf16.msra.mxu1 %v2216_v15  ;;  %2052 = vmatprep.subr.bf16.mxu0 %v2217_v16  ;;  %v2499_v57 = vrot.slane %v455_v47, 7  ;;  %v2501_v58 = vrot.slane %v469_v53, 7  ;;  %v2245_v11 = vld [vmem:[%s2778_s3 + $0x108] sm:$0xff]   ;;  %v2247_v16 = vld [vmem:[%s2778_s3 + $0x150] sm:$0xff]   ;;  %v2258_v38 = vld [vmem:[%s2778_s3 + $0x1a0] sm:$0xff]  }
  0x17   : > { %2074 = vmatprep.subr.bf16.mxu1 %v2218_v17  ;;  %v467_v55 = vor.u32 %v465_v40, %v464_v44  ;;  %v481_v61 = vor.u32 %v479_v46, %v478_v56  ;;  %v2246_v14 = vld [vmem:[%s2778_s3 + $0x188] sm:$0xff]   ;;  %v2550_v15 = vsel %vm2495_vm2, %v464_v44, %v504_v3  ;;  %v2557_v17 = vsel %vm2495_vm2, %v478_v56, %v504_v3  ;;  %v2264_v50 = vld [vmem:[%s2778_s3 + $0x1f0] sm:$0xff]   ;;  %v2267_v56 = vld [vmem:[%s2778_s3 + $0x178] sm:$0xff]  }
  0x18   : > { %v460_v62 = vor.u32 %v458_v52, %v2499_v57  ;;  %v474_v0 = vor.u32 %v472_v54, %v2501_v58  ;;  %v2260_v41 = vld [vmem:[%s2778_s3 + $0x1e8] sm:$0xff]   ;;  %v2265_v53 = vld [vmem:[%s2778_s3 + $0x130] sm:$0xff]   ;;  %v2271_v3 = vld [vmem:[%s2778_s3 + $0x240] sm:$0xff]  }
  0x19   : > { %2053 = vmatpush3.bf16.msra.mxu0 %v2219_v18  ;;  %v2508_v60 = vsel %vm2495_vm2, %v425_v37, %v467_v55  ;;  %v2523_v4 = vsel %vm2495_vm2, %v425_v37, %v481_v61  ;;  %v2248_v18 = vld [vmem:[%s2778_s3 + $0x1d0] sm:$0xff]   ;;  %v2257_v37 = vld [vmem:[%s2778_s3 + $0x120] sm:$0xff]   ;;  %v2261_v44 = vld [vmem:[%s2778_s3 + $0x128] sm:$0xff]  }
  0x1a   : > { %2075 = vmatpush3.bf16.msra.mxu1 %v2220_v19  ;;  %2054 = vmatprep.subr.bf16.mxu0 %v2221_v20  ;;  %v955_v63 = vshll.u32 %v2508_v60, 16  ;;  %v2527_v5 = vsel %vm2495_vm2, %v421_v51, %v460_v62  ;;  %v953_v6 = vshrl.u32 %v2508_v60, 16  ;;  %v979_v7 = vshll.u32 %v2523_v4, 16  ;;  %v2249_v19 = vld [vmem:[%s2778_s3 + $0x110] sm:$0xff]   ;;  %v2262_v47 = vld [vmem:[%s2778_s3 + $0x1a8] sm:$0xff]   ;;  %v2269_v61 = vld [vmem:[%s2778_s3 + $0x138] sm:$0xff]  }
  0x1b   : > { %2076 = vmatprep.subr.bf16.mxu1 %v2222_v21  ;;  %822 = vmatprep.mubr.bf16.mxu0 %v2508_v60  ;;  %v2538_v10 = vsel %vm2495_vm2, %v421_v51, %v474_v0  ;;  %v977_v12 = vshrl.u32 %v2523_v4, 16  ;;  %v960_v21 = vshll.u32 %v2550_v15, 16  ;;  %v941_v39 = vshrl.u32 %v2527_v5, 16  ;;  %v2266_v55 = vld [vmem:[%s2778_s3 + $0x1b0] sm:$0xff]   ;;  %v2270_v0 = vld [vmem:[%s2778_s3 + $0x1b8] sm:$0xff]  }
  0x1c   : > { %863 = vmatprep.mubr.bf16.mxu1 %v2523_v4  ;;  %v957_v9 = vrot.slane %v955_v63, 1  ;;  %v981_v13 = vrot.slane %v979_v7, 1  ;;  %v943_v40 = vshll.u32 %v2527_v5, 16  ;;  %v965_v43 = vshrl.u32 %v2538_v10, 16 }
  0x1d   : > { %2055 = vmatpush3.bf16.msra.mxu0 %v2223_v22  ;;  %v2250_v22 = vld [vmem:[%s2778_s3 + $0x190] sm:$0xff]   ;;  %v962_v26 = vrot.slane %v960_v21, 1  ;;  %v967_v46 = vshll.u32 %v2538_v10, 16  ;;  %v1345_v63 = vrot.slane %v2508_v60, 1  ;;  %v2272_v60 = vld [vmem:[%s2778_s3 + $0x2c0] sm:$0xff]   ;;  %v1352_v7 = vrot.slane %v2557_v17, 1 }
  0x1e   : > { %2077 = vmatpush3.bf16.msra.mxu1 %v2224_v23  ;;  %2056 = vmatprep.subr.bf16.mxu0 %v2225_v24  ;;  %v958_v20 = vor.u32 %v957_v9, %v953_v6  ;;  %v982_v23 = vor.u32 %v981_v13, %v977_v12  ;;  %v984_v24 = vshll.u32 %v2557_v17, 16  ;;  %v945_v52 = vrot.slane %v943_v40, 1  ;;  %v2273_v9 = vld [vmem:[%s2778_s3 + $0x200] sm:$0xff]   ;;  %v2275_v13 = vld [vmem:[%s2778_s3 + $0x248] sm:$0xff]   ;;  %v2282_v21 = vld [vmem:[%s2778_s3 + $0x290] sm:$0xff]  }
  0x1f   : > { %2078 = vmatprep.subr.bf16.mxu1 %v2226_v25  ;;  %v2251_v25 = vld [vmem:[%s2778_s3 + $0x158] sm:$0xff]   ;;  %v969_v54 = vrot.slane %v967_v46, 1  ;;  %v1351_v6 = vrot.slane %v2523_v4, 1  ;;  %v2278_v17 = vld [vmem:[%s2778_s3 + $0x288] sm:$0xff]  }
  0x20   : > { %v946_v62 = vor.u32 %v945_v52, %v941_v39  ;;  %v2299_v39 = vld [vmem:[%s2778_s3 + $0x278] sm:$0xff]  }
  0x21   : > { %2057 = vmatpush3.bf16.msra.mxu0 %v2227_v28  ;;  %v986_v28 = vrot.slane %v984_v24, 1  ;;  %v2285_v24 = vld [vmem:[%s2778_s3 + $0x218] sm:$0xff]  }
  0x22   : > { %2079 = vmatpush3.bf16.msra.mxu1 %v2228_v29  ;;  %2058 = vmatprep.subr.bf16.mxu0 %v2229_v30  ;;  %v2253_v29 = vld [vmem:[%s2778_s3 + $0x118] sm:$0xff]   ;;  %v963_v30 = vsel %vm939_vm3, %v958_v20, %v962_v26  ;;  %v2281_v20 = vld [vmem:[%s2778_s3 + $0x210] sm:$0xff]   ;;  %v2287_v26 = vld [vmem:[%s2778_s3 + $0x260] sm:$0xff]  }
  0x23   : > { %2080 = vmatprep.subr.bf16.mxu1 %v2230_v31  ;;  %v2254_v31 = vld [vmem:[%s2778_s3 + $0x198] sm:$0xff]   ;;  %v987_v32 = vsel %vm939_vm3, %v982_v23, %v986_v28  ;;  %v2289_v28 = vld [vmem:[%s2778_s3 + $0x220] sm:$0xff]  }
  0x24   : > { %v2284_v23 = vld [vmem:[%s2778_s3 + $0x2d8] sm:$0xff]  }
  0x25   : > { %2059 = vmatpush3.bf16.msra.mxu0 %v2231_v34  ;;  %v2255_v34 = vld [vmem:[%s2778_s3 + $0x160] sm:$0xff]   ;;  %v2300_v40 = vld [vmem:[%s2778_s3 + $0x2f8] sm:$0xff]  }
  0x26   : > { %2081 = vmatpush3.bf16.msra.mxu1 %v2232_v35  ;;  %2088 = vmatprep.subr.bf16.mxu0 %v2239_v48  ;;  %v501_v35 = vshll.u32 %v2479_v33, 16  ;;  %v2259_v33 = vld [vmem:[%s2778_s3 + $0x168] sm:$0xff]   ;;  %v2263_v48 = vld [vmem:[%s2778_s3 + $0x170] sm:$0xff]  }
  0x27   : > { %2110 = vmatprep.subr.bf16.mxu1 %v2240_v49 }
  0x28   : > { %823 = vmatmul.mubr.bf16.vlgmr.msra.gmra.mrb[0].mxu0 %v2527_v5  ;;  %v2608_v42 = vsel %vm2495_vm2, %v2499_v57, %v501_v35  ;;  %v2617_v45 = vsel %vm2495_vm2, %v2501_v58, %v501_v35  ;;  %v2268_v58 = vld [vmem:[%s2778_s3 + $0x1f8] sm:$0xff]   ;;  %v2295_v35 = vld [vmem:[%s2778_s3 + $0x270] sm:$0xff]  }
  0x29   : > { %2089 = vmatpush3.bf16.msra.mxu0 %v2241_v59  ;;  %864 = vmatmul.mubr.bf16.vlgmr.msra.gmra.mrb[0].mxu1 %v2538_v10  ;;  %v948_v49 = vshll.u32 %v2608_v42, 16  ;;  %v972_v51 = vshll.u32 %v2617_v45, 16  ;;  %v1349_v46 = vrot.slane %v2617_v45, 1 }
  0x2a   : > { %2090 = vmatprep.subr.bf16.mxu0 %v2243_v2  ;;  %2111 = vmatpush3.bf16.msra.mxu1 %v2242_v1  ;;  %v1346_v1 = vrot.slane %v2550_v15, 1  ;;  %v970_v2 = vor.u32 %v969_v54, %v965_v43  ;;  %v1353_v15 = vsel %vm1341_vm4, %v1351_v6, %v1352_v7  ;;  %v1343_v43 = vrot.slane %v2608_v42, 1 }
  0x2b   : > { %2112 = vmatprep.subr.bf16.mxu1 %v2244_v8  ;;  %1216 = vmatprep.mubr.bf16.mxu0 %v963_v30  ;;  %v950_v57 = vrot.slane %v948_v49, 1  ;;  %v974_v59 = vrot.slane %v972_v51, 1  ;;  %v2291_v30 = vld [vmem:[%s2778_s3 + $0x268] sm:$0xff]  }
  0x2c   : > { %1257 = vmatprep.mubr.bf16.mxu1 %v987_v32  ;;  %v1347_v4 = vsel %vm1341_vm4, %v1345_v63, %v1346_v1  ;;  %v2293_v32 = vld [vmem:[%s2778_s3 + $0x228] sm:$0xff]  }
  0x2d   : > { %2091 = vmatpush3.bf16.msra.mxu0 %v2245_v11  ;;  %v951_v8 = vsel %vm939_vm3, %v946_v62, %v950_v57  ;;  %v2274_v11 = vld [vmem:[%s2778_s3 + $0x280] sm:$0xff]   ;;  %v975_v12 = vsel %vm939_vm3, %v970_v2, %v974_v59 }
  0x2e   : > { %2092 = vmatprep.subr.bf16.mxu0 %v2247_v16  ;;  %2113 = vmatpush3.bf16.msra.mxu1 %v2246_v14  ;;  %v2276_v14 = vld [vmem:[%s2778_s3 + $0x2c8] sm:$0xff]   ;;  %v1803_v2 = vld [vmem:[%s2779_s4] ss:$0 sm:$0xff] }
  0x2f   : > { %2114 = vmatprep.subr.bf16.mxu1 %v2248_v18  ;;  %v2277_v16 = vld [vmem:[%s2778_s3 + $0x208] sm:$0xff]   ;;  %v2279_v18 = vld [vmem:[%s2778_s3 + $0x250] sm:$0xff]  }
  0x31   : > { %2093 = vmatpush3.bf16.msra.mxu0 %v2249_v19  ;;  %v2280_v19 = vld [vmem:[%s2778_s3 + $0x2d0] sm:$0xff]  }
  0x32   : > { %2094 = vmatprep.subr.bf16.mxu0 %v2251_v25  ;;  %2115 = vmatpush3.bf16.msra.mxu1 %v2250_v22  ;;  %v2283_v22 = vld [vmem:[%s2778_s3 + $0x258] sm:$0xff]  }
  0x33   : > { %2116 = vmatprep.subr.bf16.mxu1 %v2252_v27  ;;  %v2286_v25 = vld [vmem:[%s2778_s3 + $0x298] sm:$0xff]   ;;  %v2288_v27 = vld [vmem:[%s2778_s3 + $0x2e0] sm:$0xff]  }
  0x35   : > { %2095 = vmatpush3.bf16.msra.mxu0 %v2253_v29  ;;  %v2290_v29 = vld [vmem:[%s2778_s3 + $0x2a0] sm:$0xff]  }
  0x36   : > { %2096 = vmatprep.subr.bf16.mxu0 %v2255_v34  ;;  %2117 = vmatpush3.bf16.msra.mxu1 %v2254_v31  ;;  %v2292_v31 = vld [vmem:[%s2778_s3 + $0x2e8] sm:$0xff]  }
  0x37   : > { %2118 = vmatprep.subr.bf16.mxu1 %v2256_v36  ;;  %v2294_v34 = vld [vmem:[%s2778_s3 + $0x2a8] sm:$0xff]   ;;  %v2296_v36 = vld [vmem:[%s2778_s3 + $0x2f0] sm:$0xff]  }
  0x39   : > { %2097 = vmatpush3.bf16.msra.mxu0 %v2257_v37  ;;  %v2297_v37 = vld [vmem:[%s2778_s3 + $0x230] sm:$0xff]  }
  0x3a   : > { %2098 = vmatprep.subr.bf16.mxu0 %v2259_v33  ;;  %2119 = vmatpush3.bf16.msra.mxu1 %v2258_v38  ;;  %v2298_v38 = vld [vmem:[%s2778_s3 + $0x2b0] sm:$0xff]   ;;  %v1342_v33 = vrot.slane %v2527_v5, 1  ;;  %v2302_v5 = vld [vmem:[%s2778_s3 + $0x2b8] sm:$0xff]  }
  0x3b   : > { %2120 = vmatprep.subr.bf16.mxu1 %v2260_v41  ;;  %v2301_v41 = vld [vmem:[%s2778_s3 + $0x238] sm:$0xff]  }
  0x3d   : > { %2099 = vmatpush3.bf16.msra.mxu0 %v2261_v44  ;;  %v1348_v44 = vrot.slane %v2538_v10, 1 }
  0x3e   : > { %2100 = vmatprep.subr.bf16.mxu0 %v2263_v48  ;;  %2121 = vmatpush3.bf16.msra.mxu1 %v2262_v47  ;;  %v1344_v47 = vsel %vm1341_vm4, %v1342_v33, %v1343_v43 }
  0x3f   : > { %2122 = vmatprep.subr.bf16.mxu1 %v2264_v50  ;;  %v1350_v48 = vsel %vm1341_vm4, %v1348_v44, %v1349_v46 }
  0x41   : > { %2101 = vmatpush3.bf16.msra.mxu0 %v2265_v53 }
  0x42   : > { %2102 = vmatprep.subr.bf16.mxu0 %v2267_v56  ;;  %2123 = vmatpush3.bf16.msra.mxu1 %v2266_v55 }
  0x43   : > { %2124 = vmatprep.subr.bf16.mxu1 %v2268_v58 }
  0x45   : > { %2103 = vmatpush3.bf16.msra.mxu0 %v2269_v61 }
  0x46   : > { %2132 = vmatprep.subr.bf16.mxu0 %v2271_v3  ;;  %2125 = vmatpush3.bf16.msra.mxu1 %v2270_v0 }
  0x47   : > { %2154 = vmatprep.subr.bf16.mxu1 %v2272_v60 }
  0x48   : > { %1217 = vmatmul.mubr.bf16.vlgmr.msra.gmra.mrb[4].mxu0 %v951_v8 }
  0x49   : > { %2133 = vmatpush3.bf16.msra.mxu0 %v2273_v9  ;;  %1582 = vmatprep.mubr.bf16.mxu0 %v1347_v4 }
  0x4a   : > { %1258 = vmatmul.mubr.bf16.vlgmr.msra.gmra.mrb[4].mxu1 %v975_v12  ;;  %2134 = vmatprep.subr.bf16.mxu0 %v2275_v13 }
  0x4b   : > { %2155 = vmatpush3.bf16.msra.mxu1 %v2274_v11  ;;  %1623 = vmatprep.mubr.bf16.mxu1 %v1353_v15 }
  0x4c   : > { %2156 = vmatprep.subr.bf16.mxu1 %v2276_v14 }
  0x4d   : > { %2135 = vmatpush3.bf16.msra.mxu0 %v2277_v16 }
  0x4e   : > { %2136 = vmatprep.subr.bf16.mxu0 %v2279_v18 }
  0x4f   : > { %2157 = vmatpush3.bf16.msra.mxu1 %v2278_v17 }
  0x50   : > { %2158 = vmatprep.subr.bf16.mxu1 %v2280_v19 }
  0x51   : > { %2137 = vmatpush3.bf16.msra.mxu0 %v2281_v20 }
  0x52   : > { %2138 = vmatprep.subr.bf16.mxu0 %v2283_v22 }
  0x53   : > { %2159 = vmatpush3.bf16.msra.mxu1 %v2282_v21 }
  0x54   : > { %2160 = vmatprep.subr.bf16.mxu1 %v2284_v23 }
  0x55   : > { %2139 = vmatpush3.bf16.msra.mxu0 %v2285_v24 }
  0x56   : > { %2140 = vmatprep.subr.bf16.mxu0 %v2287_v26 }
  0x57   : > { %2161 = vmatpush3.bf16.msra.mxu1 %v2286_v25 }
  0x58   : > { %2162 = vmatprep.subr.bf16.mxu1 %v2288_v27 }
  0x59   : > { %2141 = vmatpush3.bf16.msra.mxu0 %v2289_v28 }
  0x5a   : > { %2142 = vmatprep.subr.bf16.mxu0 %v2291_v30 }
  0x5b   : > { %2163 = vmatpush3.bf16.msra.mxu1 %v2290_v29 }
  0x5c   : > { %2164 = vmatprep.subr.bf16.mxu1 %v2292_v31 }
  0x5d   : > { %2143 = vmatpush3.bf16.msra.mxu0 %v2293_v32 }
  0x5e   : > { %2144 = vmatprep.subr.bf16.mxu0 %v2295_v35 }
  0x5f   : > { %2165 = vmatpush3.bf16.msra.mxu1 %v2294_v34 }
  0x60   : > { %2166 = vmatprep.subr.bf16.mxu1 %v2296_v36 }
  0x61   : > { %2145 = vmatpush3.bf16.msra.mxu0 %v2297_v37 }
  0x62   : > { %2146 = vmatprep.subr.bf16.mxu0 %v2299_v39 }
  0x63   : > { %2167 = vmatpush3.bf16.msra.mxu1 %v2298_v38 }
  0x64   : > { %2168 = vmatprep.subr.bf16.mxu1 %v2300_v40 }
  0x65   : > { %2147 = vmatpush3.bf16.msra.mxu0 %v2301_v41 }
  0x67   : > { %2169 = vmatpush3.bf16.msra.mxu1 %v2302_v5 }
  0x68   : > { %1583 = vmatmul.mubr.bf16.vlgmr.msra.gmra.mrb[8].mxu0 %v1344_v47 }
  0x6a   : > { %1624 = vmatmul.mubr.bf16.vlgmr.msra.gmra.mrb[8].mxu1 %v1350_v48 }
  0xfb   : > { %v2060_v42 = vpop.f32.mrb[0].mxu0 }
  0xfc   : > { %v2061_v49 = vpop.f32.mrb[1].mxu0  ;;  %v2082_v50 = vpop.f32.mrb[0].mxu1 }
  0xfd   : > { %v2062_v10 = vadd.f32 %v2061_v49, %v2060_v42  ;;  %v2063_v51 = vpop.f32.mrb[2].mxu0  ;;  %v2083_v52 = vpop.f32.mrb[1].mxu1 }
  0xfe   : > { %v2064_v53 = vpop.f32.mrb[3].mxu0  ;;  %v2084_v54 = vadd.f32 %v2083_v52, %v2082_v50  ;;  %v2085_v55 = vpop.f32.mrb[2].mxu1 }
  0xff   : > { %v2065_v56 = vadd.f32 %v2064_v53, %v2063_v51  ;;  %v2086_v45 = vpop.f32.mrb[3].mxu1 }
 0x100   : > { %v866_v57 = vadd.f32 %v2084_v54, %v2062_v10  ;;  %v2087_v58 = vadd.f32 %v2086_v45, %v2085_v55 }
 0x102   : > { %v869_v59 = vadd.f32 %v2087_v58, %v2065_v56  ;;  %v872_v11 = vadd.f32 %v1803_v2, %v866_v57 }
 0x104   : > { %v873_v13 = vadd.f32 %v1803_v2, %v869_v59 }
 0x11b   : > { %v2104_v61 = vpop.f32.mrb[4].mxu0 }
 0x11c   : > { %v2105_v62 = vpop.f32.mrb[5].mxu0 }
 0x11d   : > { %v2126_v63 = vpop.f32.mrb[4].mxu1  ;;  %v2106_v0 = vadd.f32 %v2105_v62, %v2104_v61  ;;  %v2107_v1 = vpop.f32.mrb[6].mxu0 }
 0x11e   : > { %v2127_v3 = vpop.f32.mrb[5].mxu1  ;;  %v2108_v6 = vpop.f32.mrb[7].mxu0 }
 0x11f   : > { %v2128_v60 = vadd.f32 %v2127_v3, %v2126_v63  ;;  %v2129_v7 = vpop.f32.mrb[6].mxu1  ;;  %v2109_v8 = vadd.f32 %v2108_v6, %v2107_v1 }
 0x120   : > { %v2130_v9 = vpop.f32.mrb[7].mxu1 }
 0x121   : > { %v1260_v4 = vadd.f32 %v2128_v60, %v2106_v0  ;;  %v2131_v12 = vadd.f32 %v2130_v9, %v2129_v7 }
 0x123   : > { %v1266_v14 = vadd.f32 %v1260_v4, %v872_v11  ;;  %v1263_v15 = vadd.f32 %v2131_v12, %v2109_v8 }
 0x125   : > { %v1267_v16 = vadd.f32 %v1263_v15, %v873_v13 }
 0x13b   : > { %v2148_v17 = vpop.f32.mrb[8].mxu0 }
 0x13c   : > { %v2149_v18 = vpop.f32.mrb[9].mxu0 }
 0x13d   : > { %v2170_v19 = vpop.f32.mrb[8].mxu1  ;;  %v2150_v20 = vadd.f32 %v2149_v18, %v2148_v17  ;;  %v2151_v21 = vpop.f32.mrb[10].mxu0 }
 0x13e   : > { %v2171_v22 = vpop.f32.mrb[9].mxu1  ;;  %v2152_v23 = vpop.f32.mrb[11].mxu0 }
 0x13f   : > { %v2172_v24 = vadd.f32 %v2171_v22, %v2170_v19  ;;  %v2173_v25 = vpop.f32.mrb[10].mxu1  ;;  %v2153_v26 = vadd.f32 %v2152_v23, %v2151_v21 }
 0x140   : > { %v2174_v27 = vpop.f32.mrb[11].mxu1 }
 0x141   : > { %v1626_v28 = vadd.f32 %v2172_v24, %v2150_v20  ;;  %v2175_v29 = vadd.f32 %v2174_v27, %v2173_v25 }
 0x143   : > { %v1632_v30 = vadd.f32 %v1626_v28, %v1266_v14  ;;  %v1629_v31 = vadd.f32 %v2175_v29, %v2153_v26 }
 0x145   : > { %v1633_v32 = vadd.f32 %v1629_v31, %v1267_v16  ;;  %v1634_v34 = vmax.f32 %v1632_v30, 0.0 }
 0x147   : > { %v1635_v35 = vmax.f32 %v1633_v32, 0.0 }
 0x149   : > { %v2042_v36 = vpack.c.bf16 %v1635_v35, %v1634_v34 }
 0x14b   : > { %2043 = vst [vmem:[%s389_s12] sm:$0xff] %v2042_v36  }
 0x14c PF: > { %s15_s20 = sadd.s32 1, %s2325_s20   ;;  %s2783_s18 = smov %s2321_s19 }
 0x14d   : > { %p12_p5 = scmp.ge.s32.totalorder %s15_s20, 4   ;;  %s2784_s19 = smov %s2786_s1 }
 0x14f   :  { %14 = sbr.rel (!%p12_p5) target bundleno = 2 (0x2), region = 78 }

// kernel: forward.11
= control target key start
LH: loop header
LB: loop body
LE: loop exit
PB: predicated region body
PF: predicated region fallthrough
CT: control target
= control target key end

     0   :  { %s1830_s18 = smov 0   ;;  %s1832_s19 = smov 0   ;;  %s2179_s0 = inlined_call_operand.vmem [shape: bf16[2,8,128], index: 0, kind: input, shape index: {}, may-alias: {0,1,2}]   ;;  %s2180_s1 = inlined_call_operand.vmem [shape: bf16[2,8,128], index: 1, kind: input, shape index: {}, may-alias: {0,1,2}]   ;;  %s2181_s2 = inlined_call_operand.vmem [shape: bf16[2,8,128], index: 2, kind: input, shape index: {}, may-alias: {0,1,2}]   ;;  %s2182_s3 = inlined_call_operand.vmem [shape: bf16[3,128,512], index: 3, kind: input, shape index: {}]   ;;  %s2183_s4 = inlined_call_operand.vmem [shape: f32[1,512], index: 4, kind: input, shape index: {}]   ;;  %s2184_s5 = inlined_call_operand.vmem [shape: bf16[2,8,512], index: 5, kind: output, shape index: {}]  }
   0x1   :  { %s1834_s20 = smov 0  }
   0x2 LB: > { %s27_s1 = sadd.s32 1, %s1793_s19  ;;  %p1409_p0 = scmp.ge.s32.totalorder %s1797_s20, 1  ;;  %s1797_s20 = sphi %s1834_s20, %s15_s20   ;;  %s1793_s19 = sphi %s1832_s19, %s2186_s19   ;;  %s1789_s18 = sphi %s1830_s18, %s2185_s18  }
   0x3   : > { %p29_p1 = scmp.ge.s32.totalorder %s27_s1, 2  ;;  %p257_p2 = scmp.lt.s32.totalorder %s1797_s20, 3 }
   0x5   : > { %s2188_s1 = smov (%p29_p1, %s27_s1), 0  ;;  %p258_p3 = pnand %p1409_p0, %p257_p2 }
   0x6   : > { %v1630_v0 = vld [vmem:[%s2182_s3 + $0x4] ss:$16 sps:$4 sm:$0xff] (!%p258_p3)   ;;  %v1632_v1 = vld [vmem:[%s2182_s3 + $0xc] ss:$16 sps:$4 sm:$0xff] (!%p258_p3)   ;;  %v1799_v2 = vmov (!%p258_p3), 0   ;;  %p311_p4 = scmp.lt.s32.totalorder (!%p258_p3), %s1789_s18, 1 }
   0x7   : > { %261 = sbr.rel (%p258_p3) target bundleno = 324 (0x144), region = 40  ;;  %644 = vmatprep.mubr.bf16.mxu0 (!%p258_p3), %v1799_v2  ;;  %685 = vmatprep.mubr.bf16.mxu1 (!%p258_p3), %v1799_v2  ;;  %v1634_v3 = vld [vmem:[%s2182_s3] ss:$16 sps:$4 sm:$0xff] (!%p258_p3)   ;;  %v1635_v4 = vld [vmem:[%s2182_s3 + $0x8] ss:$16 sps:$4 sm:$0xff] (!%p258_p3)   ;;  %v1415_v24 = vcombine.low (!%p258_p3), %v1799_v2, %v1799_v2  ;;  %vm390_vm0 = vcmask (!%p258_p3), 1040384  }
   0x8   : > { %612 = vmatprep.subr.bf16.mxu0 (!%p258_p3), %v1630_v0  ;;  %653 = vmatprep.subr.bf16.mxu1 (!%p258_p3), %v1632_v1  ;;  %v1636_v5 = vld [vmem:[%s2182_s3 + $0x24] ss:$16 sps:$4 sm:$0xff] (!%p258_p3)   ;;  %v1638_v6 = vld [vmem:[%s2182_s3 + $0x2c] ss:$16 sps:$4 sm:$0xff] (!%p258_p3)   ;;  %v1640_v7 = vld [vmem:[%s2182_s3 + $0x20] ss:$16 sps:$4 sm:$0xff] (!%p258_p3)  }
   0x9   : > { %613 = vmatpush1.bf16.msra.mxu0 (!%p258_p3), %v1634_v3  ;;  %654 = vmatpush1.bf16.msra.mxu1 (!%p258_p3), %v1635_v4  ;;  %v1641_v8 = vld [vmem:[%s2182_s3 + $0x28] ss:$16 sps:$4 sm:$0xff] (!%p258_p3)   ;;  %v1642_v9 = vld [vmem:[%s2182_s3 + $0x44] ss:$16 sps:$4 sm:$0xff] (!%p258_p3)   ;;  %v1644_v10 = vld [vmem:[%s2182_s3 + $0x4c] ss:$16 sps:$4 sm:$0xff] (!%p258_p3)  }
   0xa   : > { %614 = vmatprep.subr.bf16.mxu0 (!%p258_p3), %v1636_v5  ;;  %655 = vmatprep.subr.bf16.mxu1 (!%p258_p3), %v1638_v6  ;;  %v1646_v11 = vld [vmem:[%s2182_s3 + $0x40] ss:$16 sps:$4 sm:$0xff] (!%p258_p3)   ;;  %v1647_v12 = vld [vmem:[%s2182_s3 + $0x48] ss:$16 sps:$4 sm:$0xff] (!%p258_p3)   ;;  %v1648_v13 = vld [vmem:[%s2182_s3 + $0x64] ss:$16 sps:$4 sm:$0xff] (!%p258_p3)  }
   0xb   : > { %v1650_v14 = vld [vmem:[%s2182_s3 + $0x6c] ss:$16 sps:$4 sm:$0xff] (!%p258_p3)   ;;  %v1652_v15 = vld [vmem:[%s2182_s3 + $0x60] ss:$16 sps:$4 sm:$0xff] (!%p258_p3)   ;;  %v1653_v16 = vld [vmem:[%s2182_s3 + $0x68] ss:$16 sps:$4 sm:$0xff] (!%p258_p3)  }
   0xc   : > { %v1654_v17 = vld [vmem:[%s2182_s3 + $0x84] ss:$16 sps:$4 sm:$0xff] (!%p258_p3)   ;;  %v1656_v18 = vld [vmem:[%s2182_s3 + $0x8c] ss:$16 sps:$4 sm:$0xff] (!%p258_p3)   ;;  %v1658_v19 = vld [vmem:[%s2182_s3 + $0x80] ss:$16 sps:$4 sm:$0xff] (!%p258_p3)  }
   0xd   : > { %615 = vmatpush1.bf16.msra.mxu0 (!%p258_p3), %v1640_v7  ;;  %656 = vmatpush1.bf16.msra.mxu1 (!%p258_p3), %v1641_v8  ;;  %v1659_v20 = vld [vmem:[%s2182_s3 + $0x88] ss:$16 sps:$4 sm:$0xff] (!%p258_p3)   ;;  %v1660_v21 = vld [vmem:[%s2182_s3 + $0xa4] ss:$16 sps:$4 sm:$0xff] (!%p258_p3)   ;;  %v1662_v22 = vld [vmem:[%s2182_s3 + $0xac] ss:$16 sps:$4 sm:$0xff] (!%p258_p3)  }
   0xe   : > { %616 = vmatprep.subr.bf16.mxu0 %v1642_v9  ;;  %657 = vmatprep.subr.bf16.mxu1 %v1644_v10  ;;  %s2190_s18 = smov (!%p311_p4, %s1789_s18), 1  ;;  %v1664_v23 = vld [vmem:[%s2182_s3 + $0xa0] ss:$16 sps:$4 sm:$0xff]   ;;  %v1665_v25 = vld [vmem:[%s2182_s3 + $0xa8] ss:$16 sps:$4 sm:$0xff]   ;;  %v367_v30 = vshrl.u32 %v1415_v24, 16 }
   0xf   : > { %s1410_s16 = sshll.u32 %s2190_s18, 2  ;;  %v1666_v26 = vld [vmem:[%s2182_s3 + $0xc4] ss:$16 sps:$4 sm:$0xff]   ;;  %v1668_v27 = vld [vmem:[%s2182_s3 + $0xcc] ss:$16 sps:$4 sm:$0xff]   ;;  %v386_v34 = vshll.u32 %v1415_v24, 16 }
  0x10   : > { %s317_s29 = scalar_lea.vmem %s2179_s0, %s1410_s16  ;;  %v1670_v28 = vld [vmem:[%s2182_s3 + $0xc0] ss:$16 sps:$4 sm:$0xff]   ;;  %v1671_v29 = vld [vmem:[%s2182_s3 + $0xc8] ss:$16 sps:$4 sm:$0xff]   ;;  %v1672_v31 = vld [vmem:[%s2182_s3 + $0xe4] ss:$16 sps:$4 sm:$0xff]  }
  0x11   : > { %617 = vmatpush1.bf16.msra.mxu0 %v1646_v11  ;;  %658 = vmatpush1.bf16.msra.mxu1 %v1647_v12  ;;  %v1684_v32 = vld [vmem:[%s317_s29] ss:$0 sps:$4 sm:$0xff]   ;;  %v1674_v33 = vld [vmem:[%s2182_s3 + $0xec] ss:$16 sps:$4 sm:$0xff]   ;;  %vm394_vm1 = vcmask 1044480   ;;  %v369_v40 = vrot.slane %v367_v30, 3 }
  0x12   : > { %618 = vmatprep.subr.bf16.mxu0 %v1648_v13  ;;  %659 = vmatprep.subr.bf16.mxu1 %v1650_v14  ;;  %v1676_v35 = vld [vmem:[%s2182_s3 + $0xe0] ss:$16 sps:$4 sm:$0xff]   ;;  %v375_v36 = vshrl.u32 %v1684_v32, 16  ;;  %v378_v37 = vshll.u32 %v1684_v32, 16  ;;  %vm391_vm2 = vsmask.f32 256 }
  0x13   : > { %v1677_v38 = vld [vmem:[%s2182_s3 + $0xe8] ss:$16 sps:$4 sm:$0xff]   ;;  %vm395_vm3 = vsmask.f32 4352  ;;  %v1680_v39 = vld [vmem:[%s2182_s3 + $0x104] ss:$16 sps:$4 sm:$0xff]   ;;  %vm392_vm4 = vmand %vm390_vm0, %vm391_vm2 }
  0x14   : > { %v377_v41 = vrot.slane %v375_v36, 7  ;;  %v1683_v42 = vld [vmem:[%s2182_s3 + $0x10c] ss:$16 sps:$4 sm:$0xff]   ;;  %v388_v43 = vrot.slane %v386_v34, 4  ;;  %vm396_vm5 = vmand %vm394_vm1, %vm395_vm3  ;;  %v1678_v45 = vld [vmem:[%s2182_s3 + $0x100] ss:$16 sps:$4 sm:$0xff]  }
  0x15   : > { %619 = vmatpush1.bf16.msra.mxu0 %v1652_v15  ;;  %660 = vmatpush1.bf16.msra.mxu1 %v1653_v16  ;;  %v1681_v46 = vld [vmem:[%s2182_s3 + $0x108] ss:$16 sps:$4 sm:$0xff]   ;;  %v1687_v49 = vld [vmem:[%s2182_s3 + $0x124] ss:$16 sps:$4 sm:$0xff]   ;;  %v1690_v50 = vld [vmem:[%s2182_s3 + $0x12c] ss:$16 sps:$4 sm:$0xff]  }
  0x16   : > { %620 = vmatprep.subr.bf16.mxu0 %v1654_v17  ;;  %661 = vmatprep.subr.bf16.mxu1 %v1656_v18  ;;  %v380_v44 = vor.u32 %v378_v37, %v377_v41  ;;  %v1685_v51 = vld [vmem:[%s2182_s3 + $0x120] ss:$16 sps:$4 sm:$0xff]   ;;  %v1688_v52 = vld [vmem:[%s2182_s3 + $0x128] ss:$16 sps:$4 sm:$0xff]   ;;  %v1693_v53 = vld [vmem:[%s2182_s3 + $0x144] ss:$16 sps:$4 sm:$0xff]  }
  0x17   : > { %v1696_v54 = vld [vmem:[%s2182_s3 + $0x14c] ss:$16 sps:$4 sm:$0xff]   ;;  %v1691_v55 = vld [vmem:[%s2182_s3 + $0x140] ss:$16 sps:$4 sm:$0xff]   ;;  %v1694_v56 = vld [vmem:[%s2182_s3 + $0x148] ss:$16 sps:$4 sm:$0xff]  }
  0x18   : > { %v393_v47 = vsel %vm392_vm4, %v369_v40, %v380_v44  ;;  %v1699_v57 = vld [vmem:[%s2182_s3 + $0x164] ss:$16 sps:$4 sm:$0xff]   ;;  %v1702_v58 = vld [vmem:[%s2182_s3 + $0x16c] ss:$16 sps:$4 sm:$0xff]   ;;  %v1697_v59 = vld [vmem:[%s2182_s3 + $0x160] ss:$16 sps:$4 sm:$0xff]  }
  0x19   : > { %621 = vmatpush1.bf16.msra.mxu0 %v1658_v19  ;;  %662 = vmatpush1.bf16.msra.mxu1 %v1659_v20  ;;  %v1972_v48 = vsel %vm396_vm5, %v393_v47, %v388_v43  ;;  %v1700_v60 = vld [vmem:[%s2182_s3 + $0x168] ss:$16 sps:$4 sm:$0xff]   ;;  %v1705_v61 = vld [vmem:[%s2182_s3 + $0x184] ss:$16 sps:$4 sm:$0xff]   ;;  %v1708_v62 = vld [vmem:[%s2182_s3 + $0x18c] ss:$16 sps:$4 sm:$0xff]  }
  0x1a   : > { %622 = vmatprep.subr.bf16.mxu0 %v1660_v21  ;;  %663 = vmatprep.subr.bf16.mxu1 %v1662_v22  ;;  %v1703_v63 = vld [vmem:[%s2182_s3 + $0x180] ss:$16 sps:$4 sm:$0xff]   ;;  %v1706_v0 = vld [vmem:[%s2182_s3 + $0x188] ss:$16 sps:$4 sm:$0xff]   ;;  %v1711_v1 = vld [vmem:[%s2182_s3 + $0x1a4] ss:$16 sps:$4 sm:$0xff]  }
  0x1b   : > { %v1714_v3 = vld [vmem:[%s2182_s3 + $0x1ac] ss:$16 sps:$4 sm:$0xff]   ;;  %v1709_v4 = vld [vmem:[%s2182_s3 + $0x1a0] ss:$16 sps:$4 sm:$0xff]   ;;  %v1712_v5 = vld [vmem:[%s2182_s3 + $0x1a8] ss:$16 sps:$4 sm:$0xff]  }
  0x1c   : > { %v1717_v6 = vld [vmem:[%s2182_s3 + $0x1c4] ss:$16 sps:$4 sm:$0xff]   ;;  %v1720_v7 = vld [vmem:[%s2182_s3 + $0x1cc] ss:$16 sps:$4 sm:$0xff]   ;;  %v1715_v8 = vld [vmem:[%s2182_s3 + $0x1c0] ss:$16 sps:$4 sm:$0xff]  }
  0x1d   : > { %623 = vmatpush1.bf16.msra.mxu0 %v1664_v23  ;;  %664 = vmatpush1.bf16.msra.mxu1 %v1665_v25  ;;  %v734_v9 = vshll.u32 %v1972_v48, 16  ;;  %v1718_v10 = vld [vmem:[%s2182_s3 + $0x1c8] ss:$16 sps:$4 sm:$0xff]   ;;  %v1723_v11 = vld [vmem:[%s2182_s3 + $0x1e4] ss:$16 sps:$4 sm:$0xff]   ;;  %v732_v14 = vshrl.u32 %v1972_v48, 16 }
  0x1e   : > { %624 = vmatprep.subr.bf16.mxu0 %v1666_v26  ;;  %665 = vmatprep.subr.bf16.mxu1 %v1668_v27  ;;  %v1726_v12 = vld [vmem:[%s2182_s3 + $0x1ec] ss:$16 sps:$4 sm:$0xff]   ;;  %v1721_v13 = vld [vmem:[%s2182_s3 + $0x1e0] ss:$16 sps:$4 sm:$0xff]   ;;  %v1724_v16 = vld [vmem:[%s2182_s3 + $0x1e8] ss:$16 sps:$4 sm:$0xff]  }
  0x1f   : > { %v736_v15 = vrot.slane %v734_v9, 1  ;;  %v1729_v17 = vld [vmem:[%s2182_s3 + $0x204] ss:$16 sps:$4 sm:$0xff]   ;;  %v1732_v18 = vld [vmem:[%s2182_s3 + $0x20c] ss:$16 sps:$4 sm:$0xff]   ;;  %s1582_s9 = sshll.u32 %s2190_s18, 4 }
  0x20   : > { %v1727_v19 = vld [vmem:[%s2182_s3 + $0x200] ss:$16 sps:$4 sm:$0xff]   ;;  %v1730_v21 = vld [vmem:[%s2182_s3 + $0x208] ss:$16 sps:$4 sm:$0xff]   ;;  %v1735_v22 = vld [vmem:[%s2182_s3 + $0x224] ss:$16 sps:$4 sm:$0xff]   ;;  %s352_s12 = scalar_lea.vmem %s2184_s5, %s1582_s9 }
  0x21   : > { %625 = vmatpush1.bf16.msra.mxu0 %v1670_v28  ;;  %666 = vmatpush1.bf16.msra.mxu1 %v1671_v29  ;;  %v737_v20 = vor.u32 %v736_v15, %v732_v14  ;;  %v1738_v23 = vld [vmem:[%s2182_s3 + $0x22c] ss:$16 sps:$4 sm:$0xff]   ;;  %v1733_v24 = vld [vmem:[%s2182_s3 + $0x220] ss:$16 sps:$4 sm:$0xff]   ;;  %v1736_v25 = vld [vmem:[%s2182_s3 + $0x228] ss:$16 sps:$4 sm:$0xff]  }
  0x22   : > { %626 = vmatprep.subr.bf16.mxu0 %v1672_v31  ;;  %667 = vmatprep.subr.bf16.mxu1 %v1674_v33  ;;  %v1741_v26 = vld [vmem:[%s2182_s3 + $0x244] ss:$16 sps:$4 sm:$0xff]   ;;  %v1744_v27 = vld [vmem:[%s2182_s3 + $0x24c] ss:$16 sps:$4 sm:$0xff]   ;;  %v1739_v28 = vld [vmem:[%s2182_s3 + $0x240] ss:$16 sps:$4 sm:$0xff]  }
  0x23   : > { %v1742_v29 = vld [vmem:[%s2182_s3 + $0x248] ss:$16 sps:$4 sm:$0xff]   ;;  %v1747_v30 = vld [vmem:[%s2182_s3 + $0x264] ss:$16 sps:$4 sm:$0xff]   ;;  %v1745_v31 = vld [vmem:[%s2182_s3 + $0x260] ss:$16 sps:$4 sm:$0xff]  }
  0x24   : > { %v1748_v32 = vld [vmem:[%s2182_s3 + $0x268] ss:$16 sps:$4 sm:$0xff]   ;;  %v1753_v33 = vld [vmem:[%s2182_s3 + $0x284] ss:$16 sps:$4 sm:$0xff]   ;;  %v1756_v34 = vld [vmem:[%s2182_s3 + $0x28c] ss:$16 sps:$4 sm:$0xff]  }
  0x25   : > { %627 = vmatpush1.bf16.msra.mxu0 %v1676_v35  ;;  %668 = vmatpush1.bf16.msra.mxu1 %v1677_v38  ;;  %v1751_v35 = vld [vmem:[%s2182_s3 + $0x280] ss:$16 sps:$4 sm:$0xff]   ;;  %v1754_v36 = vld [vmem:[%s2182_s3 + $0x288] ss:$16 sps:$4 sm:$0xff]   ;;  %v1759_v37 = vld [vmem:[%s2182_s3 + $0x2a4] ss:$16 sps:$4 sm:$0xff]  }
  0x26   : > { %899 = vmatprep.subr.bf16.mxu0 %v1680_v39  ;;  %940 = vmatprep.subr.bf16.mxu1 %v1683_v42  ;;  %v1762_v38 = vld [vmem:[%s2182_s3 + $0x2ac] ss:$16 sps:$4 sm:$0xff]   ;;  %v1757_v39 = vld [vmem:[%s2182_s3 + $0x2a0] ss:$16 sps:$4 sm:$0xff]   ;;  %v1760_v40 = vld [vmem:[%s2182_s3 + $0x2a8] ss:$16 sps:$4 sm:$0xff]  }
  0x27   : > { %v1765_v41 = vld [vmem:[%s2182_s3 + $0x2c4] ss:$16 sps:$4 sm:$0xff]   ;;  %v1768_v42 = vld [vmem:[%s2182_s3 + $0x2cc] ss:$16 sps:$4 sm:$0xff]   ;;  %v1763_v43 = vld [vmem:[%s2182_s3 + $0x2c0] ss:$16 sps:$4 sm:$0xff]  }
  0x28   : > { %645 = vmatmul.mubr.bf16.vlgmr.msra.gmra.mrb[0].mxu0 %v1972_v48  ;;  %686 = vmatmul.mubr.bf16.vlgmr.msra.gmra.mrb[0].mxu1 %v1972_v48  ;;  %v1766_v44 = vld [vmem:[%s2182_s3 + $0x2c8] ss:$16 sps:$4 sm:$0xff]   ;;  %v1769_v47 = vld [vmem:[%s2182_s3 + $0x2e0] ss:$16 sps:$4 sm:$0xff]  }
  0x29   : > { %900 = vmatpush1.bf16.msra.mxu0 %v1678_v45  ;;  %941 = vmatpush1.bf16.msra.mxu1 %v1681_v46  ;;  %v1771_v45 = vld [vmem:[%s2182_s3 + $0x2e4] ss:$16 sps:$4 sm:$0xff]   ;;  %v1774_v46 = vld [vmem:[%s2182_s3 + $0x2ec] ss:$16 sps:$4 sm:$0xff]  }
  0x2a   : > { %901 = vmatprep.subr.bf16.mxu0 %v1687_v49  ;;  %942 = vmatprep.subr.bf16.mxu1 %v1690_v50  ;;  %v1772_v49 = vld [vmem:[%s2182_s3 + $0x2e8] ss:$16 sps:$4 sm:$0xff]   ;;  %v1019_v50 = vrot.slane %v1972_v48, 1 }
  0x2b   : > { %931 = vmatprep.mubr.bf16.mxu0 %v1799_v2  ;;  %972 = vmatprep.mubr.bf16.mxu1 %v1799_v2 }
  0x2d   : > { %902 = vmatpush1.bf16.msra.mxu0 %v1685_v51  ;;  %943 = vmatpush1.bf16.msra.mxu1 %v1688_v52  ;;  %v400_v51 = vlaneseq }
  0x2e   : > { %903 = vmatprep.subr.bf16.mxu0 %v1693_v53  ;;  %944 = vmatprep.subr.bf16.mxu1 %v1696_v54 }
  0x2f   : > { %v401_v52 = vshrl.u32 %v400_v51, 7 }
  0x31   : > { %904 = vmatpush1.bf16.msra.mxu0 %v1691_v55  ;;  %945 = vmatpush1.bf16.msra.mxu1 %v1694_v56  ;;  %v402_v53 = vsub.s32 0, %v401_v52  ;;  %v410_v54 = vsub.s32 2, %v401_v52  ;;  %v398_v55 = vld [vmem:[%s2183_s4] sm:$0xf]  ;;  %v406_v56 = vsub.s32 1, %v401_v52 }
  0x32   : > { %905 = vmatprep.subr.bf16.mxu0 %v1699_v57  ;;  %946 = vmatprep.subr.bf16.mxu1 %v1702_v58  ;;  %v414_v57 = vsub.s32 3, %v401_v52 }
  0x33   : > { %v403_v58 = vrot.slane %v398_v55, %v402_v53 }
  0x35   : > { %906 = vmatpush1.bf16.msra.mxu0 %v1697_v59  ;;  %947 = vmatpush1.bf16.msra.mxu1 %v1700_v60  ;;  %v411_v59 = vrot.slane %v398_v55, %v410_v54  ;;  %v407_v60 = vrot.slane %v398_v55, %v406_v56 }
  0x36   : > { %907 = vmatprep.subr.bf16.mxu0 %v1705_v61  ;;  %948 = vmatprep.subr.bf16.mxu1 %v1708_v62  ;;  %v415_v61 = vrot.slane %v398_v55, %v414_v57 }
  0x39   : > { %908 = vmatpush1.bf16.msra.mxu0 %v1703_v63  ;;  %949 = vmatpush1.bf16.msra.mxu1 %v1706_v0 }
  0x3a   : > { %909 = vmatprep.subr.bf16.mxu0 %v1711_v1  ;;  %950 = vmatprep.subr.bf16.mxu1 %v1714_v3 }
  0x3d   : > { %910 = vmatpush1.bf16.msra.mxu0 %v1709_v4  ;;  %951 = vmatpush1.bf16.msra.mxu1 %v1712_v5 }
  0x3e   : > { %911 = vmatprep.subr.bf16.mxu0 %v1717_v6  ;;  %952 = vmatprep.subr.bf16.mxu1 %v1720_v7 }
  0x41   : > { %912 = vmatpush1.bf16.msra.mxu0 %v1715_v8  ;;  %953 = vmatpush1.bf16.msra.mxu1 %v1718_v10 }
  0x42   : > { %913 = vmatprep.subr.bf16.mxu0 %v1723_v11  ;;  %954 = vmatprep.subr.bf16.mxu1 %v1726_v12 }
  0x45   : > { %914 = vmatpush1.bf16.msra.mxu0 %v1721_v13  ;;  %955 = vmatpush1.bf16.msra.mxu1 %v1724_v16 }
  0x46   : > { %1181 = vmatprep.subr.bf16.mxu0 %v1729_v17  ;;  %1222 = vmatprep.subr.bf16.mxu1 %v1732_v18 }
  0x48   : > { %932 = vmatmul.mubr.bf16.vlgmr.msra.gmra.mrb[0].mxu0 %v737_v20  ;;  %973 = vmatmul.mubr.bf16.vlgmr.msra.gmra.mrb[0].mxu1 %v737_v20 }
  0x49   : > { %1182 = vmatpush1.bf16.msra.mxu0 %v1727_v19  ;;  %1223 = vmatpush1.bf16.msra.mxu1 %v1730_v21 }
  0x4a   : > { %1183 = vmatprep.subr.bf16.mxu0 %v1735_v22  ;;  %1224 = vmatprep.subr.bf16.mxu1 %v1738_v23 }
  0x4b   : > { %1213 = vmatprep.mubr.bf16.mxu0 %v1799_v2  ;;  %1254 = vmatprep.mubr.bf16.mxu1 %v1799_v2  ;;  %v1750_v2 = vld [vmem:[%s2182_s3 + $0x26c] ss:$16 sps:$4 sm:$0xff]  }
  0x4d   : > { %1184 = vmatpush1.bf16.msra.mxu0 %v1733_v24  ;;  %1225 = vmatpush1.bf16.msra.mxu1 %v1736_v25 }
  0x4e   : > { %1185 = vmatprep.subr.bf16.mxu0 %v1741_v26  ;;  %1226 = vmatprep.subr.bf16.mxu1 %v1744_v27 }
  0x51   : > { %1186 = vmatpush1.bf16.msra.mxu0 %v1739_v28  ;;  %1227 = vmatpush1.bf16.msra.mxu1 %v1742_v29 }
  0x52   : > { %1187 = vmatprep.subr.bf16.mxu0 %v1747_v30  ;;  %1228 = vmatprep.subr.bf16.mxu1 %v1750_v2 }
  0x55   : > { %1188 = vmatpush1.bf16.msra.mxu0 %v1745_v31  ;;  %1229 = vmatpush1.bf16.msra.mxu1 %v1748_v32 }
  0x56   : > { %1189 = vmatprep.subr.bf16.mxu0 %v1753_v33  ;;  %1230 = vmatprep.subr.bf16.mxu1 %v1756_v34 }
  0x59   : > { %1190 = vmatpush1.bf16.msra.mxu0 %v1751_v35  ;;  %1231 = vmatpush1.bf16.msra.mxu1 %v1754_v36 }
  0x5a   : > { %1191 = vmatprep.subr.bf16.mxu0 %v1759_v37  ;;  %1232 = vmatprep.subr.bf16.mxu1 %v1762_v38 }
  0x5d   : > { %1192 = vmatpush1.bf16.msra.mxu0 %v1757_v39  ;;  %1233 = vmatpush1.bf16.msra.mxu1 %v1760_v40 }
  0x5e   : > { %1193 = vmatprep.subr.bf16.mxu0 %v1765_v41  ;;  %1234 = vmatprep.subr.bf16.mxu1 %v1768_v42 }
  0x61   : > { %1194 = vmatpush1.bf16.msra.mxu0 %v1763_v43  ;;  %1235 = vmatpush1.bf16.msra.mxu1 %v1766_v44 }
  0x62   : > { %1195 = vmatprep.subr.bf16.mxu0 %v1771_v45  ;;  %1236 = vmatprep.subr.bf16.mxu1 %v1774_v46 }
  0x65   : > { %1196 = vmatpush1.bf16.msra.mxu0 %v1769_v47  ;;  %1237 = vmatpush1.bf16.msra.mxu1 %v1772_v49 }
  0x68   : > { %1214 = vmatmul.mubr.bf16.vlgmr.msra.gmra.mrb[0].mxu0 %v1019_v50  ;;  %1255 = vmatmul.mubr.bf16.vlgmr.msra.gmra.mrb[0].mxu1 %v1019_v50 }
 0x13b   : > { %v1215_v48 = vpop.f32.mrb[0].mxu0  ;;  %v1256_v62 = vpop.f32.mrb[0].mxu1 }
 0x13c   : > { %v1585_v63 = vadd.f32 %v1215_v48, %v403_v58  ;;  %v1587_v0 = vadd.f32 %v1256_v62, %v411_v59  ;;  %v1217_v1 = vpop.f32.mrb[1].mxu0  ;;  %v1258_v3 = vpop.f32.mrb[1].mxu1 }
 0x13d   : > { %v1586_v4 = vadd.f32 %v1217_v1, %v407_v60  ;;  %v1588_v5 = vadd.f32 %v1258_v3, %v415_v61  ;;  %v1219_v6 = vpop.f32.mrb[2].mxu0  ;;  %v1260_v7 = vpop.f32.mrb[2].mxu1 }
 0x13e   : > { %v1267_v8 = vmax.f32 %v1585_v63, 0.0  ;;  %v1269_v9 = vmax.f32 %v1587_v0, 0.0  ;;  %v1220_v10 = vpop.f32.mrb[3].mxu0  ;;  %v1261_v11 = vpop.f32.mrb[3].mxu1 }
 0x13f   : > { %v1268_v12 = vmax.f32 %v1586_v4, 0.0  ;;  %v1270_v13 = vmax.f32 %v1588_v5, 0.0 }
 0x141   : > { %v1583_v14 = vpack.c.bf16 %v1268_v12, %v1267_v8  ;;  %v1584_v15 = vpack.c.bf16 %v1270_v13, %v1269_v9 }
 0x143   : > { %1287 = vst [vmem:[%s352_s12] sm:$0xff] %v1583_v14  ;;  %1288 = vst [vmem:[%s352_s12 + $0x8] sm:$0xff] %v1584_v15 }
 0x144 PF: > { %s15_s20 = sadd.s32 1, %s1797_s20   ;;  %s2185_s18 = smov %s1793_s19 }
 0x145   : > { %p12_p5 = scmp.ge.s32.totalorder %s15_s20, 4   ;;  %s2186_s19 = smov %s2188_s1 }
 0x147   :  { %14 = sbr.rel (!%p12_p5) target bundleno = 2 (0x2), region = 78 }

// kernel: forward.8
= control target key start
LH: loop header
LB: loop body
LE: loop exit
PB: predicated region body
PF: predicated region fallthrough
CT: control target
= control target key end

     0   :  { %10 = vsyncpa [#allocation3], 0  ;;  %s7597_s0 = inlined_call_operand.vmem [shape: bf16[2,16,2,512], index: 0, kind: input, shape index: {}, may-alias: {0,1,2}]   ;;  %s7598_s1 = inlined_call_operand.vmem [shape: bf16[2,16,2,512], index: 1, kind: input, shape index: {}, may-alias: {0,1,2}]   ;;  %s7599_s2 = inlined_call_operand.vmem [shape: bf16[2,16,2,512], index: 2, kind: input, shape index: {}, may-alias: {0,1,2}]   ;;  %s7600_s3 = inlined_call_operand.hbm [shape: bf16[3,512,512], index: 3, kind: input, shape index: {}]   ;;  %s7601_s4 = inlined_call_operand.hbm [shape: f32[1,512], index: 4, kind: input, shape index: {}]   ;;  %s7602_s5 = inlined_call_operand.vmem [shape: bf16[2,16,512], index: 5, kind: output, shape index: {}]  }
   0x1   :  { %11 = vsyncpa [#allocation5], 0  ;;  %s6436_s18 = smov 0   ;;  %s6438_s19 = smov 0  }
   0x2   :  { %s6440_s20 = smov 0   ;;  %s6442_s21 = smov 0  }
   0x3   :  { %s6444_s22 = smov 0  }
   0x4 LB: > { %s4821_s23 = sadd.s32 4294967295, %s6398_s22   ;;  %s26_s24 = sadd.s32 1, %s6390_s20  ;;  %s6398_s22 = sphi %s6444_s22, %s17_s22   ;;  %s6394_s21 = sphi %s6442_s21, %s7715_s21   ;;  %s6390_s20 = sphi %s6440_s20, %s7714_s20   ;;  %s6386_s19 = sphi %s6438_s19, %s7713_s19   ;;  %s6382_s18 = sphi %s6436_s18, %s7712_s18  }
   0x5   : > { %p27_p0 = scmp.ge.s32.totalorder %s26_s24, 2  ;;  %s29_s25 = sadd.s32 1, %s6394_s21 }
   0x6   : > { %p4829_p1 = scmp.ge.s32.totalorder %s6398_s22, 1  ;;  %p204_p2 = scmp.lt.s32.totalorder %s6398_s22, 5 }
   0x7   : > { %s7717_s24 = smov (%p27_p0, %s26_s24), 0  ;;  %s7719_s25 = smov (!%p27_p0, %s29_s25), %s6394_s21 }
   0x8   : > { %p6469_p3 = pnand %p4829_p1, %p204_p2  ;;  %p31_p4 = scmp.ge.s32.totalorder %s7719_s25, 2 }
   0x9   : > { %p6473_p5 = scmp.eq.s32.totalorder %s4821_s23, 0  ;;  %s6400_s28 = smov [#allocation2]  }
   0xa   : > { %s7650_s26 = scalar_select %p6469_p3, 1, 0 }
   0xb   : > { %s7651_s27 = scalar_select %p6473_p5, 1, 0 }
   0xc   : > { %p5263_p6 = pneg %p6469_p3  ;;  %s7721_s25 = smov (%p31_p4, %s7719_s25), 0 }
   0xd   : > { %s216_s29 = sshll.u32 %s6400_s28, 4  ;;  %s6296_s8 = scalar_lea.hbm %s7600_s3, 49152  ;;  %s217_s29 = int_to_ptr.vmem [resolvable:$true] %s216_s29 }
   0xe   : > { %p6483_p7 = pnand %p6473_p5, %p5263_p6  ;;  %p6297_p8 = scmp.ne.s32.totalorder %s7600_s3, %s6296_s8 }
   0xf   : > { %p6303_p12 = scmp.lt.u32.totalorder %s6296_s8, %s7600_s3 }
  0x10   : > { %p6298_p9 = pneg %p6483_p7 }
  0x12   : > { %p6299_p10 = pnand %p6298_p9, %p6297_p8 }
  0x14   : > { %p6300_p11 = pneg %p6299_p10 }
  0x16   : > { %p6305_p13 = pnand %p6303_p12, %p6300_p11 }
  0x18   : > { %6308 = shalt.err (!%p6305_p13)
}
  0x19   : > { %s6309_s13 = scalar_lea.vmem %s217_s29, 49152  ;;  %p6317_p4 = scmp.lt.s32.totalorder %s217_s29, %s217_s29 }
  0x1a   : > { %p6310_p0 = scmp.ne.s32.totalorder %s217_s29, %s6309_s13  ;;  %p6318_p6 = scmp.lt.s32.totalorder %s6309_s13, %s6309_s13 }
  0x1c   : > { %p6312_p1 = pnand %p6310_p0, %p6298_p9  ;;  %p6319_p5 = por %p6318_p6, %p6317_p4 }
  0x1e   : > { %p6313_p2 = pneg %p6312_p1 }
  0x20   : > { %p6320_p3 = pnand %p6319_p5, %p6313_p2 }
  0x22   : > { %6323 = shalt.err (!%p6320_p3)
}
  0x23   : > { %s6401_s14 = smov 256   ;;  %s6402_s15 = smov 16  }
  0x24   : > { %5266 = dma.hbm_to_vmem [thread:$0]  (!%p6483_p7), %s7600_s3, 49152, %s217_s29, [#allocation3], %s6401_s14, %s6401_s14, %s6402_s15  }
  0x25   : > { %s6403_s23 = smov [#allocation4]   ;;  %s6324_s8 = scalar_lea.hbm %s7601_s4, 64 }
  0x26   : > { %s230_s28 = sshll.u32 %s6403_s23, 4  ;;  %p6325_p3 = scmp.ne.s32.totalorder %s7601_s4, %s6324_s8  ;;  %s231_s28 = int_to_ptr.vmem [resolvable:$true] %s230_s28 }
  0x27   : > { %p6331_p10 = scmp.lt.u32.totalorder %s6324_s8, %s7601_s4 }
  0x28   : > { %p6327_p5 = pnand %p6325_p3, %p6298_p9 }
  0x2a   : > { %p6328_p8 = pneg %p6327_p5 }
  0x2c   : > { %p6333_p11 = pnand %p6331_p10, %p6328_p8 }
  0x2e   : > { %6336 = shalt.err (!%p6333_p11)
}
  0x2f   : > { %s6337_s29 = scalar_lea.vmem %s231_s28, 64  ;;  %p6345_p1 = scmp.lt.s32.totalorder %s231_s28, %s231_s28 }
  0x30   : > { %p6338_p12 = scmp.ne.s32.totalorder %s231_s28, %s6337_s29  ;;  %p6346_p2 = scmp.lt.s32.totalorder %s6337_s29, %s6337_s29 }
  0x32   : > { %p6340_p13 = pnand %p6338_p12, %p6298_p9  ;;  %p6347_p4 = por %p6346_p2, %p6345_p1 }
  0x34   : > { %p6341_p0 = pneg %p6340_p13 }
  0x36   : > { %p6348_p6 = pnand %p6347_p4, %p6341_p0 }
  0x38   : > { %6351 = shalt.err (!%p6348_p6)
}
  0x39   : > { %5269 = dma.hbm_to_vmem [thread:$0]  (!%p6483_p7), %s7601_s4, 64, %s231_s28, [#allocation5]  }
  0x3a   : > { %p7653_p3 = scmp.ne.s32.totalorder %s7650_s26, 0 }
  0x3c   : > { %294 = sbr.rel (%p7653_p3) target bundleno = 1085 (0x43d), region = 40 }
  0x43   : > { %p7654_p5 = scmp.ne.s32.totalorder %s7651_s27, 0 }
  0x45   : > { %6373 = dma.done.wait (%p7654_p5), [#allocation3], 49152  }
  0x46   : > { %6375 = vsyncadd (%p7654_p5), [#allocation3], 4294918144 }
  0x47   : > { %6377 = dma.done.wait (%p7654_p5), [#allocation5], 64  }
  0x48   : > { %6379 = vsyncadd (%p7654_p5), [#allocation5], 4294967232  ;;  %v5320_v0 = vld [vmem:[#allocation2 + $0x404] ss:$16 sps:$4 sm:$0xff]   ;;  %v5324_v2 = vld [vmem:[#allocation2 + $0x400] ss:$16 sps:$4 sm:$0xff]   ;;  %v441_v39 = vlaneseq }
  0x49   : > { %v5322_v1 = vld [vmem:[#allocation2 + $0x604] ss:$16 sps:$4 sm:$0xff]   ;;  %1955 = vmatprep.subr.bf16.mxu0 %v5320_v0  ;;  %v5325_v3 = vld [vmem:[#allocation2 + $0x600] ss:$16 sps:$4 sm:$0xff]   ;;  %s6540_s26 = sshll.u32 %s6382_s18, 3  ;;  %p359_p7 = scmp.lt.s32.totalorder %s6386_s19, 1 }
  0x4a   : > { %1996 = vmatprep.subr.bf16.mxu1 %v5322_v1  ;;  %v5326_v4 = vld [vmem:[#allocation2 + $0x424] ss:$16 sps:$4 sm:$0xff]   ;;  %1956 = vmatpush1.bf16.msra.mxu0 %v5324_v2  ;;  %v5330_v6 = vld [vmem:[#allocation2 + $0x420] ss:$16 sps:$4 sm:$0xff]   ;;  %p361_p9 = scmp.lt.s32.totalorder %s6540_s26, 15  ;;  %v6551_v45 = vshrl.u32 %v441_v39, 7 }
  0x4b   : > { %1997 = vmatpush1.bf16.msra.mxu1 %v5325_v3  ;;  %v5328_v5 = vld [vmem:[#allocation2 + $0x624] ss:$16 sps:$4 sm:$0xff]   ;;  %1957 = vmatprep.subr.bf16.mxu0 %v5326_v4  ;;  %v5331_v7 = vld [vmem:[#allocation2 + $0x620] ss:$16 sps:$4 sm:$0xff]   ;;  %s7723_s19 = smov (!%p359_p7, %s6386_s19), 1  ;;  %vm682_vm0 = vcmask 1042434  }
  0x4c   : > { %1998 = vmatprep.subr.bf16.mxu1 %v5328_v5  ;;  %v5332_v8 = vld [vmem:[#allocation2 + $0x444] ss:$16 sps:$4 sm:$0xff]   ;;  %v5336_v10 = vld [vmem:[#allocation2 + $0x440] ss:$16 sps:$4 sm:$0xff]   ;;  %s362_s27 = scalar_select %p361_p9, %s6540_s26, 15  ;;  %7655 = vst [vmem:[#allocation8_spill] sm:$0xff] %v6551_v45 }
  0x4d   : > { %v5334_v9 = vld [vmem:[#allocation2 + $0x644] ss:$16 sps:$4 sm:$0xff]   ;;  %v5337_v11 = vld [vmem:[#allocation2 + $0x640] ss:$16 sps:$4 sm:$0xff]   ;;  %v6404_v37 = vmov 1966171168  }
  0x4e   : > { %1958 = vmatpush1.bf16.msra.mxu0 %v5330_v6  ;;  %v5338_v12 = vld [vmem:[#allocation2 + $0x464] ss:$16 sps:$4 sm:$0xff]   ;;  %v5342_v14 = vld [vmem:[#allocation2 + $0x460] ss:$16 sps:$4 sm:$0xff]   ;;  %v439_v38 = vunpack.c.l.s4 %v6404_v37  ;;  %s4837_s30 = sshll.u32 %s362_s27, 2  ;;  %s6549_s15 = sshll.u32 %s7723_s19, 6 }
  0x4f   : > { %1999 = vmatpush1.bf16.msra.mxu1 %v5331_v7  ;;  %1959 = vmatprep.subr.bf16.mxu0 %v5332_v8  ;;  %v5340_v13 = vld [vmem:[#allocation2 + $0x664] ss:$16 sps:$4 sm:$0xff]   ;;  %v5343_v15 = vld [vmem:[#allocation2 + $0x660] ss:$16 sps:$4 sm:$0xff]   ;;  %s365_s16 = sadd.s32 %s6549_s15, %s4837_s30  ;;  %vm685_vm1 = vcmask 1043459   ;;  %vm688_vm2 = vcmask 1044484  }
  0x50   : > { %2000 = vmatprep.subr.bf16.mxu1 %v5334_v9  ;;  %v5344_v16 = vld [vmem:[#allocation2 + $0x484] ss:$16 sps:$4 sm:$0xff]   ;;  %v5348_v18 = vld [vmem:[#allocation2 + $0x480] ss:$16 sps:$4 sm:$0xff]   ;;  %v440_v44 = vunpack.c.0.s8 %v439_v38  ;;  %s6557_s28 = scalar_lea.vmem %s7597_s0, %s365_s16  ;;  %vm691_vm3 = vcmask 1045509   ;;  %vm780_vm4 = vcmask 1041409  }
  0x51   : > { %v5346_v17 = vld [vmem:[#allocation2 + $0x684] ss:$16 sps:$4 sm:$0xff]   ;;  %v5349_v19 = vld [vmem:[#allocation2 + $0x680] ss:$16 sps:$4 sm:$0xff]   ;;  %vm694_vm5 = vcmask 1046534   ;;  %vm697_vm6 = vcmask 1047559  }
  0x52   : > { %1960 = vmatpush1.bf16.msra.mxu0 %v5336_v10  ;;  %v5350_v20 = vld [vmem:[#allocation2 + $0x4a4] ss:$16 sps:$4 sm:$0xff]   ;;  %v5354_v22 = vld [vmem:[#allocation2 + $0x4a0] ss:$16 sps:$4 sm:$0xff]   ;;  %v6560_v50 = vsub.s32 %v440_v44, %v6551_v45  ;;  %s6926_s6 = sadd.s32 4294967295, %s6540_s26  ;;  %p421_p8 = scmp.eq.s32.totalorder %s6382_s18, 0 }
  0x53   : > { %2001 = vmatpush1.bf16.msra.mxu1 %v5337_v11  ;;  %1961 = vmatprep.subr.bf16.mxu0 %v5338_v12  ;;  %v5352_v21 = vld [vmem:[#allocation2 + $0x6a4] ss:$16 sps:$4 sm:$0xff]   ;;  %v5355_v23 = vld [vmem:[#allocation2 + $0x6a0] ss:$16 sps:$4 sm:$0xff]   ;;  %p370_p10 = scmp.gt.s32.totalorder %s6926_s6, 0  ;;  %p4841_p11 = scmp.lt.s32.totalorder %s6926_s6, 15 }
  0x54   : > { %2002 = vmatprep.subr.bf16.mxu1 %v5340_v13  ;;  %v5356_v24 = vld [vmem:[#allocation2 + $0x4c4] ss:$16 sps:$4 sm:$0xff]   ;;  %v5360_v26 = vld [vmem:[#allocation2 + $0x4c0] ss:$16 sps:$4 sm:$0xff]   ;;  %s422_s7 = scalar_select %p421_p8, 1, 0 }
  0x55   : > { %v5358_v25 = vld [vmem:[#allocation2 + $0x6c4] ss:$16 sps:$4 sm:$0xff]   ;;  %v5361_v27 = vld [vmem:[#allocation2 + $0x6c0] ss:$16 sps:$4 sm:$0xff]   ;;  %s371_s8 = scalar_select %p370_p10, %s6926_s6, 0  ;;  %vm743_vm9 = vcmask 1040384  }
  0x56   : > { %1962 = vmatpush1.bf16.msra.mxu0 %v5342_v14  ;;  %v5362_v28 = vld [vmem:[#allocation2 + $0x4e4] ss:$16 sps:$4 sm:$0xff]   ;;  %v5366_v30 = vld [vmem:[#allocation2 + $0x4e0] ss:$16 sps:$4 sm:$0xff]   ;;  %vm744_vm10 = vsmask.f32 256 }
  0x57   : > { %2003 = vmatpush1.bf16.msra.mxu1 %v5343_v15  ;;  %1963 = vmatprep.subr.bf16.mxu0 %v5344_v16  ;;  %v5364_v29 = vld [vmem:[#allocation2 + $0x6e4] ss:$16 sps:$4 sm:$0xff]   ;;  %v5367_v31 = vld [vmem:[#allocation2 + $0x6e0] ss:$16 sps:$4 sm:$0xff]   ;;  %s7725_s8 = smov (!%p4841_p11, %s371_s8), 15  ;;  %vm6941_vm11 = vmand %vm743_vm9, %vm744_vm10  ;;  %s5252_s13 = sadd.s32 8, %s6540_s26 }
  0x58   : > { %2004 = vmatprep.subr.bf16.mxu1 %v5346_v17  ;;  %v5368_v32 = vld [vmem:[#allocation2 + $0x504] ss:$16 sps:$4 sm:$0xff]   ;;  %v5372_v34 = vld [vmem:[#allocation2 + $0x500] ss:$16 sps:$4 sm:$0xff]   ;;  %s4846_s9 = sshll.u32 %s7725_s8, 2  ;;  %p7306_p12 = scmp.lt.s32.totalorder %s5252_s13, 15 }
  0x59   : > { %v5370_v33 = vld [vmem:[#allocation2 + $0x704] ss:$16 sps:$4 sm:$0xff]   ;;  %v5373_v35 = vld [vmem:[#allocation2 + $0x700] ss:$16 sps:$4 sm:$0xff]   ;;  %s378_s10 = sadd.s32 %s4846_s9, %s6549_s15  ;;  %p429_p13 = scmp.eq.s32.totalorder %s6382_s18, 1  ;;  %vm881_vm14 = vcmask 1043456  }
  0x5a   : > { %1964 = vmatpush1.bf16.msra.mxu0 %v5348_v18  ;;  %v5374_v36 = vld [vmem:[#allocation2 + $0x524] ss:$16 sps:$4 sm:$0xff]   ;;  %v5378_v41 = vld [vmem:[#allocation2 + $0x520] ss:$16 sps:$4 sm:$0xff]   ;;  %s379_s29 = scalar_lea.vmem %s7598_s1, %s378_s10  ;;  %s7727_s13 = smov (!%p7306_p12, %s5252_s13), 15 }
  0x5b   : > { %2005 = vmatpush1.bf16.msra.mxu1 %v5349_v19  ;;  %1965 = vmatprep.subr.bf16.mxu0 %v5350_v20  ;;  %v5376_v40 = vld [vmem:[#allocation2 + $0x724] ss:$16 sps:$4 sm:$0xff]   ;;  %v5379_v42 = vld [vmem:[#allocation2 + $0x720] ss:$16 sps:$4 sm:$0xff]   ;;  %s430_s27 = scalar_select %p429_p13, 1, 0 }
  0x5c   : > { %2006 = vmatprep.subr.bf16.mxu1 %v5352_v21  ;;  %v5380_v43 = vld [vmem:[#allocation2 + $0x544] ss:$16 sps:$4 sm:$0xff]   ;;  %v5384_v47 = vld [vmem:[#allocation2 + $0x540] ss:$16 sps:$4 sm:$0xff]   ;;  %s7729_s13 = smov (!%p7306_p12, %s7727_s13), 15  ;;  %p402_p0 = scmp.lt.s32.totalorder %s6382_s18, 1 }
  0x5d   : > { %v5382_v46 = vld [vmem:[#allocation2 + $0x744] ss:$16 sps:$4 sm:$0xff]   ;;  %v5385_v48 = vld [vmem:[#allocation2 + $0x740] ss:$16 sps:$4 sm:$0xff]   ;;  %s4852_s26 = sshll.u32 %s7729_s13, 2 }
  0x5e   : > { %1966 = vmatpush1.bf16.msra.mxu0 %v5354_v22  ;;  %v5386_v49 = vld [vmem:[#allocation2 + $0x564] ss:$16 sps:$4 sm:$0xff]   ;;  %v5390_v52 = vld [vmem:[#allocation2 + $0x560] ss:$16 sps:$4 sm:$0xff]   ;;  %s394_s30 = sadd.s32 %s4852_s26, %s6549_s15  ;;  %vm882_vm15 = vsmask.f32 3328 }
  0x5f   : > { %2007 = vmatpush1.bf16.msra.mxu1 %v5355_v23  ;;  %1967 = vmatprep.subr.bf16.mxu0 %v5356_v24  ;;  %v5388_v51 = vld [vmem:[#allocation2 + $0x764] ss:$16 sps:$4 sm:$0xff]   ;;  %v5391_v53 = vld [vmem:[#allocation2 + $0x760] ss:$16 sps:$4 sm:$0xff]   ;;  %s395_s23 = scalar_lea.vmem %s7599_s2, %s394_s30  ;;  %s7731_s18 = smov (!%p402_p0, %s6382_s18), 1 }
  0x60   : > { %2008 = vmatprep.subr.bf16.mxu1 %v5358_v25  ;;  %v6563_v54 = vld.sshfl [vmem:[%s6557_s28] sm:$0x33 pattern:$0x75316420]  ;;  %v5392_v55 = vld [vmem:[#allocation2 + $0x584] ss:$16 sps:$4 sm:$0xff]  }
  0x61   : > { %v5394_v56 = vld [vmem:[#allocation2 + $0x784] ss:$16 sps:$4 sm:$0xff]   ;;  %v6569_v58 = vld.sshfl [vmem:[%s6557_s28 + $0x8] sm:$0x33 pattern:$0x75316420]  ;;  %v492_v0 = vcombine.high %v6563_v54, %v6563_v54 }
  0x62   : > { %1968 = vmatpush1.bf16.msra.mxu0 %v5360_v26  ;;  %v6566_v57 = vld.sshfl [vmem:[%s6557_s28 + $0x4] sm:$0x33 pattern:$0x75316420]  ;;  %v540_v2 = vcombine.high %v6569_v58, %v6569_v58  ;;  %v5396_v4 = vld [vmem:[#allocation2 + $0x580] ss:$16 sps:$4 sm:$0xff]  }
  0x63   : > { %2009 = vmatpush1.bf16.msra.mxu1 %v5361_v27  ;;  %1969 = vmatprep.subr.bf16.mxu0 %v5362_v28  ;;  %v6572_v59 = vld.sshfl [vmem:[%s6557_s28 + $0xc] sm:$0x33 pattern:$0x75316420]  ;;  %v516_v1 = vcombine.high %v6566_v57, %v6566_v57  ;;  %v5397_v5 = vld [vmem:[#allocation2 + $0x780] ss:$16 sps:$4 sm:$0xff]   ;;  %v6595_v6 = vrot.slane %v492_v0, %v6560_v50 }
  0x64   : > { %2010 = vmatprep.subr.bf16.mxu1 %v5364_v29  ;;  %v6575_v60 = vld.sshfl [vmem:[%s6557_s28 + $0x10] sm:$0x33 pattern:$0x75316420]  ;;  %v564_v3 = vcombine.high %v6572_v59, %v6572_v59  ;;  %v5398_v9 = vld [vmem:[#allocation2 + $0x5a4] ss:$16 sps:$4 sm:$0xff]   ;;  %v6603_v11 = vrot.slane %v540_v2, %v6560_v50 }
  0x65   : > { %v6578_v61 = vld.sshfl [vmem:[%s6557_s28 + $0x14] sm:$0x33 pattern:$0x75316420]  ;;  %v588_v7 = vcombine.high %v6575_v60, %v6575_v60  ;;  %v530_v10 = vrot.slane %v516_v1, %v6560_v50  ;;  %v6617_v17 = vunpack.c.l.b16 %v6595_v6  ;;  %v5402_v22 = vld [vmem:[#allocation2 + $0x5a0] ss:$16 sps:$4 sm:$0xff]  }
  0x66   : > { %1970 = vmatpush1.bf16.msra.mxu0 %v5366_v30  ;;  %v6581_v62 = vld.sshfl [vmem:[%s6557_s28 + $0x18] sm:$0x33 pattern:$0x75316420]  ;;  %v612_v8 = vcombine.high %v6578_v61, %v6578_v61  ;;  %v6606_v12 = vrot.slane %v564_v3, %v6560_v50  ;;  %v5400_v13 = vld [vmem:[#allocation2 + $0x7a4] ss:$16 sps:$4 sm:$0xff]   ;;  %v7616_v19 = vunpack.c.l.b16 %v6603_v11 }
  0x67   : > { %2011 = vmatpush1.bf16.msra.mxu1 %v5367_v31  ;;  %1971 = vmatprep.subr.bf16.mxu0 %v5368_v32  ;;  %v6584_v63 = vld.sshfl [vmem:[%s6557_s28 + $0x1c] sm:$0x33 pattern:$0x75316420]  ;;  %v6609_v14 = vrot.slane %v588_v7, %v6560_v50  ;;  %v636_v16 = vcombine.high %v6581_v62, %v6581_v62  ;;  %v6619_v18 = vunpack.c.l.b16 %v530_v10  ;;  %v5403_v23 = vld [vmem:[#allocation2 + $0x7a0] ss:$16 sps:$4 sm:$0xff]  }
  0x68   : > { %2012 = vmatprep.subr.bf16.mxu1 %v5370_v33  ;;  %v6612_v15 = vrot.slane %v612_v8, %v6560_v50  ;;  %v7615_v20 = vunpack.c.l.b16 %v6606_v12  ;;  %v758_v21 = vcombine.high %v6584_v63, %v6584_v63  ;;  %v6633_v28 = vrot.slane %v7616_v19, 6  ;;  %v5404_v31 = vld [vmem:[#allocation2 + $0x5c4] ss:$16 sps:$4 sm:$0xff]   ;;  %v5408_v38 = vld [vmem:[#allocation2 + $0x5c0] ss:$16 sps:$4 sm:$0xff]   ;;  %s4854_s15 = sshll.u32 %s7731_s18, 2 }
  0x69   : > { %v6626_v24 = vrot.slane %v636_v16, %v6560_v50  ;;  %v7614_v25 = vunpack.c.l.b16 %v6609_v14  ;;  %v699_v27 = vrot.slane %v6619_v18, 7  ;;  %v5406_v32 = vld [vmem:[#allocation2 + $0x7c4] ss:$16 sps:$4 sm:$0xff]   ;;  %v5414_v0 = vld [vmem:[#allocation2 + $0x5e0] ss:$16 sps:$4 sm:$0xff]  }
  0x6a   : > { %1972 = vmatpush1.bf16.msra.mxu0 %v5372_v34  ;;  %v7613_v26 = vunpack.c.l.b16 %v6612_v15  ;;  %v6637_v29 = vrot.slane %v7615_v20, 5  ;;  %v6640_v30 = vrot.slane %v758_v21, %v6560_v50 }
  0x6b   : > { %2013 = vmatpush1.bf16.msra.mxu1 %v5373_v35  ;;  %1973 = vmatprep.subr.bf16.mxu0 %v5374_v36  ;;  %v7612_v33 = vunpack.c.l.b16 %v6626_v24  ;;  %v6645_v34 = vrot.slane %v7614_v25, 4  ;;  %v1283_v37 = vsel %vm780_vm4, %v699_v27, %v6617_v17  ;;  %v652_v2 = vcombine.high %v6626_v24, %v6626_v24 }
  0x6c   : > { %2014 = vmatprep.subr.bf16.mxu1 %v5376_v40  ;;  %v6649_v35 = vrot.slane %v7613_v26, 3  ;;  %v7611_v36 = vunpack.c.l.b16 %v6640_v30  ;;  %v1284_v40 = vsel %vm682_vm0, %v6633_v28, %v1283_v37 }
  0x6d   : > { %v6658_v39 = vrot.slane %v7612_v33, 2  ;;  %v1285_v44 = vsel %vm685_vm1, %v6637_v29, %v1284_v40 }
  0x6e   : > { %1974 = vmatpush1.bf16.msra.mxu0 %v5378_v41  ;;  %v508_v41 = vcombine.high %v6595_v6, %v6595_v6 }
  0x6f   : > { %2015 = vmatpush1.bf16.msra.mxu1 %v5379_v42  ;;  %1975 = vmatprep.subr.bf16.mxu0 %v5380_v43  ;;  %v532_v42 = vcombine.high %v530_v10, %v530_v10  ;;  %v5409_v43 = vld [vmem:[#allocation2 + $0x7c0] ss:$16 sps:$4 sm:$0xff]  }
  0x70   : > { %2016 = vmatprep.subr.bf16.mxu1 %v5382_v46  ;;  %v1289_v46 = vrot.slane %v7611_v36, 1 }
  0x71   : > { %v6684_v3 = vunpack.c.l.b16 %v532_v42 }
  0x72   : > { %1976 = vmatpush1.bf16.msra.mxu0 %v5384_v47  ;;  %v556_v47 = vcombine.high %v6603_v11, %v6603_v11 }
  0x73   : > { %2017 = vmatpush1.bf16.msra.mxu1 %v5385_v48  ;;  %1977 = vmatprep.subr.bf16.mxu0 %v5386_v49  ;;  %v580_v48 = vcombine.high %v6606_v12, %v6606_v12  ;;  %v5410_v49 = vld [vmem:[#allocation2 + $0x5e4] ss:$16 sps:$4 sm:$0xff]   ;;  %v723_v16 = vrot.slane %v6684_v3, 7 }
  0x74   : > { %2018 = vmatprep.subr.bf16.mxu1 %v5388_v51  ;;  %v5412_v51 = vld [vmem:[#allocation2 + $0x7e4] ss:$16 sps:$4 sm:$0xff]  }
  0x75   : > { %v6690_v7 = vunpack.c.l.b16 %v580_v48  ;;  %v6727_v48 = vrot.slane %v6572_v59, %v6560_v50  ;;  %v6747_v59 = vrot.slane %v6581_v62, %v6560_v50 }
  0x76   : > { %1978 = vmatpush1.bf16.msra.mxu0 %v5390_v52  ;;  %v1286_v52 = vsel %vm688_vm2, %v6645_v34, %v1285_v44 }
  0x77   : > { %2019 = vmatpush1.bf16.msra.mxu1 %v5391_v53  ;;  %1979 = vmatprep.subr.bf16.mxu0 %v5392_v55  ;;  %v604_v53 = vcombine.high %v6609_v14, %v6609_v14  ;;  %v628_v55 = vcombine.high %v6612_v15, %v6612_v15  ;;  %v1287_v1 = vsel %vm691_vm3, %v6649_v35, %v1286_v52 }
  0x78   : > { %2020 = vmatprep.subr.bf16.mxu1 %v5394_v56  ;;  %v6678_v56 = vunpack.c.l.b16 %v508_v41  ;;  %v1288_v6 = vsel %vm694_vm5, %v6658_v39, %v1287_v1  ;;  %v774_v41 = vcombine.high %v6640_v30, %v6640_v30 }
  0x79   : > { %v6692_v8 = vunpack.c.l.b16 %v604_v53  ;;  %v1290_v10 = vsel %vm697_vm6, %v1289_v46, %v1288_v6  ;;  %v523_v46 = vrot.slane %v6566_v57, %v6560_v50  ;;  %v6740_v57 = vrot.slane %v6578_v61, %v6560_v50 }
  0x7a   : > { %1980 = vmatpush1.bf16.msra.mxu0 %v5396_v4  ;;  %v6686_v4 = vunpack.c.l.b16 %v556_v47  ;;  %v1299_v42 = vsel %vm780_vm4, %v723_v16, %v6678_v56  ;;  %v6723_v47 = vrot.slane %v6569_v58, %v6560_v50 }
  0x7b   : > { %2021 = vmatpush1.bf16.msra.mxu1 %v5397_v5  ;;  %1981 = vmatprep.subr.bf16.mxu0 %v5398_v9  ;;  %v5415_v5 = vld [vmem:[#allocation2 + $0x7e0] ss:$16 sps:$4 sm:$0xff]   ;;  %v6694_v9 = vunpack.c.l.b16 %v628_v55  ;;  %v6751_v53 = vunpack.c.l.b16 %v523_v46 }
  0x7c   : > { %2022 = vmatprep.subr.bf16.mxu1 %v5400_v13  ;;  %v6697_v13 = vunpack.c.l.b16 %v652_v2  ;;  %v725_v21 = vrot.slane %v6686_v4, 6  ;;  %v7610_v55 = vunpack.c.l.b16 %v6723_v47  ;;  %v7607_v2 = vunpack.c.l.b16 %v6740_v57 }
  0x7d   : > { %v7620_v37 = vrot.slane %v6694_v9, 3 }
  0x7e   : > { %1982 = vmatpush1.bf16.msra.mxu0 %v5402_v22  ;;  %v5418_v22 = vld [vmem:[#allocation2 + $0x40c] ss:$16 sps:$4 sm:$0xff]   ;;  %v7617_v40 = vrot.slane %v6697_v13, 2  ;;  %v1300_v44 = vsel %vm682_vm0, %v725_v21, %v1299_v42 }
  0x7f   : > { %2023 = vmatpush1.bf16.msra.mxu1 %v5403_v23  ;;  %1983 = vmatprep.subr.bf16.mxu0 %v5404_v31  ;;  %v6701_v23 = vpack.c.b16 %v1290_v10, %v1290_v10  ;;  %v7622_v31 = vrot.slane %v6690_v7, 5  ;;  %v7619_v10 = vrot.slane %v6751_v53, 7 }
  0x80   : > { %2024 = vmatprep.subr.bf16.mxu1 %v5406_v32  ;;  %v7621_v32 = vrot.slane %v6692_v8, 4 }
  0x81   : > { %1987 = vmatprep.mubr.bf16.mxu0 %v6701_v23 }
  0x82   : > { %1984 = vmatpush1.bf16.msra.mxu0 %v5408_v38  ;;  %v5421_v38 = vld [vmem:[#allocation2 + $0x60c] ss:$16 sps:$4 sm:$0xff]  }
  0x83   : > { %2025 = vmatpush1.bf16.msra.mxu1 %v5409_v43  ;;  %1985 = vmatprep.subr.bf16.mxu0 %v5410_v49  ;;  %v499_v43 = vrot.slane %v6563_v54, %v6560_v50  ;;  %v6729_v54 = vunpack.c.l.b16 %v774_v41  ;;  %v1301_v49 = vsel %vm685_vm1, %v7622_v31, %v1300_v44  ;;  %v6783_v44 = vrot.slane %v7607_v2, 3 }
  0x84   : > { %2026 = vmatprep.subr.bf16.mxu1 %v5412_v51  ;;  %v6736_v51 = vrot.slane %v6575_v60, %v6560_v50  ;;  %v1302_v58 = vsel %vm688_vm2, %v7621_v32, %v1301_v49  ;;  %v579_v2 = vcombine.high %v6727_v48, %v6727_v48 }
  0x85   : > { %v6749_v52 = vunpack.c.l.b16 %v499_v43  ;;  %v1303_v60 = vsel %vm691_vm3, %v7620_v37, %v1302_v58  ;;  %v1305_v61 = vrot.slane %v6729_v54, 1  ;;  %v6791_v58 = vrot.slane %v6584_v63, %v6560_v50 }
  0x86   : > { %1986 = vmatpush1.bf16.msra.mxu0 %v5414_v0  ;;  %v7609_v0 = vunpack.c.l.b16 %v6727_v48  ;;  %v1304_v62 = vsel %vm694_vm5, %v7617_v40, %v1303_v60  ;;  %v7608_v1 = vunpack.c.l.b16 %v6736_v51  ;;  %v603_v63 = vcombine.high %v6736_v51, %v6736_v51 }
  0x87   : > { %2027 = vmatpush1.bf16.msra.mxu1 %v5415_v5  ;;  %2037 = vmatprep.subr.bf16.mxu0 %v5418_v22  ;;  %v7606_v5 = vunpack.c.l.b16 %v6747_v59  ;;  %v1306_v6 = vsel %vm697_vm6, %v1305_v61, %v1304_v62  ;;  %v6769_v22 = vrot.slane %v7610_v55, 6  ;;  %v1275_v60 = vsel %vm780_vm4, %v7619_v10, %v6749_v52 }
  0x88   : > { %2078 = vmatprep.subr.bf16.mxu1 %v5421_v38  ;;  %v6773_v38 = vrot.slane %v7609_v0, 5  ;;  %v6775_v41 = vpack.c.b16 %v1306_v6, %v1306_v6  ;;  %v6779_v42 = vrot.slane %v7608_v1, 4  ;;  %v507_v61 = vcombine.high %v499_v43, %v499_v43 }
  0x89   : > { %v6787_v49 = vrot.slane %v7606_v5, 2  ;;  %v531_v62 = vcombine.high %v523_v46, %v523_v46  ;;  %v1276_v6 = vsel %vm682_vm0, %v6769_v22, %v1275_v60  ;;  %v555_v5 = vcombine.high %v6723_v47, %v6723_v47 }
  0x8a   : > { %2028 = vmatprep.mubr.bf16.mxu1 %v6775_v41  ;;  %v7618_v1 = vunpack.c.l.b16 %v6791_v58  ;;  %v1277_v43 = vsel %vm685_vm1, %v6773_v38, %v1276_v6  ;;  %v627_v46 = vcombine.high %v6740_v57, %v6740_v57  ;;  %v651_v60 = vcombine.high %v6747_v59, %v6747_v59 }
  0x8b   : > { %v1278_v0 = vsel %vm688_vm2, %v6779_v42, %v1277_v43  ;;  %v6815_v55 = vunpack.c.l.b16 %v507_v61  ;;  %v6817_v36 = vunpack.c.l.b16 %v531_v62  ;;  %v6819_v33 = vunpack.c.l.b16 %v555_v5  ;;  %v5416_v62 = vld [vmem:[#allocation2 + $0x408] ss:$16 sps:$4 sm:$0xff]  }
  0x8c   : > { %v1279_v26 = vsel %vm691_vm3, %v6783_v44, %v1278_v0  ;;  %v1281_v6 = vrot.slane %v7618_v1, 1  ;;  %v6825_v25 = vunpack.c.l.b16 %v579_v2  ;;  %v6827_v20 = vunpack.c.l.b16 %v603_v63 }
  0x8d   : > { %v1280_v19 = vsel %vm694_vm5, %v6787_v49, %v1279_v26  ;;  %v6831_v43 = vunpack.c.l.b16 %v627_v46  ;;  %v6833_v61 = vunpack.c.l.b16 %v651_v60  ;;  %v711_v5 = vrot.slane %v6817_v36, 7  ;;  %v5424_v46 = vld [vmem:[#allocation2 + $0x42c] ss:$16 sps:$4 sm:$0xff]  }
  0x8e   : > { %v1282_v40 = vsel %vm697_vm6, %v1281_v6, %v1280_v19  ;;  %v713_v0 = vrot.slane %v6819_v33, 6  ;;  %v715_v1 = vrot.slane %v6825_v25, 5  ;;  %v717_v63 = vrot.slane %v6827_v20, 4 }
  0x8f   : > { %7656 = vst [vmem:[#allocation9_spill] sm:$0xff] %v6831_v43  ;;  %7657 = vst [vmem:[#allocation10_spill] sm:$0xff] %v6833_v61  ;;  %v6839_v2 = vpack.c.b16 %v1282_v40, %v1282_v40  ;;  %v719_v10 = vrot.slane %v6831_v43, 3  ;;  %v773_v26 = vcombine.high %v6791_v58, %v6791_v58  ;;  %v721_v60 = vrot.slane %v6833_v61, 2  ;;  %v5422_v61 = vld [vmem:[#allocation2 + $0x428] ss:$16 sps:$4 sm:$0xff]  }
  0x90   : > { %v1291_v37 = vsel %vm780_vm4, %v711_v5, %v6815_v55  ;;  %v700_v19 = vsel %vm682_vm0, %v699_v27, %v6617_v17  ;;  %v724_v40 = vsel %vm682_vm0, %v723_v16, %v6678_v56 }
  0x91   : > { %1988 = vmatmul.mubr.bf16.vlgmr.msra.gmra.mrb[0].mxu0 %v6839_v2  ;;  %v6857_v6 = vunpack.c.l.b16 %v773_v26  ;;  %v1292_v32 = vsel %vm682_vm0, %v713_v0, %v1291_v37  ;;  %v702_v31 = vsel %vm685_vm1, %v6633_v28, %v700_v19  ;;  %v726_v45 = vsel %vm685_vm1, %v725_v21, %v724_v40  ;;  %v5430_v19 = vld [vmem:[#allocation2 + $0x44c] ss:$16 sps:$4 sm:$0xff]   ;;  %v5419_v40 = vld [vmem:[#allocation2 + $0x608] ss:$16 sps:$4 sm:$0xff]  }
  0x92   : > { %v1293_v27 = vsel %vm685_vm1, %v715_v1, %v1292_v32  ;;  %2038 = vmatpush1.bf16.msra.mxu0 %v5416_v62  ;;  %2069 = vmatprep.mubr.bf16.mxu0 %v6701_v23  ;;  %v704_v16 = vsel %vm688_vm2, %v6637_v29, %v702_v31  ;;  %v7658_v26 = vrot.slane %v6690_v7, 5  ;;  %v7659_v29 = vrot.slane %v6692_v8, 4 }
  0x93   : > { %v1294_v43 = vsel %vm688_vm2, %v717_v63, %v1293_v27  ;;  %v1297_v28 = vrot.slane %v6857_v6, 1  ;;  %2039 = vmatprep.subr.bf16.mxu0 %v5424_v46  ;;  %v706_v21 = vsel %vm691_vm3, %v6645_v34, %v704_v16  ;;  %v5428_v34 = vld [vmem:[#allocation2 + $0x448] ss:$16 sps:$4 sm:$0xff]  }
  0x94   : > { %v728_v37 = vsel %vm688_vm2, %v7658_v26, %v726_v45  ;;  %v1295_v32 = vsel %vm691_vm3, %v719_v10, %v1294_v43  ;;  %v708_v62 = vsel %vm694_vm5, %v6649_v35, %v706_v21  ;;  %v5427_v43 = vld [vmem:[#allocation2 + $0x62c] ss:$16 sps:$4 sm:$0xff]   ;;  %v7660_v26 = vrot.slane %v6694_v9, 3 }
  0x95   : > { %v730_v31 = vsel %vm691_vm3, %v7659_v29, %v728_v37  ;;  %v1296_v45 = vsel %vm694_vm5, %v721_v60, %v1295_v32  ;;  %v6885_v27 = vsel %vm697_vm6, %v6658_v39, %v708_v62  ;;  %v5436_v35 = vld [vmem:[#allocation2 + $0x46c] ss:$16 sps:$4 sm:$0xff]   ;;  %v7661_v21 = vrot.slane %v6751_v53, 7  ;;  %v5425_v29 = vld [vmem:[#allocation2 + $0x628] ss:$16 sps:$4 sm:$0xff]  }
  0x96   : > { %v1298_v46 = vsel %vm697_vm6, %v1297_v28, %v1296_v45  ;;  %2040 = vmatpush1.bf16.msra.mxu0 %v5422_v61  ;;  %v732_v37 = vsel %vm694_vm5, %v7660_v26, %v730_v31  ;;  %v712_v39 = vsel %vm682_vm0, %v711_v5, %v6815_v55  ;;  %v7662_v61 = vrot.slane %v6697_v13, 2  ;;  %v5434_v5 = vld [vmem:[#allocation2 + $0x468] ss:$16 sps:$4 sm:$0xff]  }
  0x97   : > { %v6888_v16 = vpack.c.b16 %v1298_v46, %v1298_v46  ;;  %2041 = vmatprep.subr.bf16.mxu0 %v5430_v19  ;;  %v683_v32 = vsel %vm682_vm0, %v7661_v21, %v6749_v52  ;;  %v714_v62 = vsel %vm685_vm1, %v713_v0, %v712_v39  ;;  %v5442_v0 = vld [vmem:[#allocation2 + $0x48c] ss:$16 sps:$4 sm:$0xff]  }
  0x98   : > { %v6902_v28 = vsel %vm697_vm6, %v7662_v61, %v732_v37  ;;  %v686_v19 = vsel %vm685_vm1, %v6769_v22, %v683_v32  ;;  %v716_v45 = vsel %vm688_vm2, %v715_v1, %v714_v62  ;;  %v5433_v22 = vld [vmem:[#allocation2 + $0x64c] ss:$16 sps:$4 sm:$0xff]   ;;  %v5449_v61 = vld [vmem:[#allocation2 + $0x6a8] ss:$16 sps:$4 sm:$0xff]  }
  0x99   : > { %2029 = vmatmul.mubr.bf16.vlgmr.msra.gmra.mrb[0].mxu1 %v6888_v16  ;;  %v689_v31 = vsel %vm688_vm2, %v6773_v38, %v686_v19  ;;  %v718_v26 = vsel %vm691_vm3, %v717_v63, %v716_v45  ;;  %v5440_v63 = vld [vmem:[#allocation2 + $0x488] ss:$16 sps:$4 sm:$0xff]   ;;  %v5451_v32 = vld [vmem:[#allocation2 + $0x6ac] ss:$16 sps:$4 sm:$0xff]  }
  0x9a   : > { %2079 = vmatpush1.bf16.msra.mxu1 %v5419_v40  ;;  %2042 = vmatpush1.bf16.msra.mxu0 %v5428_v34  ;;  %v692_v46 = vsel %vm691_vm3, %v6779_v42, %v689_v31  ;;  %v720_v21 = vsel %vm694_vm5, %v719_v10, %v718_v26  ;;  %v5431_v42 = vld [vmem:[#allocation2 + $0x648] ss:$16 sps:$4 sm:$0xff]   ;;  %v5439_v40 = vld [vmem:[#allocation2 + $0x66c] ss:$16 sps:$4 sm:$0xff]  }
  0x9b   : > { %2080 = vmatprep.subr.bf16.mxu1 %v5427_v43  ;;  %2043 = vmatprep.subr.bf16.mxu0 %v5436_v35  ;;  %v695_v37 = vsel %vm694_vm5, %v6783_v44, %v692_v46  ;;  %v6923_v38 = vsel %vm697_vm6, %v721_v60, %v720_v21  ;;  %v5448_v34 = vld [vmem:[#allocation2 + $0x4ac] ss:$16 sps:$4 sm:$0xff]   ;;  %v5437_v44 = vld [vmem:[#allocation2 + $0x668] ss:$16 sps:$4 sm:$0xff]  }
  0x9c   : > { %2110 = vmatprep.mubr.bf16.mxu1 %v6775_v41  ;;  %v6920_v1 = vsel %vm697_vm6, %v6787_v49, %v695_v37  ;;  %v5446_v10 = vld [vmem:[#allocation2 + $0x4a8] ss:$16 sps:$4 sm:$0xff]   ;;  %v5445_v43 = vld [vmem:[#allocation2 + $0x68c] ss:$16 sps:$4 sm:$0xff]  }
  0x9d   : > { %v5454_v49 = vld [vmem:[#allocation2 + $0x4cc] ss:$16 sps:$4 sm:$0xff]   ;;  %v5443_v35 = vld [vmem:[#allocation2 + $0x688] ss:$16 sps:$4 sm:$0xff]  }
  0x9e   : > { %2081 = vmatpush1.bf16.msra.mxu1 %v5425_v29  ;;  %2044 = vmatpush1.bf16.msra.mxu0 %v5434_v5  ;;  %v5452_v60 = vld [vmem:[#allocation2 + $0x4c8] ss:$16 sps:$4 sm:$0xff]   ;;  %v5460_v39 = vld [vmem:[#allocation2 + $0x4ec] ss:$16 sps:$4 sm:$0xff]  }
  0x9f   : > { %2082 = vmatprep.subr.bf16.mxu1 %v5433_v22  ;;  %2045 = vmatprep.subr.bf16.mxu0 %v5442_v0  ;;  %v5458_v19 = vld [vmem:[#allocation2 + $0x4e8] ss:$16 sps:$4 sm:$0xff]   ;;  %v5457_v62 = vld [vmem:[#allocation2 + $0x6cc] ss:$16 sps:$4 sm:$0xff]  }
  0xa0   : > { %v5466_v29 = vld [vmem:[#allocation2 + $0x50c] ss:$16 sps:$4 sm:$0xff]   ;;  %v5455_v31 = vld [vmem:[#allocation2 + $0x6c8] ss:$16 sps:$4 sm:$0xff]  }
  0xa1   : > { %v5464_v45 = vld [vmem:[#allocation2 + $0x508] ss:$16 sps:$4 sm:$0xff]   ;;  %v5463_v5 = vld [vmem:[#allocation2 + $0x6ec] ss:$16 sps:$4 sm:$0xff]  }
  0xa2   : > { %2083 = vmatpush1.bf16.msra.mxu1 %v5431_v42  ;;  %2046 = vmatpush1.bf16.msra.mxu0 %v5440_v63  ;;  %v5472_v46 = vld [vmem:[#allocation2 + $0x52c] ss:$16 sps:$4 sm:$0xff]   ;;  %v5461_v26 = vld [vmem:[#allocation2 + $0x6e8] ss:$16 sps:$4 sm:$0xff]  }
  0xa3   : > { %2084 = vmatprep.subr.bf16.mxu1 %v5439_v40  ;;  %2047 = vmatprep.subr.bf16.mxu0 %v5448_v34  ;;  %v5469_v22 = vld [vmem:[#allocation2 + $0x70c] ss:$16 sps:$4 sm:$0xff]   ;;  %v5470_v0 = vld [vmem:[#allocation2 + $0x528] ss:$16 sps:$4 sm:$0xff]   ;;  %v423_v34 = vstv %s422_s7 }
  0xa4   : > { %v5478_v37 = vld [vmem:[#allocation2 + $0x54c] ss:$16 sps:$4 sm:$0xff]   ;;  %v5467_v21 = vld [vmem:[#allocation2 + $0x708] ss:$16 sps:$4 sm:$0xff]   ;;  %vm424_vm7 = vcmp.eq.s32.totalorder %v423_v34, 1 }
  0xa5   : > { %v5476_v42 = vld [vmem:[#allocation2 + $0x548] ss:$16 sps:$4 sm:$0xff]   ;;  %v5475_v63 = vld [vmem:[#allocation2 + $0x72c] ss:$16 sps:$4 sm:$0xff]  }
  0xa6   : > { %2085 = vmatpush1.bf16.msra.mxu1 %v5437_v44  ;;  %2048 = vmatpush1.bf16.msra.mxu0 %v5446_v10  ;;  %v5484_v40 = vld [vmem:[#allocation2 + $0x56c] ss:$16 sps:$4 sm:$0xff]   ;;  %v5473_v44 = vld [vmem:[#allocation2 + $0x728] ss:$16 sps:$4 sm:$0xff]  }
  0xa7   : > { %2086 = vmatprep.subr.bf16.mxu1 %v5445_v43  ;;  %2049 = vmatprep.subr.bf16.mxu0 %v5454_v49  ;;  %v5482_v10 = vld [vmem:[#allocation2 + $0x568] ss:$16 sps:$4 sm:$0xff]   ;;  %v5481_v43 = vld [vmem:[#allocation2 + $0x74c] ss:$16 sps:$4 sm:$0xff]  }
  0xa8   : > { %v5490_v49 = vld [vmem:[#allocation2 + $0x58c] ss:$16 sps:$4 sm:$0xff]   ;;  %v5506_v34 = vld [vmem:[#allocation2 + $0x5e8] ss:$16 sps:$4 sm:$0xff]  }
  0xaa   : > { %2087 = vmatpush1.bf16.msra.mxu1 %v5443_v35  ;;  %2050 = vmatpush1.bf16.msra.mxu0 %v5452_v60  ;;  %v5479_v35 = vld [vmem:[#allocation2 + $0x748] ss:$16 sps:$4 sm:$0xff]   ;;  %v7641_v60 = vmov 0  }
  0xab   : > { %2088 = vmatprep.subr.bf16.mxu1 %v5451_v32  ;;  %2051 = vmatprep.subr.bf16.mxu0 %v5460_v39  ;;  %v425_v32 = vsel %vm424_vm7, 1, %v7641_v60  ;;  %v5488_v39 = vld [vmem:[#allocation2 + $0x588] ss:$16 sps:$4 sm:$0xff]   ;;  %vm7357_vm7 = vmand %vm881_vm14, %vm882_vm15 }
  0xae   : > { %2089 = vmatpush1.bf16.msra.mxu1 %v5449_v61  ;;  %2052 = vmatpush1.bf16.msra.mxu0 %v5458_v19  ;;  %v5487_v61 = vld [vmem:[#allocation2 + $0x76c] ss:$16 sps:$4 sm:$0xff]  }
  0xaf   : > { %2090 = vmatprep.subr.bf16.mxu1 %v5457_v62  ;;  %2053 = vmatprep.subr.bf16.mxu0 %v5466_v29  ;;  %v5496_v19 = vld [vmem:[#allocation2 + $0x5ac] ss:$16 sps:$4 sm:$0xff]   ;;  %v426_v62 = vpack.c.b16 %v425_v32, %v425_v32  ;;  %v5485_v29 = vld [vmem:[#allocation2 + $0x768] ss:$16 sps:$4 sm:$0xff]  }
  0xb1   : > { %vm427_vm8 = vcmp.ne.s16.totalorder %v426_v62, 0  ;;  %v5503_v62 = vld [vmem:[#allocation2 + $0x7c8] ss:$16 sps:$4 sm:$0xff]  }
  0xb2   : > { %2091 = vmatpush1.bf16.msra.mxu1 %v5455_v31  ;;  %2054 = vmatpush1.bf16.msra.mxu0 %v5464_v45  ;;  %v5494_v31 = vld [vmem:[#allocation2 + $0x5a8] ss:$16 sps:$4 sm:$0xff]   ;;  %v5493_v45 = vld [vmem:[#allocation2 + $0x78c] ss:$16 sps:$4 sm:$0xff]  }
  0xb3   : > { %2092 = vmatprep.subr.bf16.mxu1 %v5463_v5  ;;  %2055 = vmatprep.subr.bf16.mxu0 %v5472_v46  ;;  %v5502_v5 = vld [vmem:[#allocation2 + $0x5cc] ss:$16 sps:$4 sm:$0xff]   ;;  %v5491_v46 = vld [vmem:[#allocation2 + $0x788] ss:$16 sps:$4 sm:$0xff]  }
  0xb6   : > { %2093 = vmatpush1.bf16.msra.mxu1 %v5461_v26  ;;  %2056 = vmatpush1.bf16.msra.mxu0 %v5470_v0  ;;  %v5499_v26 = vld [vmem:[#allocation2 + $0x7ac] ss:$16 sps:$4 sm:$0xff]   ;;  %v419_v0 = vld [vmem:[%s379_s29] sm:$0xf] }
  0xb7   : > { %2094 = vmatprep.subr.bf16.mxu1 %v5469_v22  ;;  %2057 = vmatprep.subr.bf16.mxu0 %v5478_v37  ;;  %v5500_v22 = vld [vmem:[#allocation2 + $0x5c8] ss:$16 sps:$4 sm:$0xff]   ;;  %v5508_v37 = vld [vmem:[#allocation2 + $0x5ec] ss:$16 sps:$4 sm:$0xff]  }
  0xba   : > { %2095 = vmatpush1.bf16.msra.mxu1 %v5467_v21  ;;  %2058 = vmatpush1.bf16.msra.mxu0 %v5476_v42  ;;  %v428_v21 = vsel %vm427_vm8, 0, %v419_v0 }
  0xbb   : > { %2096 = vmatprep.subr.bf16.mxu1 %v5475_v63  ;;  %2059 = vmatprep.subr.bf16.mxu0 %v5484_v40  ;;  %v444_v42 = vrot.slane %v428_v21, %v6560_v50  ;;  %v5497_v63 = vld [vmem:[#allocation2 + $0x7a8] ss:$16 sps:$4 sm:$0xff]   ;;  %v5505_v40 = vld [vmem:[#allocation2 + $0x7cc] ss:$16 sps:$4 sm:$0xff]   ;;  %v5518_v21 = vld [vmem:[#allocation2 + $0x20] ss:$16 sps:$4 sm:$0xff]  }
  0xbe   : > { %2097 = vmatpush1.bf16.msra.mxu1 %v5473_v44  ;;  %2060 = vmatpush1.bf16.msra.mxu0 %v5482_v10  ;;  %v5514_v44 = vld [vmem:[#allocation2 + $0x4] ss:$16 sps:$4 sm:$0xff]   ;;  %v445_v10 = vcombine.high %v444_v42, %v444_v42 }
  0xbf   : > { %2098 = vmatprep.subr.bf16.mxu1 %v5481_v43  ;;  %2061 = vmatprep.subr.bf16.mxu0 %v5490_v49  ;;  %v452_v43 = vrot.slane %v444_v42, %v6560_v50  ;;  %v735_v49 = vpack.c.b16 %v6920_v1, %v6920_v1  ;;  %v5512_v1 = vld [vmem:[#allocation2] ss:$16 sps:$4 sm:$0xff]   ;;  %v5526_v42 = vld [vmem:[#allocation2 + $0x44] ss:$16 sps:$4 sm:$0xff]  }
  0xc0   : > { %v459_v32 = vrot.slane %v445_v10, %v6560_v50  ;;  %v5524_v10 = vld [vmem:[#allocation2 + $0x40] ss:$16 sps:$4 sm:$0xff]  }
  0xc2   : > { %2099 = vmatpush1.bf16.msra.mxu1 %v5479_v35  ;;  %2062 = vmatpush1.bf16.msra.mxu0 %v5488_v39  ;;  %v463_v39 = vshrl.u32 %v452_v43, 16  ;;  %v461_v0 = vcombine.high %v459_v32, %v459_v32  ;;  %v5533_v35 = vld [vmem:[#allocation2 + $0x260] ss:$16 sps:$4 sm:$0xff]  }
  0xc3   : > { %2100 = vmatprep.subr.bf16.mxu1 %v5487_v61  ;;  %2063 = vmatprep.subr.bf16.mxu0 %v5496_v19  ;;  %v460_v61 = vcombine.high %v452_v43, %v452_v43  ;;  %v737_v19 = vpack.c.b16 %v6923_v38, %v6923_v38  ;;  %v5532_v43 = vld [vmem:[#allocation2 + $0x64] ss:$16 sps:$4 sm:$0xff]  }
  0xc6   : > { %2101 = vmatpush1.bf16.msra.mxu1 %v5485_v29  ;;  %2064 = vmatpush1.bf16.msra.mxu0 %v5494_v31  ;;  %v736_v29 = vpack.c.b16 %v6885_v27, %v6885_v27  ;;  %v466_v31 = vshrl.u32 %v459_v32, 16 }
  0xc7   : > { %2102 = vmatprep.subr.bf16.mxu1 %v5493_v45  ;;  %2065 = vmatprep.subr.bf16.mxu0 %v5502_v5  ;;  %v6952_v45 = vsel %vm6941_vm11, %v463_v39, %v735_v49  ;;  %v469_v5 = vshrl.u32 %v460_v61, 16  ;;  %v5521_v49 = vld [vmem:[#allocation2 + $0x220] ss:$16 sps:$4 sm:$0xff]   ;;  %v5529_v39 = vld [vmem:[#allocation2 + $0x244] ss:$16 sps:$4 sm:$0xff]  }
  0xc8   : > { %v6961_v27 = vsel %vm6941_vm11, %v466_v31, %v736_v29  ;;  %v5530_v61 = vld [vmem:[#allocation2 + $0x60] ss:$16 sps:$4 sm:$0xff]   ;;  %v5541_v31 = vld [vmem:[#allocation2 + $0x284] ss:$16 sps:$4 sm:$0xff]  }
  0xc9   : > { %v6956_v38 = vsel %vm6941_vm11, %v469_v5, %v737_v19  ;;  %v5527_v19 = vld [vmem:[#allocation2 + $0x240] ss:$16 sps:$4 sm:$0xff]  }
  0xca   : > { %2103 = vmatpush1.bf16.msra.mxu1 %v5491_v46  ;;  %2066 = vmatpush1.bf16.msra.mxu0 %v5500_v22  ;;  %v5511_v46 = vld [vmem:[#allocation2 + $0x7ec] ss:$16 sps:$4 sm:$0xff]   ;;  %v5509_v22 = vld [vmem:[#allocation2 + $0x7e8] ss:$16 sps:$4 sm:$0xff]   ;;  %v5536_v29 = vld [vmem:[#allocation2 + $0x80] ss:$16 sps:$4 sm:$0xff]  }
  0xcb   : > { %2104 = vmatprep.subr.bf16.mxu1 %v5499_v26  ;;  %2067 = vmatprep.subr.bf16.mxu0 %v5508_v37  ;;  %v5520_v26 = vld [vmem:[#allocation2 + $0x24] ss:$16 sps:$4 sm:$0xff]   ;;  %v5542_v5 = vld [vmem:[#allocation2 + $0xa0] ss:$16 sps:$4 sm:$0xff]  }
  0xcc   : > { %v5517_v37 = vld [vmem:[#allocation2 + $0x204] ss:$16 sps:$4 sm:$0xff]  }
  0xce   : > { %2105 = vmatpush1.bf16.msra.mxu1 %v5497_v63  ;;  %2068 = vmatpush1.bf16.msra.mxu0 %v5506_v34  ;;  %v5515_v63 = vld [vmem:[#allocation2 + $0x200] ss:$16 sps:$4 sm:$0xff]   ;;  %v738_v34 = vpack.c.b16 %v6902_v28, %v6902_v28  ;;  %v5538_v28 = vld [vmem:[#allocation2 + $0x84] ss:$16 sps:$4 sm:$0xff]  }
  0xcf   : > { %2106 = vmatprep.subr.bf16.mxu1 %v5505_v40  ;;  %2759 = vmatprep.subr.bf16.mxu0 %v5514_v44  ;;  %v472_v40 = vshrl.u32 %v461_v0, 16  ;;  %v5523_v44 = vld [vmem:[#allocation2 + $0x224] ss:$16 sps:$4 sm:$0xff]   ;;  %v5548_v0 = vld [vmem:[#allocation2 + $0xc0] ss:$16 sps:$4 sm:$0xff]  }
  0xd1   : > { %2070 = vmatmul.mubr.bf16.vlgmr.msra.gmra.mrb[4].mxu0 %v6839_v2  ;;  %v6969_v32 = vsel %vm6941_vm11, %v472_v40, %v738_v34  ;;  %v5562_v40 = vld [vmem:[#allocation2 + $0x104] ss:$16 sps:$4 sm:$0xff]   ;;  %v5551_v34 = vld [vmem:[#allocation2 + $0x2c0] ss:$16 sps:$4 sm:$0xff]  }
  0xd2   : > { %2107 = vmatpush1.bf16.msra.mxu1 %v5503_v62  ;;  %2760 = vmatpush1.bf16.msra.mxu0 %v5512_v1  ;;  %v5535_v62 = vld [vmem:[#allocation2 + $0x264] ss:$16 sps:$4 sm:$0xff]  }
  0xd3   : > { %2108 = vmatprep.subr.bf16.mxu1 %v5511_v46  ;;  %2761 = vmatprep.subr.bf16.mxu0 %v5520_v26  ;;  %v5544_v1 = vld [vmem:[#allocation2 + $0xa4] ss:$16 sps:$4 sm:$0xff]   ;;  %v5539_v26 = vld [vmem:[#allocation2 + $0x280] ss:$16 sps:$4 sm:$0xff]  }
  0xd4   : > { %2791 = vmatprep.mubr.bf16.mxu0 %v6961_v27  ;;  %v5550_v46 = vld [vmem:[#allocation2 + $0xc4] ss:$16 sps:$4 sm:$0xff]  }
  0xd6   : > { %2109 = vmatpush1.bf16.msra.mxu1 %v5509_v22  ;;  %2762 = vmatpush1.bf16.msra.mxu0 %v5518_v21  ;;  %v5547_v22 = vld [vmem:[#allocation2 + $0x2a4] ss:$16 sps:$4 sm:$0xff]   ;;  %v5545_v21 = vld [vmem:[#allocation2 + $0x2a0] ss:$16 sps:$4 sm:$0xff]  }
  0xd7   : > { %2800 = vmatprep.subr.bf16.mxu1 %v5517_v37  ;;  %2763 = vmatprep.subr.bf16.mxu0 %v5526_v42  ;;  %v5556_v37 = vld [vmem:[#allocation2 + $0xe4] ss:$16 sps:$4 sm:$0xff]  }
  0xd8   : > { %v5553_v42 = vld [vmem:[#allocation2 + $0x2c4] ss:$16 sps:$4 sm:$0xff]  }
  0xd9   : > { %2111 = vmatmul.mubr.bf16.vlgmr.msra.gmra.mrb[4].mxu1 %v6888_v16 }
  0xda   : > { %2801 = vmatpush1.bf16.msra.mxu1 %v5515_v63  ;;  %2764 = vmatpush1.bf16.msra.mxu0 %v5524_v10  ;;  %v5554_v63 = vld [vmem:[#allocation2 + $0xe0] ss:$16 sps:$4 sm:$0xff]  }
  0xdb   : > { %2802 = vmatprep.subr.bf16.mxu1 %v5523_v44  ;;  %2765 = vmatprep.subr.bf16.mxu0 %v5532_v43  ;;  %v5559_v44 = vld [vmem:[#allocation2 + $0x2e4] ss:$16 sps:$4 sm:$0xff]   ;;  %v5560_v10 = vld [vmem:[#allocation2 + $0x100] ss:$16 sps:$4 sm:$0xff]  }
  0xdc   : > { %2832 = vmatprep.mubr.bf16.mxu1 %v6969_v32  ;;  %v5568_v43 = vld [vmem:[#allocation2 + $0x124] ss:$16 sps:$4 sm:$0xff]  }
  0xde   : > { %2803 = vmatpush1.bf16.msra.mxu1 %v5521_v49  ;;  %2766 = vmatpush1.bf16.msra.mxu0 %v5530_v61  ;;  %v5557_v49 = vld [vmem:[#allocation2 + $0x2e0] ss:$16 sps:$4 sm:$0xff]  }
  0xdf   : > { %2804 = vmatprep.subr.bf16.mxu1 %v5529_v39  ;;  %2767 = vmatprep.subr.bf16.mxu0 %v5538_v28  ;;  %v5565_v39 = vld [vmem:[#allocation2 + $0x304] ss:$16 sps:$4 sm:$0xff]   ;;  %v5566_v61 = vld [vmem:[#allocation2 + $0x120] ss:$16 sps:$4 sm:$0xff]  }
  0xe0   : > { %v5574_v28 = vld [vmem:[#allocation2 + $0x144] ss:$16 sps:$4 sm:$0xff]  }
  0xe2   : > { %2805 = vmatpush1.bf16.msra.mxu1 %v5527_v19  ;;  %2768 = vmatpush1.bf16.msra.mxu0 %v5536_v29  ;;  %v5563_v19 = vld [vmem:[#allocation2 + $0x300] ss:$16 sps:$4 sm:$0xff]  }
  0xe3   : > { %2806 = vmatprep.subr.bf16.mxu1 %v5535_v62  ;;  %2769 = vmatprep.subr.bf16.mxu0 %v5544_v1  ;;  %v5571_v62 = vld [vmem:[#allocation2 + $0x324] ss:$16 sps:$4 sm:$0xff]   ;;  %v5572_v29 = vld [vmem:[#allocation2 + $0x140] ss:$16 sps:$4 sm:$0xff]  }
  0xe4   : > { %v5580_v1 = vld [vmem:[#allocation2 + $0x164] ss:$16 sps:$4 sm:$0xff]  }
  0xe6   : > { %2807 = vmatpush1.bf16.msra.mxu1 %v5533_v35  ;;  %2770 = vmatpush1.bf16.msra.mxu0 %v5542_v5  ;;  %v5569_v35 = vld [vmem:[#allocation2 + $0x320] ss:$16 sps:$4 sm:$0xff]  }
  0xe7   : > { %2808 = vmatprep.subr.bf16.mxu1 %v5541_v31  ;;  %2771 = vmatprep.subr.bf16.mxu0 %v5550_v46  ;;  %v5577_v31 = vld [vmem:[#allocation2 + $0x344] ss:$16 sps:$4 sm:$0xff]   ;;  %v5578_v5 = vld [vmem:[#allocation2 + $0x160] ss:$16 sps:$4 sm:$0xff]  }
  0xe8   : > { %v5586_v46 = vld [vmem:[#allocation2 + $0x184] ss:$16 sps:$4 sm:$0xff]  }
  0xea   : > { %2809 = vmatpush1.bf16.msra.mxu1 %v5539_v26  ;;  %2772 = vmatpush1.bf16.msra.mxu0 %v5548_v0  ;;  %v5575_v26 = vld [vmem:[#allocation2 + $0x340] ss:$16 sps:$4 sm:$0xff]  }
  0xeb   : > { %2810 = vmatprep.subr.bf16.mxu1 %v5547_v22  ;;  %2773 = vmatprep.subr.bf16.mxu0 %v5556_v37  ;;  %v5583_v22 = vld [vmem:[#allocation2 + $0x364] ss:$16 sps:$4 sm:$0xff]   ;;  %v5584_v0 = vld [vmem:[#allocation2 + $0x180] ss:$16 sps:$4 sm:$0xff]  }
  0xec   : > { %v5592_v37 = vld [vmem:[#allocation2 + $0x1a4] ss:$16 sps:$4 sm:$0xff]  }
  0xee   : > { %2811 = vmatpush1.bf16.msra.mxu1 %v5545_v21  ;;  %2774 = vmatpush1.bf16.msra.mxu0 %v5554_v63  ;;  %v5581_v21 = vld [vmem:[#allocation2 + $0x360] ss:$16 sps:$4 sm:$0xff]  }
  0xef   : > { %2812 = vmatprep.subr.bf16.mxu1 %v5553_v42  ;;  %2775 = vmatprep.subr.bf16.mxu0 %v5562_v40  ;;  %v5589_v42 = vld [vmem:[#allocation2 + $0x384] ss:$16 sps:$4 sm:$0xff]   ;;  %v5590_v63 = vld [vmem:[#allocation2 + $0x1a0] ss:$16 sps:$4 sm:$0xff]  }
  0xf0   : > { %v5598_v40 = vld [vmem:[#allocation2 + $0x1c4] ss:$16 sps:$4 sm:$0xff]  }
  0xf2   : > { %2813 = vmatpush1.bf16.msra.mxu1 %v5551_v34  ;;  %2776 = vmatpush1.bf16.msra.mxu0 %v5560_v10  ;;  %v5587_v34 = vld [vmem:[#allocation2 + $0x380] ss:$16 sps:$4 sm:$0xff]  }
  0xf3   : > { %2814 = vmatprep.subr.bf16.mxu1 %v5559_v44  ;;  %2777 = vmatprep.subr.bf16.mxu0 %v5568_v43  ;;  %v5595_v44 = vld [vmem:[#allocation2 + $0x3a4] ss:$16 sps:$4 sm:$0xff]   ;;  %v5596_v10 = vld [vmem:[#allocation2 + $0x1c0] ss:$16 sps:$4 sm:$0xff]  }
  0xf4   : > { %v5604_v43 = vld [vmem:[#allocation2 + $0x1e4] ss:$16 sps:$4 sm:$0xff]  }
  0xf6   : > { %2815 = vmatpush1.bf16.msra.mxu1 %v5557_v49  ;;  %2778 = vmatpush1.bf16.msra.mxu0 %v5566_v61  ;;  %v5593_v49 = vld [vmem:[#allocation2 + $0x3a0] ss:$16 sps:$4 sm:$0xff]  }
  0xf7   : > { %2816 = vmatprep.subr.bf16.mxu1 %v5565_v39  ;;  %2779 = vmatprep.subr.bf16.mxu0 %v5574_v28  ;;  %v5601_v39 = vld [vmem:[#allocation2 + $0x3c4] ss:$16 sps:$4 sm:$0xff]   ;;  %v5602_v61 = vld [vmem:[#allocation2 + $0x1e0] ss:$16 sps:$4 sm:$0xff]   ;;  %v5610_v28 = vld [vmem:[#allocation2 + $0xc] ss:$16 sps:$4 sm:$0xff]  }
  0xfa   : > { %2817 = vmatpush1.bf16.msra.mxu1 %v5563_v19  ;;  %2780 = vmatpush1.bf16.msra.mxu0 %v5572_v29  ;;  %v5599_v19 = vld [vmem:[#allocation2 + $0x3c0] ss:$16 sps:$4 sm:$0xff]   ;;  %v5608_v29 = vld [vmem:[#allocation2 + $0x8] ss:$16 sps:$4 sm:$0xff]  }
  0xfb   : > { %2818 = vmatprep.subr.bf16.mxu1 %v5571_v62  ;;  %2781 = vmatprep.subr.bf16.mxu0 %v5580_v1  ;;  %v5607_v62 = vld [vmem:[#allocation2 + $0x3e4] ss:$16 sps:$4 sm:$0xff]   ;;  %v5616_v1 = vld [vmem:[#allocation2 + $0x2c] ss:$16 sps:$4 sm:$0xff]  }
  0xfe   : > { %2819 = vmatpush1.bf16.msra.mxu1 %v5569_v35  ;;  %2782 = vmatpush1.bf16.msra.mxu0 %v5578_v5  ;;  %v5605_v35 = vld [vmem:[#allocation2 + $0x3e0] ss:$16 sps:$4 sm:$0xff]   ;;  %v5614_v5 = vld [vmem:[#allocation2 + $0x28] ss:$16 sps:$4 sm:$0xff]  }
  0xff   : > { %2820 = vmatprep.subr.bf16.mxu1 %v5577_v31  ;;  %2783 = vmatprep.subr.bf16.mxu0 %v5586_v46  ;;  %v5613_v31 = vld [vmem:[#allocation2 + $0x20c] ss:$16 sps:$4 sm:$0xff]  }
 0x100   : > { %v5622_v46 = vld [vmem:[#allocation2 + $0x4c] ss:$16 sps:$4 sm:$0xff]  }
 0x102   : > { %2821 = vmatpush1.bf16.msra.mxu1 %v5575_v26  ;;  %2784 = vmatpush1.bf16.msra.mxu0 %v5584_v0  ;;  %v5611_v26 = vld [vmem:[#allocation2 + $0x208] ss:$16 sps:$4 sm:$0xff]  }
 0x103   : > { %2822 = vmatprep.subr.bf16.mxu1 %v5583_v22  ;;  %2785 = vmatprep.subr.bf16.mxu0 %v5592_v37  ;;  %v5619_v22 = vld [vmem:[#allocation2 + $0x22c] ss:$16 sps:$4 sm:$0xff]   ;;  %v5620_v0 = vld [vmem:[#allocation2 + $0x48] ss:$16 sps:$4 sm:$0xff]  }
 0x104   : > { %v5628_v37 = vld [vmem:[#allocation2 + $0x6c] ss:$16 sps:$4 sm:$0xff]  }
 0x106   : > { %2823 = vmatpush1.bf16.msra.mxu1 %v5581_v21  ;;  %2786 = vmatpush1.bf16.msra.mxu0 %v5590_v63  ;;  %v5617_v21 = vld [vmem:[#allocation2 + $0x228] ss:$16 sps:$4 sm:$0xff]  }
 0x107   : > { %2824 = vmatprep.subr.bf16.mxu1 %v5589_v42  ;;  %2787 = vmatprep.subr.bf16.mxu0 %v5598_v40  ;;  %v5625_v42 = vld [vmem:[#allocation2 + $0x24c] ss:$16 sps:$4 sm:$0xff]   ;;  %v5626_v63 = vld [vmem:[#allocation2 + $0x68] ss:$16 sps:$4 sm:$0xff]  }
 0x108   : > { %v5634_v40 = vld [vmem:[#allocation2 + $0x8c] ss:$16 sps:$4 sm:$0xff]  }
 0x10a   : > { %2825 = vmatpush1.bf16.msra.mxu1 %v5587_v34  ;;  %2788 = vmatpush1.bf16.msra.mxu0 %v5596_v10  ;;  %v5631_v34 = vld [vmem:[#allocation2 + $0x26c] ss:$16 sps:$4 sm:$0xff]  }
 0x10b   : > { %2826 = vmatprep.subr.bf16.mxu1 %v5595_v44  ;;  %2789 = vmatprep.subr.bf16.mxu0 %v5604_v43  ;;  %v5632_v44 = vld [vmem:[#allocation2 + $0x88] ss:$16 sps:$4 sm:$0xff]   ;;  %v5640_v10 = vld [vmem:[#allocation2 + $0xac] ss:$16 sps:$4 sm:$0xff]  }
 0x10c   : > { %v5629_v43 = vld [vmem:[#allocation2 + $0x268] ss:$16 sps:$4 sm:$0xff]  }
 0x10e   : > { %2827 = vmatpush1.bf16.msra.mxu1 %v5593_v49  ;;  %2790 = vmatpush1.bf16.msra.mxu0 %v5602_v61  ;;  %v5637_v49 = vld [vmem:[#allocation2 + $0x28c] ss:$16 sps:$4 sm:$0xff]  }
 0x10f   : > { %2828 = vmatprep.subr.bf16.mxu1 %v5601_v39  ;;  %2841 = vmatprep.subr.bf16.mxu0 %v5610_v28  ;;  %v5638_v39 = vld [vmem:[#allocation2 + $0xa8] ss:$16 sps:$4 sm:$0xff]   ;;  %v5646_v61 = vld [vmem:[#allocation2 + $0xcc] ss:$16 sps:$4 sm:$0xff]  }
 0x110   : > { %v5635_v28 = vld [vmem:[#allocation2 + $0x288] ss:$16 sps:$4 sm:$0xff]  }
 0x111   : > { %2792 = vmatmul.mubr.bf16.vlgmr.msra.gmra.mrb[8].mxu0 %v6952_v45 }
 0x112   : > { %2829 = vmatpush1.bf16.msra.mxu1 %v5599_v19  ;;  %2842 = vmatpush1.bf16.msra.mxu0 %v5608_v29  ;;  %v5643_v19 = vld [vmem:[#allocation2 + $0x2ac] ss:$16 sps:$4 sm:$0xff]   ;;  %v5641_v29 = vld [vmem:[#allocation2 + $0x2a8] ss:$16 sps:$4 sm:$0xff]  }
 0x113   : > { %2830 = vmatprep.subr.bf16.mxu1 %v5607_v62  ;;  %2843 = vmatprep.subr.bf16.mxu0 %v5616_v1  ;;  %v5652_v62 = vld [vmem:[#allocation2 + $0xec] ss:$16 sps:$4 sm:$0xff]   ;;  %v5650_v1 = vld [vmem:[#allocation2 + $0xe8] ss:$16 sps:$4 sm:$0xff]  }
 0x114   : > { %2873 = vmatprep.mubr.bf16.mxu0 %v6961_v27  ;;  %v5623_v27 = vld [vmem:[#allocation2 + $0x248] ss:$16 sps:$4 sm:$0xff]  }
 0x116   : > { %2831 = vmatpush1.bf16.msra.mxu1 %v5605_v35  ;;  %2844 = vmatpush1.bf16.msra.mxu0 %v5614_v5  ;;  %v5649_v35 = vld [vmem:[#allocation2 + $0x2cc] ss:$16 sps:$4 sm:$0xff]   ;;  %v5647_v5 = vld [vmem:[#allocation2 + $0x2c8] ss:$16 sps:$4 sm:$0xff]  }
 0x117   : > { %2882 = vmatprep.subr.bf16.mxu1 %v5613_v31  ;;  %2845 = vmatprep.subr.bf16.mxu0 %v5622_v46  ;;  %v5658_v31 = vld [vmem:[#allocation2 + $0x10c] ss:$16 sps:$4 sm:$0xff]   ;;  %v5656_v46 = vld [vmem:[#allocation2 + $0x108] ss:$16 sps:$4 sm:$0xff]  }
 0x119   : > { %2833 = vmatmul.mubr.bf16.vlgmr.msra.gmra.mrb[8].mxu1 %v6956_v38 }
 0x11a   : > { %2883 = vmatpush1.bf16.msra.mxu1 %v5611_v26  ;;  %2846 = vmatpush1.bf16.msra.mxu0 %v5620_v0  ;;  %v5655_v26 = vld [vmem:[#allocation2 + $0x2ec] ss:$16 sps:$4 sm:$0xff]   ;;  %v5653_v0 = vld [vmem:[#allocation2 + $0x2e8] ss:$16 sps:$4 sm:$0xff]  }
 0x11b   : > { %2884 = vmatprep.subr.bf16.mxu1 %v5619_v22  ;;  %2847 = vmatprep.subr.bf16.mxu0 %v5628_v37  ;;  %v5664_v22 = vld [vmem:[#allocation2 + $0x12c] ss:$16 sps:$4 sm:$0xff]  }
 0x11c   : > { %2914 = vmatprep.mubr.bf16.mxu1 %v6969_v32  ;;  %v5644_v32 = vld [vmem:[#allocation2 + $0xc8] ss:$16 sps:$4 sm:$0xff]   ;;  %v5661_v37 = vld [vmem:[#allocation2 + $0x30c] ss:$16 sps:$4 sm:$0xff]  }
 0x11e   : > { %2885 = vmatpush1.bf16.msra.mxu1 %v5617_v21  ;;  %2848 = vmatpush1.bf16.msra.mxu0 %v5626_v63  ;;  %v5662_v21 = vld [vmem:[#allocation2 + $0x128] ss:$16 sps:$4 sm:$0xff]  }
 0x11f   : > { %2886 = vmatprep.subr.bf16.mxu1 %v5625_v42  ;;  %2849 = vmatprep.subr.bf16.mxu0 %v5634_v40  ;;  %v5670_v42 = vld [vmem:[#allocation2 + $0x14c] ss:$16 sps:$4 sm:$0xff]   ;;  %v5659_v63 = vld [vmem:[#allocation2 + $0x308] ss:$16 sps:$4 sm:$0xff]  }
 0x120   : > { %v5667_v40 = vld [vmem:[#allocation2 + $0x32c] ss:$16 sps:$4 sm:$0xff]  }
 0x122   : > { %2887 = vmatpush1.bf16.msra.mxu1 %v5623_v27  ;;  %2850 = vmatpush1.bf16.msra.mxu0 %v5632_v44  ;;  %v5668_v27 = vld [vmem:[#allocation2 + $0x148] ss:$16 sps:$4 sm:$0xff]   ;;  %v2931_v44 = vrot.slane %v6617_v17, 1 }
 0x123   : > { %2888 = vmatprep.subr.bf16.mxu1 %v5631_v34  ;;  %2851 = vmatprep.subr.bf16.mxu0 %v5640_v10  ;;  %v5676_v34 = vld [vmem:[#allocation2 + $0x16c] ss:$16 sps:$4 sm:$0xff]   ;;  %v5665_v10 = vld [vmem:[#allocation2 + $0x328] ss:$16 sps:$4 sm:$0xff]  }
 0x124   : > { %v5671_v17 = vld [vmem:[#allocation2 + $0x348] ss:$16 sps:$4 sm:$0xff]  }
 0x126   : > { %2889 = vmatpush1.bf16.msra.mxu1 %v5629_v43  ;;  %2852 = vmatpush1.bf16.msra.mxu0 %v5638_v39  ;;  %v5673_v43 = vld [vmem:[#allocation2 + $0x34c] ss:$16 sps:$4 sm:$0xff]   ;;  %v7665_v39 = vunpack.c.l.b16 %v6603_v11 }
 0x127   : > { %2890 = vmatprep.subr.bf16.mxu1 %v5637_v49  ;;  %2853 = vmatprep.subr.bf16.mxu0 %v5646_v61  ;;  %v5674_v49 = vld [vmem:[#allocation2 + $0x168] ss:$16 sps:$4 sm:$0xff]  }
 0x128   : > { %v6979_v61 = vrot.slane %v7665_v39, 7 }
 0x12a   : > { %2891 = vmatpush1.bf16.msra.mxu1 %v5635_v28  ;;  %2854 = vmatpush1.bf16.msra.mxu0 %v5644_v32  ;;  %v5682_v28 = vld [vmem:[#allocation2 + $0x18c] ss:$16 sps:$4 sm:$0xff]   ;;  %v7666_v32 = vunpack.c.l.b16 %v6606_v12 }
 0x12b   : > { %2892 = vmatprep.subr.bf16.mxu1 %v5643_v19  ;;  %2855 = vmatprep.subr.bf16.mxu0 %v5652_v62  ;;  %v2932_v19 = vsel %vm780_vm4, %v6619_v18, %v2931_v44  ;;  %v7669_v44 = vunpack.c.l.b16 %v6626_v24 }
 0x12c   : > { %v6985_v62 = vrot.slane %v7666_v32, 6  ;;  %v2933_v11 = vsel %vm682_vm0, %v6979_v61, %v2932_v19  ;;  %v7670_v19 = vunpack.c.l.b16 %v6640_v30 }
 0x12e   : > { %2893 = vmatpush1.bf16.msra.mxu1 %v5641_v29  ;;  %2856 = vmatpush1.bf16.msra.mxu0 %v5650_v1  ;;  %v5679_v29 = vld [vmem:[#allocation2 + $0x36c] ss:$16 sps:$4 sm:$0xff]   ;;  %v5680_v1 = vld [vmem:[#allocation2 + $0x188] ss:$16 sps:$4 sm:$0xff]   ;;  %v2934_v12 = vsel %vm685_vm1, %v6985_v62, %v2933_v11  ;;  %v7018_v32 = vrot.slane %v7670_v19, 2 }
 0x12f   : > { %2894 = vmatprep.subr.bf16.mxu1 %v5649_v35  ;;  %2857 = vmatprep.subr.bf16.mxu0 %v5658_v31  ;;  %v5688_v35 = vld [vmem:[#allocation2 + $0x1ac] ss:$16 sps:$4 sm:$0xff]   ;;  %v2947_v31 = vrot.slane %v6678_v56, 1  ;;  %v5715_v19 = vld [vmem:[#allocation2 + $0xa24] ss:$16 sps:$4 sm:$0xff]  }
 0x130   : > { %v5697_v11 = vld [vmem:[#allocation2 + $0x3cc] ss:$16 sps:$4 sm:$0xff]  }
 0x132   : > { %2895 = vmatpush1.bf16.msra.mxu1 %v5647_v5  ;;  %2858 = vmatpush1.bf16.msra.mxu0 %v5656_v46  ;;  %v7667_v5 = vunpack.c.l.b16 %v6609_v14  ;;  %v2948_v14 = vsel %vm780_vm4, %v6684_v3, %v2947_v31  ;;  %v7631_v31 = vrot.slane %v6694_v9, 4 }
 0x133   : > { %2896 = vmatprep.subr.bf16.mxu1 %v5655_v26  ;;  %2859 = vmatprep.subr.bf16.mxu0 %v5664_v22  ;;  %v5677_v26 = vld [vmem:[#allocation2 + $0x368] ss:$16 sps:$4 sm:$0xff]  }
 0x134   : > { %v6992_v46 = vrot.slane %v7667_v5, 5  ;;  %v5686_v22 = vld [vmem:[#allocation2 + $0x1a8] ss:$16 sps:$4 sm:$0xff]  }
 0x136   : > { %2897 = vmatpush1.bf16.msra.mxu1 %v5653_v0  ;;  %2860 = vmatpush1.bf16.msra.mxu0 %v5662_v21  ;;  %v7634_v0 = vrot.slane %v6686_v4, 7  ;;  %v5694_v21 = vld [vmem:[#allocation2 + $0x1cc] ss:$16 sps:$4 sm:$0xff]  }
 0x137   : > { %2898 = vmatprep.subr.bf16.mxu1 %v5661_v37  ;;  %2861 = vmatprep.subr.bf16.mxu0 %v5670_v42  ;;  %v5685_v37 = vld [vmem:[#allocation2 + $0x38c] ss:$16 sps:$4 sm:$0xff]   ;;  %v7668_v42 = vunpack.c.l.b16 %v6612_v15 }
 0x138   : > { %v2949_v15 = vsel %vm682_vm0, %v7634_v0, %v2948_v14 }
 0x139   : > { %v6999_v56 = vrot.slane %v7668_v42, 4 }
 0x13a   : > { %2899 = vmatpush1.bf16.msra.mxu1 %v5659_v63  ;;  %2862 = vmatpush1.bf16.msra.mxu0 %v5668_v27  ;;  %v2935_v63 = vsel %vm688_vm2, %v6992_v46, %v2934_v12  ;;  %v5683_v27 = vld [vmem:[#allocation2 + $0x388] ss:$16 sps:$4 sm:$0xff]  }
 0x13b   : > { %2900 = vmatprep.subr.bf16.mxu1 %v5667_v40  ;;  %2863 = vmatprep.subr.bf16.mxu0 %v5676_v34  ;;  %v7633_v40 = vrot.slane %v6690_v7, 6  ;;  %v5692_v34 = vld [vmem:[#allocation2 + $0x1c8] ss:$16 sps:$4 sm:$0xff]   ;;  %v2936_v39 = vsel %vm691_vm3, %v6999_v56, %v2935_v63  ;;  %v7629_v63 = vrot.slane %v6729_v54, 2 }
 0x13c   : > { %v5695_v12 = vld [vmem:[#allocation2 + $0x3c8] ss:$16 sps:$4 sm:$0xff]  }
 0x13d   : > { %v2950_v24 = vsel %vm685_vm1, %v7633_v40, %v2949_v15  ;;  %v5709_v15 = vld [vmem:[#allocation2 + $0xa04] ss:$16 sps:$4 sm:$0xff]  }
 0x13e   : > { %2901 = vmatpush1.bf16.msra.mxu1 %v5665_v10  ;;  %2864 = vmatpush1.bf16.msra.mxu0 %v5674_v49  ;;  %v7008_v10 = vrot.slane %v7669_v44, 3  ;;  %v5700_v49 = vld [vmem:[#allocation2 + $0x1ec] ss:$16 sps:$4 sm:$0xff]  }
 0x13f   : > { %2902 = vmatprep.subr.bf16.mxu1 %v5673_v43  ;;  %2865 = vmatprep.subr.bf16.mxu0 %v5682_v28  ;;  %v5691_v43 = vld [vmem:[#allocation2 + $0x3ac] ss:$16 sps:$4 sm:$0xff]   ;;  %v7632_v28 = vrot.slane %v6692_v8, 5 }
 0x141   : > { %v2951_v30 = vsel %vm688_vm2, %v7632_v28, %v2950_v24  ;;  %v5724_v24 = vld [vmem:[#allocation2 + $0x864] ss:$16 sps:$4 sm:$0xff]  }
 0x142   : > { %2903 = vmatpush1.bf16.msra.mxu1 %v5671_v17  ;;  %2866 = vmatpush1.bf16.msra.mxu0 %v5680_v1  ;;  %v5689_v17 = vld [vmem:[#allocation2 + $0x3a8] ss:$16 sps:$4 sm:$0xff]   ;;  %v2937_v1 = vsel %vm694_vm5, %v7008_v10, %v2936_v39  ;;  %v2952_v42 = vsel %vm691_vm3, %v7631_v31, %v2951_v30  ;;  %v5716_v39 = vld [vmem:[#allocation2 + $0x840] ss:$16 sps:$4 sm:$0xff]  }
 0x143   : > { %2904 = vmatprep.subr.bf16.mxu1 %v5679_v29  ;;  %2867 = vmatprep.subr.bf16.mxu0 %v5688_v35  ;;  %v5698_v29 = vld [vmem:[#allocation2 + $0x1e8] ss:$16 sps:$4 sm:$0xff]   ;;  %v5706_v35 = vld [vmem:[#allocation2 + $0x804] ss:$16 sps:$4 sm:$0xff]   ;;  %v2938_v5 = vsel %vm697_vm6, %v7018_v32, %v2937_v1  ;;  %v5722_v1 = vld [vmem:[#allocation2 + $0x860] ss:$16 sps:$4 sm:$0xff]  }
 0x144   : > { %v7035_v14 = vpack.c.b16 %v2938_v5, %v2938_v5  ;;  %v5719_v30 = vld [vmem:[#allocation2 + $0xa40] ss:$16 sps:$4 sm:$0xff]   ;;  %v5827_v31 = vld [vmem:[#allocation2 + $0xa88] ss:$16 sps:$4 sm:$0xff]  }
 0x145   : > { %v5728_v5 = vld [vmem:[#allocation2 + $0x880] ss:$16 sps:$4 sm:$0xff]  }
 0x146   : > { %2905 = vmatpush1.bf16.msra.mxu1 %v5677_v26  ;;  %2868 = vmatpush1.bf16.msra.mxu0 %v5686_v22  ;;  %v5704_v26 = vld [vmem:[#allocation2 + $0x800] ss:$16 sps:$4 sm:$0xff]   ;;  %v7630_v22 = vrot.slane %v6697_v13, 3 }
 0x147   : > { %2906 = vmatprep.subr.bf16.mxu1 %v5685_v37  ;;  %2869 = vmatprep.subr.bf16.mxu0 %v5694_v21  ;;  %v5703_v37 = vld [vmem:[#allocation2 + $0x3ec] ss:$16 sps:$4 sm:$0xff]   ;;  %v5712_v21 = vld [vmem:[#allocation2 + $0x824] ss:$16 sps:$4 sm:$0xff]  }
 0x148   : > { %v2953_v44 = vsel %vm694_vm5, %v7630_v22, %v2952_v42  ;;  %v5742_v42 = vld [vmem:[#allocation2 + $0x8c4] ss:$16 sps:$4 sm:$0xff]  }
 0x14a   : > { %2907 = vmatpush1.bf16.msra.mxu1 %v5683_v27  ;;  %2870 = vmatpush1.bf16.msra.mxu0 %v5692_v34  ;;  %v5701_v27 = vld [vmem:[#allocation2 + $0x3e8] ss:$16 sps:$4 sm:$0xff]   ;;  %v5710_v34 = vld [vmem:[#allocation2 + $0x820] ss:$16 sps:$4 sm:$0xff]  }
 0x14b   : > { %2908 = vmatprep.subr.bf16.mxu1 %v5691_v43  ;;  %2871 = vmatprep.subr.bf16.mxu0 %v5700_v49  ;;  %v5718_v43 = vld [vmem:[#allocation2 + $0x844] ss:$16 sps:$4 sm:$0xff]   ;;  %v5707_v49 = vld [vmem:[#allocation2 + $0xa00] ss:$16 sps:$4 sm:$0xff]  }
 0x14e   : > { %2909 = vmatpush1.bf16.msra.mxu1 %v5689_v17  ;;  %2872 = vmatpush1.bf16.msra.mxu0 %v5698_v29  ;;  %v5713_v29 = vld [vmem:[#allocation2 + $0xa20] ss:$16 sps:$4 sm:$0xff]  }
 0x14f   : > { %2910 = vmatprep.subr.bf16.mxu1 %v5697_v11  ;;  %3603 = vmatprep.subr.bf16.mxu0 %v5706_v35  ;;  %v5721_v11 = vld [vmem:[#allocation2 + $0xa44] ss:$16 sps:$4 sm:$0xff]  }
 0x150   : > { %v5730_v35 = vld [vmem:[#allocation2 + $0x884] ss:$16 sps:$4 sm:$0xff]  }
 0x151   : > { %2874 = vmatmul.mubr.bf16.vlgmr.msra.gmra.mrb[12].mxu0 %v6952_v45  ;;  %v2954_v45 = vsel %vm697_vm6, %v7629_v63, %v2953_v44  ;;  %v5731_v44 = vld [vmem:[#allocation2 + $0xa80] ss:$16 sps:$4 sm:$0xff]   ;;  %v5820_v63 = vld [vmem:[#allocation2 + $0x86c] ss:$16 sps:$4 sm:$0xff]  }
 0x152   : > { %2911 = vmatpush1.bf16.msra.mxu1 %v5695_v12  ;;  %3604 = vmatpush1.bf16.msra.mxu0 %v5704_v26  ;;  %v7046_v17 = vpack.c.b16 %v2954_v45, %v2954_v45  ;;  %v5727_v12 = vld [vmem:[#allocation2 + $0xa64] ss:$16 sps:$4 sm:$0xff]  }
 0x153   : > { %2912 = vmatprep.subr.bf16.mxu1 %v5703_v37  ;;  %3605 = vmatprep.subr.bf16.mxu0 %v5712_v21  ;;  %v5736_v26 = vld [vmem:[#allocation2 + $0x8a4] ss:$16 sps:$4 sm:$0xff]   ;;  %v5734_v37 = vld [vmem:[#allocation2 + $0x8a0] ss:$16 sps:$4 sm:$0xff]  }
 0x154   : > { %3635 = vmatprep.mubr.bf16.mxu0 %v7035_v14  ;;  %v5733_v21 = vld [vmem:[#allocation2 + $0xa84] ss:$16 sps:$4 sm:$0xff]  }
 0x155   : > { %v5739_v45 = vld [vmem:[#allocation2 + $0xaa4] ss:$16 sps:$4 sm:$0xff]  }
 0x156   : > { %2913 = vmatpush1.bf16.msra.mxu1 %v5701_v27  ;;  %3606 = vmatpush1.bf16.msra.mxu0 %v5710_v34 }
 0x157   : > { %3644 = vmatprep.subr.bf16.mxu1 %v5709_v15  ;;  %3607 = vmatprep.subr.bf16.mxu0 %v5718_v43  ;;  %v5740_v43 = vld [vmem:[#allocation2 + $0x8c0] ss:$16 sps:$4 sm:$0xff]  }
 0x159   : > { %2915 = vmatmul.mubr.bf16.vlgmr.msra.gmra.mrb[12].mxu1 %v6956_v38  ;;  %v5725_v38 = vld [vmem:[#allocation2 + $0xa60] ss:$16 sps:$4 sm:$0xff]  }
 0x15a   : > { %3645 = vmatpush1.bf16.msra.mxu1 %v5707_v49  ;;  %3608 = vmatpush1.bf16.msra.mxu0 %v5716_v39  ;;  %v5748_v39 = vld [vmem:[#allocation2 + $0x8e4] ss:$16 sps:$4 sm:$0xff]  }
 0x15b   : > { %3646 = vmatprep.subr.bf16.mxu1 %v5715_v19  ;;  %3609 = vmatprep.subr.bf16.mxu0 %v5724_v24  ;;  %v5737_v19 = vld [vmem:[#allocation2 + $0xaa0] ss:$16 sps:$4 sm:$0xff]  }
 0x15c   : > { %3676 = vmatprep.mubr.bf16.mxu1 %v7046_v17  ;;  %v5746_v24 = vld [vmem:[#allocation2 + $0x8e0] ss:$16 sps:$4 sm:$0xff]  }
 0x15e   : > { %3647 = vmatpush1.bf16.msra.mxu1 %v5713_v29  ;;  %3610 = vmatpush1.bf16.msra.mxu0 %v5722_v1  ;;  %v5745_v29 = vld [vmem:[#allocation2 + $0xac4] ss:$16 sps:$4 sm:$0xff]  }
 0x15f   : > { %3648 = vmatprep.subr.bf16.mxu1 %v5721_v11  ;;  %3611 = vmatprep.subr.bf16.mxu0 %v5730_v35  ;;  %v5754_v1 = vld [vmem:[#allocation2 + $0x904] ss:$16 sps:$4 sm:$0xff]  }
 0x162   : > { %3649 = vmatpush1.bf16.msra.mxu1 %v5719_v30  ;;  %3612 = vmatpush1.bf16.msra.mxu0 %v5728_v5 }
 0x163   : > { %3650 = vmatprep.subr.bf16.mxu1 %v5727_v12  ;;  %3613 = vmatprep.subr.bf16.mxu0 %v5736_v26  ;;  %v5743_v26 = vld [vmem:[#allocation2 + $0xac0] ss:$16 sps:$4 sm:$0xff]  }
 0x164   : > { %v1989_v27 = vpop.f32.mrb[0].mxu0 }
 0x165   : > { %v1991_v34 = vpop.f32.mrb[1].mxu0 }
 0x166   : > { %3651 = vmatpush1.bf16.msra.mxu1 %v5725_v38  ;;  %v1993_v15 = vpop.f32.mrb[2].mxu0  ;;  %3614 = vmatpush1.bf16.msra.mxu0 %v5734_v37  ;;  %v5752_v38 = vld [vmem:[#allocation2 + $0x900] ss:$16 sps:$4 sm:$0xff]  }
 0x167   : > { %3652 = vmatprep.subr.bf16.mxu1 %v5733_v21  ;;  %v1994_v49 = vpop.f32.mrb[3].mxu0  ;;  %3615 = vmatprep.subr.bf16.mxu0 %v5742_v42  ;;  %v5751_v21 = vld [vmem:[#allocation2 + $0xae4] ss:$16 sps:$4 sm:$0xff]   ;;  %v5758_v15 = vld [vmem:[#allocation2 + $0x920] ss:$16 sps:$4 sm:$0xff]  }
 0x168   : > { %v5760_v42 = vld [vmem:[#allocation2 + $0x924] ss:$16 sps:$4 sm:$0xff]   ;;  %v5764_v49 = vld [vmem:[#allocation2 + $0x940] ss:$16 sps:$4 sm:$0xff]  }
 0x16a   : > { %3653 = vmatpush1.bf16.msra.mxu1 %v5731_v44  ;;  %3616 = vmatpush1.bf16.msra.mxu0 %v5740_v43  ;;  %v5749_v44 = vld [vmem:[#allocation2 + $0xae0] ss:$16 sps:$4 sm:$0xff]   ;;  %v5766_v43 = vld [vmem:[#allocation2 + $0x944] ss:$16 sps:$4 sm:$0xff]  }
 0x16b   : > { %3654 = vmatprep.subr.bf16.mxu1 %v5739_v45  ;;  %3617 = vmatprep.subr.bf16.mxu0 %v5748_v39  ;;  %v5755_v45 = vld [vmem:[#allocation2 + $0xb00] ss:$16 sps:$4 sm:$0xff]   ;;  %v5763_v39 = vld [vmem:[#allocation2 + $0xb24] ss:$16 sps:$4 sm:$0xff]  }
 0x16c   : > { %v2030_v11 = vpop.f32.mrb[0].mxu1 }
 0x16d   : > { %v7050_v35 = vadd.f32 %v2030_v11, %v1989_v27  ;;  %v2032_v30 = vpop.f32.mrb[1].mxu1  ;;  %v5757_v27 = vld [vmem:[#allocation2 + $0xb04] ss:$16 sps:$4 sm:$0xff]   ;;  %v5761_v11 = vld [vmem:[#allocation2 + $0xb20] ss:$16 sps:$4 sm:$0xff]  }
 0x16e   : > { %v7052_v5 = vadd.f32 %v2032_v30, %v1991_v34  ;;  %v2034_v12 = vpop.f32.mrb[2].mxu1  ;;  %3655 = vmatpush1.bf16.msra.mxu1 %v5737_v19  ;;  %3618 = vmatpush1.bf16.msra.mxu0 %v5746_v24  ;;  %v2923_v34 = vrot.slane %v6749_v52, 1  ;;  %v5772_v19 = vld [vmem:[#allocation2 + $0x964] ss:$16 sps:$4 sm:$0xff]   ;;  %v7671_v24 = vunpack.c.l.b16 %v6723_v47  ;;  %v5770_v30 = vld [vmem:[#allocation2 + $0x960] ss:$16 sps:$4 sm:$0xff]   ;;  %v7673_v52 = vunpack.c.l.b16 %v6727_v48 }
 0x16f   : > { %v2035_v37 = vpop.f32.mrb[3].mxu1  ;;  %3656 = vmatprep.subr.bf16.mxu1 %v5745_v29  ;;  %3619 = vmatprep.subr.bf16.mxu0 %v5754_v1 }
 0x170   : > { %v7057_v29 = vrot.slane %v7671_v24, 7  ;;  %v2924_v1 = vsel %vm780_vm4, %v6751_v53, %v2923_v34  ;;  %v7063_v12 = vrot.slane %v7673_v52, 6  ;;  %v2939_v37 = vrot.slane %v6815_v55, 1 }
 0x171   : > { %v7640_v34 = vrot.slane %v6819_v33, 7  ;;  %v7639_v24 = vrot.slane %v6825_v25, 6 }
 0x172   : > { %3657 = vmatpush1.bf16.msra.mxu1 %v5743_v26  ;;  %3620 = vmatpush1.bf16.msra.mxu0 %v5752_v38  ;;  %7672 = vst [vmem:[#allocation11_spill] sm:$0xff] %v7057_v29  ;;  %7674 = vst [vmem:[#allocation12_spill] sm:$0xff] %v7063_v12  ;;  %v5769_v26 = vld [vmem:[#allocation2 + $0xb44] ss:$16 sps:$4 sm:$0xff]   ;;  %v2925_v47 = vsel %vm682_vm0, %v7057_v29, %v2924_v1  ;;  %v5995_v29 = vld [vmem:[#allocation2 + $0x4e8] ss:$16 sps:$4 sm:$0xff]  }
 0x173   : > { %3658 = vmatprep.subr.bf16.mxu1 %v5751_v21  ;;  %3621 = vmatprep.subr.bf16.mxu0 %v5760_v42  ;;  %v5778_v38 = vld [vmem:[#allocation2 + $0x984] ss:$16 sps:$4 sm:$0xff]   ;;  %v7675_v21 = vunpack.c.l.b16 %v6736_v51  ;;  %v2926_v48 = vsel %vm685_vm1, %v7063_v12, %v2925_v47  ;;  %v2940_v51 = vsel %vm780_vm4, %v6817_v36, %v2939_v37  ;;  %v5779_v47 = vld [vmem:[#allocation2 + $0xb80] ss:$16 sps:$4 sm:$0xff]  }
 0x174   : > { %v5781_v1 = vld [vmem:[#allocation2 + $0xb84] ss:$16 sps:$4 sm:$0xff]   ;;  %v2941_v52 = vsel %vm682_vm0, %v7640_v34, %v2940_v51  ;;  %v5788_v37 = vld [vmem:[#allocation2 + $0x9c0] ss:$16 sps:$4 sm:$0xff]  }
 0x175   : > { %v7070_v42 = vrot.slane %v7675_v21, 5  ;;  %v7681_v21 = vunpack.c.l.b16 %v6791_v58  ;;  %v5785_v58 = vld [vmem:[#allocation2 + $0xba0] ss:$16 sps:$4 sm:$0xff]   ;;  %v5933_v12 = vld [vmem:[#allocation2 + $0x504] ss:$16 sps:$4 sm:$0xff]  }
 0x176   : > { %3659 = vmatpush1.bf16.msra.mxu1 %v5749_v44  ;;  %3622 = vmatpush1.bf16.msra.mxu0 %v5758_v15  ;;  %v5767_v44 = vld [vmem:[#allocation2 + $0xb40] ss:$16 sps:$4 sm:$0xff]  }
 0x177   : > { %3660 = vmatprep.subr.bf16.mxu1 %v5757_v27  ;;  %3623 = vmatprep.subr.bf16.mxu0 %v5766_v43  ;;  %7676 = vst [vmem:[#allocation13_spill] sm:$0xff] %v7070_v42  ;;  %v5776_v15 = vld [vmem:[#allocation2 + $0x980] ss:$16 sps:$4 sm:$0xff]   ;;  %v5775_v27 = vld [vmem:[#allocation2 + $0xb64] ss:$16 sps:$4 sm:$0xff]  }
 0x178   : > { %v5784_v43 = vld [vmem:[#allocation2 + $0x9a4] ss:$16 sps:$4 sm:$0xff]  }
 0x17a   : > { %3661 = vmatpush1.bf16.msra.mxu1 %v5755_v45  ;;  %3624 = vmatpush1.bf16.msra.mxu0 %v5764_v49  ;;  %v7677_v45 = vunpack.c.l.b16 %v6740_v57  ;;  %v2927_v49 = vsel %vm688_vm2, %v7070_v42, %v2926_v48  ;;  %v7679_v57 = vunpack.c.l.b16 %v6747_v59  ;;  %v2942_v59 = vsel %vm685_vm1, %v7639_v24, %v2941_v52  ;;  %v5796_v48 = vld [vmem:[#allocation2 + $0x9e4] ss:$16 sps:$4 sm:$0xff]  }
 0x17b   : > { %3662 = vmatprep.subr.bf16.mxu1 %v5763_v39  ;;  %3625 = vmatprep.subr.bf16.mxu0 %v5772_v19  ;;  %v5773_v39 = vld [vmem:[#allocation2 + $0xb60] ss:$16 sps:$4 sm:$0xff]   ;;  %v5932_v42 = vld [vmem:[#allocation2 + $0x6c4] ss:$16 sps:$4 sm:$0xff]  }
 0x17c   : > { %v7077_v55 = vrot.slane %v7677_v45, 4  ;;  %v5782_v19 = vld [vmem:[#allocation2 + $0x9a0] ss:$16 sps:$4 sm:$0xff]  }
 0x17e   : > { %3663 = vmatpush1.bf16.msra.mxu1 %v5761_v11  ;;  %3626 = vmatpush1.bf16.msra.mxu0 %v5770_v30  ;;  %7678 = vst [vmem:[#allocation14_spill] sm:$0xff] %v7077_v55  ;;  %v5790_v11 = vld [vmem:[#allocation2 + $0x9c4] ss:$16 sps:$4 sm:$0xff]   ;;  %v7086_v30 = vrot.slane %v7679_v57, 3  ;;  %v5802_v57 = vld [vmem:[#allocation2 + $0x80c] ss:$16 sps:$4 sm:$0xff]  }
 0x17f   : > { %3664 = vmatprep.subr.bf16.mxu1 %v5769_v26  ;;  %3627 = vmatprep.subr.bf16.mxu0 %v5778_v38  ;;  %v2928_v26 = vsel %vm691_vm3, %v7077_v55, %v2927_v49  ;;  %v7638_v38 = vrot.slane %v6827_v20, 5  ;;  %v5794_v49 = vld [vmem:[#allocation2 + $0x9e0] ss:$16 sps:$4 sm:$0xff]  }
 0x180   : > { %7680 = vst [vmem:[#allocation15_spill] sm:$0xff] %v7086_v30  ;;  %v5930_v55 = vld [vmem:[#allocation2 + $0x6a0] ss:$16 sps:$4 sm:$0xff]  }
 0x181   : > { %v2943_v51 = vsel %vm688_vm2, %v7638_v38, %v2942_v59  ;;  %v5799_v59 = vld [vmem:[#allocation2 + $0xbe4] ss:$16 sps:$4 sm:$0xff]  }
 0x182   : > { %3665 = vmatpush1.bf16.msra.mxu1 %v5767_v44  ;;  %3628 = vmatpush1.bf16.msra.mxu0 %v5776_v15  ;;  %v7096_v44 = vrot.slane %v7681_v21, 2  ;;  %v5787_v15 = vld [vmem:[#allocation2 + $0xba4] ss:$16 sps:$4 sm:$0xff]   ;;  %v5800_v21 = vld [vmem:[#allocation2 + $0x808] ss:$16 sps:$4 sm:$0xff]  }
 0x183   : > { %3666 = vmatprep.subr.bf16.mxu1 %v5775_v27  ;;  %3629 = vmatprep.subr.bf16.mxu0 %v5784_v43  ;;  %v2929_v27 = vsel %vm694_vm5, %v7086_v30, %v2928_v26  ;;  %v7683_v43 = vld [vmem:[#allocation9_spill] sm:$0xff] }
 0x184   : > { %7682 = vst [vmem:[#allocation16_spill] sm:$0xff] %v7096_v44  ;;  %v7637_v45 = vrot.slane %v7683_v43, 4 }
 0x186   : > { %3667 = vmatpush1.bf16.msra.mxu1 %v5773_v39  ;;  %3630 = vmatpush1.bf16.msra.mxu0 %v5782_v19  ;;  %v2930_v39 = vsel %vm697_vm6, %v7096_v44, %v2929_v27  ;;  %v5793_v19 = vld [vmem:[#allocation2 + $0xbc4] ss:$16 sps:$4 sm:$0xff]   ;;  %v2944_v52 = vsel %vm691_vm3, %v7637_v45, %v2943_v51  ;;  %v5797_v27 = vld [vmem:[#allocation2 + $0xbe0] ss:$16 sps:$4 sm:$0xff]   ;;  %v5929_v45 = vld [vmem:[%s6557_s28 + $0x1c] sm:$0xf] }
 0x187   : > { %3668 = vmatprep.subr.bf16.mxu1 %v5781_v1  ;;  %3631 = vmatprep.subr.bf16.mxu0 %v5790_v11  ;;  %v7684_v1 = vld [vmem:[#allocation10_spill] sm:$0xff]  ;;  %v7113_v26 = vpack.c.b16 %v2930_v39, %v2930_v39  ;;  %v5814_v39 = vld [vmem:[#allocation2 + $0x84c] ss:$16 sps:$4 sm:$0xff]  }
 0x188   : > { %v7636_v11 = vrot.slane %v7684_v1, 3 }
 0x18a   : > { %3669 = vmatpush1.bf16.msra.mxu1 %v5779_v47  ;;  %3632 = vmatpush1.bf16.msra.mxu0 %v5788_v37  ;;  %v5791_v47 = vld [vmem:[#allocation2 + $0xbc0] ss:$16 sps:$4 sm:$0xff]   ;;  %v7635_v37 = vrot.slane %v6857_v6, 2 }
 0x18b   : > { %3670 = vmatprep.subr.bf16.mxu1 %v5787_v15  ;;  %3633 = vmatprep.subr.bf16.mxu0 %v5796_v48  ;;  %v2945_v15 = vsel %vm694_vm5, %v7636_v11, %v2944_v52  ;;  %v5808_v48 = vld [vmem:[#allocation2 + $0x82c] ss:$16 sps:$4 sm:$0xff]   ;;  %v5812_v52 = vld [vmem:[#allocation2 + $0x848] ss:$16 sps:$4 sm:$0xff]   ;;  %v5928_v11 = vld [vmem:[#allocation2 + $0x4e4] ss:$16 sps:$4 sm:$0xff]  }
 0x18c   : > { %v2946_v51 = vsel %vm697_vm6, %v7635_v37, %v2945_v15  ;;  %v5817_v15 = vld [vmem:[#allocation2 + $0xa4c] ss:$16 sps:$4 sm:$0xff]   ;;  %v5927_v37 = vld [vmem:[#allocation2 + $0x6a4] ss:$16 sps:$4 sm:$0xff]  }
 0x18e   : > { %3671 = vmatpush1.bf16.msra.mxu1 %v5785_v58  ;;  %3634 = vmatpush1.bf16.msra.mxu0 %v5794_v49  ;;  %v5806_v58 = vld [vmem:[#allocation2 + $0x828] ss:$16 sps:$4 sm:$0xff]   ;;  %v5805_v49 = vld [vmem:[#allocation2 + $0xa0c] ss:$16 sps:$4 sm:$0xff]  }
 0x18f   : > { %3672 = vmatprep.subr.bf16.mxu1 %v5793_v19  ;;  %3685 = vmatprep.subr.bf16.mxu0 %v5802_v57  ;;  %v7124_v19 = vpack.c.b16 %v2946_v51, %v2946_v51  ;;  %v5803_v57 = vld [vmem:[#allocation2 + $0xa08] ss:$16 sps:$4 sm:$0xff]  }
 0x190   : > { %v5824_v51 = vld [vmem:[#allocation2 + $0x888] ss:$16 sps:$4 sm:$0xff]  }
 0x191   : > { %3636 = vmatmul.mubr.bf16.vlgmr.msra.gmra.mrb[16].mxu0 %v7113_v26 }
 0x192   : > { %3673 = vmatpush1.bf16.msra.mxu1 %v5791_v47  ;;  %3686 = vmatpush1.bf16.msra.mxu0 %v5800_v21  ;;  %v5811_v47 = vld [vmem:[#allocation2 + $0xa2c] ss:$16 sps:$4 sm:$0xff]   ;;  %v5809_v21 = vld [vmem:[#allocation2 + $0xa28] ss:$16 sps:$4 sm:$0xff]  }
 0x193   : > { %3674 = vmatprep.subr.bf16.mxu1 %v5799_v59  ;;  %3687 = vmatprep.subr.bf16.mxu0 %v5808_v48  ;;  %v5818_v59 = vld [vmem:[#allocation2 + $0x868] ss:$16 sps:$4 sm:$0xff]   ;;  %v5826_v48 = vld [vmem:[#allocation2 + $0x88c] ss:$16 sps:$4 sm:$0xff]  }
 0x194   : > { %3717 = vmatprep.mubr.bf16.mxu0 %v7035_v14 }
 0x196   : > { %3675 = vmatpush1.bf16.msra.mxu1 %v5797_v27  ;;  %3688 = vmatpush1.bf16.msra.mxu0 %v5806_v58  ;;  %v5815_v27 = vld [vmem:[#allocation2 + $0xa48] ss:$16 sps:$4 sm:$0xff]   ;;  %v5823_v58 = vld [vmem:[#allocation2 + $0xa6c] ss:$16 sps:$4 sm:$0xff]  }
 0x197   : > { %3726 = vmatprep.subr.bf16.mxu1 %v5805_v49  ;;  %3689 = vmatprep.subr.bf16.mxu0 %v5814_v39  ;;  %v5832_v49 = vld [vmem:[#allocation2 + $0x8ac] ss:$16 sps:$4 sm:$0xff]   ;;  %v5821_v39 = vld [vmem:[#allocation2 + $0xa68] ss:$16 sps:$4 sm:$0xff]  }
 0x199   : > { %3677 = vmatmul.mubr.bf16.vlgmr.msra.gmra.mrb[16].mxu1 %v7124_v19 }
 0x19a   : > { %3727 = vmatpush1.bf16.msra.mxu1 %v5803_v57  ;;  %3690 = vmatpush1.bf16.msra.mxu0 %v5812_v52  ;;  %v5830_v57 = vld [vmem:[#allocation2 + $0x8a8] ss:$16 sps:$4 sm:$0xff]   ;;  %v5829_v52 = vld [vmem:[#allocation2 + $0xa8c] ss:$16 sps:$4 sm:$0xff]  }
 0x19b   : > { %3728 = vmatprep.subr.bf16.mxu1 %v5811_v47  ;;  %3691 = vmatprep.subr.bf16.mxu0 %v5820_v63  ;;  %v5838_v47 = vld [vmem:[#allocation2 + $0x8cc] ss:$16 sps:$4 sm:$0xff]  }
 0x19c   : > { %3758 = vmatprep.mubr.bf16.mxu1 %v7046_v17 }
 0x19e   : > { %3729 = vmatpush1.bf16.msra.mxu1 %v5809_v21  ;;  %3692 = vmatpush1.bf16.msra.mxu0 %v5818_v59  ;;  %v5836_v59 = vld [vmem:[#allocation2 + $0x8c8] ss:$16 sps:$4 sm:$0xff]  }
 0x19f   : > { %3730 = vmatprep.subr.bf16.mxu1 %v5817_v15  ;;  %3693 = vmatprep.subr.bf16.mxu0 %v5826_v48  ;;  %v5835_v15 = vld [vmem:[#allocation2 + $0xaac] ss:$16 sps:$4 sm:$0xff]  }
 0x1a0   : > { %v5844_v48 = vld [vmem:[#allocation2 + $0x8ec] ss:$16 sps:$4 sm:$0xff]  }
 0x1a2   : > { %3731 = vmatpush1.bf16.msra.mxu1 %v5815_v27  ;;  %3694 = vmatpush1.bf16.msra.mxu0 %v5824_v51  ;;  %v5833_v27 = vld [vmem:[#allocation2 + $0xaa8] ss:$16 sps:$4 sm:$0xff]  }
 0x1a3   : > { %3732 = vmatprep.subr.bf16.mxu1 %v5823_v58  ;;  %3695 = vmatprep.subr.bf16.mxu0 %v5832_v49  ;;  %v5842_v51 = vld [vmem:[#allocation2 + $0x8e8] ss:$16 sps:$4 sm:$0xff]   ;;  %v5841_v58 = vld [vmem:[#allocation2 + $0xacc] ss:$16 sps:$4 sm:$0xff]  }
 0x1a4   : > { %v2071_v63 = vpop.f32.mrb[4].mxu0  ;;  %v5850_v49 = vld [vmem:[#allocation2 + $0x90c] ss:$16 sps:$4 sm:$0xff]  }
 0x1a5   : > { %v2073_v22 = vpop.f32.mrb[5].mxu0 }
 0x1a6   : > { %3733 = vmatpush1.bf16.msra.mxu1 %v5821_v39  ;;  %v2075_v21 = vpop.f32.mrb[6].mxu0  ;;  %3696 = vmatpush1.bf16.msra.mxu0 %v5830_v57 }
 0x1a7   : > { %3734 = vmatprep.subr.bf16.mxu1 %v5829_v52  ;;  %v2076_v28 = vpop.f32.mrb[7].mxu0  ;;  %3697 = vmatprep.subr.bf16.mxu0 %v5838_v47  ;;  %v5839_v52 = vld [vmem:[#allocation2 + $0xac8] ss:$16 sps:$4 sm:$0xff]  }
 0x1a8   : > { %v5848_v28 = vld [vmem:[#allocation2 + $0x908] ss:$16 sps:$4 sm:$0xff]  }
 0x1aa   : > { %3735 = vmatpush1.bf16.msra.mxu1 %v5827_v31  ;;  %3698 = vmatpush1.bf16.msra.mxu0 %v5836_v59  ;;  %v5847_v31 = vld [vmem:[#allocation2 + $0xaec] ss:$16 sps:$4 sm:$0xff]  }
 0x1ab   : > { %3736 = vmatprep.subr.bf16.mxu1 %v5835_v15  ;;  %3699 = vmatprep.subr.bf16.mxu0 %v5844_v48  ;;  %v5856_v59 = vld [vmem:[#allocation2 + $0x92c] ss:$16 sps:$4 sm:$0xff]   ;;  %v5845_v15 = vld [vmem:[#allocation2 + $0xae8] ss:$16 sps:$4 sm:$0xff]  }
 0x1ac   : > { %v2112_v40 = vpop.f32.mrb[4].mxu1  ;;  %v5854_v48 = vld [vmem:[#allocation2 + $0x928] ss:$16 sps:$4 sm:$0xff]  }
 0x1ad   : > { %v7128_v0 = vadd.f32 %v2112_v40, %v2071_v63  ;;  %v2114_v39 = vpop.f32.mrb[5].mxu1  ;;  %v5853_v40 = vld [vmem:[#allocation2 + $0xb0c] ss:$16 sps:$4 sm:$0xff]  }
 0x1ae   : > { %v7130_v21 = vadd.f32 %v2114_v39, %v2073_v22  ;;  %v2116_v57 = vpop.f32.mrb[6].mxu1  ;;  %3737 = vmatpush1.bf16.msra.mxu1 %v5833_v27  ;;  %3700 = vmatpush1.bf16.msra.mxu0 %v5842_v51  ;;  %v5862_v63 = vld [vmem:[#allocation2 + $0x94c] ss:$16 sps:$4 sm:$0xff]   ;;  %v5851_v22 = vld [vmem:[#allocation2 + $0xb08] ss:$16 sps:$4 sm:$0xff]  }
 0x1af   : > { %v2117_v47 = vpop.f32.mrb[7].mxu1  ;;  %3738 = vmatprep.subr.bf16.mxu1 %v5841_v58  ;;  %3701 = vmatprep.subr.bf16.mxu0 %v5850_v49  ;;  %v5860_v27 = vld [vmem:[#allocation2 + $0x948] ss:$16 sps:$4 sm:$0xff]   ;;  %v5859_v51 = vld [vmem:[#allocation2 + $0xb2c] ss:$16 sps:$4 sm:$0xff]  }
 0x1b0   : > { %v5868_v39 = vld [vmem:[#allocation2 + $0x96c] ss:$16 sps:$4 sm:$0xff]   ;;  %v5857_v58 = vld [vmem:[#allocation2 + $0xb28] ss:$16 sps:$4 sm:$0xff]  }
 0x1b1   : > { %v5866_v49 = vld [vmem:[#allocation2 + $0x968] ss:$16 sps:$4 sm:$0xff]   ;;  %v5865_v57 = vld [vmem:[#allocation2 + $0xb4c] ss:$16 sps:$4 sm:$0xff]  }
 0x1b2   : > { %3739 = vmatpush1.bf16.msra.mxu1 %v5839_v52  ;;  %3702 = vmatpush1.bf16.msra.mxu0 %v5848_v28  ;;  %v5874_v52 = vld [vmem:[#allocation2 + $0x98c] ss:$16 sps:$4 sm:$0xff]   ;;  %v5863_v28 = vld [vmem:[#allocation2 + $0xb48] ss:$16 sps:$4 sm:$0xff]  }
 0x1b3   : > { %3740 = vmatprep.subr.bf16.mxu1 %v5847_v31  ;;  %3703 = vmatprep.subr.bf16.mxu0 %v5856_v59  ;;  %v5872_v47 = vld [vmem:[#allocation2 + $0x988] ss:$16 sps:$4 sm:$0xff]   ;;  %v5871_v31 = vld [vmem:[#allocation2 + $0xb6c] ss:$16 sps:$4 sm:$0xff]  }
 0x1b4   : > { %v5880_v59 = vld [vmem:[#allocation2 + $0x9ac] ss:$16 sps:$4 sm:$0xff]  }
 0x1b6   : > { %3741 = vmatpush1.bf16.msra.mxu1 %v5845_v15  ;;  %3704 = vmatpush1.bf16.msra.mxu0 %v5854_v48  ;;  %v5869_v15 = vld [vmem:[#allocation2 + $0xb68] ss:$16 sps:$4 sm:$0xff]  }
 0x1b7   : > { %3742 = vmatprep.subr.bf16.mxu1 %v5853_v40  ;;  %3705 = vmatprep.subr.bf16.mxu0 %v5862_v63  ;;  %v5878_v48 = vld [vmem:[#allocation2 + $0x9a8] ss:$16 sps:$4 sm:$0xff]   ;;  %v5877_v40 = vld [vmem:[#allocation2 + $0xb8c] ss:$16 sps:$4 sm:$0xff]  }
 0x1b8   : > { %v5886_v63 = vld [vmem:[#allocation2 + $0x9cc] ss:$16 sps:$4 sm:$0xff]  }
 0x1ba   : > { %3743 = vmatpush1.bf16.msra.mxu1 %v5851_v22  ;;  %3706 = vmatpush1.bf16.msra.mxu0 %v5860_v27  ;;  %v5875_v22 = vld [vmem:[#allocation2 + $0xb88] ss:$16 sps:$4 sm:$0xff]  }
 0x1bb   : > { %3744 = vmatprep.subr.bf16.mxu1 %v5859_v51  ;;  %3707 = vmatprep.subr.bf16.mxu0 %v5868_v39  ;;  %v5884_v27 = vld [vmem:[#allocation2 + $0x9c8] ss:$16 sps:$4 sm:$0xff]   ;;  %v5883_v51 = vld [vmem:[#allocation2 + $0xbac] ss:$16 sps:$4 sm:$0xff]  }
 0x1bc   : > { %v5892_v39 = vld [vmem:[#allocation2 + $0x9ec] ss:$16 sps:$4 sm:$0xff]  }
 0x1be   : > { %3745 = vmatpush1.bf16.msra.mxu1 %v5857_v58  ;;  %3708 = vmatpush1.bf16.msra.mxu0 %v5866_v49  ;;  %v5881_v58 = vld [vmem:[#allocation2 + $0xba8] ss:$16 sps:$4 sm:$0xff]  }
 0x1bf   : > { %3746 = vmatprep.subr.bf16.mxu1 %v5865_v57  ;;  %3709 = vmatprep.subr.bf16.mxu0 %v5874_v52  ;;  %v5890_v49 = vld [vmem:[#allocation2 + $0x9e8] ss:$16 sps:$4 sm:$0xff]   ;;  %v5889_v57 = vld [vmem:[#allocation2 + $0xbcc] ss:$16 sps:$4 sm:$0xff]  }
 0x1c0   : > { %v5887_v52 = vld [vmem:[#allocation2 + $0xbc8] ss:$16 sps:$4 sm:$0xff]  }
 0x1c2   : > { %3747 = vmatpush1.bf16.msra.mxu1 %v5863_v28  ;;  %3710 = vmatpush1.bf16.msra.mxu0 %v5872_v47  ;;  %v5895_v28 = vld [vmem:[#allocation2 + $0xbec] ss:$16 sps:$4 sm:$0xff]   ;;  %v5896_v47 = vld [vmem:[#allocation2 + $0x404] ss:$16 sps:$4 sm:$0xff]  }
 0x1c3   : > { %3748 = vmatprep.subr.bf16.mxu1 %v5871_v31  ;;  %3711 = vmatprep.subr.bf16.mxu0 %v5880_v59  ;;  %v5893_v31 = vld [vmem:[#allocation2 + $0xbe8] ss:$16 sps:$4 sm:$0xff]   ;;  %v5897_v59 = vld [vmem:[#allocation2 + $0x400] ss:$16 sps:$4 sm:$0xff]  }
 0x1c6   : > { %3749 = vmatpush1.bf16.msra.mxu1 %v5869_v15  ;;  %3712 = vmatpush1.bf16.msra.mxu0 %v5878_v48  ;;  %v5898_v15 = vld [vmem:[#allocation2 + $0x424] ss:$16 sps:$4 sm:$0xff]   ;;  %v5899_v48 = vld [vmem:[#allocation2 + $0x420] ss:$16 sps:$4 sm:$0xff]  }
 0x1c7   : > { %3750 = vmatprep.subr.bf16.mxu1 %v5877_v40  ;;  %3713 = vmatprep.subr.bf16.mxu0 %v5886_v63  ;;  %v5900_v40 = vld [vmem:[#allocation2 + $0x604] ss:$16 sps:$4 sm:$0xff]  }
 0x1c8   : > { %v5901_v63 = vld [vmem:[#allocation2 + $0x444] ss:$16 sps:$4 sm:$0xff]  }
 0x1ca   : > { %3751 = vmatpush1.bf16.msra.mxu1 %v5875_v22  ;;  %3714 = vmatpush1.bf16.msra.mxu0 %v5884_v27  ;;  %v5902_v22 = vld [vmem:[#allocation2 + $0x600] ss:$16 sps:$4 sm:$0xff]  }
 0x1cb   : > { %3752 = vmatprep.subr.bf16.mxu1 %v5883_v51  ;;  %3715 = vmatprep.subr.bf16.mxu0 %v5892_v39  ;;  %v5903_v27 = vld [vmem:[#allocation2 + $0x440] ss:$16 sps:$4 sm:$0xff]   ;;  %v5904_v51 = vld [vmem:[#allocation2 + $0x624] ss:$16 sps:$4 sm:$0xff]  }
 0x1cc   : > { %v5905_v39 = vld [vmem:[#allocation2 + $0x464] ss:$16 sps:$4 sm:$0xff]  }
 0x1ce   : > { %3753 = vmatpush1.bf16.msra.mxu1 %v5881_v58  ;;  %3716 = vmatpush1.bf16.msra.mxu0 %v5890_v49  ;;  %v5906_v58 = vld [vmem:[#allocation2 + $0x620] ss:$16 sps:$4 sm:$0xff]  }
 0x1cf   : > { %3754 = vmatprep.subr.bf16.mxu1 %v5889_v57  ;;  %3976 = vmatprep.subr.bf16.mxu0 %v5896_v47  ;;  %v5907_v49 = vld [vmem:[#allocation2 + $0x460] ss:$16 sps:$4 sm:$0xff]   ;;  %v5908_v57 = vld [vmem:[#allocation2 + $0x644] ss:$16 sps:$4 sm:$0xff]  }
 0x1d0   : > { %v5911_v47 = vld [vmem:[#allocation2 + $0x480] ss:$16 sps:$4 sm:$0xff]  }
 0x1d1   : > { %3718 = vmatmul.mubr.bf16.vlgmr.msra.gmra.mrb[20].mxu0 %v7113_v26 }
 0x1d2   : > { %3755 = vmatpush1.bf16.msra.mxu1 %v5887_v52  ;;  %3977 = vmatpush1.bf16.msra.mxu0 %v5897_v59  ;;  %v5909_v52 = vld [vmem:[#allocation2 + $0x484] ss:$16 sps:$4 sm:$0xff]  }
 0x1d3   : > { %3756 = vmatprep.subr.bf16.mxu1 %v5895_v28  ;;  %3978 = vmatprep.subr.bf16.mxu0 %v5898_v15  ;;  %v5910_v28 = vld [vmem:[#allocation2 + $0x640] ss:$16 sps:$4 sm:$0xff]   ;;  %v5913_v59 = vld [vmem:[#allocation2 + $0x4a4] ss:$16 sps:$4 sm:$0xff]  }
 0x1d4   : > { %4008 = vmatprep.mubr.bf16.mxu0 %v7035_v14 }
 0x1d6   : > { %3757 = vmatpush1.bf16.msra.mxu1 %v5893_v31  ;;  %3979 = vmatpush1.bf16.msra.mxu0 %v5899_v48  ;;  %v5912_v31 = vld [vmem:[#allocation2 + $0x664] ss:$16 sps:$4 sm:$0xff]  }
 0x1d7   : > { %4017 = vmatprep.subr.bf16.mxu1 %v5900_v40  ;;  %3980 = vmatprep.subr.bf16.mxu0 %v5901_v63  ;;  %v5914_v63 = vld [vmem:[%s6557_s28] sm:$0xf] }
 0x1d9   : > { %3759 = vmatmul.mubr.bf16.vlgmr.msra.gmra.mrb[20].mxu1 %v7124_v19 }
 0x1da   : > { %4018 = vmatpush1.bf16.msra.mxu1 %v5902_v22  ;;  %3981 = vmatpush1.bf16.msra.mxu0 %v5903_v27  ;;  %v7138_v22 = vunpack.c.l.bf16 %v5914_v63  ;;  %v5915_v27 = vld [vmem:[%s6557_s28 + $0x4] sm:$0xf] }
 0x1db   : > { %4019 = vmatprep.subr.bf16.mxu1 %v5904_v51  ;;  %3982 = vmatprep.subr.bf16.mxu0 %v5905_v39  ;;  %v7141_v51 = vunpack.c.l.bf16 %v5915_v27  ;;  %v5916_v39 = vld [vmem:[#allocation2 + $0x660] ss:$16 sps:$4 sm:$0xff]   ;;  %v7686_v63 = vld [vmem:[#allocation8_spill] sm:$0xff] }
 0x1dc   : > { %4049 = vmatprep.mubr.bf16.mxu1 %v7046_v17  ;;  %7685 = vst [vmem:[#allocation9_spill] sm:$0xff] %v7138_v22  ;;  %v7151_v27 = vsub.s32 0, %v7686_v63 }
 0x1de   : > { %4020 = vmatpush1.bf16.msra.mxu1 %v5906_v58  ;;  %3983 = vmatpush1.bf16.msra.mxu0 %v5907_v49 }
 0x1df   : > { %4021 = vmatprep.subr.bf16.mxu1 %v5908_v57  ;;  %3984 = vmatprep.subr.bf16.mxu0 %v5909_v52  ;;  %v5917_v57 = vld [vmem:[#allocation2 + $0x4a0] ss:$16 sps:$4 sm:$0xff]   ;;  %v5918_v52 = vld [vmem:[%s6557_s28 + $0x8] sm:$0xf] }
 0x1e2   : > { %4022 = vmatpush1.bf16.msra.mxu1 %v5910_v28  ;;  %3985 = vmatpush1.bf16.msra.mxu0 %v5911_v47  ;;  %v7145_v28 = vunpack.c.l.bf16 %v5918_v52  ;;  %v5924_v52 = vld [vmem:[#allocation2 + $0x680] ss:$16 sps:$4 sm:$0xff]  }
 0x1e3   : > { %4023 = vmatprep.subr.bf16.mxu1 %v5912_v31  ;;  %3986 = vmatprep.subr.bf16.mxu0 %v5913_v59  ;;  %v5920_v31 = vld [vmem:[#allocation2 + $0x4c4] ss:$16 sps:$4 sm:$0xff]   ;;  %v5921_v59 = vld [vmem:[%s6557_s28 + $0xc] sm:$0xf] }
 0x1e4   : > { %v2793_v15 = vpop.f32.mrb[8].mxu0 }
 0x1e5   : > { %v2794_v48 = vadd.f32 %v2793_v15, %v7050_v35  ;;  %v2795_v40 = vpop.f32.mrb[9].mxu0  ;;  %v5919_v35 = vld [vmem:[#allocation2 + $0x684] ss:$16 sps:$4 sm:$0xff]   ;;  %v7148_v15 = vunpack.c.l.bf16 %v5921_v59  ;;  %v5926_v59 = vld [vmem:[%s6557_s28 + $0x18] sm:$0xf] }
 0x1e6   : > { %4024 = vmatpush1.bf16.msra.mxu1 %v5916_v39  ;;  %v2796_v58 = vadd.f32 %v2795_v40, %v7052_v5  ;;  %v2797_v49 = vpop.f32.mrb[10].mxu0  ;;  %3987 = vmatpush1.bf16.msra.mxu0 %v5917_v57  ;;  %v5922_v5 = vld [vmem:[%s6557_s28 + $0x10] sm:$0xf]  ;;  %v7157_v39 = vsub.s32 2, %v7686_v63 }
 0x1e7   : > { %4025 = vmatprep.subr.bf16.mxu1 %v5919_v35  ;;  %v2798_v47 = vpop.f32.mrb[11].mxu0  ;;  %3988 = vmatprep.subr.bf16.mxu0 %v5920_v31  ;;  %v7154_v40 = vunpack.c.l.bf16 %v5922_v5  ;;  %v5923_v49 = vld [vmem:[%s6557_s28 + $0x14] sm:$0xf]  ;;  %v5925_v35 = vld [vmem:[#allocation2 + $0x4c0] ss:$16 sps:$4 sm:$0xff]   ;;  %v3831_v31 = vrot.slane %v7141_v51, %v7151_v27  ;;  %v7167_v5 = vunpack.c.l.bf16 %v5926_v59  ;;  %v3863_v38 = vrot.slane %v7148_v15, %v7151_v27  ;;  %s4855_s28 = sshll.u32 %s7723_s19, 3 }
 0x1e8   : > { %v7160_v57 = vunpack.c.l.bf16 %v5923_v49  ;;  %v3815_v47 = vrot.slane %v7138_v22, %v7151_v27  ;;  %v3847_v49 = vrot.slane %v7145_v28, %v7151_v27  ;;  %v3819_v59 = vrot.slane %v7138_v22, %v7157_v39  ;;  %s406_s6 = sadd.s32 %s4855_s28, %s4854_s15 }
 0x1e9   : > { %s4856_s7 = sshll.u32 %s406_s6, 2 }
 0x1ea   : > { %4026 = vmatpush1.bf16.msra.mxu1 %v5924_v52  ;;  %3989 = vmatpush1.bf16.msra.mxu0 %v5925_v35  ;;  %v7172_v52 = vunpack.c.l.bf16 %v5929_v45  ;;  %v3940_v24 = vsel %vm780_vm4, %v3831_v31, %v3815_v47  ;;  %v3835_v45 = vrot.slane %v7141_v51, %v7157_v39  ;;  %v5931_v47 = vld [vmem:[#allocation2 + $0x4e0] ss:$16 sps:$4 sm:$0xff]   ;;  %s408_s8 = scalar_lea.vmem %s7602_s5, %s4856_s7 }
 0x1eb   : > { %4027 = vmatprep.subr.bf16.mxu1 %v5927_v37  ;;  %3990 = vmatprep.subr.bf16.mxu0 %v5928_v11  ;;  %v3879_v11 = vrot.slane %v7154_v40, %v7151_v27  ;;  %v3941_v60 = vsel %vm682_vm0, %v3847_v49, %v3940_v24  ;;  %v3911_v24 = vrot.slane %v7167_v5, %v7151_v27 }
 0x1ec   : > { %v2834_v35 = vpop.f32.mrb[8].mxu1  ;;  %v3942_v31 = vsel %vm685_vm1, %v3863_v38, %v3941_v60  ;;  %v3867_v60 = vrot.slane %v7148_v15, %v7157_v39  ;;  %v5934_v38 = vld [vmem:[#allocation2 + $0x6c0] ss:$16 sps:$4 sm:$0xff]  }
 0x1ed   : > { %v7179_v34 = vadd.f32 %v2834_v35, %v2794_v48  ;;  %v2836_v37 = vpop.f32.mrb[9].mxu1  ;;  %v3895_v48 = vrot.slane %v7160_v57, %v7151_v27 }
 0x1ee   : > { %v7186_v44 = vadd.f32 %v2836_v37, %v2796_v58  ;;  %v2838_v30 = vpop.f32.mrb[10].mxu1  ;;  %4028 = vmatpush1.bf16.msra.mxu1 %v5930_v55  ;;  %3991 = vmatpush1.bf16.msra.mxu0 %v5931_v47  ;;  %v3943_v58 = vsel %vm688_vm2, %v3879_v11, %v3942_v31  ;;  %v3851_v55 = vrot.slane %v7145_v28, %v7157_v39  ;;  %v5935_v37 = vld [vmem:[#allocation2 + $0x500] ss:$16 sps:$4 sm:$0xff]   ;;  %v5936_v31 = vld [vmem:[#allocation2 + $0x6e4] ss:$16 sps:$4 sm:$0xff]  }
 0x1ef   : > { %v2839_v35 = vpop.f32.mrb[11].mxu1  ;;  %4029 = vmatprep.subr.bf16.mxu1 %v5932_v42  ;;  %3992 = vmatprep.subr.bf16.mxu0 %v5933_v12  ;;  %v3927_v30 = vrot.slane %v7172_v52, %v7151_v27  ;;  %v3944_v49 = vsel %vm691_vm3, %v3895_v48, %v3943_v58  ;;  %v3883_v12 = vrot.slane %v7154_v40, %v7157_v39 }
 0x1f0   : > { %v3945_v42 = vsel %vm694_vm5, %v3911_v24, %v3944_v49  ;;  %v3899_v47 = vrot.slane %v7160_v57, %v7157_v39  ;;  %v3947_v48 = vsel %vm780_vm4, %v3835_v45, %v3819_v59  ;;  %v5937_v35 = vld [vmem:[#allocation2 + $0x524] ss:$16 sps:$4 sm:$0xff]   ;;  %v3915_v24 = vrot.slane %v7167_v5, %v7157_v39 }
 0x1f1   : > { %v7205_v11 = vsel %vm697_vm6, %v3927_v30, %v3945_v42  ;;  %v3948_v58 = vsel %vm682_vm0, %v3851_v55, %v3947_v48  ;;  %v3931_v49 = vrot.slane %v7172_v52, %v7157_v39  ;;  %v5940_v45 = vld [vmem:[#allocation2 + $0x704] ss:$16 sps:$4 sm:$0xff]   ;;  %v5942_v48 = vld [vmem:[#allocation2 + $0x700] ss:$16 sps:$4 sm:$0xff]  }
 0x1f2   : > { %4030 = vmatpush1.bf16.msra.mxu1 %v5934_v38  ;;  %3993 = vmatpush1.bf16.msra.mxu0 %v5935_v37  ;;  %v3949_v30 = vsel %vm685_vm1, %v3867_v60, %v3948_v58  ;;  %v5938_v38 = vld [vmem:[#allocation2 + $0x6e0] ss:$16 sps:$4 sm:$0xff]   ;;  %v5945_v58 = vld [vmem:[#allocation2 + $0x564] ss:$16 sps:$4 sm:$0xff]  }
 0x1f3   : > { %4031 = vmatprep.subr.bf16.mxu1 %v5936_v31  ;;  %3994 = vmatprep.subr.bf16.mxu0 %v5937_v35  ;;  %v3950_v42 = vsel %vm688_vm2, %v3883_v12, %v3949_v30  ;;  %v5939_v37 = vld [vmem:[#allocation2 + $0x520] ss:$16 sps:$4 sm:$0xff]   ;;  %v5941_v31 = vld [vmem:[#allocation2 + $0x544] ss:$16 sps:$4 sm:$0xff]  }
 0x1f4   : > { %v3951_v59 = vsel %vm691_vm3, %v3899_v47, %v3950_v42  ;;  %v5943_v60 = vld [vmem:[#allocation2 + $0x540] ss:$16 sps:$4 sm:$0xff]   ;;  %v5944_v12 = vld [vmem:[#allocation2 + $0x724] ss:$16 sps:$4 sm:$0xff]  }
 0x1f5   : > { %v3952_v35 = vsel %vm694_vm5, %v3915_v24, %v3951_v59  ;;  %v5946_v30 = vld [vmem:[#allocation2 + $0x720] ss:$16 sps:$4 sm:$0xff]   ;;  %v5948_v42 = vld [vmem:[#allocation2 + $0x744] ss:$16 sps:$4 sm:$0xff]  }
 0x1f6   : > { %4032 = vmatpush1.bf16.msra.mxu1 %v5938_v38  ;;  %3995 = vmatpush1.bf16.msra.mxu0 %v5939_v37  ;;  %v7220_v55 = vsel %vm697_vm6, %v3931_v49, %v3952_v35  ;;  %v5947_v47 = vld [vmem:[#allocation2 + $0x560] ss:$16 sps:$4 sm:$0xff]   ;;  %v5949_v38 = vld [vmem:[#allocation2 + $0x584] ss:$16 sps:$4 sm:$0xff]  }
 0x1f7   : > { %4033 = vmatprep.subr.bf16.mxu1 %v5940_v45  ;;  %3996 = vmatprep.subr.bf16.mxu0 %v5941_v31  ;;  %v5950_v24 = vld [vmem:[#allocation2 + $0x740] ss:$16 sps:$4 sm:$0xff]   ;;  %v5952_v37 = vld [vmem:[#allocation2 + $0x764] ss:$16 sps:$4 sm:$0xff]  }
 0x1f8   : > { %v5951_v49 = vld [vmem:[#allocation2 + $0x580] ss:$16 sps:$4 sm:$0xff]   ;;  %v5953_v59 = vld [vmem:[#allocation2 + $0x5a4] ss:$16 sps:$4 sm:$0xff]  }
 0x1f9   : > { %v5954_v45 = vld [vmem:[#allocation2 + $0x760] ss:$16 sps:$4 sm:$0xff]   ;;  %v5956_v35 = vld [vmem:[#allocation2 + $0x784] ss:$16 sps:$4 sm:$0xff]  }
 0x1fa   : > { %4034 = vmatpush1.bf16.msra.mxu1 %v5942_v48  ;;  %3997 = vmatpush1.bf16.msra.mxu0 %v5943_v60  ;;  %v5955_v31 = vld [vmem:[#allocation2 + $0x5a0] ss:$16 sps:$4 sm:$0xff]   ;;  %v5957_v48 = vld [vmem:[#allocation2 + $0x5c4] ss:$16 sps:$4 sm:$0xff]  }
 0x1fb   : > { %4035 = vmatprep.subr.bf16.mxu1 %v5944_v12  ;;  %3998 = vmatprep.subr.bf16.mxu0 %v5945_v58  ;;  %v5958_v60 = vld [vmem:[#allocation2 + $0x780] ss:$16 sps:$4 sm:$0xff]   ;;  %v5960_v58 = vld [vmem:[#allocation2 + $0x7a4] ss:$16 sps:$4 sm:$0xff]  }
 0x1fc   : > { %v5959_v12 = vld [vmem:[#allocation2 + $0x5c0] ss:$16 sps:$4 sm:$0xff]  }
 0x1fe   : > { %4036 = vmatpush1.bf16.msra.mxu1 %v5946_v30  ;;  %3999 = vmatpush1.bf16.msra.mxu0 %v5947_v47  ;;  %v5961_v30 = vld [vmem:[#allocation2 + $0x5e4] ss:$16 sps:$4 sm:$0xff]   ;;  %v5962_v47 = vld [vmem:[#allocation2 + $0x7a0] ss:$16 sps:$4 sm:$0xff]  }
 0x1ff   : > { %4037 = vmatprep.subr.bf16.mxu1 %v5948_v42  ;;  %4000 = vmatprep.subr.bf16.mxu0 %v5949_v38  ;;  %v5963_v42 = vld [vmem:[#allocation2 + $0x5e0] ss:$16 sps:$4 sm:$0xff]   ;;  %v5964_v38 = vld [vmem:[#allocation2 + $0x7c4] ss:$16 sps:$4 sm:$0xff]  }
 0x202   : > { %4038 = vmatpush1.bf16.msra.mxu1 %v5950_v24  ;;  %4001 = vmatpush1.bf16.msra.mxu0 %v5951_v49  ;;  %v5965_v24 = vld [vmem:[#allocation2 + $0x40c] ss:$16 sps:$4 sm:$0xff]   ;;  %v5966_v49 = vld [vmem:[#allocation2 + $0x7c0] ss:$16 sps:$4 sm:$0xff]  }
 0x203   : > { %4039 = vmatprep.subr.bf16.mxu1 %v5952_v37  ;;  %4002 = vmatprep.subr.bf16.mxu0 %v5953_v59  ;;  %v5967_v37 = vld [vmem:[#allocation2 + $0x408] ss:$16 sps:$4 sm:$0xff]   ;;  %v5968_v59 = vld [vmem:[#allocation2 + $0x7e4] ss:$16 sps:$4 sm:$0xff]  }
 0x206   : > { %4040 = vmatpush1.bf16.msra.mxu1 %v5954_v45  ;;  %4003 = vmatpush1.bf16.msra.mxu0 %v5955_v31  ;;  %v5969_v45 = vld [vmem:[#allocation2 + $0x42c] ss:$16 sps:$4 sm:$0xff]   ;;  %v5970_v31 = vld [vmem:[#allocation2 + $0x7e0] ss:$16 sps:$4 sm:$0xff]  }
 0x207   : > { %4041 = vmatprep.subr.bf16.mxu1 %v5956_v35  ;;  %4004 = vmatprep.subr.bf16.mxu0 %v5957_v48  ;;  %v5971_v35 = vld [vmem:[#allocation2 + $0x428] ss:$16 sps:$4 sm:$0xff]   ;;  %v5972_v48 = vld [vmem:[#allocation2 + $0x60c] ss:$16 sps:$4 sm:$0xff]  }
 0x20a   : > { %4042 = vmatpush1.bf16.msra.mxu1 %v5958_v60  ;;  %4005 = vmatpush1.bf16.msra.mxu0 %v5959_v12  ;;  %v5973_v60 = vld [vmem:[#allocation2 + $0x44c] ss:$16 sps:$4 sm:$0xff]   ;;  %v5974_v12 = vld [vmem:[#allocation2 + $0x608] ss:$16 sps:$4 sm:$0xff]  }
 0x20b   : > { %4043 = vmatprep.subr.bf16.mxu1 %v5960_v58  ;;  %4006 = vmatprep.subr.bf16.mxu0 %v5961_v30  ;;  %v5975_v58 = vld [vmem:[#allocation2 + $0x448] ss:$16 sps:$4 sm:$0xff]   ;;  %v5976_v30 = vld [vmem:[#allocation2 + $0x62c] ss:$16 sps:$4 sm:$0xff]  }
 0x20e   : > { %4044 = vmatpush1.bf16.msra.mxu1 %v5962_v47  ;;  %4007 = vmatpush1.bf16.msra.mxu0 %v5963_v42  ;;  %v5977_v47 = vld [vmem:[#allocation2 + $0x46c] ss:$16 sps:$4 sm:$0xff]   ;;  %v5979_v42 = vld [vmem:[#allocation2 + $0x468] ss:$16 sps:$4 sm:$0xff]  }
 0x20f   : > { %4045 = vmatprep.subr.bf16.mxu1 %v5964_v38  ;;  %4058 = vmatprep.subr.bf16.mxu0 %v5965_v24  ;;  %v5980_v38 = vld [vmem:[#allocation2 + $0x64c] ss:$16 sps:$4 sm:$0xff]  }
 0x210   : > { %v5981_v24 = vld [vmem:[#allocation2 + $0x48c] ss:$16 sps:$4 sm:$0xff]  }
 0x211   : > { %4009 = vmatmul.mubr.bf16.vlgmr.msra.gmra.mrb[24].mxu0 %v7113_v26 }
 0x212   : > { %4046 = vmatpush1.bf16.msra.mxu1 %v5966_v49  ;;  %4059 = vmatpush1.bf16.msra.mxu0 %v5967_v37  ;;  %v5982_v49 = vld [vmem:[#allocation2 + $0x648] ss:$16 sps:$4 sm:$0xff]  }
 0x213   : > { %4047 = vmatprep.subr.bf16.mxu1 %v5968_v59  ;;  %4060 = vmatprep.subr.bf16.mxu0 %v5969_v45  ;;  %v5983_v37 = vld [vmem:[#allocation2 + $0x488] ss:$16 sps:$4 sm:$0xff]   ;;  %v5984_v59 = vld [vmem:[#allocation2 + $0x66c] ss:$16 sps:$4 sm:$0xff]  }
 0x214   : > { %4090 = vmatprep.mubr.bf16.mxu0 %v7035_v14  ;;  %v5978_v14 = vld [vmem:[#allocation2 + $0x628] ss:$16 sps:$4 sm:$0xff]   ;;  %v5985_v45 = vld [vmem:[#allocation2 + $0x4ac] ss:$16 sps:$4 sm:$0xff]  }
 0x216   : > { %4048 = vmatpush1.bf16.msra.mxu1 %v5970_v31  ;;  %4061 = vmatpush1.bf16.msra.mxu0 %v5971_v35 }
 0x217   : > { %4099 = vmatprep.subr.bf16.mxu1 %v5972_v48  ;;  %4062 = vmatprep.subr.bf16.mxu0 %v5973_v60  ;;  %v5986_v48 = vld [vmem:[#allocation2 + $0x668] ss:$16 sps:$4 sm:$0xff]  }
 0x219   : > { %4050 = vmatmul.mubr.bf16.vlgmr.msra.gmra.mrb[24].mxu1 %v7124_v19 }
 0x21a   : > { %4100 = vmatpush1.bf16.msra.mxu1 %v5974_v12  ;;  %4063 = vmatpush1.bf16.msra.mxu0 %v5975_v58  ;;  %v5987_v58 = vld [vmem:[#allocation2 + $0x4a8] ss:$16 sps:$4 sm:$0xff]  }
 0x21b   : > { %4101 = vmatprep.subr.bf16.mxu1 %v5976_v30  ;;  %4064 = vmatprep.subr.bf16.mxu0 %v5977_v47  ;;  %v5988_v30 = vld [vmem:[#allocation2 + $0x68c] ss:$16 sps:$4 sm:$0xff]  }
 0x21c   : > { %4131 = vmatprep.mubr.bf16.mxu1 %v7046_v17 }
 0x21e   : > { %4102 = vmatpush1.bf16.msra.mxu1 %v5978_v14  ;;  %4065 = vmatpush1.bf16.msra.mxu0 %v5979_v42  ;;  %v5989_v14 = vld [vmem:[#allocation2 + $0x4cc] ss:$16 sps:$4 sm:$0xff]   ;;  %v3822_v42 = vsub.s32 4, %v7686_v63 }
 0x21f   : > { %4103 = vmatprep.subr.bf16.mxu1 %v5980_v38  ;;  %4066 = vmatprep.subr.bf16.mxu0 %v5981_v24  ;;  %v7230_v38 = vsub.s32 6, %v7686_v63  ;;  %v5990_v24 = vld [vmem:[#allocation2 + $0x688] ss:$16 sps:$4 sm:$0xff]  }
 0x222   : > { %4104 = vmatpush1.bf16.msra.mxu1 %v5982_v49  ;;  %4067 = vmatpush1.bf16.msra.mxu0 %v5983_v37  ;;  %v3823_v49 = vrot.slane %v7138_v22, %v3822_v42  ;;  %v5992_v37 = vld [vmem:[#allocation2 + $0x6ac] ss:$16 sps:$4 sm:$0xff]  }
 0x223   : > { %4105 = vmatprep.subr.bf16.mxu1 %v5984_v59  ;;  %4068 = vmatprep.subr.bf16.mxu0 %v5985_v45  ;;  %v5993_v59 = vld [vmem:[#allocation2 + $0x4ec] ss:$16 sps:$4 sm:$0xff]   ;;  %v3855_v45 = vrot.slane %v7145_v28, %v3822_v42 }
 0x224   : > { %v2875_v31 = vpop.f32.mrb[12].mxu0 }
 0x225   : > { %v2876_v35 = vadd.f32 %v2875_v31, %v7128_v0  ;;  %v2877_v17 = vpop.f32.mrb[13].mxu0  ;;  %v5991_v0 = vld [vmem:[#allocation2 + $0x4c8] ss:$16 sps:$4 sm:$0xff]  }
 0x226   : > { %4106 = vmatpush1.bf16.msra.mxu1 %v5986_v48  ;;  %v2878_v60 = vadd.f32 %v2877_v17, %v7130_v21  ;;  %v2879_v12 = vpop.f32.mrb[14].mxu0  ;;  %4069 = vmatpush1.bf16.msra.mxu0 %v5987_v58  ;;  %v3839_v21 = vrot.slane %v7141_v51, %v3822_v42  ;;  %v3871_v17 = vrot.slane %v7148_v15, %v3822_v42 }
 0x227   : > { %4107 = vmatprep.subr.bf16.mxu1 %v5988_v30  ;;  %v2880_v47 = vpop.f32.mrb[15].mxu0  ;;  %4070 = vmatprep.subr.bf16.mxu0 %v5989_v14  ;;  %v3827_v12 = vrot.slane %v7138_v22, %v7230_v38  ;;  %v5997_v22 = vld [vmem:[#allocation2 + $0x50c] ss:$16 sps:$4 sm:$0xff]  }
 0x228   : > { %v3954_v48 = vsel %vm780_vm4, %v3839_v21, %v3823_v49  ;;  %v3887_v47 = vrot.slane %v7154_v40, %v3822_v42  ;;  %v3903_v49 = vrot.slane %v7160_v57, %v3822_v42 }
 0x229   : > { %v3955_v14 = vsel %vm682_vm0, %v3855_v45, %v3954_v48  ;;  %v3919_v45 = vrot.slane %v7167_v5, %v3822_v42 }
 0x22a   : > { %4108 = vmatpush1.bf16.msra.mxu1 %v5990_v24  ;;  %4071 = vmatpush1.bf16.msra.mxu0 %v5991_v0  ;;  %v3843_v24 = vrot.slane %v7141_v51, %v7230_v38 }
 0x22b   : > { %4109 = vmatprep.subr.bf16.mxu1 %v5992_v37  ;;  %4072 = vmatprep.subr.bf16.mxu0 %v5993_v59  ;;  %v5994_v59 = vld [vmem:[#allocation2 + $0x6a8] ss:$16 sps:$4 sm:$0xff]  }
 0x22c   : > { %v2916_v31 = vpop.f32.mrb[12].mxu1 }
 0x22d   : > { %v7239_v58 = vadd.f32 %v2916_v31, %v2876_v35  ;;  %v2918_v30 = vpop.f32.mrb[13].mxu1  ;;  %v3956_v35 = vsel %vm685_vm1, %v3871_v17, %v3955_v14  ;;  %v5996_v31 = vld [vmem:[#allocation2 + $0x6cc] ss:$16 sps:$4 sm:$0xff]   ;;  %v3891_v14 = vrot.slane %v7154_v40, %v7230_v38 }
 0x22e   : > { %v7245_v0 = vadd.f32 %v2918_v30, %v2878_v60  ;;  %v2920_v37 = vpop.f32.mrb[14].mxu1  ;;  %4110 = vmatpush1.bf16.msra.mxu1 %v5994_v59  ;;  %4073 = vmatpush1.bf16.msra.mxu0 %v5995_v29  ;;  %v3957_v48 = vsel %vm688_vm2, %v3887_v47, %v3956_v35  ;;  %v3859_v60 = vrot.slane %v7145_v28, %v7230_v38  ;;  %v5999_v59 = vld [vmem:[#allocation2 + $0x508] ss:$16 sps:$4 sm:$0xff]   ;;  %v6000_v35 = vld [vmem:[#allocation2 + $0x6ec] ss:$16 sps:$4 sm:$0xff]  }
 0x22f   : > { %v2921_v21 = vpop.f32.mrb[15].mxu1  ;;  %4111 = vmatprep.subr.bf16.mxu1 %v5996_v31  ;;  %4074 = vmatprep.subr.bf16.mxu0 %v5997_v22  ;;  %v3935_v30 = vrot.slane %v7172_v52, %v3822_v42  ;;  %v3958_v29 = vsel %vm691_vm3, %v3903_v49, %v3957_v48  ;;  %v3875_v37 = vrot.slane %v7148_v15, %v7230_v38  ;;  %v5998_v22 = vld [vmem:[#allocation2 + $0x6c8] ss:$16 sps:$4 sm:$0xff]  }
 0x230   : > { %v3959_v17 = vsel %vm694_vm5, %v3919_v45, %v3958_v29  ;;  %v3907_v42 = vrot.slane %v7160_v57, %v7230_v38  ;;  %v3961_v49 = vsel %vm780_vm4, %v3843_v24, %v3827_v12  ;;  %v6001_v21 = vld [vmem:[#allocation2 + $0x52c] ss:$16 sps:$4 sm:$0xff]   ;;  %v3923_v31 = vrot.slane %v7167_v5, %v7230_v38 }
 0x231   : > { %v7261_v47 = vsel %vm697_vm6, %v3935_v30, %v3959_v17  ;;  %v3962_v45 = vsel %vm682_vm0, %v3859_v60, %v3961_v49  ;;  %v3939_v48 = vrot.slane %v7172_v52, %v7230_v38  ;;  %v6002_v17 = vld [vmem:[#allocation2 + $0x6e8] ss:$16 sps:$4 sm:$0xff]   ;;  %v6004_v24 = vld [vmem:[#allocation2 + $0x70c] ss:$16 sps:$4 sm:$0xff]  }
 0x232   : > { %4112 = vmatpush1.bf16.msra.mxu1 %v5998_v22  ;;  %4075 = vmatpush1.bf16.msra.mxu0 %v5999_v59  ;;  %v3963_v30 = vsel %vm685_vm1, %v3875_v37, %v3962_v45  ;;  %v6003_v22 = vld [vmem:[#allocation2 + $0x528] ss:$16 sps:$4 sm:$0xff]   ;;  %v6005_v59 = vld [vmem:[#allocation2 + $0x54c] ss:$16 sps:$4 sm:$0xff]  }
 0x233   : > { %4113 = vmatprep.subr.bf16.mxu1 %v6000_v35  ;;  %4076 = vmatprep.subr.bf16.mxu0 %v6001_v21  ;;  %v3964_v29 = vsel %vm688_vm2, %v3891_v14, %v3963_v30  ;;  %v6006_v38 = vld [vmem:[#allocation2 + $0x708] ss:$16 sps:$4 sm:$0xff]   ;;  %v6008_v14 = vld [vmem:[#allocation2 + $0x72c] ss:$16 sps:$4 sm:$0xff]  }
 0x234   : > { %v3965_v12 = vsel %vm691_vm3, %v3907_v42, %v3964_v29  ;;  %v6007_v37 = vld [vmem:[#allocation2 + $0x548] ss:$16 sps:$4 sm:$0xff]   ;;  %v6009_v49 = vld [vmem:[#allocation2 + $0x56c] ss:$16 sps:$4 sm:$0xff]  }
 0x235   : > { %v3966_v35 = vsel %vm694_vm5, %v3923_v31, %v3965_v12  ;;  %v6010_v21 = vld [vmem:[#allocation2 + $0x728] ss:$16 sps:$4 sm:$0xff]   ;;  %v6012_v45 = vld [vmem:[#allocation2 + $0x74c] ss:$16 sps:$4 sm:$0xff]  }
 0x236   : > { %4114 = vmatpush1.bf16.msra.mxu1 %v6002_v17  ;;  %4077 = vmatpush1.bf16.msra.mxu0 %v6003_v22  ;;  %v7276_v60 = vsel %vm697_vm6, %v3939_v48, %v3966_v35  ;;  %v6011_v42 = vld [vmem:[#allocation2 + $0x568] ss:$16 sps:$4 sm:$0xff]   ;;  %v6013_v30 = vld [vmem:[#allocation2 + $0x58c] ss:$16 sps:$4 sm:$0xff]  }
 0x237   : > { %4115 = vmatprep.subr.bf16.mxu1 %v6004_v24  ;;  %4078 = vmatprep.subr.bf16.mxu0 %v6005_v59  ;;  %v6014_v31 = vld [vmem:[#allocation2 + $0x748] ss:$16 sps:$4 sm:$0xff]   ;;  %v6016_v29 = vld [vmem:[#allocation2 + $0x76c] ss:$16 sps:$4 sm:$0xff]  }
 0x238   : > { %v6015_v48 = vld [vmem:[#allocation2 + $0x588] ss:$16 sps:$4 sm:$0xff]   ;;  %v6017_v17 = vld [vmem:[#allocation2 + $0x5ac] ss:$16 sps:$4 sm:$0xff]  }
 0x239   : > { %v6018_v22 = vld [vmem:[#allocation2 + $0x768] ss:$16 sps:$4 sm:$0xff]   ;;  %v6020_v24 = vld [vmem:[#allocation2 + $0x78c] ss:$16 sps:$4 sm:$0xff]  }
 0x23a   : > { %4116 = vmatpush1.bf16.msra.mxu1 %v6006_v38  ;;  %4079 = vmatpush1.bf16.msra.mxu0 %v6007_v37  ;;  %v6019_v12 = vld [vmem:[#allocation2 + $0x5a8] ss:$16 sps:$4 sm:$0xff]   ;;  %v6021_v59 = vld [vmem:[#allocation2 + $0x5cc] ss:$16 sps:$4 sm:$0xff]  }
 0x23b   : > { %4117 = vmatprep.subr.bf16.mxu1 %v6008_v14  ;;  %4080 = vmatprep.subr.bf16.mxu0 %v6009_v49  ;;  %v6022_v35 = vld [vmem:[#allocation2 + $0x788] ss:$16 sps:$4 sm:$0xff]   ;;  %v6024_v37 = vld [vmem:[#allocation2 + $0x7ac] ss:$16 sps:$4 sm:$0xff]  }
 0x23c   : > { %v6023_v38 = vld [vmem:[#allocation2 + $0x5c8] ss:$16 sps:$4 sm:$0xff]   ;;  %v6025_v14 = vld [vmem:[#allocation2 + $0x5ec] ss:$16 sps:$4 sm:$0xff]  }
 0x23d   : > { %v6026_v49 = vld [vmem:[#allocation2 + $0x7a8] ss:$16 sps:$4 sm:$0xff]  }
 0x23e   : > { %4118 = vmatpush1.bf16.msra.mxu1 %v6010_v21  ;;  %4081 = vmatpush1.bf16.msra.mxu0 %v6011_v42  ;;  %v6027_v21 = vld [vmem:[#allocation2 + $0x5e8] ss:$16 sps:$4 sm:$0xff]   ;;  %v6028_v42 = vld [vmem:[#allocation2 + $0x7cc] ss:$16 sps:$4 sm:$0xff]  }
 0x23f   : > { %4119 = vmatprep.subr.bf16.mxu1 %v6012_v45  ;;  %4082 = vmatprep.subr.bf16.mxu0 %v6013_v30  ;;  %v6029_v45 = vld [vmem:[#allocation2 + $0x4] ss:$16 sps:$4 sm:$0xff]   ;;  %v6030_v30 = vld [vmem:[#allocation2 + $0x7c8] ss:$16 sps:$4 sm:$0xff]  }
 0x242   : > { %4120 = vmatpush1.bf16.msra.mxu1 %v6014_v31  ;;  %4083 = vmatpush1.bf16.msra.mxu0 %v6015_v48  ;;  %v6031_v31 = vld [vmem:[#allocation2] ss:$16 sps:$4 sm:$0xff]   ;;  %v6032_v48 = vld [vmem:[#allocation2 + $0x7ec] ss:$16 sps:$4 sm:$0xff]  }
 0x243   : > { %4121 = vmatprep.subr.bf16.mxu1 %v6016_v29  ;;  %4084 = vmatprep.subr.bf16.mxu0 %v6017_v17  ;;  %v6033_v29 = vld [vmem:[#allocation2 + $0x24] ss:$16 sps:$4 sm:$0xff]   ;;  %v6034_v17 = vld [vmem:[#allocation2 + $0x7e8] ss:$16 sps:$4 sm:$0xff]  }
 0x246   : > { %4122 = vmatpush1.bf16.msra.mxu1 %v6018_v22  ;;  %4085 = vmatpush1.bf16.msra.mxu0 %v6019_v12  ;;  %v6035_v22 = vld [vmem:[#allocation2 + $0x20] ss:$16 sps:$4 sm:$0xff]   ;;  %v6036_v12 = vld [vmem:[#allocation2 + $0x204] ss:$16 sps:$4 sm:$0xff]  }
 0x247   : > { %4123 = vmatprep.subr.bf16.mxu1 %v6020_v24  ;;  %4086 = vmatprep.subr.bf16.mxu0 %v6021_v59  ;;  %v6037_v24 = vld [vmem:[#allocation2 + $0x44] ss:$16 sps:$4 sm:$0xff]   ;;  %v6039_v59 = vld [vmem:[#allocation2 + $0x40] ss:$16 sps:$4 sm:$0xff]  }
 0x24a   : > { %4124 = vmatpush1.bf16.msra.mxu1 %v6022_v35  ;;  %4087 = vmatpush1.bf16.msra.mxu0 %v6023_v38  ;;  %v6040_v35 = vld [vmem:[#allocation2 + $0x224] ss:$16 sps:$4 sm:$0xff]  }
 0x24b   : > { %4125 = vmatprep.subr.bf16.mxu1 %v6024_v37  ;;  %4088 = vmatprep.subr.bf16.mxu0 %v6025_v14  ;;  %v6041_v38 = vld [vmem:[#allocation2 + $0x64] ss:$16 sps:$4 sm:$0xff]   ;;  %v6042_v37 = vld [vmem:[#allocation2 + $0x220] ss:$16 sps:$4 sm:$0xff]  }
 0x24c   : > { %v6043_v14 = vld [vmem:[#allocation2 + $0x60] ss:$16 sps:$4 sm:$0xff]  }
 0x24e   : > { %4126 = vmatpush1.bf16.msra.mxu1 %v6026_v49  ;;  %4089 = vmatpush1.bf16.msra.mxu0 %v6027_v21  ;;  %v6044_v49 = vld [vmem:[#allocation2 + $0x244] ss:$16 sps:$4 sm:$0xff]  }
 0x24f   : > { %4127 = vmatprep.subr.bf16.mxu1 %v6028_v42  ;;  %4140 = vmatprep.subr.bf16.mxu0 %v6029_v45  ;;  %v6045_v21 = vld [vmem:[#allocation2 + $0x84] ss:$16 sps:$4 sm:$0xff]   ;;  %v6046_v42 = vld [vmem:[#allocation2 + $0x240] ss:$16 sps:$4 sm:$0xff]  }
 0x250   : > { %v6048_v45 = vld [vmem:[#allocation2 + $0x264] ss:$16 sps:$4 sm:$0xff]  }
 0x251   : > { %4091 = vmatmul.mubr.bf16.vlgmr.msra.gmra.mrb[28].mxu0 %v7113_v26  ;;  %v6038_v26 = vld [vmem:[#allocation2 + $0x200] ss:$16 sps:$4 sm:$0xff]  }
 0x252   : > { %4128 = vmatpush1.bf16.msra.mxu1 %v6030_v30  ;;  %4141 = vmatpush1.bf16.msra.mxu0 %v6031_v31  ;;  %v6049_v30 = vld [vmem:[#allocation2 + $0xa4] ss:$16 sps:$4 sm:$0xff]  }
 0x253   : > { %4129 = vmatprep.subr.bf16.mxu1 %v6032_v48  ;;  %4142 = vmatprep.subr.bf16.mxu0 %v6033_v29  ;;  %v6050_v29 = vld [vmem:[#allocation2 + $0x260] ss:$16 sps:$4 sm:$0xff]  }
 0x254   : > { %4172 = vmatprep.mubr.bf16.mxu0 %v6701_v23 }
 0x256   : > { %4130 = vmatpush1.bf16.msra.mxu1 %v6034_v17  ;;  %4143 = vmatpush1.bf16.msra.mxu0 %v6035_v22  ;;  %v6051_v22 = vld [vmem:[#allocation2 + $0xa0] ss:$16 sps:$4 sm:$0xff]  }
 0x257   : > { %4181 = vmatprep.subr.bf16.mxu1 %v6036_v12  ;;  %4144 = vmatprep.subr.bf16.mxu0 %v6037_v24  ;;  %v6052_v12 = vld [vmem:[#allocation2 + $0x284] ss:$16 sps:$4 sm:$0xff]  }
 0x259   : > { %4132 = vmatmul.mubr.bf16.vlgmr.msra.gmra.mrb[28].mxu1 %v7124_v19  ;;  %v6047_v19 = vld [vmem:[#allocation2 + $0x80] ss:$16 sps:$4 sm:$0xff]  }
 0x25a   : > { %4182 = vmatpush1.bf16.msra.mxu1 %v6038_v26  ;;  %4145 = vmatpush1.bf16.msra.mxu0 %v6039_v59  ;;  %v6053_v26 = vld [vmem:[#allocation2 + $0xc4] ss:$16 sps:$4 sm:$0xff]   ;;  %v6054_v59 = vld [vmem:[#allocation2 + $0x280] ss:$16 sps:$4 sm:$0xff]  }
 0x25b   : > { %4183 = vmatprep.subr.bf16.mxu1 %v6040_v35  ;;  %4146 = vmatprep.subr.bf16.mxu0 %v6041_v38  ;;  %v7282_v35 = vld [vmem:[#allocation4] sm:$0xf]  ;;  %v7285_v38 = vsub.s32 1, %v7686_v63 }
 0x25c   : > { %4213 = vmatprep.mubr.bf16.mxu1 %v6775_v41 }
 0x25e   : > { %4184 = vmatpush1.bf16.msra.mxu1 %v6042_v37  ;;  %4147 = vmatpush1.bf16.msra.mxu0 %v6043_v14  ;;  %v6055_v37 = vld [vmem:[#allocation2 + $0xc0] ss:$16 sps:$4 sm:$0xff]   ;;  %v6056_v14 = vld [vmem:[#allocation2 + $0x2a4] ss:$16 sps:$4 sm:$0xff]  }
 0x25f   : > { %4185 = vmatprep.subr.bf16.mxu1 %v6044_v49  ;;  %4148 = vmatprep.subr.bf16.mxu0 %v6045_v21  ;;  %v6057_v49 = vld [vmem:[#allocation2 + $0xe4] ss:$16 sps:$4 sm:$0xff]  }
 0x262   : > { %4186 = vmatpush1.bf16.msra.mxu1 %v6046_v42  ;;  %4149 = vmatpush1.bf16.msra.mxu0 %v6047_v19  ;;  %v7289_v19 = vrot.slane %v7282_v35, %v7151_v27 }
 0x263   : > { %4187 = vmatprep.subr.bf16.mxu1 %v6048_v45  ;;  %4150 = vmatprep.subr.bf16.mxu0 %v6049_v30 }
 0x264   : > { %v3637_v31 = vpop.f32.mrb[16].mxu0 }
 0x265   : > { %v3639_v48 = vpop.f32.mrb[17].mxu0 }
 0x266   : > { %4188 = vmatpush1.bf16.msra.mxu1 %v6050_v29  ;;  %v3641_v17 = vpop.f32.mrb[18].mxu0  ;;  %4151 = vmatpush1.bf16.msra.mxu0 %v6051_v22  ;;  %v7293_v29 = vrot.slane %v7282_v35, %v7285_v38  ;;  %v6058_v22 = vld [vmem:[#allocation2 + $0x2a0] ss:$16 sps:$4 sm:$0xff]  }
 0x267   : > { %4189 = vmatprep.subr.bf16.mxu1 %v6052_v12  ;;  %v3642_v24 = vpop.f32.mrb[19].mxu0  ;;  %4152 = vmatprep.subr.bf16.mxu0 %v6053_v26  ;;  %v6059_v12 = vld [vmem:[#allocation2 + $0xe0] ss:$16 sps:$4 sm:$0xff]  }
 0x26a   : > { %4190 = vmatpush1.bf16.msra.mxu1 %v6054_v59  ;;  %4153 = vmatpush1.bf16.msra.mxu0 %v6055_v37  ;;  %v6060_v59 = vld [vmem:[#allocation2 + $0x2c4] ss:$16 sps:$4 sm:$0xff]  }
 0x26b   : > { %4191 = vmatprep.subr.bf16.mxu1 %v6056_v14  ;;  %4154 = vmatprep.subr.bf16.mxu0 %v6057_v49  ;;  %v6062_v14 = vld [vmem:[#allocation2 + $0x2c0] ss:$16 sps:$4 sm:$0xff]  }
 0x26c   : > { %v3678_v21 = vpop.f32.mrb[16].mxu1  ;;  %v6063_v49 = vld [vmem:[#allocation2 + $0x100] ss:$16 sps:$4 sm:$0xff]  }
 0x26d   : > { %v3679_v42 = vadd.f32 %v3678_v21, %v3637_v31  ;;  %v3680_v45 = vpop.f32.mrb[17].mxu1  ;;  %v6061_v31 = vld [vmem:[#allocation2 + $0x104] ss:$16 sps:$4 sm:$0xff]  }
 0x26e   : > { %v3681_v30 = vadd.f32 %v3680_v45, %v3639_v48  ;;  %v3682_v17 = vpop.f32.mrb[18].mxu1  ;;  %4192 = vmatpush1.bf16.msra.mxu1 %v6058_v22  ;;  %4155 = vmatpush1.bf16.msra.mxu0 %v6059_v12  ;;  %v6064_v45 = vld [vmem:[#allocation2 + $0x2e4] ss:$16 sps:$4 sm:$0xff]   ;;  %v6070_v12 = vld [vmem:[#allocation2 + $0x300] ss:$16 sps:$4 sm:$0xff]  }
 0x26f   : > { %v3767_v24 = vadd.f32 %v3679_v42, %v7179_v34  ;;  %v3683_v26 = vpop.f32.mrb[19].mxu1  ;;  %4193 = vmatprep.subr.bf16.mxu1 %v6060_v59  ;;  %4156 = vmatprep.subr.bf16.mxu0 %v6061_v31  ;;  %v6065_v34 = vld [vmem:[#allocation2 + $0x124] ss:$16 sps:$4 sm:$0xff]   ;;  %v6066_v17 = vld [vmem:[#allocation2 + $0x2e0] ss:$16 sps:$4 sm:$0xff]  }
 0x270   : > { %v3768_v27 = vadd.f32 %v3681_v30, %v7186_v44  ;;  %v6067_v44 = vld [vmem:[#allocation2 + $0x120] ss:$16 sps:$4 sm:$0xff]   ;;  %v6068_v30 = vld [vmem:[#allocation2 + $0x304] ss:$16 sps:$4 sm:$0xff]  }
 0x271   : > { %v3792_v48 = vadd.f32 %v7289_v19, %v3767_v24  ;;  %v6069_v22 = vld [vmem:[#allocation2 + $0x144] ss:$16 sps:$4 sm:$0xff]   ;;  %v6075_v59 = vld [vmem:[#allocation2 + $0x160] ss:$16 sps:$4 sm:$0xff]  }
 0x272   : > { %v3793_v37 = vadd.f32 %v7293_v29, %v3768_v27  ;;  %4194 = vmatpush1.bf16.msra.mxu1 %v6062_v14  ;;  %4157 = vmatpush1.bf16.msra.mxu0 %v6063_v49  ;;  %v6072_v24 = vld [vmem:[#allocation2 + $0x324] ss:$16 sps:$4 sm:$0xff]  }
 0x273   : > { %v7300_v21 = vadd.f32 %v7205_v11, %v3792_v48  ;;  %4195 = vmatprep.subr.bf16.mxu1 %v6064_v45  ;;  %4158 = vmatprep.subr.bf16.mxu0 %v6065_v34  ;;  %v6071_v11 = vld [vmem:[#allocation2 + $0x140] ss:$16 sps:$4 sm:$0xff]   ;;  %v6073_v26 = vld [vmem:[#allocation2 + $0x164] ss:$16 sps:$4 sm:$0xff]   ;;  %v431_v45 = vstv %s430_s27 }
 0x274   : > { %v7303_v42 = vadd.f32 %v7220_v55, %v3793_v37  ;;  %v6074_v55 = vld [vmem:[#allocation2 + $0x320] ss:$16 sps:$4 sm:$0xff]   ;;  %v6076_v31 = vld [vmem:[#allocation2 + $0x344] ss:$16 sps:$4 sm:$0xff]   ;;  %vm432_vm12 = vcmp.eq.s32.totalorder %v431_v45, 1 }
 0x275   : > { %v6077_v27 = vld [vmem:[#allocation2 + $0x184] ss:$16 sps:$4 sm:$0xff]   ;;  %v6078_v48 = vld [vmem:[#allocation2 + $0x340] ss:$16 sps:$4 sm:$0xff]  }
 0x276   : > { %4196 = vmatpush1.bf16.msra.mxu1 %v6066_v17  ;;  %4159 = vmatpush1.bf16.msra.mxu0 %v6067_v44  ;;  %v6079_v37 = vld [vmem:[#allocation2 + $0x180] ss:$16 sps:$4 sm:$0xff]   ;;  %v6080_v14 = vld [vmem:[#allocation2 + $0x364] ss:$16 sps:$4 sm:$0xff]  }
 0x277   : > { %4197 = vmatprep.subr.bf16.mxu1 %v6068_v30  ;;  %4160 = vmatprep.subr.bf16.mxu0 %v6069_v22  ;;  %v6081_v49 = vld [vmem:[#allocation2 + $0x1a4] ss:$16 sps:$4 sm:$0xff]   ;;  %v6082_v34 = vld [vmem:[#allocation2 + $0x360] ss:$16 sps:$4 sm:$0xff]   ;;  %v7688_v22 = vmov 0  }
 0x278   : > { %v6083_v17 = vld [vmem:[#allocation2 + $0x1a0] ss:$16 sps:$4 sm:$0xff]   ;;  %v6084_v44 = vld [vmem:[#allocation2 + $0x384] ss:$16 sps:$4 sm:$0xff]  }
 0x279   : > { %v6085_v30 = vld [vmem:[#allocation2 + $0x1c4] ss:$16 sps:$4 sm:$0xff]  }
 0x27a   : > { %4198 = vmatpush1.bf16.msra.mxu1 %v6070_v12  ;;  %4161 = vmatpush1.bf16.msra.mxu0 %v6071_v11  ;;  %v433_v12 = vsel %vm432_vm12, 1, %v7688_v22 }
 0x27b   : > { %4199 = vmatprep.subr.bf16.mxu1 %v6072_v24  ;;  %4162 = vmatprep.subr.bf16.mxu0 %v6073_v26  ;;  %v434_v11 = vpack.c.b16 %v433_v12, %v433_v12  ;;  %v6086_v24 = vld [vmem:[#allocation2 + $0x380] ss:$16 sps:$4 sm:$0xff]  }
 0x27c   : > { %v6087_v26 = vld [vmem:[#allocation2 + $0x1c0] ss:$16 sps:$4 sm:$0xff]  }
 0x27d   : > { %vm7320_vm13 = vcmp.ne.s16.totalorder %v434_v11, 0  ;;  %v6098_v11 = vld [vmem:[#allocation2 + $0x3e0] ss:$16 sps:$4 sm:$0xff]  }
 0x27e   : > { %4200 = vmatpush1.bf16.msra.mxu1 %v6074_v55  ;;  %4163 = vmatpush1.bf16.msra.mxu0 %v6075_v59  ;;  %v6088_v55 = vld [vmem:[#allocation2 + $0x3a4] ss:$16 sps:$4 sm:$0xff]  }
 0x27f   : > { %4201 = vmatprep.subr.bf16.mxu1 %v6076_v31  ;;  %4164 = vmatprep.subr.bf16.mxu0 %v6077_v27  ;;  %v6089_v59 = vld [vmem:[#allocation2 + $0x1e4] ss:$16 sps:$4 sm:$0xff]   ;;  %v420_v31 = vld [vmem:[%s395_s23] sm:$0xf]  ;;  %v7692_v27 = vrot.slane %v6825_v25, 6 }
 0x280   : > { %v436_v45 = vsel %vm7320_vm13, 0, %v420_v31 }
 0x281   : > { %v7328_v22 = vrot.slane %v436_v45, %v6560_v50  ;;  %v6104_v45 = vld [vmem:[#allocation2 + $0x22c] ss:$16 sps:$4 sm:$0xff]  }
 0x282   : > { %4202 = vmatpush1.bf16.msra.mxu1 %v6078_v48  ;;  %4165 = vmatpush1.bf16.msra.mxu0 %v6079_v37  ;;  %v6090_v48 = vld [vmem:[#allocation2 + $0x3a0] ss:$16 sps:$4 sm:$0xff]  }
 0x283   : > { %4203 = vmatprep.subr.bf16.mxu1 %v6080_v14  ;;  %4166 = vmatprep.subr.bf16.mxu0 %v6081_v49  ;;  %v6091_v37 = vld [vmem:[#allocation2 + $0x1e0] ss:$16 sps:$4 sm:$0xff]   ;;  %v6092_v14 = vld [vmem:[#allocation2 + $0x3c4] ss:$16 sps:$4 sm:$0xff]   ;;  %v6093_v49 = vld [vmem:[#allocation2 + $0xc] ss:$16 sps:$4 sm:$0xff]   ;;  %v7333_v12 = vrot.slane %v7328_v22, %v6560_v50 }
 0x286   : > { %4204 = vmatpush1.bf16.msra.mxu1 %v6082_v34  ;;  %4167 = vmatpush1.bf16.msra.mxu0 %v6083_v17  ;;  %v6094_v34 = vld [vmem:[#allocation2 + $0x3c0] ss:$16 sps:$4 sm:$0xff]   ;;  %v6095_v17 = vld [vmem:[#allocation2 + $0x8] ss:$16 sps:$4 sm:$0xff]  }
 0x287   : > { %4205 = vmatprep.subr.bf16.mxu1 %v6084_v44  ;;  %4168 = vmatprep.subr.bf16.mxu0 %v6085_v30  ;;  %v6096_v44 = vld [vmem:[#allocation2 + $0x3e4] ss:$16 sps:$4 sm:$0xff]   ;;  %v6097_v30 = vld [vmem:[#allocation2 + $0x2c] ss:$16 sps:$4 sm:$0xff]  }
 0x28a   : > { %4206 = vmatpush1.bf16.msra.mxu1 %v6086_v24  ;;  %4169 = vmatpush1.bf16.msra.mxu0 %v6087_v26  ;;  %v6099_v24 = vld [vmem:[#allocation2 + $0x28] ss:$16 sps:$4 sm:$0xff]   ;;  %v6100_v26 = vld [vmem:[#allocation2 + $0x20c] ss:$16 sps:$4 sm:$0xff]  }
 0x28b   : > { %4207 = vmatprep.subr.bf16.mxu1 %v6088_v55  ;;  %4170 = vmatprep.subr.bf16.mxu0 %v6089_v59  ;;  %v6101_v55 = vld [vmem:[#allocation2 + $0x4c] ss:$16 sps:$4 sm:$0xff]   ;;  %v7691_v59 = vrot.slane %v6819_v33, 7  ;;  %v6103_v33 = vld [vmem:[#allocation2 + $0x48] ss:$16 sps:$4 sm:$0xff]  }
 0x28d   : > { %v805_v31 = vsel %vm780_vm4, %v7691_v59, %v6817_v36  ;;  %v7694_v36 = vrot.slane %v7683_v43, 4  ;;  %v7698_v43 = vrot.slane %v6857_v6, 2  ;;  %v6108_v59 = vld [vmem:[#allocation2 + $0x24c] ss:$16 sps:$4 sm:$0xff]  }
 0x28e   : > { %4208 = vmatpush1.bf16.msra.mxu1 %v6090_v48  ;;  %4171 = vmatpush1.bf16.msra.mxu0 %v6091_v37  ;;  %v7693_v48 = vrot.slane %v6827_v20, 5  ;;  %v6112_v6 = vld [vmem:[#allocation2 + $0x26c] ss:$16 sps:$4 sm:$0xff]  }
 0x28f   : > { %4209 = vmatprep.subr.bf16.mxu1 %v6092_v14  ;;  %4222 = vmatprep.subr.bf16.mxu0 %v6093_v49  ;;  %v859_v14 = vcombine.high %v7333_v12, %v7333_v12  ;;  %v6102_v49 = vld [vmem:[#allocation2 + $0x208] ss:$16 sps:$4 sm:$0xff]  }
 0x291   : > { %4173 = vmatmul.mubr.bf16.vlgmr.msra.gmra.mrb[32].mxu0 %v6839_v2 }
 0x292   : > { %4210 = vmatpush1.bf16.msra.mxu1 %v6094_v34  ;;  %4223 = vmatpush1.bf16.msra.mxu0 %v6095_v17  ;;  %v6105_v34 = vld [vmem:[#allocation2 + $0x6c] ss:$16 sps:$4 sm:$0xff]   ;;  %v7695_v17 = vrot.slane %v7684_v1, 3  ;;  %v6107_v1 = vld [vmem:[#allocation2 + $0x68] ss:$16 sps:$4 sm:$0xff]  }
 0x293   : > { %4211 = vmatprep.subr.bf16.mxu1 %v6096_v44  ;;  %4224 = vmatprep.subr.bf16.mxu0 %v6097_v30  ;;  %v870_v44 = vshll.u32 %v859_v14, 16  ;;  %v6227_v30 = vld [vmem:[#allocation2 + $0x828] ss:$16 sps:$4 sm:$0xff]  }
 0x294   : > { %4254 = vmatprep.mubr.bf16.mxu0 %v6701_v23  ;;  %v807_v23 = vsel %vm682_vm0, %v7692_v27, %v805_v31  ;;  %v6109_v31 = vld [vmem:[#allocation2 + $0x8c] ss:$16 sps:$4 sm:$0xff]   ;;  %v6110_v27 = vld [vmem:[#allocation2 + $0x248] ss:$16 sps:$4 sm:$0xff]  }
 0x295   : > { %v809_v37 = vsel %vm685_vm1, %v7693_v48, %v807_v23  ;;  %v6111_v23 = vld [vmem:[#allocation2 + $0x88] ss:$16 sps:$4 sm:$0xff]   ;;  %v6113_v48 = vld [vmem:[#allocation2 + $0xac] ss:$16 sps:$4 sm:$0xff]  }
 0x296   : > { %4212 = vmatpush1.bf16.msra.mxu1 %v6098_v11  ;;  %4225 = vmatpush1.bf16.msra.mxu0 %v6099_v24  ;;  %v811_v25 = vsel %vm688_vm2, %v7694_v36, %v809_v37  ;;  %v6115_v36 = vld [vmem:[#allocation2 + $0xa8] ss:$16 sps:$4 sm:$0xff]  }
 0x297   : > { %4263 = vmatprep.subr.bf16.mxu1 %v6100_v26  ;;  %4226 = vmatprep.subr.bf16.mxu0 %v6101_v55  ;;  %v813_v20 = vsel %vm691_vm3, %v7695_v17, %v811_v25  ;;  %v872_v26 = vrot.slane %v870_v44, 5  ;;  %v6106_v55 = vld [vmem:[#allocation2 + $0x228] ss:$16 sps:$4 sm:$0xff]   ;;  %v6116_v25 = vld [vmem:[#allocation2 + $0x28c] ss:$16 sps:$4 sm:$0xff]  }
 0x298   : > { %v815_v11 = vsel %vm694_vm5, %v7698_v43, %v813_v20  ;;  %v6118_v17 = vld [vmem:[#allocation2 + $0x288] ss:$16 sps:$4 sm:$0xff]   ;;  %v7369_v20 = vsub.s32 3, %v7686_v63  ;;  %v6120_v43 = vld [vmem:[#allocation2 + $0x2ac] ss:$16 sps:$4 sm:$0xff]  }
 0x299   : > { %4214 = vmatmul.mubr.bf16.vlgmr.msra.gmra.mrb[32].mxu1 %v6888_v16  ;;  %v830_v24 = vpack.c.b16 %v815_v11, %v815_v11  ;;  %v6119_v44 = vld [vmem:[#allocation2 + $0xc8] ss:$16 sps:$4 sm:$0xff]   ;;  %v6121_v11 = vld [vmem:[#allocation2 + $0xec] ss:$16 sps:$4 sm:$0xff]  }
 0x29a   : > { %4264 = vmatpush1.bf16.msra.mxu1 %v6102_v49  ;;  %4227 = vmatpush1.bf16.msra.mxu0 %v6103_v33  ;;  %v6114_v49 = vld [vmem:[#allocation2 + $0x268] ss:$16 sps:$4 sm:$0xff]  }
 0x29b   : > { %4265 = vmatprep.subr.bf16.mxu1 %v6104_v45  ;;  %4228 = vmatprep.subr.bf16.mxu0 %v6105_v34  ;;  %v6117_v34 = vld [vmem:[#allocation2 + $0xcc] ss:$16 sps:$4 sm:$0xff]  }
 0x29c   : > { %4295 = vmatprep.mubr.bf16.mxu1 %v6775_v41  ;;  %v7366_v41 = vsel %vm7357_vm7, %v830_v24, %v872_v26 }
 0x29e   : > { %4266 = vmatpush1.bf16.msra.mxu1 %v6106_v55  ;;  %4229 = vmatpush1.bf16.msra.mxu0 %v6107_v1  ;;  %v7373_v55 = vrot.slane %v7282_v35, %v7157_v39 }
 0x29f   : > { %4267 = vmatprep.subr.bf16.mxu1 %v6108_v59  ;;  %4230 = vmatprep.subr.bf16.mxu0 %v6109_v31  ;;  %v7377_v31 = vrot.slane %v7282_v35, %v7369_v20  ;;  %v6126_v35 = vld [vmem:[#allocation2 + $0x2c8] ss:$16 sps:$4 sm:$0xff]  }
 0x2a2   : > { %4268 = vmatpush1.bf16.msra.mxu1 %v6110_v27  ;;  %4231 = vmatpush1.bf16.msra.mxu0 %v6111_v23  ;;  %v6122_v23 = vld [vmem:[#allocation2 + $0x2a8] ss:$16 sps:$4 sm:$0xff]  }
 0x2a3   : > { %4269 = vmatprep.subr.bf16.mxu1 %v6112_v6  ;;  %4232 = vmatprep.subr.bf16.mxu0 %v6113_v48  ;;  %v6123_v6 = vld [vmem:[#allocation2 + $0xe8] ss:$16 sps:$4 sm:$0xff]  }
 0x2a4   : > { %v3719_v37 = vpop.f32.mrb[20].mxu0 }
 0x2a5   : > { %v3721_v14 = vpop.f32.mrb[21].mxu0 }
 0x2a6   : > { %4270 = vmatpush1.bf16.msra.mxu1 %v6114_v49  ;;  %v3723_v33 = vpop.f32.mrb[22].mxu0  ;;  %4233 = vmatpush1.bf16.msra.mxu0 %v6115_v36 }
 0x2a7   : > { %4271 = vmatprep.subr.bf16.mxu1 %v6116_v25  ;;  %v3724_v45 = vpop.f32.mrb[23].mxu0  ;;  %4234 = vmatprep.subr.bf16.mxu0 %v6117_v34  ;;  %v6124_v33 = vld [vmem:[#allocation2 + $0x2cc] ss:$16 sps:$4 sm:$0xff]   ;;  %v6127_v25 = vld [vmem:[#allocation2 + $0x108] ss:$16 sps:$4 sm:$0xff]  }
 0x2a8   : > { %v6128_v34 = vld [vmem:[#allocation2 + $0x2ec] ss:$16 sps:$4 sm:$0xff]  }
 0x2aa   : > { %4272 = vmatpush1.bf16.msra.mxu1 %v6118_v17  ;;  %4235 = vmatpush1.bf16.msra.mxu0 %v6119_v44  ;;  %v6130_v44 = vld [vmem:[#allocation2 + $0x2e8] ss:$16 sps:$4 sm:$0xff]  }
 0x2ab   : > { %4273 = vmatprep.subr.bf16.mxu1 %v6120_v43  ;;  %4236 = vmatprep.subr.bf16.mxu0 %v6121_v11  ;;  %v6132_v43 = vld [vmem:[#allocation2 + $0x30c] ss:$16 sps:$4 sm:$0xff]  }
 0x2ac   : > { %v3760_v24 = vpop.f32.mrb[20].mxu1  ;;  %v6133_v11 = vld [vmem:[#allocation2 + $0x14c] ss:$16 sps:$4 sm:$0xff]  }
 0x2ad   : > { %v3761_v26 = vadd.f32 %v3760_v24, %v3719_v37  ;;  %v3762_v1 = vpop.f32.mrb[21].mxu1  ;;  %v6125_v37 = vld [vmem:[#allocation2 + $0x10c] ss:$16 sps:$4 sm:$0xff]   ;;  %v6134_v24 = vld [vmem:[#allocation2 + $0x308] ss:$16 sps:$4 sm:$0xff]  }
 0x2ae   : > { %v3763_v59 = vadd.f32 %v3762_v1, %v3721_v14  ;;  %v3764_v27 = vpop.f32.mrb[22].mxu1  ;;  %4274 = vmatpush1.bf16.msra.mxu1 %v6122_v23  ;;  %4237 = vmatpush1.bf16.msra.mxu0 %v6123_v6  ;;  %v6137_v1 = vld [vmem:[#allocation2 + $0x16c] ss:$16 sps:$4 sm:$0xff]  }
 0x2af   : > { %v3769_v48 = vadd.f32 %v3761_v26, %v7239_v58  ;;  %v3765_v49 = vpop.f32.mrb[23].mxu1  ;;  %4275 = vmatprep.subr.bf16.mxu1 %v6124_v33  ;;  %4238 = vmatprep.subr.bf16.mxu0 %v6125_v37  ;;  %v6129_v58 = vld [vmem:[#allocation2 + $0x12c] ss:$16 sps:$4 sm:$0xff]   ;;  %v6135_v26 = vld [vmem:[#allocation2 + $0x148] ss:$16 sps:$4 sm:$0xff]  }
 0x2b0   : > { %v3770_v39 = vadd.f32 %v3763_v59, %v7245_v0  ;;  %v6131_v0 = vld [vmem:[#allocation2 + $0x128] ss:$16 sps:$4 sm:$0xff]   ;;  %v6140_v6 = vld [vmem:[#allocation2 + $0x34c] ss:$16 sps:$4 sm:$0xff]  }
 0x2b1   : > { %v3794_v14 = vadd.f32 %v7373_v55, %v3769_v48  ;;  %v6138_v59 = vld [vmem:[#allocation2 + $0x328] ss:$16 sps:$4 sm:$0xff]   ;;  %v6141_v48 = vld [vmem:[#allocation2 + $0x18c] ss:$16 sps:$4 sm:$0xff]  }
 0x2b2   : > { %v3795_v36 = vadd.f32 %v7377_v31, %v3770_v39  ;;  %4276 = vmatpush1.bf16.msra.mxu1 %v6126_v35  ;;  %4239 = vmatpush1.bf16.msra.mxu0 %v6127_v25  ;;  %v6139_v27 = vld [vmem:[#allocation2 + $0x168] ss:$16 sps:$4 sm:$0xff]   ;;  %v6144_v39 = vld [vmem:[#allocation2 + $0x36c] ss:$16 sps:$4 sm:$0xff]   ;;  %v7700_v25 = vrot.slane %v6690_v7, 6 }
 0x2b3   : > { %v7384_v45 = vadd.f32 %v7261_v47, %v3794_v14  ;;  %4277 = vmatprep.subr.bf16.mxu1 %v6128_v34  ;;  %4240 = vmatprep.subr.bf16.mxu0 %v6129_v58  ;;  %v6136_v47 = vld [vmem:[#allocation2 + $0x32c] ss:$16 sps:$4 sm:$0xff]   ;;  %v6142_v33 = vld [vmem:[#allocation2 + $0x348] ss:$16 sps:$4 sm:$0xff]  }
 0x2b4   : > { %v7387_v17 = vadd.f32 %v7276_v60, %v3795_v36  ;;  %v793_v60 = vsel %vm780_vm4, %v6979_v61, %v6619_v18  ;;  %v6143_v37 = vld [vmem:[#allocation2 + $0x188] ss:$16 sps:$4 sm:$0xff]   ;;  %v6145_v18 = vld [vmem:[#allocation2 + $0x1ac] ss:$16 sps:$4 sm:$0xff]   ;;  %v844_v61 = vcombine.high %v7328_v22, %v7328_v22 }
 0x2b5   : > { %v795_v23 = vsel %vm682_vm0, %v6985_v62, %v793_v60  ;;  %v7699_v62 = vrot.slane %v6686_v4, 7  ;;  %v6147_v35 = vld [vmem:[#allocation2 + $0x1a8] ss:$16 sps:$4 sm:$0xff]   ;;  %v6148_v58 = vld [vmem:[#allocation2 + $0x38c] ss:$16 sps:$4 sm:$0xff]  }
 0x2b6   : > { %4278 = vmatpush1.bf16.msra.mxu1 %v6130_v44  ;;  %4241 = vmatpush1.bf16.msra.mxu0 %v6131_v0  ;;  %v797_v49 = vsel %vm685_vm1, %v6992_v46, %v795_v23  ;;  %v6146_v46 = vld [vmem:[#allocation2 + $0x368] ss:$16 sps:$4 sm:$0xff]   ;;  %v6149_v44 = vld [vmem:[#allocation2 + $0x1cc] ss:$16 sps:$4 sm:$0xff]   ;;  %v6157_v23 = vld [vmem:[#allocation2 + $0x804] ss:$16 sps:$4 sm:$0xff]  }
 0x2b7   : > { %4279 = vmatprep.subr.bf16.mxu1 %v6132_v43  ;;  %4242 = vmatprep.subr.bf16.mxu0 %v6133_v11  ;;  %v817_v14 = vsel %vm780_vm4, %v7699_v62, %v6684_v3  ;;  %v799_v36 = vsel %vm688_vm2, %v6999_v56, %v797_v49  ;;  %v858_v3 = vrot.slane %v844_v61, %v6560_v50  ;;  %v7701_v56 = vrot.slane %v6692_v8, 5  ;;  %v6150_v43 = vld [vmem:[#allocation2 + $0x388] ss:$16 sps:$4 sm:$0xff]  }
 0x2b8   : > { %v819_v34 = vsel %vm682_vm0, %v7700_v25, %v817_v14  ;;  %v801_v4 = vsel %vm691_vm3, %v7008_v10, %v799_v36  ;;  %v6151_v11 = vld [vmem:[#allocation2 + $0x1c8] ss:$16 sps:$4 sm:$0xff]   ;;  %v7702_v10 = vrot.slane %v6694_v9, 4  ;;  %v6163_v14 = vld [vmem:[#allocation2 + $0x820] ss:$16 sps:$4 sm:$0xff]  }
 0x2b9   : > { %v866_v22 = vshll.u32 %v858_v3, 16  ;;  %v821_v0 = vsel %vm685_vm1, %v7701_v56, %v819_v34  ;;  %v803_v7 = vsel %vm694_vm5, %v7018_v32, %v801_v4  ;;  %v860_v8 = vcombine.high %v858_v3, %v858_v3  ;;  %v6154_v60 = vld [vmem:[#allocation2 + $0x3a8] ss:$16 sps:$4 sm:$0xff]   ;;  %v6164_v36 = vld [vmem:[#allocation2 + $0xa04] ss:$16 sps:$4 sm:$0xff]  }
 0x2ba   : > { %4280 = vmatpush1.bf16.msra.mxu1 %v6134_v24  ;;  %4243 = vmatpush1.bf16.msra.mxu0 %v6135_v26  ;;  %v6152_v24 = vld [vmem:[#allocation2 + $0x3ac] ss:$16 sps:$4 sm:$0xff]   ;;  %v823_v50 = vsel %vm688_vm2, %v7702_v10, %v821_v0  ;;  %v7703_v32 = vrot.slane %v6697_v13, 3  ;;  %v6158_v49 = vld [vmem:[#allocation2 + $0x3c8] ss:$16 sps:$4 sm:$0xff]  }
 0x2bb   : > { %4281 = vmatprep.subr.bf16.mxu1 %v6136_v47  ;;  %4244 = vmatprep.subr.bf16.mxu0 %v6137_v1  ;;  %v6153_v26 = vld [vmem:[#allocation2 + $0x1ec] ss:$16 sps:$4 sm:$0xff]   ;;  %v829_v47 = vpack.c.b16 %v803_v7, %v803_v7  ;;  %v868_v1 = vrot.slane %v866_v22, 5  ;;  %v6161_v13 = vld [vmem:[#allocation2 + $0x824] ss:$16 sps:$4 sm:$0xff]  }
 0x2bc   : > { %v6162_v62 = vld [vmem:[#allocation2 + $0x3e8] ss:$16 sps:$4 sm:$0xff]   ;;  %v6167_v25 = vld [vmem:[#allocation2 + $0x840] ss:$16 sps:$4 sm:$0xff]   ;;  %v6168_v34 = vld [vmem:[#allocation2 + $0xa24] ss:$16 sps:$4 sm:$0xff]  }
 0x2bd   : > { %v7424_v9 = vsel %vm7357_vm7, %v829_v47, %v868_v1  ;;  %v6171_v4 = vld [vmem:[#allocation2 + $0x860] ss:$16 sps:$4 sm:$0xff]   ;;  %v6172_v3 = vld [vmem:[#allocation2 + $0xa44] ss:$16 sps:$4 sm:$0xff]  }
 0x2be   : > { %4282 = vmatpush1.bf16.msra.mxu1 %v6138_v59  ;;  %4245 = vmatpush1.bf16.msra.mxu0 %v6139_v27  ;;  %v6155_v59 = vld [vmem:[#allocation2 + $0x1e8] ss:$16 sps:$4 sm:$0xff]   ;;  %v6156_v27 = vld [vmem:[#allocation2 + $0x3cc] ss:$16 sps:$4 sm:$0xff]   ;;  %v6174_v22 = vld [vmem:[#allocation2 + $0xa40] ss:$16 sps:$4 sm:$0xff]  }
 0x2bf   : > { %4283 = vmatprep.subr.bf16.mxu1 %v6140_v6  ;;  %4246 = vmatprep.subr.bf16.mxu0 %v6141_v48  ;;  %v825_v6 = vsel %vm691_vm3, %v7703_v32, %v823_v50  ;;  %v874_v48 = vshll.u32 %v860_v8, 16  ;;  %v6175_v56 = vld [vmem:[#allocation2 + $0x880] ss:$16 sps:$4 sm:$0xff]   ;;  %v6176_v0 = vld [vmem:[#allocation2 + $0xa64] ss:$16 sps:$4 sm:$0xff]  }
 0x2c0   : > { %v6179_v10 = vld [vmem:[#allocation2 + $0x8a0] ss:$16 sps:$4 sm:$0xff]   ;;  %v6180_v50 = vld [vmem:[#allocation2 + $0xa84] ss:$16 sps:$4 sm:$0xff]  }
 0x2c1   : > { %v876_v61 = vrot.slane %v874_v48, 5  ;;  %v6181_v1 = vld [vmem:[#allocation2 + $0x8c4] ss:$16 sps:$4 sm:$0xff]   ;;  %v6182_v8 = vld [vmem:[#allocation2 + $0xa80] ss:$16 sps:$4 sm:$0xff]  }
 0x2c2   : > { %4284 = vmatpush1.bf16.msra.mxu1 %v6142_v33  ;;  %4247 = vmatpush1.bf16.msra.mxu0 %v6143_v37  ;;  %v6159_v33 = vld [vmem:[#allocation2 + $0x800] ss:$16 sps:$4 sm:$0xff]   ;;  %v7704_v37 = vrot.slane %v6729_v54, 2 }
 0x2c3   : > { %4285 = vmatprep.subr.bf16.mxu1 %v6144_v39  ;;  %4248 = vmatprep.subr.bf16.mxu0 %v6145_v18  ;;  %v6160_v18 = vld [vmem:[#allocation2 + $0x3ec] ss:$16 sps:$4 sm:$0xff]  }
 0x2c4   : > { %v827_v39 = vsel %vm694_vm5, %v7704_v37, %v825_v6  ;;  %v6187_v37 = vld [vmem:[#allocation2 + $0x8e0] ss:$16 sps:$4 sm:$0xff]  }
 0x2c6   : > { %4286 = vmatpush1.bf16.msra.mxu1 %v6146_v46  ;;  %4249 = vmatpush1.bf16.msra.mxu0 %v6147_v35  ;;  %v6165_v46 = vld [vmem:[#allocation2 + $0x844] ss:$16 sps:$4 sm:$0xff]   ;;  %v6166_v35 = vld [vmem:[#allocation2 + $0xa00] ss:$16 sps:$4 sm:$0xff]  }
 0x2c7   : > { %4287 = vmatprep.subr.bf16.mxu1 %v6148_v58  ;;  %4250 = vmatprep.subr.bf16.mxu0 %v6149_v44  ;;  %v6169_v58 = vld [vmem:[#allocation2 + $0x864] ss:$16 sps:$4 sm:$0xff]   ;;  %v6170_v44 = vld [vmem:[#allocation2 + $0xa20] ss:$16 sps:$4 sm:$0xff]  }
 0x2ca   : > { %4288 = vmatpush1.bf16.msra.mxu1 %v6150_v43  ;;  %4251 = vmatpush1.bf16.msra.mxu0 %v6151_v11  ;;  %v6177_v43 = vld [vmem:[#allocation2 + $0x8a4] ss:$16 sps:$4 sm:$0xff]  }
 0x2cb   : > { %4289 = vmatprep.subr.bf16.mxu1 %v6152_v24  ;;  %4252 = vmatprep.subr.bf16.mxu0 %v6153_v26  ;;  %v6178_v24 = vld [vmem:[#allocation2 + $0xa60] ss:$16 sps:$4 sm:$0xff]  }
 0x2ce   : > { %4290 = vmatpush1.bf16.msra.mxu1 %v6154_v60  ;;  %4253 = vmatpush1.bf16.msra.mxu0 %v6155_v59  ;;  %v6183_v60 = vld [vmem:[#allocation2 + $0x8c0] ss:$16 sps:$4 sm:$0xff]   ;;  %v6184_v59 = vld [vmem:[#allocation2 + $0xaa4] ss:$16 sps:$4 sm:$0xff]  }
 0x2cf   : > { %4291 = vmatprep.subr.bf16.mxu1 %v6156_v27  ;;  %4304 = vmatprep.subr.bf16.mxu0 %v6157_v23  ;;  %v6185_v27 = vld [vmem:[#allocation2 + $0x8e4] ss:$16 sps:$4 sm:$0xff]  }
 0x2d1   : > { %4255 = vmatmul.mubr.bf16.vlgmr.msra.gmra.mrb[36].mxu0 %v6839_v2  ;;  %v831_v2 = vpack.c.b16 %v827_v39, %v827_v39 }
 0x2d2   : > { %4292 = vmatpush1.bf16.msra.mxu1 %v6158_v49  ;;  %4305 = vmatpush1.bf16.msra.mxu0 %v6159_v33  ;;  %v6186_v33 = vld [vmem:[#allocation2 + $0xaa0] ss:$16 sps:$4 sm:$0xff]  }
 0x2d3   : > { %4293 = vmatprep.subr.bf16.mxu1 %v6160_v18  ;;  %4306 = vmatprep.subr.bf16.mxu0 %v6161_v13  ;;  %v7433_v54 = vsel %vm7357_vm7, %v831_v2, %v876_v61  ;;  %v6188_v18 = vld [vmem:[#allocation2 + $0xac4] ss:$16 sps:$4 sm:$0xff]   ;;  %v6190_v2 = vld [vmem:[#allocation2 + $0xac0] ss:$16 sps:$4 sm:$0xff]  }
 0x2d4   : > { %4336 = vmatprep.mubr.bf16.mxu0 %v7424_v9  ;;  %v6189_v13 = vld [vmem:[#allocation2 + $0x904] ss:$16 sps:$4 sm:$0xff]   ;;  %v6191_v61 = vld [vmem:[#allocation2 + $0x900] ss:$16 sps:$4 sm:$0xff]  }
 0x2d6   : > { %4294 = vmatpush1.bf16.msra.mxu1 %v6162_v62  ;;  %4307 = vmatpush1.bf16.msra.mxu0 %v6163_v14  ;;  %v6192_v62 = vld [vmem:[#allocation2 + $0xae4] ss:$16 sps:$4 sm:$0xff]  }
 0x2d7   : > { %4345 = vmatprep.subr.bf16.mxu1 %v6164_v36  ;;  %4308 = vmatprep.subr.bf16.mxu0 %v6165_v46  ;;  %v6193_v14 = vld [vmem:[#allocation2 + $0x924] ss:$16 sps:$4 sm:$0xff]   ;;  %v6194_v36 = vld [vmem:[#allocation2 + $0xae0] ss:$16 sps:$4 sm:$0xff]  }
 0x2d8   : > { %v6195_v46 = vld [vmem:[#allocation2 + $0x920] ss:$16 sps:$4 sm:$0xff]  }
 0x2d9   : > { %4296 = vmatmul.mubr.bf16.vlgmr.msra.gmra.mrb[36].mxu1 %v6888_v16  ;;  %v6173_v16 = vld [vmem:[#allocation2 + $0x884] ss:$16 sps:$4 sm:$0xff]  }
 0x2da   : > { %4346 = vmatpush1.bf16.msra.mxu1 %v6166_v35  ;;  %4309 = vmatpush1.bf16.msra.mxu0 %v6167_v25  ;;  %v6196_v35 = vld [vmem:[#allocation2 + $0xb04] ss:$16 sps:$4 sm:$0xff]  }
 0x2db   : > { %4347 = vmatprep.subr.bf16.mxu1 %v6168_v34  ;;  %4310 = vmatprep.subr.bf16.mxu0 %v6169_v58  ;;  %v6197_v25 = vld [vmem:[#allocation2 + $0x944] ss:$16 sps:$4 sm:$0xff]   ;;  %v7705_v34 = vld [vmem:[#allocation11_spill] sm:$0xff] }
 0x2dc   : > { %4377 = vmatprep.mubr.bf16.mxu1 %v7433_v54  ;;  %v781_v58 = vsel %vm780_vm4, %v7705_v34, %v6751_v53  ;;  %v6205_v53 = vld [vmem:[#allocation2 + $0x984] ss:$16 sps:$4 sm:$0xff]   ;;  %v6222_v34 = vld [vmem:[#allocation2 + $0xbc0] ss:$16 sps:$4 sm:$0xff]  }
 0x2de   : > { %4348 = vmatpush1.bf16.msra.mxu1 %v6170_v44  ;;  %4311 = vmatpush1.bf16.msra.mxu0 %v6171_v4  ;;  %v6198_v44 = vld [vmem:[#allocation2 + $0xb00] ss:$16 sps:$4 sm:$0xff]  }
 0x2df   : > { %4349 = vmatprep.subr.bf16.mxu1 %v6172_v3  ;;  %4312 = vmatprep.subr.bf16.mxu0 %v6173_v16  ;;  %v6199_v4 = vld [vmem:[#allocation2 + $0x940] ss:$16 sps:$4 sm:$0xff]   ;;  %v6200_v3 = vld [vmem:[#allocation2 + $0xb24] ss:$16 sps:$4 sm:$0xff]  }
 0x2e0   : > { %v6201_v16 = vld [vmem:[#allocation2 + $0x964] ss:$16 sps:$4 sm:$0xff]  }
 0x2e2   : > { %4350 = vmatpush1.bf16.msra.mxu1 %v6174_v22  ;;  %4313 = vmatpush1.bf16.msra.mxu0 %v6175_v56  ;;  %v7706_v22 = vld [vmem:[#allocation12_spill] sm:$0xff] }
 0x2e3   : > { %4351 = vmatprep.subr.bf16.mxu1 %v6176_v0  ;;  %4314 = vmatprep.subr.bf16.mxu0 %v6177_v43  ;;  %v783_v56 = vsel %vm682_vm0, %v7706_v22, %v781_v58  ;;  %v6202_v0 = vld [vmem:[#allocation2 + $0xb20] ss:$16 sps:$4 sm:$0xff]   ;;  %v6223_v58 = vld [vmem:[#allocation2 + $0x808] ss:$16 sps:$4 sm:$0xff]   ;;  %v6229_v22 = vld [vmem:[#allocation2 + $0x84c] ss:$16 sps:$4 sm:$0xff]  }
 0x2e4   : > { %v4010_v11 = vpop.f32.mrb[24].mxu0  ;;  %v6203_v43 = vld [vmem:[#allocation2 + $0x960] ss:$16 sps:$4 sm:$0xff]  }
 0x2e5   : > { %v4012_v7 = vpop.f32.mrb[25].mxu0 }
 0x2e6   : > { %4352 = vmatpush1.bf16.msra.mxu1 %v6178_v24  ;;  %v4014_v26 = vpop.f32.mrb[26].mxu0  ;;  %4315 = vmatpush1.bf16.msra.mxu0 %v6179_v10  ;;  %v6204_v24 = vld [vmem:[#allocation2 + $0xb44] ss:$16 sps:$4 sm:$0xff]  }
 0x2e7   : > { %4353 = vmatprep.subr.bf16.mxu1 %v6180_v50  ;;  %v4015_v47 = vpop.f32.mrb[27].mxu0  ;;  %4316 = vmatprep.subr.bf16.mxu0 %v6181_v1  ;;  %v7708_v26 = vld [vmem:[#allocation14_spill] sm:$0xff]  ;;  %v6206_v50 = vld [vmem:[#allocation2 + $0xb40] ss:$16 sps:$4 sm:$0xff]  }
 0x2e8   : > { %v6207_v47 = vld [vmem:[#allocation2 + $0x980] ss:$16 sps:$4 sm:$0xff]   ;;  %v6208_v1 = vld [vmem:[#allocation2 + $0xb64] ss:$16 sps:$4 sm:$0xff]  }
 0x2ea   : > { %4354 = vmatpush1.bf16.msra.mxu1 %v6182_v8  ;;  %4317 = vmatpush1.bf16.msra.mxu0 %v6183_v60  ;;  %v6209_v8 = vld [vmem:[#allocation2 + $0x9a4] ss:$16 sps:$4 sm:$0xff]   ;;  %v7709_v60 = vld [vmem:[#allocation15_spill] sm:$0xff] }
 0x2eb   : > { %4355 = vmatprep.subr.bf16.mxu1 %v6184_v59  ;;  %4318 = vmatprep.subr.bf16.mxu0 %v6185_v27  ;;  %v6210_v27 = vld [vmem:[#allocation2 + $0xb60] ss:$16 sps:$4 sm:$0xff]  }
 0x2ec   : > { %v4051_v23 = vpop.f32.mrb[24].mxu1 }
 0x2ed   : > { %v7436_v32 = vadd.f32 %v4051_v23, %v4010_v11  ;;  %v4053_v6 = vpop.f32.mrb[25].mxu1  ;;  %v7707_v11 = vld [vmem:[#allocation13_spill] sm:$0xff] }
 0x2ee   : > { %v7438_v48 = vadd.f32 %v4053_v6, %v4012_v7  ;;  %v4055_v49 = vpop.f32.mrb[26].mxu1  ;;  %4356 = vmatpush1.bf16.msra.mxu1 %v6186_v33  ;;  %4319 = vmatpush1.bf16.msra.mxu0 %v6187_v37  ;;  %v785_v7 = vsel %vm685_vm1, %v7707_v11, %v783_v56  ;;  %v6211_v23 = vld [vmem:[#allocation2 + $0x9a0] ss:$16 sps:$4 sm:$0xff]   ;;  %v862_v6 = vshll.u32 %v7333_v12, 16  ;;  %v6213_v33 = vld [vmem:[#allocation2 + $0x9c4] ss:$16 sps:$4 sm:$0xff]  }
 0x2ef   : > { %v4056_v39 = vpop.f32.mrb[27].mxu1  ;;  %4357 = vmatprep.subr.bf16.mxu1 %v6188_v18  ;;  %4320 = vmatprep.subr.bf16.mxu0 %v6189_v13  ;;  %v787_v10 = vsel %vm688_vm2, %v7708_v26, %v785_v7  ;;  %v6212_v49 = vld [vmem:[#allocation2 + $0xb84] ss:$16 sps:$4 sm:$0xff]   ;;  %v6214_v18 = vld [vmem:[#allocation2 + $0xb80] ss:$16 sps:$4 sm:$0xff]  }
 0x2f0   : > { %v789_v59 = vsel %vm691_vm3, %v7709_v60, %v787_v10  ;;  %v7710_v37 = vld [vmem:[#allocation16_spill] sm:$0xff]  ;;  %v6215_v13 = vld [vmem:[#allocation2 + $0x9c0] ss:$16 sps:$4 sm:$0xff]   ;;  %v6233_v11 = vld [vmem:[#allocation2 + $0x86c] ss:$16 sps:$4 sm:$0xff]  }
 0x2f1   : > { %v791_v39 = vsel %vm694_vm5, %v7710_v37, %v789_v59  ;;  %v6219_v12 = vld [vmem:[#allocation2 + $0x9e0] ss:$16 sps:$4 sm:$0xff]   ;;  %v6230_v56 = vld [vmem:[#allocation2 + $0xa08] ss:$16 sps:$4 sm:$0xff]   ;;  %v6248_v37 = vld [vmem:[#allocation2 + $0xaac] ss:$16 sps:$4 sm:$0xff]  }
 0x2f2   : > { %4358 = vmatpush1.bf16.msra.mxu1 %v6190_v2  ;;  %4321 = vmatpush1.bf16.msra.mxu0 %v6191_v61  ;;  %v828_v2 = vpack.c.b16 %v791_v39, %v791_v39  ;;  %v864_v61 = vrot.slane %v862_v6, 5  ;;  %v6235_v7 = vld [vmem:[#allocation2 + $0x868] ss:$16 sps:$4 sm:$0xff]   ;;  %v6245_v6 = vld [vmem:[#allocation2 + $0x8cc] ss:$16 sps:$4 sm:$0xff]  }
 0x2f3   : > { %4359 = vmatprep.subr.bf16.mxu1 %v6192_v62  ;;  %4322 = vmatprep.subr.bf16.mxu0 %v6193_v14  ;;  %v6216_v62 = vld [vmem:[#allocation2 + $0xba4] ss:$16 sps:$4 sm:$0xff]   ;;  %v6238_v26 = vld [vmem:[#allocation2 + $0xa48] ss:$16 sps:$4 sm:$0xff]   ;;  %v6249_v39 = vld [vmem:[#allocation2 + $0x8ec] ss:$16 sps:$4 sm:$0xff]  }
 0x2f4   : > { %v6217_v14 = vld [vmem:[#allocation2 + $0x9e4] ss:$16 sps:$4 sm:$0xff]   ;;  %v6239_v10 = vld [vmem:[#allocation2 + $0x888] ss:$16 sps:$4 sm:$0xff]  }
 0x2f5   : > { %v6242_v60 = vld [vmem:[#allocation2 + $0xa68] ss:$16 sps:$4 sm:$0xff]  }
 0x2f6   : > { %4360 = vmatpush1.bf16.msra.mxu1 %v6194_v36  ;;  %4323 = vmatpush1.bf16.msra.mxu0 %v6195_v46  ;;  %v6218_v36 = vld [vmem:[#allocation2 + $0xba0] ss:$16 sps:$4 sm:$0xff]   ;;  %v7456_v46 = vsel %vm7357_vm7, %v828_v2, %v864_v61  ;;  %v6243_v59 = vld [vmem:[#allocation2 + $0x8a8] ss:$16 sps:$4 sm:$0xff]  }
 0x2f7   : > { %4361 = vmatprep.subr.bf16.mxu1 %v6196_v35  ;;  %4324 = vmatprep.subr.bf16.mxu0 %v6197_v25  ;;  %v6220_v35 = vld [vmem:[#allocation2 + $0xbc4] ss:$16 sps:$4 sm:$0xff]   ;;  %v6221_v25 = vld [vmem:[#allocation2 + $0x80c] ss:$16 sps:$4 sm:$0xff]  }
 0x2fa   : > { %4362 = vmatpush1.bf16.msra.mxu1 %v6198_v44  ;;  %4325 = vmatpush1.bf16.msra.mxu0 %v6199_v4  ;;  %v6224_v44 = vld [vmem:[#allocation2 + $0xbe4] ss:$16 sps:$4 sm:$0xff]   ;;  %v6225_v4 = vld [vmem:[#allocation2 + $0x82c] ss:$16 sps:$4 sm:$0xff]  }
 0x2fb   : > { %4363 = vmatprep.subr.bf16.mxu1 %v6200_v3  ;;  %4326 = vmatprep.subr.bf16.mxu0 %v6201_v16  ;;  %v6226_v3 = vld [vmem:[#allocation2 + $0xbe0] ss:$16 sps:$4 sm:$0xff]   ;;  %v6228_v16 = vld [vmem:[#allocation2 + $0xa0c] ss:$16 sps:$4 sm:$0xff]  }
 0x2fe   : > { %4364 = vmatpush1.bf16.msra.mxu1 %v6202_v0  ;;  %4327 = vmatpush1.bf16.msra.mxu0 %v6203_v43  ;;  %v6231_v0 = vld [vmem:[#allocation2 + $0x848] ss:$16 sps:$4 sm:$0xff]   ;;  %v6232_v43 = vld [vmem:[#allocation2 + $0xa2c] ss:$16 sps:$4 sm:$0xff]  }
 0x2ff   : > { %4365 = vmatprep.subr.bf16.mxu1 %v6204_v24  ;;  %4328 = vmatprep.subr.bf16.mxu0 %v6205_v53  ;;  %v6236_v24 = vld [vmem:[#allocation2 + $0xa4c] ss:$16 sps:$4 sm:$0xff]  }
 0x300   : > { %v6237_v53 = vld [vmem:[#allocation2 + $0x88c] ss:$16 sps:$4 sm:$0xff]  }
 0x302   : > { %4366 = vmatpush1.bf16.msra.mxu1 %v6206_v50  ;;  %4329 = vmatpush1.bf16.msra.mxu0 %v6207_v47  ;;  %v6240_v50 = vld [vmem:[#allocation2 + $0xa6c] ss:$16 sps:$4 sm:$0xff]  }
 0x303   : > { %4367 = vmatprep.subr.bf16.mxu1 %v6208_v1  ;;  %4330 = vmatprep.subr.bf16.mxu0 %v6209_v8  ;;  %v6241_v47 = vld [vmem:[#allocation2 + $0x8ac] ss:$16 sps:$4 sm:$0xff]  }
 0x306   : > { %4368 = vmatpush1.bf16.msra.mxu1 %v6210_v27  ;;  %4331 = vmatpush1.bf16.msra.mxu0 %v6211_v23  ;;  %v6244_v27 = vld [vmem:[#allocation2 + $0xa8c] ss:$16 sps:$4 sm:$0xff]  }
 0x307   : > { %4369 = vmatprep.subr.bf16.mxu1 %v6212_v49  ;;  %4332 = vmatprep.subr.bf16.mxu0 %v6213_v33  ;;  %v6246_v49 = vld [vmem:[#allocation2 + $0xa88] ss:$16 sps:$4 sm:$0xff]  }
 0x308   : > { %v6247_v33 = vld [vmem:[#allocation2 + $0x8c8] ss:$16 sps:$4 sm:$0xff]  }
 0x30a   : > { %4370 = vmatpush1.bf16.msra.mxu1 %v6214_v18  ;;  %4333 = vmatpush1.bf16.msra.mxu0 %v6215_v13 }
 0x30b   : > { %4371 = vmatprep.subr.bf16.mxu1 %v6216_v62  ;;  %4334 = vmatprep.subr.bf16.mxu0 %v6217_v14  ;;  %v6250_v14 = vld [vmem:[#allocation2 + $0xaa8] ss:$16 sps:$4 sm:$0xff]  }
 0x30e   : > { %4372 = vmatpush1.bf16.msra.mxu1 %v6218_v36  ;;  %4335 = vmatpush1.bf16.msra.mxu0 %v6219_v12  ;;  %v6251_v36 = vld [vmem:[#allocation2 + $0x8e8] ss:$16 sps:$4 sm:$0xff]  }
 0x30f   : > { %4373 = vmatprep.subr.bf16.mxu1 %v6220_v35  ;;  %4386 = vmatprep.subr.bf16.mxu0 %v6221_v25  ;;  %v6252_v35 = vld [vmem:[#allocation2 + $0xacc] ss:$16 sps:$4 sm:$0xff]  }
 0x310   : > { %v6253_v25 = vld [vmem:[#allocation2 + $0x90c] ss:$16 sps:$4 sm:$0xff]  }
 0x311   : > { %4337 = vmatmul.mubr.bf16.vlgmr.msra.gmra.mrb[40].mxu0 %v7456_v46 }
 0x312   : > { %4374 = vmatpush1.bf16.msra.mxu1 %v6222_v34  ;;  %4387 = vmatpush1.bf16.msra.mxu0 %v6223_v58  ;;  %v6254_v34 = vld [vmem:[#allocation2 + $0xac8] ss:$16 sps:$4 sm:$0xff]  }
 0x313   : > { %4375 = vmatprep.subr.bf16.mxu1 %v6224_v44  ;;  %4388 = vmatprep.subr.bf16.mxu0 %v6225_v4  ;;  %v6255_v58 = vld [vmem:[#allocation2 + $0x908] ss:$16 sps:$4 sm:$0xff]   ;;  %v6256_v44 = vld [vmem:[#allocation2 + $0xaec] ss:$16 sps:$4 sm:$0xff]  }
 0x314   : > { %4418 = vmatprep.mubr.bf16.mxu0 %v7424_v9  ;;  %v6234_v9 = vld [vmem:[#allocation2 + $0xa28] ss:$16 sps:$4 sm:$0xff]   ;;  %v6257_v4 = vld [vmem:[#allocation2 + $0x92c] ss:$16 sps:$4 sm:$0xff]  }
 0x316   : > { %4376 = vmatpush1.bf16.msra.mxu1 %v6226_v3  ;;  %4389 = vmatpush1.bf16.msra.mxu0 %v6227_v30  ;;  %v6258_v3 = vld [vmem:[#allocation2 + $0xae8] ss:$16 sps:$4 sm:$0xff]  }
 0x317   : > { %4427 = vmatprep.subr.bf16.mxu1 %v6228_v16  ;;  %4390 = vmatprep.subr.bf16.mxu0 %v6229_v22  ;;  %v6259_v30 = vld [vmem:[#allocation2 + $0x928] ss:$16 sps:$4 sm:$0xff]   ;;  %v6260_v16 = vld [vmem:[#allocation2 + $0xb0c] ss:$16 sps:$4 sm:$0xff]  }
 0x318   : > { %v6261_v22 = vld [vmem:[#allocation2 + $0x94c] ss:$16 sps:$4 sm:$0xff]  }
 0x319   : > { %4378 = vmatmul.mubr.bf16.vlgmr.msra.gmra.mrb[40].mxu1 %v7366_v41 }
 0x31a   : > { %4428 = vmatpush1.bf16.msra.mxu1 %v6230_v56  ;;  %4391 = vmatpush1.bf16.msra.mxu0 %v6231_v0  ;;  %v6262_v56 = vld [vmem:[#allocation2 + $0xb08] ss:$16 sps:$4 sm:$0xff]  }
 0x31b   : > { %4429 = vmatprep.subr.bf16.mxu1 %v6232_v43  ;;  %4392 = vmatprep.subr.bf16.mxu0 %v6233_v11  ;;  %v6263_v0 = vld [vmem:[#allocation2 + $0x948] ss:$16 sps:$4 sm:$0xff]   ;;  %v6264_v43 = vld [vmem:[#allocation2 + $0xb2c] ss:$16 sps:$4 sm:$0xff]  }
 0x31c   : > { %4459 = vmatprep.mubr.bf16.mxu1 %v7433_v54  ;;  %v6265_v11 = vld [vmem:[#allocation2 + $0x96c] ss:$16 sps:$4 sm:$0xff]  }
 0x31e   : > { %4430 = vmatpush1.bf16.msra.mxu1 %v6234_v9  ;;  %4393 = vmatpush1.bf16.msra.mxu0 %v6235_v7  ;;  %v6266_v9 = vld [vmem:[#allocation2 + $0xb28] ss:$16 sps:$4 sm:$0xff]  }
 0x31f   : > { %4431 = vmatprep.subr.bf16.mxu1 %v6236_v24  ;;  %4394 = vmatprep.subr.bf16.mxu0 %v6237_v53  ;;  %v6267_v7 = vld [vmem:[#allocation2 + $0x968] ss:$16 sps:$4 sm:$0xff]   ;;  %v6268_v24 = vld [vmem:[#allocation2 + $0xb4c] ss:$16 sps:$4 sm:$0xff]  }
 0x320   : > { %v6269_v53 = vld [vmem:[#allocation2 + $0x98c] ss:$16 sps:$4 sm:$0xff]  }
 0x322   : > { %4432 = vmatpush1.bf16.msra.mxu1 %v6238_v26  ;;  %4395 = vmatpush1.bf16.msra.mxu0 %v6239_v10  ;;  %v6270_v26 = vld [vmem:[#allocation2 + $0xb48] ss:$16 sps:$4 sm:$0xff]  }
 0x323   : > { %4433 = vmatprep.subr.bf16.mxu1 %v6240_v50  ;;  %4396 = vmatprep.subr.bf16.mxu0 %v6241_v47  ;;  %v6271_v10 = vld [vmem:[#allocation2 + $0x988] ss:$16 sps:$4 sm:$0xff]   ;;  %v6272_v50 = vld [vmem:[#allocation2 + $0xb6c] ss:$16 sps:$4 sm:$0xff]  }
 0x324   : > { %v4092_v1 = vpop.f32.mrb[28].mxu0  ;;  %v6273_v47 = vld [vmem:[#allocation2 + $0x9ac] ss:$16 sps:$4 sm:$0xff]  }
 0x325   : > { %v4094_v8 = vpop.f32.mrb[29].mxu0 }
 0x326   : > { %4434 = vmatpush1.bf16.msra.mxu1 %v6242_v60  ;;  %v4096_v54 = vpop.f32.mrb[30].mxu0  ;;  %4397 = vmatpush1.bf16.msra.mxu0 %v6243_v59  ;;  %v6276_v60 = vld [vmem:[#allocation2 + $0xb8c] ss:$16 sps:$4 sm:$0xff]   ;;  %v6278_v59 = vld [vmem:[#allocation2 + $0xb88] ss:$16 sps:$4 sm:$0xff]  }
 0x327   : > { %4435 = vmatprep.subr.bf16.mxu1 %v6244_v27  ;;  %v4097_v23 = vpop.f32.mrb[31].mxu0  ;;  %4398 = vmatprep.subr.bf16.mxu0 %v6245_v6  ;;  %v6277_v54 = vld [vmem:[#allocation2 + $0x9cc] ss:$16 sps:$4 sm:$0xff]   ;;  %v6279_v27 = vld [vmem:[#allocation2 + $0x9c8] ss:$16 sps:$4 sm:$0xff]  }
 0x328   : > { %v6280_v23 = vld [vmem:[#allocation2 + $0xbac] ss:$16 sps:$4 sm:$0xff]  }
 0x329   : > { %v6281_v6 = vld [vmem:[#allocation2 + $0x9ec] ss:$16 sps:$4 sm:$0xff]  }
 0x32a   : > { %4436 = vmatpush1.bf16.msra.mxu1 %v6246_v49  ;;  %4399 = vmatpush1.bf16.msra.mxu0 %v6247_v33  ;;  %v6282_v49 = vld [vmem:[#allocation2 + $0xba8] ss:$16 sps:$4 sm:$0xff]  }
 0x32b   : > { %4437 = vmatprep.subr.bf16.mxu1 %v6248_v37  ;;  %4400 = vmatprep.subr.bf16.mxu0 %v6249_v39  ;;  %v6283_v33 = vld [vmem:[#allocation2 + $0x9e8] ss:$16 sps:$4 sm:$0xff]   ;;  %v6284_v37 = vld [vmem:[#allocation2 + $0xbcc] ss:$16 sps:$4 sm:$0xff]  }
 0x32c   : > { %v4133_v18 = vpop.f32.mrb[28].mxu1  ;;  %v6285_v39 = vld [vmem:[#allocation2 + $0xbc8] ss:$16 sps:$4 sm:$0xff]  }
 0x32d   : > { %v7462_v13 = vadd.f32 %v4133_v18, %v4092_v1  ;;  %v4135_v2 = vpop.f32.mrb[29].mxu1  ;;  %v6274_v1 = vld [vmem:[#allocation2 + $0xb68] ss:$16 sps:$4 sm:$0xff]   ;;  %v6286_v18 = vld [vmem:[#allocation2 + $0xbec] ss:$16 sps:$4 sm:$0xff]  }
 0x32e   : > { %v7464_v61 = vadd.f32 %v4135_v2, %v4094_v8  ;;  %v4137_v62 = vpop.f32.mrb[30].mxu1  ;;  %4438 = vmatpush1.bf16.msra.mxu1 %v6250_v14  ;;  %4401 = vmatpush1.bf16.msra.mxu0 %v6251_v36  ;;  %v6275_v8 = vld [vmem:[#allocation2 + $0x9a8] ss:$16 sps:$4 sm:$0xff]  }
 0x32f   : > { %v4138_v12 = vpop.f32.mrb[31].mxu1  ;;  %4439 = vmatprep.subr.bf16.mxu1 %v6252_v35  ;;  %4402 = vmatprep.subr.bf16.mxu0 %v6253_v25  ;;  %v6287_v2 = vld [vmem:[#allocation2 + $0xbe8] ss:$16 sps:$4 sm:$0xff]  }
 0x332   : > { %4440 = vmatpush1.bf16.msra.mxu1 %v6254_v34  ;;  %4403 = vmatpush1.bf16.msra.mxu0 %v6255_v58  ;;  %v7711_v34 = vld [vmem:[#allocation9_spill] sm:$0xff] }
 0x333   : > { %4441 = vmatprep.subr.bf16.mxu1 %v6256_v44  ;;  %4404 = vmatprep.subr.bf16.mxu0 %v6257_v4  ;;  %v4479_v58 = vrot.slane %v7711_v34, %v7285_v38  ;;  %v4511_v44 = vrot.slane %v7145_v28, %v7285_v38 }
 0x336   : > { %4442 = vmatpush1.bf16.msra.mxu1 %v6258_v3  ;;  %4405 = vmatpush1.bf16.msra.mxu0 %v6259_v30  ;;  %v4515_v30 = vrot.slane %v7145_v28, %v7369_v20 }
 0x337   : > { %4443 = vmatprep.subr.bf16.mxu1 %v6260_v16  ;;  %4406 = vmatprep.subr.bf16.mxu0 %v6261_v22 }
 0x33a   : > { %4444 = vmatpush1.bf16.msra.mxu1 %v6262_v56  ;;  %4407 = vmatpush1.bf16.msra.mxu0 %v6263_v0  ;;  %v4543_v56 = vrot.slane %v7154_v40, %v7285_v38 }
 0x33b   : > { %4445 = vmatprep.subr.bf16.mxu1 %v6264_v43  ;;  %4408 = vmatprep.subr.bf16.mxu0 %v6265_v11  ;;  %v4531_v43 = vrot.slane %v7148_v15, %v7369_v20 }
 0x33e   : > { %4446 = vmatpush1.bf16.msra.mxu1 %v6266_v9  ;;  %4409 = vmatpush1.bf16.msra.mxu0 %v6267_v7  ;;  %v4559_v7 = vrot.slane %v7160_v57, %v7285_v38 }
 0x33f   : > { %4447 = vmatprep.subr.bf16.mxu1 %v6268_v24  ;;  %4410 = vmatprep.subr.bf16.mxu0 %v6269_v53  ;;  %v4547_v53 = vrot.slane %v7154_v40, %v7369_v20 }
 0x342   : > { %4448 = vmatpush1.bf16.msra.mxu1 %v6270_v26  ;;  %4411 = vmatpush1.bf16.msra.mxu0 %v6271_v10  ;;  %v4575_v10 = vrot.slane %v7167_v5, %v7285_v38 }
 0x343   : > { %4449 = vmatprep.subr.bf16.mxu1 %v6272_v50  ;;  %4412 = vmatprep.subr.bf16.mxu0 %v6273_v47  ;;  %v4563_v47 = vrot.slane %v7160_v57, %v7369_v20 }
 0x346   : > { %4450 = vmatpush1.bf16.msra.mxu1 %v6274_v1  ;;  %4413 = vmatpush1.bf16.msra.mxu0 %v6275_v8  ;;  %v4591_v8 = vrot.slane %v7172_v52, %v7285_v38 }
 0x347   : > { %4451 = vmatprep.subr.bf16.mxu1 %v6276_v60  ;;  %4414 = vmatprep.subr.bf16.mxu0 %v6277_v54  ;;  %v4579_v54 = vrot.slane %v7167_v5, %v7369_v20 }
 0x34a   : > { %4452 = vmatpush1.bf16.msra.mxu1 %v6278_v59  ;;  %4415 = vmatpush1.bf16.msra.mxu0 %v6279_v27 }
 0x34b   : > { %4453 = vmatprep.subr.bf16.mxu1 %v6280_v23  ;;  %4416 = vmatprep.subr.bf16.mxu0 %v6281_v6  ;;  %v4595_v23 = vrot.slane %v7172_v52, %v7369_v20 }
 0x34e   : > { %4454 = vmatpush1.bf16.msra.mxu1 %v6282_v49  ;;  %4417 = vmatpush1.bf16.msra.mxu0 %v6283_v33 }
 0x34f   : > { %4455 = vmatprep.subr.bf16.mxu1 %v6284_v37 }
 0x351   : > { %4419 = vmatmul.mubr.bf16.vlgmr.msra.gmra.mrb[44].mxu0 %v7456_v46  ;;  %v4495_v46 = vrot.slane %v7141_v51, %v7285_v38 }
 0x352   : > { %4456 = vmatpush1.bf16.msra.mxu1 %v6285_v39 }
 0x353   : > { %4457 = vmatprep.subr.bf16.mxu1 %v6286_v18  ;;  %v4604_v3 = vsel %vm780_vm4, %v4495_v46, %v4479_v58 }
 0x354   : > { %v4605_v0 = vsel %vm682_vm0, %v4511_v44, %v4604_v3 }
 0x356   : > { %4458 = vmatpush1.bf16.msra.mxu1 %v6287_v2 }
 0x359   : > { %4460 = vmatmul.mubr.bf16.vlgmr.msra.gmra.mrb[44].mxu1 %v7366_v41  ;;  %v4483_v41 = vrot.slane %v7711_v34, %v7369_v20 }
 0x364   : > { %v4174_v62 = vpop.f32.mrb[32].mxu0 }
 0x365   : > { %v4175_v14 = vadd.f32 %v4174_v62, %v7436_v32  ;;  %v4176_v36 = vpop.f32.mrb[33].mxu0  ;;  %v4499_v32 = vrot.slane %v7141_v51, %v7369_v20 }
 0x366   : > { %v4177_v12 = vadd.f32 %v4176_v36, %v7438_v48  ;;  %v4178_v35 = vpop.f32.mrb[34].mxu0  ;;  %v4527_v48 = vrot.slane %v7148_v15, %v7285_v38 }
 0x367   : > { %v4179_v25 = vpop.f32.mrb[35].mxu0  ;;  %v4611_v1 = vsel %vm780_vm4, %v4499_v32, %v4483_v41  ;;  %v4490_v35 = vsub.s32 7, %v7686_v63 }
 0x368   : > { %v4606_v24 = vsel %vm685_vm1, %v4527_v48, %v4605_v0  ;;  %v4612_v59 = vsel %vm682_vm0, %v4515_v30, %v4611_v1 }
 0x369   : > { %v4607_v50 = vsel %vm688_vm2, %v4543_v56, %v4606_v24  ;;  %v4613_v6 = vsel %vm685_vm1, %v4531_v43, %v4612_v59  ;;  %v4491_v44 = vrot.slane %v7711_v34, %v4490_v35  ;;  %v4507_v41 = vrot.slane %v7141_v51, %v4490_v35 }
 0x36a   : > { %v4608_v60 = vsel %vm691_vm3, %v4559_v7, %v4607_v50  ;;  %v4614_v33 = vsel %vm688_vm2, %v4547_v53, %v4613_v6  ;;  %v4555_v43 = vrot.slane %v7154_v40, %v4490_v35  ;;  %v4571_v24 = vrot.slane %v7160_v57, %v4490_v35 }
 0x36b   : > { %v4609_v27 = vsel %vm694_vm5, %v4575_v10, %v4608_v60  ;;  %v4615_v38 = vsel %vm691_vm3, %v4563_v47, %v4614_v33  ;;  %v4625_v53 = vsel %vm780_vm4, %v4507_v41, %v4491_v44  ;;  %v4587_v10 = vrot.slane %v7167_v5, %v4490_v35 }
 0x36c   : > { %v4215_v4 = vpop.f32.mrb[32].mxu1  ;;  %v7516_v49 = vsel %vm697_vm6, %v4591_v8, %v4609_v27  ;;  %v4616_v37 = vsel %vm694_vm5, %v4579_v54, %v4615_v38  ;;  %v4603_v47 = vrot.slane %v7172_v52, %v4490_v35 }
 0x36d   : > { %v7485_v16 = vadd.f32 %v4215_v4, %v4175_v14  ;;  %v4217_v22 = vpop.f32.mrb[33].mxu1  ;;  %v7522_v39 = vsel %vm697_vm6, %v4595_v23, %v4616_v37  ;;  %v4523_v4 = vrot.slane %v7145_v28, %v4490_v35 }
 0x36e   : > { %v7492_v11 = vadd.f32 %v4217_v22, %v4177_v12  ;;  %v4219_v9 = vpop.f32.mrb[34].mxu1  ;;  %v4486_v12 = vsub.s32 5, %v7686_v63  ;;  %v4539_v22 = vrot.slane %v7148_v15, %v4490_v35 }
 0x36f   : > { %v4220_v26 = vpop.f32.mrb[35].mxu1  ;;  %v4626_v50 = vsel %vm682_vm0, %v4523_v4, %v4625_v53 }
 0x370   : > { %v4487_v25 = vrot.slane %v7711_v34, %v4486_v12  ;;  %v4503_v58 = vrot.slane %v7141_v51, %v4486_v12  ;;  %v4519_v46 = vrot.slane %v7145_v28, %v4486_v12  ;;  %v4535_v32 = vrot.slane %v7148_v15, %v4486_v12 }
 0x371   : > { %v4551_v3 = vrot.slane %v7154_v40, %v4486_v12  ;;  %v4567_v51 = vrot.slane %v7160_v57, %v4486_v12  ;;  %v4583_v28 = vrot.slane %v7167_v5, %v4486_v12  ;;  %v4599_v15 = vrot.slane %v7172_v52, %v4486_v12 }
 0x372   : > { %v4627_v1 = vsel %vm685_vm1, %v4539_v22, %v4626_v50 }
 0x373   : > { %v4628_v8 = vsel %vm688_vm2, %v4555_v43, %v4627_v1 }
 0x374   : > { %v4629_v60 = vsel %vm691_vm3, %v4571_v24, %v4628_v8 }
 0x375   : > { %v4630_v54 = vsel %vm694_vm5, %v4587_v10, %v4629_v60 }
 0x376   : > { %v4631_v5 = vsel %vm697_vm6, %v4603_v47, %v4630_v54 }
 0x3a4   : > { %v4256_v18 = vpop.f32.mrb[36].mxu0 }
 0x3a5   : > { %v4257_v2 = vadd.f32 %v4256_v18, %v7462_v13  ;;  %v4258_v62 = vpop.f32.mrb[37].mxu0 }
 0x3a6   : > { %v4259_v20 = vadd.f32 %v4258_v62, %v7464_v61  ;;  %v4260_v14 = vpop.f32.mrb[38].mxu0  ;;  %v4618_v61 = vsel %vm780_vm4, %v4503_v58, %v4487_v25  ;;  %v4640_v25 = vmax.f32 %v7300_v21, 0.0 }
 0x3a7   : > { %v4261_v36 = vpop.f32.mrb[39].mxu0  ;;  %v4619_v30 = vsel %vm682_vm0, %v4519_v46, %v4618_v61  ;;  %v4641_v46 = vmax.f32 %v7303_v42, 0.0 }
 0x3a8   : > { %v4620_v0 = vsel %vm685_vm1, %v4535_v32, %v4619_v30 }
 0x3a9   : > { %v4621_v7 = vsel %vm688_vm2, %v4551_v3, %v4620_v0  ;;  %v4642_v0 = vmax.f32 %v7384_v45, 0.0 }
 0x3aa   : > { %v4622_v26 = vsel %vm691_vm3, %v4567_v51, %v4621_v7 }
 0x3ab   : > { %v4623_v40 = vsel %vm694_vm5, %v4583_v28, %v4622_v26 }
 0x3ac   : > { %v4297_v13 = vpop.f32.mrb[36].mxu1  ;;  %v4624_v57 = vsel %vm697_vm6, %v4599_v15, %v4623_v40 }
 0x3ad   : > { %v7536_v48 = vadd.f32 %v4297_v13, %v4257_v2  ;;  %v4299_v63 = vpop.f32.mrb[37].mxu1 }
 0x3ae   : > { %v7541_v56 = vadd.f32 %v4299_v63, %v4259_v20  ;;  %v4301_v34 = vpop.f32.mrb[38].mxu1 }
 0x3af   : > { %v4302_v9 = vpop.f32.mrb[39].mxu1 }
 0x3b0   : > { %v4643_v9 = vmax.f32 %v7387_v17, 0.0 }
 0x3e4   : > { %v4338_v59 = vpop.f32.mrb[40].mxu0 }
 0x3e5   : > { %v4340_v27 = vpop.f32.mrb[41].mxu0 }
 0x3e6   : > { %v4342_v23 = vpop.f32.mrb[42].mxu0 }
 0x3e7   : > { %v4343_v6 = vpop.f32.mrb[43].mxu0 }
 0x3ec   : > { %v4379_v33 = vpop.f32.mrb[40].mxu1 }
 0x3ed   : > { %v4380_v52 = vadd.f32 %v4379_v33, %v4338_v59  ;;  %v4381_v38 = vpop.f32.mrb[41].mxu1 }
 0x3ee   : > { %v4382_v37 = vadd.f32 %v4381_v38, %v4340_v27  ;;  %v4383_v18 = vpop.f32.mrb[42].mxu1 }
 0x3ef   : > { %v4468_v2 = vadd.f32 %v4380_v52, %v7485_v16  ;;  %v4384_v62 = vpop.f32.mrb[43].mxu1 }
 0x3f0   : > { %v4469_v20 = vadd.f32 %v4382_v37, %v7492_v11 }
 0x3f1   : > { %v4472_v14 = vadd.f32 %v4468_v2, %v7289_v19 }
 0x3f2   : > { %v4473_v36 = vadd.f32 %v4469_v20, %v7293_v29 }
 0x3f3   : > { %v4636_v12 = vadd.f32 %v7516_v49, %v4472_v14 }
 0x3f4   : > { %v4637_v35 = vadd.f32 %v7522_v39, %v4473_v36 }
 0x3f5   : > { %v4644_v58 = vmax.f32 %v4636_v12, 0.0 }
 0x3f6   : > { %v4645_v16 = vmax.f32 %v4637_v35, 0.0 }
 0x3f7   : > { %v4648_v44 = vmax.f32 %v4640_v25, %v4644_v58 }
 0x3f8   : > { %v4649_v41 = vmax.f32 %v4641_v46, %v4645_v16 }
 0x3fa   : > { %v5253_v19 = vpack.c.bf16 %v4649_v41, %v4648_v44 }
 0x3fc   : > { %4668 = vst [vmem:[%s408_s8] sm:$0xff] %v5253_v19 }
 0x424   : > { %v4420_v29 = vpop.f32.mrb[44].mxu0 }
 0x425   : > { %v4422_v11 = vpop.f32.mrb[45].mxu0 }
 0x426   : > { %v4424_v49 = vpop.f32.mrb[46].mxu0 }
 0x427   : > { %v4425_v13 = vpop.f32.mrb[47].mxu0 }
 0x42c   : > { %v4461_v39 = vpop.f32.mrb[44].mxu1 }
 0x42d   : > { %v4462_v32 = vadd.f32 %v4461_v39, %v4420_v29  ;;  %v4463_v21 = vpop.f32.mrb[45].mxu1 }
 0x42e   : > { %v4464_v61 = vadd.f32 %v4463_v21, %v4422_v11  ;;  %v4465_v4 = vpop.f32.mrb[46].mxu1 }
 0x42f   : > { %v4470_v42 = vadd.f32 %v4462_v32, %v7536_v48  ;;  %v4466_v63 = vpop.f32.mrb[47].mxu1 }
 0x430   : > { %v4471_v3 = vadd.f32 %v4464_v61, %v7541_v56 }
 0x431   : > { %v4474_v30 = vadd.f32 %v4470_v42, %v7373_v55 }
 0x432   : > { %v4475_v22 = vadd.f32 %v4471_v3, %v7377_v31 }
 0x433   : > { %v4638_v34 = vadd.f32 %v4624_v57, %v4474_v30 }
 0x434   : > { %v4639_v51 = vadd.f32 %v4631_v5, %v4475_v22 }
 0x435   : > { %v4646_v43 = vmax.f32 %v4638_v34, 0.0 }
 0x436   : > { %v4647_v28 = vmax.f32 %v4639_v51, 0.0 }
 0x437   : > { %v4650_v7 = vmax.f32 %v4642_v0, %v4646_v43 }
 0x438   : > { %v4651_v24 = vmax.f32 %v4643_v9, %v4647_v28 }
 0x43a   : > { %v5254_v53 = vpack.c.bf16 %v4651_v24, %v4650_v7 }
 0x43c   : > { %4669 = vst [vmem:[%s408_s8 + $0x8] sm:$0xff] %v5254_v53 }
 0x43d PF: > { %s17_s22 = sadd.s32 1, %s6398_s22   ;;  %s7712_s18 = smov %s6390_s20 }
 0x43e   : > { %p14_p1 = scmp.ge.s32.totalorder %s17_s22, 6   ;;  %s7713_s19 = smov %s6394_s21 }
 0x43f   : > { %s7714_s20 = smov %s7717_s24  ;;  %s7715_s21 = smov %s7721_s25 }
 0x440   :  { %16 = sbr.rel (!%p14_p1) target bundleno = 4 (0x4), region = 87 }
 0x447   :  { %4699 = vsyncpa [#allocation3], 1 }
 0x448   :  { %4701 = vsyncpa [#allocation3 + $0x1], 1 }
 0x449   :  { %4702 = vsyncpa [#allocation5], 1 }

// kernel: forward.12
= control target key start
LH: loop header
LB: loop body
LE: loop exit
PB: predicated region body
PF: predicated region fallthrough
CT: control target
= control target key end

     0   :  { %s4913_s18 = smov 0   ;;  %s4915_s19 = smov 0   ;;  %s6187_s0 = inlined_call_operand.vmem [shape: bf16[2,8,512], index: 0, kind: input, shape index: {}, may-alias: {0,1,2}]   ;;  %s6188_s1 = inlined_call_operand.vmem [shape: bf16[2,8,512], index: 1, kind: input, shape index: {}, may-alias: {0,1,2}]   ;;  %s6189_s2 = inlined_call_operand.vmem [shape: bf16[2,8,512], index: 2, kind: input, shape index: {}, may-alias: {0,1,2}]   ;;  %s6190_s3 = inlined_call_operand.vmem [shape: bf16[3,512,512], index: 3, kind: input, shape index: {}]   ;;  %s6191_s4 = inlined_call_operand.vmem [shape: f32[1,512], index: 4, kind: input, shape index: {}]   ;;  %s6192_s5 = inlined_call_operand.vmem [shape: bf16[2,8,512], index: 5, kind: output, shape index: {}]  }
   0x1   :  { %s4917_s20 = smov 0  }
   0x2 LB: > { %s27_s1 = sadd.s32 1, %s4876_s19  ;;  %p3538_p0 = scmp.ge.s32.totalorder %s4880_s20, 1  ;;  %s4880_s20 = sphi %s4917_s20, %s15_s20   ;;  %s4876_s19 = sphi %s4915_s19, %s6198_s19   ;;  %s4872_s18 = sphi %s4913_s18, %s6197_s18  }
   0x3   : > { %p29_p1 = scmp.ge.s32.totalorder %s27_s1, 2  ;;  %p263_p2 = scmp.lt.s32.totalorder %s4880_s20, 3 }
   0x5   : > { %s6200_s1 = smov (%p29_p1, %s27_s1), 0  ;;  %p264_p3 = pnand %p3538_p0, %p263_p2 }
   0x6   : > { %v4278_v0 = vld [vmem:[%s6190_s3 + $0x4] ss:$16 sps:$4 sm:$0xff] (!%p264_p3)   ;;  %v4280_v1 = vld [vmem:[%s6190_s3 + $0xc] ss:$16 sps:$4 sm:$0xff] (!%p264_p3)   ;;  %v4282_v2 = vld [vmem:[%s6190_s3] ss:$16 sps:$4 sm:$0xff] (!%p264_p3)  }
   0x7   : > { %267 = sbr.rel (%p264_p3) target bundleno = 611 (0x263), region = 40  ;;  %1292 = vmatprep.subr.bf16.mxu0 (!%p264_p3), %v4278_v0  ;;  %v4283_v3 = vld [vmem:[%s6190_s3 + $0x8] ss:$16 sps:$4 sm:$0xff] (!%p264_p3)   ;;  %1374 = vmatprep.subr.bf16.mxu1 (!%p264_p3), %v4280_v1  ;;  %v4284_v4 = vld [vmem:[%s6190_s3 + $0x24] ss:$16 sps:$4 sm:$0xff] (!%p264_p3)   ;;  %p323_p4 = scmp.lt.s32.totalorder (!%p264_p3), %s4872_s18, 1 }
   0x8   : > { %1293 = vmatpush1.bf16.msra.mxu0 (!%p264_p3), %v4282_v2  ;;  %1375 = vmatpush1.bf16.msra.mxu1 (!%p264_p3), %v4283_v3  ;;  %v4286_v5 = vld [vmem:[%s6190_s3 + $0x2c] ss:$16 sps:$4 sm:$0xff] (!%p264_p3)   ;;  %v4288_v6 = vld [vmem:[%s6190_s3 + $0x20] ss:$16 sps:$4 sm:$0xff] (!%p264_p3)   ;;  %v4289_v7 = vld [vmem:[%s6190_s3 + $0x28] ss:$16 sps:$4 sm:$0xff] (!%p264_p3)  }
   0x9   : > { %1294 = vmatprep.subr.bf16.mxu0 (!%p264_p3), %v4284_v4  ;;  %1376 = vmatprep.subr.bf16.mxu1 (!%p264_p3), %v4286_v5  ;;  %v4290_v8 = vld [vmem:[%s6190_s3 + $0x44] ss:$16 sps:$4 sm:$0xff] (!%p264_p3)   ;;  %v4292_v9 = vld [vmem:[%s6190_s3 + $0x4c] ss:$16 sps:$4 sm:$0xff] (!%p264_p3)   ;;  %v4294_v10 = vld [vmem:[%s6190_s3 + $0x40] ss:$16 sps:$4 sm:$0xff] (!%p264_p3)  }
   0xa   : > { %v4295_v11 = vld [vmem:[%s6190_s3 + $0x48] ss:$16 sps:$4 sm:$0xff] (!%p264_p3)   ;;  %v4296_v12 = vld [vmem:[%s6190_s3 + $0x64] ss:$16 sps:$4 sm:$0xff] (!%p264_p3)   ;;  %v4298_v13 = vld [vmem:[%s6190_s3 + $0x6c] ss:$16 sps:$4 sm:$0xff] (!%p264_p3)  }
   0xb   : > { %v4300_v14 = vld [vmem:[%s6190_s3 + $0x60] ss:$16 sps:$4 sm:$0xff] (!%p264_p3)   ;;  %v4301_v15 = vld [vmem:[%s6190_s3 + $0x68] ss:$16 sps:$4 sm:$0xff] (!%p264_p3)   ;;  %v4302_v16 = vld [vmem:[%s6190_s3 + $0x84] ss:$16 sps:$4 sm:$0xff] (!%p264_p3)  }
   0xc   : > { %1295 = vmatpush1.bf16.msra.mxu0 (!%p264_p3), %v4288_v6  ;;  %1377 = vmatpush1.bf16.msra.mxu1 (!%p264_p3), %v4289_v7  ;;  %v4304_v17 = vld [vmem:[%s6190_s3 + $0x8c] ss:$16 sps:$4 sm:$0xff] (!%p264_p3)   ;;  %v4306_v18 = vld [vmem:[%s6190_s3 + $0x80] ss:$16 sps:$4 sm:$0xff] (!%p264_p3)   ;;  %v4307_v19 = vld [vmem:[%s6190_s3 + $0x88] ss:$16 sps:$4 sm:$0xff] (!%p264_p3)  }
   0xd   : > { %1296 = vmatprep.subr.bf16.mxu0 (!%p264_p3), %v4290_v8  ;;  %1378 = vmatprep.subr.bf16.mxu1 (!%p264_p3), %v4292_v9  ;;  %v4308_v20 = vld [vmem:[%s6190_s3 + $0xa4] ss:$16 sps:$4 sm:$0xff] (!%p264_p3)   ;;  %v4310_v21 = vld [vmem:[%s6190_s3 + $0xac] ss:$16 sps:$4 sm:$0xff] (!%p264_p3)   ;;  %v4312_v22 = vld [vmem:[%s6190_s3 + $0xa0] ss:$16 sps:$4 sm:$0xff] (!%p264_p3)  }
   0xe   : > { %v4313_v23 = vld [vmem:[%s6190_s3 + $0xa8] ss:$16 sps:$4 sm:$0xff]   ;;  %v4314_v24 = vld [vmem:[%s6190_s3 + $0xc4] ss:$16 sps:$4 sm:$0xff]   ;;  %v4316_v25 = vld [vmem:[%s6190_s3 + $0xcc] ss:$16 sps:$4 sm:$0xff]  }
   0xf   : > { %v4318_v26 = vld [vmem:[%s6190_s3 + $0xc0] ss:$16 sps:$4 sm:$0xff]   ;;  %v4319_v27 = vld [vmem:[%s6190_s3 + $0xc8] ss:$16 sps:$4 sm:$0xff]   ;;  %v4320_v28 = vld [vmem:[%s6190_s3 + $0xe4] ss:$16 sps:$4 sm:$0xff]  }
  0x10   : > { %1297 = vmatpush1.bf16.msra.mxu0 %v4294_v10  ;;  %1379 = vmatpush1.bf16.msra.mxu1 %v4295_v11  ;;  %v4322_v29 = vld [vmem:[%s6190_s3 + $0xec] ss:$16 sps:$4 sm:$0xff]   ;;  %v4324_v30 = vld [vmem:[%s6190_s3 + $0xe0] ss:$16 sps:$4 sm:$0xff]   ;;  %v4325_v31 = vld [vmem:[%s6190_s3 + $0xe8] ss:$16 sps:$4 sm:$0xff]  }
  0x11   : > { %1298 = vmatprep.subr.bf16.mxu0 %v4296_v12  ;;  %1380 = vmatprep.subr.bf16.mxu1 %v4298_v13  ;;  %v4326_v32 = vld [vmem:[%s6190_s3 + $0x104] ss:$16 sps:$4 sm:$0xff]   ;;  %v4328_v33 = vld [vmem:[%s6190_s3 + $0x10c] ss:$16 sps:$4 sm:$0xff]   ;;  %v4330_v34 = vld [vmem:[%s6190_s3 + $0x100] ss:$16 sps:$4 sm:$0xff]  }
  0x12   : > { %v4331_v35 = vld [vmem:[%s6190_s3 + $0x108] ss:$16 sps:$4 sm:$0xff]   ;;  %v4332_v36 = vld [vmem:[%s6190_s3 + $0x124] ss:$16 sps:$4 sm:$0xff]   ;;  %s6202_s18 = smov (!%p323_p4, %s4872_s18), 1  ;;  %v4882_v39 = vmov 0  }
  0x13   : > { %v4334_v37 = vld [vmem:[%s6190_s3 + $0x12c] ss:$16 sps:$4 sm:$0xff]   ;;  %v4336_v38 = vld [vmem:[%s6190_s3 + $0x120] ss:$16 sps:$4 sm:$0xff]   ;;  %v3548_v40 = vcombine.high %v4882_v39, %v4882_v39  ;;  %v4337_v41 = vld [vmem:[%s6190_s3 + $0x128] ss:$16 sps:$4 sm:$0xff]   ;;  %v3547_v3 = vcombine.low %v4882_v39, %v4882_v39 }
  0x14   : > { %1299 = vmatpush1.bf16.msra.mxu0 %v4300_v14  ;;  %1381 = vmatpush1.bf16.msra.mxu1 %v4301_v15  ;;  %v4338_v42 = vld [vmem:[%s6190_s3 + $0x144] ss:$16 sps:$4 sm:$0xff]   ;;  %s4203_s8 = sshll.u32 %s6202_s18, 4  ;;  %v4340_v43 = vld [vmem:[%s6190_s3 + $0x14c] ss:$16 sps:$4 sm:$0xff]   ;;  %vm488_vm0 = vcmask 1040384  }
  0x15   : > { %1300 = vmatprep.subr.bf16.mxu0 %v4302_v16  ;;  %1382 = vmatprep.subr.bf16.mxu1 %v4304_v17  ;;  %v4342_v44 = vld [vmem:[%s6190_s3 + $0x140] ss:$16 sps:$4 sm:$0xff]   ;;  %v4343_v45 = vld [vmem:[%s6190_s3 + $0x148] ss:$16 sps:$4 sm:$0xff]   ;;  %s5075_s17 = scalar_lea.vmem %s6187_s0, %s4203_s8  ;;  %v401_v46 = vshrl.u32 %v3548_v40, 16  ;;  %vm495_vm1 = vcmask 1044480   ;;  %s370_s26 = scalar_lea.vmem %s6192_s5, %s4203_s8 }
  0x16   : > { %v4344_v47 = vld [vmem:[%s6190_s3 + $0x164] ss:$16 sps:$4 sm:$0xff]   ;;  %v4346_v48 = vld [vmem:[%s6190_s3 + $0x16c] ss:$16 sps:$4 sm:$0xff]   ;;  %v473_v52 = vshll.u32 %v3548_v40, 16  ;;  %v397_v12 = vshrl.u32 %v3547_v3, 16 }
  0x17   : > { %v372_v49 = vld [vmem:[%s5075_s17] sm:$0xff]  ;;  %v5084_v50 = vrot.slane %v401_v46, 3  ;;  %vm489_vm2 = vsmask.f32 256  ;;  %v4349_v54 = vld [vmem:[%s6190_s3 + $0x168] ss:$16 sps:$4 sm:$0xff]  }
  0x18   : > { %1301 = vmatpush1.bf16.msra.mxu0 %v4306_v18  ;;  %1383 = vmatpush1.bf16.msra.mxu1 %v4307_v19  ;;  %v3552_v51 = vcombine.high %v372_v49, %v372_v49  ;;  %v4348_v53 = vld [vmem:[%s6190_s3 + $0x160] ss:$16 sps:$4 sm:$0xff]   ;;  %v4350_v55 = vld [vmem:[%s6190_s3 + $0x184] ss:$16 sps:$4 sm:$0xff]   ;;  %v4352_v56 = vld [vmem:[%s6190_s3 + $0x18c] ss:$16 sps:$4 sm:$0xff]   ;;  %v3551_v59 = vcombine.low %v372_v49, %v372_v49 }
  0x19   : > { %1302 = vmatprep.subr.bf16.mxu0 %v4308_v20  ;;  %1384 = vmatprep.subr.bf16.mxu1 %v4310_v21  ;;  %v4354_v60 = vld [vmem:[%s6190_s3 + $0x180] ss:$16 sps:$4 sm:$0xff]   ;;  %vm496_vm3 = vsmask.f32 4352  ;;  %v4355_v61 = vld [vmem:[%s6190_s3 + $0x188] ss:$16 sps:$4 sm:$0xff]   ;;  %vm5114_vm4 = vmand %vm488_vm0, %vm489_vm2 }
  0x1a   : > { %v434_v57 = vshrl.u32 %v3552_v51, 16  ;;  %v437_v58 = vshll.u32 %v3552_v51, 16  ;;  %v4356_v62 = vld [vmem:[%s6190_s3 + $0x1a4] ss:$16 sps:$4 sm:$0xff]   ;;  %v4358_v0 = vld [vmem:[%s6190_s3 + $0x1ac] ss:$16 sps:$4 sm:$0xff]   ;;  %vm5119_vm5 = vmand %vm495_vm1, %vm496_vm3 }
  0x1b   : > { %v5110_v1 = vrot.slane %v473_v52, 4  ;;  %v427_v6 = vshrl.u32 %v3551_v59, 16  ;;  %v4360_v7 = vld [vmem:[%s6190_s3 + $0x1a0] ss:$16 sps:$4 sm:$0xff]   ;;  %v4361_v9 = vld [vmem:[%s6190_s3 + $0x1a8] ss:$16 sps:$4 sm:$0xff]  }
  0x1c   : > { %1303 = vmatpush1.bf16.msra.mxu0 %v4312_v22  ;;  %1385 = vmatpush1.bf16.msra.mxu1 %v4313_v23  ;;  %v436_v63 = vrot.slane %v434_v57, 7  ;;  %v4362_v10 = vld [vmem:[%s6190_s3 + $0x1c4] ss:$16 sps:$4 sm:$0xff]   ;;  %v4364_v13 = vld [vmem:[%s6190_s3 + $0x1cc] ss:$16 sps:$4 sm:$0xff]   ;;  %v430_v15 = vshll.u32 %v3551_v59, 16 }
  0x1d   : > { %1304 = vmatprep.subr.bf16.mxu0 %v4314_v24  ;;  %1386 = vmatprep.subr.bf16.mxu1 %v4316_v25  ;;  %v429_v14 = vrot.slane %v427_v6, 7  ;;  %v4366_v16 = vld [vmem:[%s6190_s3 + $0x1c0] ss:$16 sps:$4 sm:$0xff]   ;;  %v4367_v17 = vld [vmem:[%s6190_s3 + $0x1c8] ss:$16 sps:$4 sm:$0xff]   ;;  %v469_v19 = vshll.u32 %v3547_v3, 16 }
  0x1e   : > { %v439_v4 = vor.u32 %v437_v58, %v436_v63  ;;  %v4368_v18 = vld [vmem:[%s6190_s3 + $0x1e4] ss:$16 sps:$4 sm:$0xff]   ;;  %v4370_v20 = vld [vmem:[%s6190_s3 + $0x1ec] ss:$16 sps:$4 sm:$0xff]   ;;  %v5157_v21 = vrot.slane %v397_v12, 3 }
  0x1f   : > { %v432_v22 = vor.u32 %v430_v15, %v429_v14  ;;  %v4372_v23 = vld [vmem:[%s6190_s3 + $0x1e0] ss:$16 sps:$4 sm:$0xff]   ;;  %v4373_v24 = vld [vmem:[%s6190_s3 + $0x1e8] ss:$16 sps:$4 sm:$0xff]   ;;  %v4377_v25 = vld [vmem:[%s6190_s3 + $0x204] ss:$16 sps:$4 sm:$0xff]  }
  0x20   : > { %1305 = vmatpush1.bf16.msra.mxu0 %v4318_v26  ;;  %1387 = vmatpush1.bf16.msra.mxu1 %v4319_v27  ;;  %v492_v8 = vsel %vm5114_vm4, %v5084_v50, %v439_v4  ;;  %v5168_v26 = vrot.slane %v469_v19, 4  ;;  %v4380_v27 = vld [vmem:[%s6190_s3 + $0x20c] ss:$16 sps:$4 sm:$0xff]   ;;  %v4391_v39 = vld [vmem:[%s6190_s3 + $0x248] ss:$16 sps:$4 sm:$0xff]  }
  0x21   : > { %1306 = vmatprep.subr.bf16.mxu0 %v4320_v28  ;;  %1388 = vmatprep.subr.bf16.mxu1 %v4322_v29  ;;  %v5138_v11 = vsel %vm5119_vm5, %v492_v8, %v5110_v1  ;;  %v491_v28 = vsel %vm5114_vm4, %v5157_v21, %v432_v22  ;;  %v4375_v29 = vld [vmem:[%s6190_s3 + $0x200] ss:$16 sps:$4 sm:$0xff]   ;;  %v4396_v40 = vld [vmem:[%s6190_s3 + $0x264] ss:$16 sps:$4 sm:$0xff]   ;;  %v4411_v49 = vld [vmem:[%s6190_s3 + $0x2ac] ss:$16 sps:$4 sm:$0xff]  }
  0x22   : > { %1324 = vmatprep.mubr.bf16.mxu0 %v5138_v11  ;;  %1406 = vmatprep.mubr.bf16.mxu1 %v5138_v11  ;;  %v4400_v46 = vld [vmem:[%s6190_s3 + $0x280] ss:$16 sps:$4 sm:$0xff]   ;;  %v4409_v52 = vld [vmem:[%s6190_s3 + $0x2a8] ss:$16 sps:$4 sm:$0xff]   ;;  %v4432_v2 = vld [vmem:[%s6190_s3 + $0x324] ss:$16 sps:$4 sm:$0xff]  }
  0x23   : > { %v4406_v51 = vld [vmem:[%s6190_s3 + $0x2a0] ss:$16 sps:$4 sm:$0xff]   ;;  %v4415_v57 = vld [vmem:[%s6190_s3 + $0x2c8] ss:$16 sps:$4 sm:$0xff]   ;;  %v4435_v19 = vld [vmem:[%s6190_s3 + $0x32c] ss:$16 sps:$4 sm:$0xff]  }
  0x24   : > { %1307 = vmatpush1.bf16.msra.mxu0 %v4324_v30  ;;  %1389 = vmatpush1.bf16.msra.mxu1 %v4325_v31  ;;  %v4378_v30 = vld [vmem:[%s6190_s3 + $0x208] ss:$16 sps:$4 sm:$0xff]   ;;  %v5185_v31 = vsel %vm5119_vm5, %v491_v28, %v5168_v26  ;;  %v4436_v22 = vld [vmem:[%s6190_s3 + $0x340] ss:$16 sps:$4 sm:$0xff]   ;;  %v4450_v28 = vld [vmem:[%s6190_s3 + $0x384] ss:$16 sps:$4 sm:$0xff]  }
  0x25   : > { %1308 = vmatprep.subr.bf16.mxu0 %v4326_v32  ;;  %1390 = vmatprep.subr.bf16.mxu1 %v4328_v33  ;;  %v4384_v32 = vld [vmem:[%s6190_s3 + $0x224] ss:$16 sps:$4 sm:$0xff]   ;;  %v4387_v33 = vld [vmem:[%s6190_s3 + $0x22c] ss:$16 sps:$4 sm:$0xff]   ;;  %v4421_v8 = vld [vmem:[%s6190_s3 + $0x2e8] ss:$16 sps:$4 sm:$0xff]  }
  0x26   : > { %v4433_v5 = vld [vmem:[%s6190_s3 + $0x328] ss:$16 sps:$4 sm:$0xff]  }
  0x28   : > { %1309 = vmatpush1.bf16.msra.mxu0 %v4330_v34  ;;  %1391 = vmatpush1.bf16.msra.mxu1 %v4331_v35  ;;  %v4382_v34 = vld [vmem:[%s6190_s3 + $0x220] ss:$16 sps:$4 sm:$0xff]   ;;  %v4385_v35 = vld [vmem:[%s6190_s3 + $0x228] ss:$16 sps:$4 sm:$0xff]  }
  0x29   : > { %1310 = vmatprep.subr.bf16.mxu0 %v4332_v36  ;;  %1392 = vmatprep.subr.bf16.mxu1 %v4334_v37  ;;  %v4390_v36 = vld [vmem:[%s6190_s3 + $0x244] ss:$16 sps:$4 sm:$0xff]   ;;  %v4393_v37 = vld [vmem:[%s6190_s3 + $0x24c] ss:$16 sps:$4 sm:$0xff]  }
  0x2c   : > { %1311 = vmatpush1.bf16.msra.mxu0 %v4336_v38  ;;  %1393 = vmatpush1.bf16.msra.mxu1 %v4337_v41  ;;  %v4388_v38 = vld [vmem:[%s6190_s3 + $0x240] ss:$16 sps:$4 sm:$0xff]   ;;  %v4399_v41 = vld [vmem:[%s6190_s3 + $0x26c] ss:$16 sps:$4 sm:$0xff]  }
  0x2d   : > { %1312 = vmatprep.subr.bf16.mxu0 %v4338_v42  ;;  %1394 = vmatprep.subr.bf16.mxu1 %v4340_v43  ;;  %v4394_v42 = vld [vmem:[%s6190_s3 + $0x260] ss:$16 sps:$4 sm:$0xff]   ;;  %v4397_v43 = vld [vmem:[%s6190_s3 + $0x268] ss:$16 sps:$4 sm:$0xff]  }
  0x30   : > { %1313 = vmatpush1.bf16.msra.mxu0 %v4342_v44  ;;  %1395 = vmatpush1.bf16.msra.mxu1 %v4343_v45  ;;  %v4402_v44 = vld [vmem:[%s6190_s3 + $0x284] ss:$16 sps:$4 sm:$0xff]   ;;  %v4405_v45 = vld [vmem:[%s6190_s3 + $0x28c] ss:$16 sps:$4 sm:$0xff]  }
  0x31   : > { %1314 = vmatprep.subr.bf16.mxu0 %v4344_v47  ;;  %1396 = vmatprep.subr.bf16.mxu1 %v4346_v48  ;;  %v4403_v47 = vld [vmem:[%s6190_s3 + $0x288] ss:$16 sps:$4 sm:$0xff]   ;;  %v4408_v48 = vld [vmem:[%s6190_s3 + $0x2a4] ss:$16 sps:$4 sm:$0xff]  }
  0x34   : > { %1315 = vmatpush1.bf16.msra.mxu0 %v4348_v53  ;;  %1397 = vmatpush1.bf16.msra.mxu1 %v4349_v54  ;;  %v4414_v53 = vld [vmem:[%s6190_s3 + $0x2c4] ss:$16 sps:$4 sm:$0xff]   ;;  %v4417_v54 = vld [vmem:[%s6190_s3 + $0x2cc] ss:$16 sps:$4 sm:$0xff]  }
  0x35   : > { %1316 = vmatprep.subr.bf16.mxu0 %v4350_v55  ;;  %1398 = vmatprep.subr.bf16.mxu1 %v4352_v56  ;;  %v373_v55 = vld [vmem:[%s5075_s17 + $0x8] sm:$0xff]  ;;  %v4412_v56 = vld [vmem:[%s6190_s3 + $0x2c0] ss:$16 sps:$4 sm:$0xff]  }
  0x36   : > { %v3554_v58 = vcombine.high %v373_v55, %v373_v55  ;;  %v3553_v59 = vcombine.low %v373_v55, %v373_v55 }
  0x38   : > { %1317 = vmatpush1.bf16.msra.mxu0 %v4354_v60  ;;  %1399 = vmatpush1.bf16.msra.mxu1 %v4355_v61  ;;  %v4420_v60 = vld [vmem:[%s6190_s3 + $0x2e4] ss:$16 sps:$4 sm:$0xff]   ;;  %v4423_v61 = vld [vmem:[%s6190_s3 + $0x2ec] ss:$16 sps:$4 sm:$0xff]   ;;  %v451_v63 = vshll.u32 %v3554_v58, 16  ;;  %v444_v3 = vshll.u32 %v3553_v59, 16 }
  0x39   : > { %1318 = vmatprep.subr.bf16.mxu0 %v4356_v62  ;;  %1400 = vmatprep.subr.bf16.mxu1 %v4358_v0  ;;  %v448_v62 = vshrl.u32 %v3554_v58, 16  ;;  %v441_v0 = vshrl.u32 %v3553_v59, 16  ;;  %v4488_v58 = vld [vmem:[%s6190_s3 + $0x444] ss:$16 sps:$4 sm:$0xff]   ;;  %v4491_v59 = vld [vmem:[%s6190_s3 + $0x44c] ss:$16 sps:$4 sm:$0xff]  }
  0x3b   : > { %v450_v4 = vrot.slane %v448_v62, 7  ;;  %v443_v6 = vrot.slane %v441_v0, 7  ;;  %v4494_v62 = vld [vmem:[%s6190_s3 + $0x464] ss:$16 sps:$4 sm:$0xff]   ;;  %v4492_v0 = vld [vmem:[%s6190_s3 + $0x460] ss:$16 sps:$4 sm:$0xff]  }
  0x3c   : > { %1319 = vmatpush1.bf16.msra.mxu0 %v4360_v7  ;;  %1401 = vmatpush1.bf16.msra.mxu1 %v4361_v9  ;;  %v4418_v7 = vld [vmem:[%s6190_s3 + $0x2e0] ss:$16 sps:$4 sm:$0xff]   ;;  %v4426_v9 = vld [vmem:[%s6190_s3 + $0x304] ss:$16 sps:$4 sm:$0xff]  }
  0x3d   : > { %1320 = vmatprep.subr.bf16.mxu0 %v4362_v10  ;;  %1402 = vmatprep.subr.bf16.mxu1 %v4364_v13  ;;  %v4429_v10 = vld [vmem:[%s6190_s3 + $0x30c] ss:$16 sps:$4 sm:$0xff]   ;;  %v453_v12 = vor.u32 %v451_v63, %v450_v4  ;;  %v446_v13 = vor.u32 %v444_v3, %v443_v6  ;;  %v4495_v3 = vld [vmem:[%s6190_s3 + $0x468] ss:$16 sps:$4 sm:$0xff]   ;;  %v4500_v4 = vld [vmem:[%s6190_s3 + $0x484] ss:$16 sps:$4 sm:$0xff]  }
  0x3e   : > { %v4497_v63 = vld [vmem:[%s6190_s3 + $0x46c] ss:$16 sps:$4 sm:$0xff]  }
  0x3f   : > { %v494_v14 = vsel %vm5114_vm4, %v5084_v50, %v453_v12  ;;  %v493_v15 = vsel %vm5114_vm4, %v5157_v21, %v446_v13  ;;  %v4441_v21 = vld [vmem:[%s6190_s3 + $0x34c] ss:$16 sps:$4 sm:$0xff]   ;;  %v4504_v12 = vld [vmem:[%s6190_s3 + $0x4a0] ss:$16 sps:$4 sm:$0xff]   ;;  %v4507_v13 = vld [vmem:[%s6190_s3 + $0x4a8] ss:$16 sps:$4 sm:$0xff]  }
  0x40   : > { %1321 = vmatpush1.bf16.msra.mxu0 %v4366_v16  ;;  %1403 = vmatpush1.bf16.msra.mxu1 %v4367_v17  ;;  %v4424_v16 = vld [vmem:[%s6190_s3 + $0x300] ss:$16 sps:$4 sm:$0xff]   ;;  %v4427_v17 = vld [vmem:[%s6190_s3 + $0x308] ss:$16 sps:$4 sm:$0xff]   ;;  %v5300_v50 = vsel %vm5119_vm5, %v493_v15, %v5168_v26  ;;  %v4503_v6 = vld [vmem:[%s6190_s3 + $0x48c] ss:$16 sps:$4 sm:$0xff]  }
  0x41   : > { %1322 = vmatprep.subr.bf16.mxu0 %v4368_v18  ;;  %1404 = vmatprep.subr.bf16.mxu1 %v4370_v20  ;;  %v5295_v18 = vsel %vm5119_vm5, %v494_v14, %v5110_v1  ;;  %v4430_v1 = vld [vmem:[%s6190_s3 + $0x320] ss:$16 sps:$4 sm:$0xff]   ;;  %v4438_v20 = vld [vmem:[%s6190_s3 + $0x344] ss:$16 sps:$4 sm:$0xff]   ;;  %v4515_v15 = vld [vmem:[%s6190_s3 + $0x4cc] ss:$16 sps:$4 sm:$0xff]  }
  0x42   : > { %v4442_v26 = vld [vmem:[%s6190_s3 + $0x360] ss:$16 sps:$4 sm:$0xff]   ;;  %v4512_v14 = vld [vmem:[%s6190_s3 + $0x4c4] ss:$16 sps:$4 sm:$0xff]  }
  0x44   : > { %1323 = vmatpush1.bf16.msra.mxu0 %v4372_v23  ;;  %1405 = vmatpush1.bf16.msra.mxu1 %v4373_v24  ;;  %v4439_v23 = vld [vmem:[%s6190_s3 + $0x348] ss:$16 sps:$4 sm:$0xff]   ;;  %v4444_v24 = vld [vmem:[%s6190_s3 + $0x364] ss:$16 sps:$4 sm:$0xff]  }
  0x45   : > { %1333 = vmatprep.subr.bf16.mxu0 %v4377_v25  ;;  %1415 = vmatprep.subr.bf16.mxu1 %v4380_v27  ;;  %v4447_v25 = vld [vmem:[%s6190_s3 + $0x36c] ss:$16 sps:$4 sm:$0xff]   ;;  %v4445_v27 = vld [vmem:[%s6190_s3 + $0x368] ss:$16 sps:$4 sm:$0xff]  }
  0x47   : > { %1325 = vmatmul.mubr.bf16.vlgmr.msra.gmra.mrb[0].mxu0 %v5185_v31  ;;  %1407 = vmatmul.mubr.bf16.vlgmr.msra.gmra.mrb[0].mxu1 %v5185_v31 }
  0x48   : > { %1334 = vmatpush1.bf16.msra.mxu0 %v4375_v29  ;;  %1416 = vmatpush1.bf16.msra.mxu1 %v4378_v30  ;;  %v4453_v29 = vld [vmem:[%s6190_s3 + $0x38c] ss:$16 sps:$4 sm:$0xff]   ;;  %v4448_v30 = vld [vmem:[%s6190_s3 + $0x380] ss:$16 sps:$4 sm:$0xff]  }
  0x49   : > { %1335 = vmatprep.subr.bf16.mxu0 %v4384_v32  ;;  %1417 = vmatprep.subr.bf16.mxu1 %v4387_v33  ;;  %v4451_v32 = vld [vmem:[%s6190_s3 + $0x388] ss:$16 sps:$4 sm:$0xff]   ;;  %v4456_v33 = vld [vmem:[%s6190_s3 + $0x3a4] ss:$16 sps:$4 sm:$0xff]  }
  0x4a   : > { %1365 = vmatprep.mubr.bf16.mxu0 %v5295_v18  ;;  %1447 = vmatprep.mubr.bf16.mxu1 %v5295_v18 }
  0x4c   : > { %1336 = vmatpush1.bf16.msra.mxu0 %v4382_v34  ;;  %1418 = vmatpush1.bf16.msra.mxu1 %v4385_v35  ;;  %v4459_v34 = vld [vmem:[%s6190_s3 + $0x3ac] ss:$16 sps:$4 sm:$0xff]   ;;  %v4454_v35 = vld [vmem:[%s6190_s3 + $0x3a0] ss:$16 sps:$4 sm:$0xff]  }
  0x4d   : > { %1337 = vmatprep.subr.bf16.mxu0 %v4390_v36  ;;  %1419 = vmatprep.subr.bf16.mxu1 %v4393_v37  ;;  %v4457_v36 = vld [vmem:[%s6190_s3 + $0x3a8] ss:$16 sps:$4 sm:$0xff]   ;;  %v4462_v37 = vld [vmem:[%s6190_s3 + $0x3c4] ss:$16 sps:$4 sm:$0xff]  }
  0x50   : > { %1338 = vmatpush1.bf16.msra.mxu0 %v4388_v38  ;;  %1420 = vmatpush1.bf16.msra.mxu1 %v4391_v39  ;;  %v4465_v38 = vld [vmem:[%s6190_s3 + $0x3cc] ss:$16 sps:$4 sm:$0xff]   ;;  %v4460_v39 = vld [vmem:[%s6190_s3 + $0x3c0] ss:$16 sps:$4 sm:$0xff]  }
  0x51   : > { %1339 = vmatprep.subr.bf16.mxu0 %v4396_v40  ;;  %1421 = vmatprep.subr.bf16.mxu1 %v4399_v41  ;;  %v4463_v40 = vld [vmem:[%s6190_s3 + $0x3c8] ss:$16 sps:$4 sm:$0xff]   ;;  %v4468_v41 = vld [vmem:[%s6190_s3 + $0x3e4] ss:$16 sps:$4 sm:$0xff]  }
  0x54   : > { %1340 = vmatpush1.bf16.msra.mxu0 %v4394_v42  ;;  %1422 = vmatpush1.bf16.msra.mxu1 %v4397_v43  ;;  %v4471_v42 = vld [vmem:[%s6190_s3 + $0x3ec] ss:$16 sps:$4 sm:$0xff]   ;;  %v1599_v43 = vshll.u32 %v5138_v11, 16 }
  0x55   : > { %1341 = vmatprep.subr.bf16.mxu0 %v4402_v44  ;;  %1423 = vmatprep.subr.bf16.mxu1 %v4405_v45  ;;  %v4466_v44 = vld [vmem:[%s6190_s3 + $0x3e0] ss:$16 sps:$4 sm:$0xff]   ;;  %v4469_v45 = vld [vmem:[%s6190_s3 + $0x3e8] ss:$16 sps:$4 sm:$0xff]  }
  0x58   : > { %1342 = vmatpush1.bf16.msra.mxu0 %v4400_v46  ;;  %1424 = vmatpush1.bf16.msra.mxu1 %v4403_v47  ;;  %v4475_v46 = vld [vmem:[%s6190_s3 + $0x404] ss:$16 sps:$4 sm:$0xff]   ;;  %v4478_v47 = vld [vmem:[%s6190_s3 + $0x40c] ss:$16 sps:$4 sm:$0xff]  }
  0x59   : > { %1343 = vmatprep.subr.bf16.mxu0 %v4408_v48  ;;  %1425 = vmatprep.subr.bf16.mxu1 %v4411_v49  ;;  %v1597_v48 = vshrl.u32 %v5138_v11, 16  ;;  %v1601_v49 = vrot.slane %v1599_v43, 1  ;;  %v4552_v43 = vld [vmem:[%s6190_s3 + $0x5a0] ss:$16 sps:$4 sm:$0xff]  }
  0x5b   : > { %v1602_v55 = vor.u32 %v1601_v49, %v1597_v48  ;;  %v4558_v48 = vld [vmem:[%s6190_s3 + $0x5c0] ss:$16 sps:$4 sm:$0xff]   ;;  %v4561_v49 = vld [vmem:[%s6190_s3 + $0x5c8] ss:$16 sps:$4 sm:$0xff]  }
  0x5c   : > { %1344 = vmatpush1.bf16.msra.mxu0 %v4406_v51  ;;  %1426 = vmatpush1.bf16.msra.mxu1 %v4409_v52  ;;  %v4473_v51 = vld [vmem:[%s6190_s3 + $0x400] ss:$16 sps:$4 sm:$0xff]   ;;  %v4476_v52 = vld [vmem:[%s6190_s3 + $0x408] ss:$16 sps:$4 sm:$0xff]  }
  0x5d   : > { %1345 = vmatprep.subr.bf16.mxu0 %v4414_v53  ;;  %1427 = vmatprep.subr.bf16.mxu1 %v4417_v54  ;;  %v4482_v53 = vld [vmem:[%s6190_s3 + $0x424] ss:$16 sps:$4 sm:$0xff]   ;;  %v4485_v54 = vld [vmem:[%s6190_s3 + $0x42c] ss:$16 sps:$4 sm:$0xff]  }
  0x60   : > { %1346 = vmatpush1.bf16.msra.mxu0 %v4412_v56  ;;  %1428 = vmatpush1.bf16.msra.mxu1 %v4415_v57  ;;  %v4480_v56 = vld [vmem:[%s6190_s3 + $0x420] ss:$16 sps:$4 sm:$0xff]   ;;  %v4483_v57 = vld [vmem:[%s6190_s3 + $0x428] ss:$16 sps:$4 sm:$0xff]  }
  0x61   : > { %1347 = vmatprep.subr.bf16.mxu0 %v4420_v60  ;;  %1429 = vmatprep.subr.bf16.mxu1 %v4423_v61  ;;  %v4486_v60 = vld [vmem:[%s6190_s3 + $0x440] ss:$16 sps:$4 sm:$0xff]   ;;  %v4489_v61 = vld [vmem:[%s6190_s3 + $0x448] ss:$16 sps:$4 sm:$0xff]  }
  0x64   : > { %1348 = vmatpush1.bf16.msra.mxu0 %v4418_v7  ;;  %1430 = vmatpush1.bf16.msra.mxu1 %v4421_v8  ;;  %v4498_v7 = vld [vmem:[%s6190_s3 + $0x480] ss:$16 sps:$4 sm:$0xff]   ;;  %v4501_v8 = vld [vmem:[%s6190_s3 + $0x488] ss:$16 sps:$4 sm:$0xff]  }
  0x65   : > { %1349 = vmatprep.subr.bf16.mxu0 %v4426_v9  ;;  %1431 = vmatprep.subr.bf16.mxu1 %v4429_v10  ;;  %v4506_v9 = vld [vmem:[%s6190_s3 + $0x4a4] ss:$16 sps:$4 sm:$0xff]   ;;  %v4509_v10 = vld [vmem:[%s6190_s3 + $0x4ac] ss:$16 sps:$4 sm:$0xff]  }
  0x68   : > { %1350 = vmatpush1.bf16.msra.mxu0 %v4424_v16  ;;  %1432 = vmatpush1.bf16.msra.mxu1 %v4427_v17  ;;  %v4510_v16 = vld [vmem:[%s6190_s3 + $0x4c0] ss:$16 sps:$4 sm:$0xff]   ;;  %v4513_v17 = vld [vmem:[%s6190_s3 + $0x4c8] ss:$16 sps:$4 sm:$0xff]  }
  0x69   : > { %1351 = vmatprep.subr.bf16.mxu0 %v4432_v2  ;;  %1433 = vmatprep.subr.bf16.mxu1 %v4435_v19  ;;  %v4518_v2 = vld [vmem:[%s6190_s3 + $0x4e4] ss:$16 sps:$4 sm:$0xff]   ;;  %v4521_v19 = vld [vmem:[%s6190_s3 + $0x4ec] ss:$16 sps:$4 sm:$0xff]  }
  0x6c   : > { %1352 = vmatpush1.bf16.msra.mxu0 %v4430_v1  ;;  %1434 = vmatpush1.bf16.msra.mxu1 %v4433_v5  ;;  %v4516_v1 = vld [vmem:[%s6190_s3 + $0x4e0] ss:$16 sps:$4 sm:$0xff]   ;;  %v4519_v5 = vld [vmem:[%s6190_s3 + $0x4e8] ss:$16 sps:$4 sm:$0xff]  }
  0x6d   : > { %1353 = vmatprep.subr.bf16.mxu0 %v4438_v20  ;;  %1435 = vmatprep.subr.bf16.mxu1 %v4441_v21  ;;  %v4524_v20 = vld [vmem:[%s6190_s3 + $0x504] ss:$16 sps:$4 sm:$0xff]   ;;  %v4527_v21 = vld [vmem:[%s6190_s3 + $0x50c] ss:$16 sps:$4 sm:$0xff]  }
  0x70   : > { %1354 = vmatpush1.bf16.msra.mxu0 %v4436_v22  ;;  %1436 = vmatpush1.bf16.msra.mxu1 %v4439_v23  ;;  %v4522_v22 = vld [vmem:[%s6190_s3 + $0x500] ss:$16 sps:$4 sm:$0xff]   ;;  %v4525_v23 = vld [vmem:[%s6190_s3 + $0x508] ss:$16 sps:$4 sm:$0xff]  }
  0x71   : > { %1355 = vmatprep.subr.bf16.mxu0 %v4444_v24  ;;  %1437 = vmatprep.subr.bf16.mxu1 %v4447_v25  ;;  %v4530_v24 = vld [vmem:[%s6190_s3 + $0x524] ss:$16 sps:$4 sm:$0xff]   ;;  %v4533_v25 = vld [vmem:[%s6190_s3 + $0x52c] ss:$16 sps:$4 sm:$0xff]  }
  0x74   : > { %1356 = vmatpush1.bf16.msra.mxu0 %v4442_v26  ;;  %1438 = vmatpush1.bf16.msra.mxu1 %v4445_v27  ;;  %v4528_v26 = vld [vmem:[%s6190_s3 + $0x520] ss:$16 sps:$4 sm:$0xff]   ;;  %v4531_v27 = vld [vmem:[%s6190_s3 + $0x528] ss:$16 sps:$4 sm:$0xff]  }
  0x75   : > { %1357 = vmatprep.subr.bf16.mxu0 %v4450_v28  ;;  %1439 = vmatprep.subr.bf16.mxu1 %v4453_v29  ;;  %v4536_v28 = vld [vmem:[%s6190_s3 + $0x544] ss:$16 sps:$4 sm:$0xff]   ;;  %v4539_v29 = vld [vmem:[%s6190_s3 + $0x54c] ss:$16 sps:$4 sm:$0xff]  }
  0x78   : > { %1358 = vmatpush1.bf16.msra.mxu0 %v4448_v30  ;;  %1440 = vmatpush1.bf16.msra.mxu1 %v4451_v32  ;;  %v4534_v30 = vld [vmem:[%s6190_s3 + $0x540] ss:$16 sps:$4 sm:$0xff]   ;;  %v4537_v32 = vld [vmem:[%s6190_s3 + $0x548] ss:$16 sps:$4 sm:$0xff]  }
  0x79   : > { %1359 = vmatprep.subr.bf16.mxu0 %v4456_v33  ;;  %1441 = vmatprep.subr.bf16.mxu1 %v4459_v34  ;;  %v4542_v33 = vld [vmem:[%s6190_s3 + $0x564] ss:$16 sps:$4 sm:$0xff]   ;;  %v4545_v34 = vld [vmem:[%s6190_s3 + $0x56c] ss:$16 sps:$4 sm:$0xff]  }
  0x7c   : > { %1360 = vmatpush1.bf16.msra.mxu0 %v4454_v35  ;;  %1442 = vmatpush1.bf16.msra.mxu1 %v4457_v36  ;;  %v4540_v35 = vld [vmem:[%s6190_s3 + $0x560] ss:$16 sps:$4 sm:$0xff]   ;;  %v4543_v36 = vld [vmem:[%s6190_s3 + $0x568] ss:$16 sps:$4 sm:$0xff]  }
  0x7d   : > { %1361 = vmatprep.subr.bf16.mxu0 %v4462_v37  ;;  %1443 = vmatprep.subr.bf16.mxu1 %v4465_v38  ;;  %v4548_v37 = vld [vmem:[%s6190_s3 + $0x584] ss:$16 sps:$4 sm:$0xff]   ;;  %v4551_v38 = vld [vmem:[%s6190_s3 + $0x58c] ss:$16 sps:$4 sm:$0xff]  }
  0x80   : > { %1362 = vmatpush1.bf16.msra.mxu0 %v4460_v39  ;;  %1444 = vmatpush1.bf16.msra.mxu1 %v4463_v40  ;;  %v4546_v39 = vld [vmem:[%s6190_s3 + $0x580] ss:$16 sps:$4 sm:$0xff]   ;;  %v4549_v40 = vld [vmem:[%s6190_s3 + $0x588] ss:$16 sps:$4 sm:$0xff]  }
  0x81   : > { %1363 = vmatprep.subr.bf16.mxu0 %v4468_v41  ;;  %1445 = vmatprep.subr.bf16.mxu1 %v4471_v42  ;;  %v4554_v41 = vld [vmem:[%s6190_s3 + $0x5a4] ss:$16 sps:$4 sm:$0xff]   ;;  %v4557_v42 = vld [vmem:[%s6190_s3 + $0x5ac] ss:$16 sps:$4 sm:$0xff]  }
  0x84   : > { %1364 = vmatpush1.bf16.msra.mxu0 %v4466_v44  ;;  %1446 = vmatpush1.bf16.msra.mxu1 %v4469_v45  ;;  %v4555_v44 = vld [vmem:[%s6190_s3 + $0x5a8] ss:$16 sps:$4 sm:$0xff]   ;;  %v4560_v45 = vld [vmem:[%s6190_s3 + $0x5c4] ss:$16 sps:$4 sm:$0xff]  }
  0x85   : > { %2261 = vmatprep.subr.bf16.mxu0 %v4475_v46  ;;  %2343 = vmatprep.subr.bf16.mxu1 %v4478_v47  ;;  %v4563_v46 = vld [vmem:[%s6190_s3 + $0x5cc] ss:$16 sps:$4 sm:$0xff]   ;;  %v1592_v47 = vshll.u32 %v5185_v31, 16 }
  0x87   : > { %1366 = vmatmul.mubr.bf16.vlgmr.msra.gmra.mrb[0].mxu0 %v5300_v50  ;;  %1448 = vmatmul.mubr.bf16.vlgmr.msra.gmra.mrb[0].mxu1 %v5300_v50 }
  0x88   : > { %2262 = vmatpush1.bf16.msra.mxu0 %v4473_v51  ;;  %2344 = vmatpush1.bf16.msra.mxu1 %v4476_v52  ;;  %v4566_v51 = vld [vmem:[%s6190_s3 + $0x5e4] ss:$16 sps:$4 sm:$0xff]   ;;  %v4569_v52 = vld [vmem:[%s6190_s3 + $0x5ec] ss:$16 sps:$4 sm:$0xff]  }
  0x89   : > { %2263 = vmatprep.subr.bf16.mxu0 %v4482_v53  ;;  %2345 = vmatprep.subr.bf16.mxu1 %v4485_v54  ;;  %v1613_v53 = vshll.u32 %v5295_v18, 16  ;;  %v1590_v54 = vshrl.u32 %v5185_v31, 16 }
  0x8a   : > { %2293 = vmatprep.mubr.bf16.mxu0 %v1602_v55  ;;  %2375 = vmatprep.mubr.bf16.mxu1 %v1602_v55  ;;  %v1594_v55 = vrot.slane %v1592_v47, 1  ;;  %v4636_v47 = vld [vmem:[%s6190_s3 + $0x760] ss:$16 sps:$4 sm:$0xff]  }
  0x8c   : > { %2264 = vmatpush1.bf16.msra.mxu0 %v4480_v56  ;;  %2346 = vmatpush1.bf16.msra.mxu1 %v4483_v57  ;;  %v4564_v56 = vld [vmem:[%s6190_s3 + $0x5e0] ss:$16 sps:$4 sm:$0xff]   ;;  %v4567_v57 = vld [vmem:[%s6190_s3 + $0x5e8] ss:$16 sps:$4 sm:$0xff]  }
  0x8d   : > { %2265 = vmatprep.subr.bf16.mxu0 %v4488_v58  ;;  %2347 = vmatprep.subr.bf16.mxu1 %v4491_v59  ;;  %v4572_v58 = vld [vmem:[%s6190_s3 + $0x604] ss:$16 sps:$4 sm:$0xff]   ;;  %v4575_v59 = vld [vmem:[%s6190_s3 + $0x60c] ss:$16 sps:$4 sm:$0xff]  }
  0x90   : > { %2266 = vmatpush1.bf16.msra.mxu0 %v4486_v60  ;;  %2348 = vmatpush1.bf16.msra.mxu1 %v4489_v61  ;;  %v1611_v60 = vshrl.u32 %v5295_v18, 16  ;;  %v1615_v61 = vrot.slane %v1613_v53, 1  ;;  %v4645_v53 = vld [vmem:[%s6190_s3 + $0x788] ss:$16 sps:$4 sm:$0xff]  }
  0x91   : > { %2267 = vmatprep.subr.bf16.mxu0 %v4494_v62  ;;  %2349 = vmatprep.subr.bf16.mxu1 %v4497_v63  ;;  %v1595_v62 = vor.u32 %v1594_v55, %v1590_v54  ;;  %v4570_v63 = vld [vmem:[%s6190_s3 + $0x600] ss:$16 sps:$4 sm:$0xff]   ;;  %v4650_v54 = vld [vmem:[%s6190_s3 + $0x7a4] ss:$16 sps:$4 sm:$0xff]   ;;  %v4653_v55 = vld [vmem:[%s6190_s3 + $0x7ac] ss:$16 sps:$4 sm:$0xff]  }
  0x94   : > { %2268 = vmatpush1.bf16.msra.mxu0 %v4492_v0  ;;  %2350 = vmatpush1.bf16.msra.mxu1 %v4495_v3  ;;  %v4573_v0 = vld [vmem:[%s6190_s3 + $0x608] ss:$16 sps:$4 sm:$0xff]   ;;  %v4578_v3 = vld [vmem:[%s6190_s3 + $0x624] ss:$16 sps:$4 sm:$0xff]  }
  0x95   : > { %2269 = vmatprep.subr.bf16.mxu0 %v4500_v4  ;;  %2351 = vmatprep.subr.bf16.mxu1 %v4503_v6  ;;  %v4581_v4 = vld [vmem:[%s6190_s3 + $0x62c] ss:$16 sps:$4 sm:$0xff]   ;;  %v1616_v6 = vor.u32 %v1615_v61, %v1611_v60  ;;  %v1606_v60 = vshll.u32 %v5300_v50, 16  ;;  %v4654_v61 = vld [vmem:[%s6190_s3 + $0x7c0] ss:$16 sps:$4 sm:$0xff]  }
  0x98   : > { %2270 = vmatpush1.bf16.msra.mxu0 %v4498_v7  ;;  %2352 = vmatpush1.bf16.msra.mxu1 %v4501_v8  ;;  %v4576_v7 = vld [vmem:[%s6190_s3 + $0x620] ss:$16 sps:$4 sm:$0xff]   ;;  %v4579_v8 = vld [vmem:[%s6190_s3 + $0x628] ss:$16 sps:$4 sm:$0xff]  }
  0x99   : > { %2271 = vmatprep.subr.bf16.mxu0 %v4506_v9  ;;  %2353 = vmatprep.subr.bf16.mxu1 %v4509_v10  ;;  %v4584_v9 = vld [vmem:[%s6190_s3 + $0x644] ss:$16 sps:$4 sm:$0xff]   ;;  %v4587_v10 = vld [vmem:[%s6190_s3 + $0x64c] ss:$16 sps:$4 sm:$0xff]  }
  0x9c   : > { %2272 = vmatpush1.bf16.msra.mxu0 %v4504_v12  ;;  %2354 = vmatpush1.bf16.msra.mxu1 %v4507_v13  ;;  %v4582_v12 = vld [vmem:[%s6190_s3 + $0x640] ss:$16 sps:$4 sm:$0xff]   ;;  %v4585_v13 = vld [vmem:[%s6190_s3 + $0x648] ss:$16 sps:$4 sm:$0xff]  }
  0x9d   : > { %2273 = vmatprep.subr.bf16.mxu0 %v4512_v14  ;;  %2355 = vmatprep.subr.bf16.mxu1 %v4515_v15  ;;  %v4590_v14 = vld [vmem:[%s6190_s3 + $0x664] ss:$16 sps:$4 sm:$0xff]   ;;  %v4593_v15 = vld [vmem:[%s6190_s3 + $0x66c] ss:$16 sps:$4 sm:$0xff]  }
  0xa0   : > { %2274 = vmatpush1.bf16.msra.mxu0 %v4510_v16  ;;  %2356 = vmatpush1.bf16.msra.mxu1 %v4513_v17  ;;  %v4588_v16 = vld [vmem:[%s6190_s3 + $0x660] ss:$16 sps:$4 sm:$0xff]   ;;  %v4591_v17 = vld [vmem:[%s6190_s3 + $0x668] ss:$16 sps:$4 sm:$0xff]  }
  0xa1   : > { %2275 = vmatprep.subr.bf16.mxu0 %v4518_v2  ;;  %2357 = vmatprep.subr.bf16.mxu1 %v4521_v19  ;;  %v4596_v2 = vld [vmem:[%s6190_s3 + $0x684] ss:$16 sps:$4 sm:$0xff]   ;;  %v4599_v19 = vld [vmem:[%s6190_s3 + $0x68c] ss:$16 sps:$4 sm:$0xff]  }
  0xa4   : > { %2276 = vmatpush1.bf16.msra.mxu0 %v4516_v1  ;;  %2358 = vmatpush1.bf16.msra.mxu1 %v4519_v5  ;;  %v4594_v1 = vld [vmem:[%s6190_s3 + $0x680] ss:$16 sps:$4 sm:$0xff]   ;;  %v4597_v5 = vld [vmem:[%s6190_s3 + $0x688] ss:$16 sps:$4 sm:$0xff]  }
  0xa5   : > { %2277 = vmatprep.subr.bf16.mxu0 %v4524_v20  ;;  %2359 = vmatprep.subr.bf16.mxu1 %v4527_v21  ;;  %v4602_v20 = vld [vmem:[%s6190_s3 + $0x6a4] ss:$16 sps:$4 sm:$0xff]   ;;  %v4605_v21 = vld [vmem:[%s6190_s3 + $0x6ac] ss:$16 sps:$4 sm:$0xff]  }
  0xa8   : > { %2278 = vmatpush1.bf16.msra.mxu0 %v4522_v22  ;;  %2360 = vmatpush1.bf16.msra.mxu1 %v4525_v23  ;;  %v4600_v22 = vld [vmem:[%s6190_s3 + $0x6a0] ss:$16 sps:$4 sm:$0xff]   ;;  %v4603_v23 = vld [vmem:[%s6190_s3 + $0x6a8] ss:$16 sps:$4 sm:$0xff]  }
  0xa9   : > { %2279 = vmatprep.subr.bf16.mxu0 %v4530_v24  ;;  %2361 = vmatprep.subr.bf16.mxu1 %v4533_v25  ;;  %v4608_v24 = vld [vmem:[%s6190_s3 + $0x6c4] ss:$16 sps:$4 sm:$0xff]   ;;  %v4611_v25 = vld [vmem:[%s6190_s3 + $0x6cc] ss:$16 sps:$4 sm:$0xff]  }
  0xac   : > { %2280 = vmatpush1.bf16.msra.mxu0 %v4528_v26  ;;  %2362 = vmatpush1.bf16.msra.mxu1 %v4531_v27  ;;  %v4606_v26 = vld [vmem:[%s6190_s3 + $0x6c0] ss:$16 sps:$4 sm:$0xff]   ;;  %v4609_v27 = vld [vmem:[%s6190_s3 + $0x6c8] ss:$16 sps:$4 sm:$0xff]  }
  0xad   : > { %2281 = vmatprep.subr.bf16.mxu0 %v4536_v28  ;;  %2363 = vmatprep.subr.bf16.mxu1 %v4539_v29  ;;  %v4614_v28 = vld [vmem:[%s6190_s3 + $0x6e4] ss:$16 sps:$4 sm:$0xff]   ;;  %v4617_v29 = vld [vmem:[%s6190_s3 + $0x6ec] ss:$16 sps:$4 sm:$0xff]  }
  0xb0   : > { %2282 = vmatpush1.bf16.msra.mxu0 %v4534_v30  ;;  %2364 = vmatpush1.bf16.msra.mxu1 %v4537_v32  ;;  %v4612_v30 = vld [vmem:[%s6190_s3 + $0x6e0] ss:$16 sps:$4 sm:$0xff]   ;;  %v4615_v32 = vld [vmem:[%s6190_s3 + $0x6e8] ss:$16 sps:$4 sm:$0xff]  }
  0xb1   : > { %2283 = vmatprep.subr.bf16.mxu0 %v4542_v33  ;;  %2365 = vmatprep.subr.bf16.mxu1 %v4545_v34  ;;  %v4620_v33 = vld [vmem:[%s6190_s3 + $0x704] ss:$16 sps:$4 sm:$0xff]   ;;  %v4623_v34 = vld [vmem:[%s6190_s3 + $0x70c] ss:$16 sps:$4 sm:$0xff]  }
  0xb4   : > { %2284 = vmatpush1.bf16.msra.mxu0 %v4540_v35  ;;  %2366 = vmatpush1.bf16.msra.mxu1 %v4543_v36  ;;  %v4618_v35 = vld [vmem:[%s6190_s3 + $0x700] ss:$16 sps:$4 sm:$0xff]   ;;  %v4621_v36 = vld [vmem:[%s6190_s3 + $0x708] ss:$16 sps:$4 sm:$0xff]  }
  0xb5   : > { %2285 = vmatprep.subr.bf16.mxu0 %v4548_v37  ;;  %2367 = vmatprep.subr.bf16.mxu1 %v4551_v38  ;;  %v4626_v37 = vld [vmem:[%s6190_s3 + $0x724] ss:$16 sps:$4 sm:$0xff]   ;;  %v4629_v38 = vld [vmem:[%s6190_s3 + $0x72c] ss:$16 sps:$4 sm:$0xff]  }
  0xb8   : > { %2286 = vmatpush1.bf16.msra.mxu0 %v4546_v39  ;;  %2368 = vmatpush1.bf16.msra.mxu1 %v4549_v40  ;;  %v4624_v39 = vld [vmem:[%s6190_s3 + $0x720] ss:$16 sps:$4 sm:$0xff]   ;;  %v4627_v40 = vld [vmem:[%s6190_s3 + $0x728] ss:$16 sps:$4 sm:$0xff]  }
  0xb9   : > { %2287 = vmatprep.subr.bf16.mxu0 %v4554_v41  ;;  %2369 = vmatprep.subr.bf16.mxu1 %v4557_v42  ;;  %v4632_v41 = vld [vmem:[%s6190_s3 + $0x744] ss:$16 sps:$4 sm:$0xff]   ;;  %v4635_v42 = vld [vmem:[%s6190_s3 + $0x74c] ss:$16 sps:$4 sm:$0xff]  }
  0xbc   : > { %2288 = vmatpush1.bf16.msra.mxu0 %v4552_v43  ;;  %2370 = vmatpush1.bf16.msra.mxu1 %v4555_v44  ;;  %v4630_v43 = vld [vmem:[%s6190_s3 + $0x740] ss:$16 sps:$4 sm:$0xff]   ;;  %v4633_v44 = vld [vmem:[%s6190_s3 + $0x748] ss:$16 sps:$4 sm:$0xff]  }
  0xbd   : > { %2289 = vmatprep.subr.bf16.mxu0 %v4560_v45  ;;  %2371 = vmatprep.subr.bf16.mxu1 %v4563_v46  ;;  %v4638_v45 = vld [vmem:[%s6190_s3 + $0x764] ss:$16 sps:$4 sm:$0xff]   ;;  %v4641_v46 = vld [vmem:[%s6190_s3 + $0x76c] ss:$16 sps:$4 sm:$0xff]  }
  0xc0   : > { %2290 = vmatpush1.bf16.msra.mxu0 %v4558_v48  ;;  %2372 = vmatpush1.bf16.msra.mxu1 %v4561_v49  ;;  %v4639_v48 = vld [vmem:[%s6190_s3 + $0x768] ss:$16 sps:$4 sm:$0xff]   ;;  %v4644_v49 = vld [vmem:[%s6190_s3 + $0x784] ss:$16 sps:$4 sm:$0xff]  }
  0xc1   : > { %2291 = vmatprep.subr.bf16.mxu0 %v4566_v51  ;;  %2373 = vmatprep.subr.bf16.mxu1 %v4569_v52  ;;  %v4647_v51 = vld [vmem:[%s6190_s3 + $0x78c] ss:$16 sps:$4 sm:$0xff]   ;;  %v4642_v52 = vld [vmem:[%s6190_s3 + $0x780] ss:$16 sps:$4 sm:$0xff]  }
  0xc4   : > { %2292 = vmatpush1.bf16.msra.mxu0 %v4564_v56  ;;  %2374 = vmatpush1.bf16.msra.mxu1 %v4567_v57  ;;  %v4648_v56 = vld [vmem:[%s6190_s3 + $0x7a0] ss:$16 sps:$4 sm:$0xff]   ;;  %v4651_v57 = vld [vmem:[%s6190_s3 + $0x7a8] ss:$16 sps:$4 sm:$0xff]  }
  0xc5   : > { %2302 = vmatprep.subr.bf16.mxu0 %v4572_v58  ;;  %2384 = vmatprep.subr.bf16.mxu1 %v4575_v59  ;;  %v4656_v58 = vld [vmem:[%s6190_s3 + $0x7c4] ss:$16 sps:$4 sm:$0xff]   ;;  %v4659_v59 = vld [vmem:[%s6190_s3 + $0x7cc] ss:$16 sps:$4 sm:$0xff]  }
  0xc7   : > { %2294 = vmatmul.mubr.bf16.vlgmr.msra.gmra.mrb[0].mxu0 %v1595_v62  ;;  %2376 = vmatmul.mubr.bf16.vlgmr.msra.gmra.mrb[0].mxu1 %v1595_v62  ;;  %v4657_v62 = vld [vmem:[%s6190_s3 + $0x7c8] ss:$16 sps:$4 sm:$0xff]  }
  0xc8   : > { %2303 = vmatpush1.bf16.msra.mxu0 %v4570_v63  ;;  %2385 = vmatpush1.bf16.msra.mxu1 %v4573_v0  ;;  %v4662_v63 = vld [vmem:[%s6190_s3 + $0x7e4] ss:$16 sps:$4 sm:$0xff]   ;;  %v4665_v0 = vld [vmem:[%s6190_s3 + $0x7ec] ss:$16 sps:$4 sm:$0xff]  }
  0xc9   : > { %2304 = vmatprep.subr.bf16.mxu0 %v4578_v3  ;;  %2386 = vmatprep.subr.bf16.mxu1 %v4581_v4  ;;  %v1604_v3 = vshrl.u32 %v5300_v50, 16  ;;  %v1608_v4 = vrot.slane %v1606_v60, 1  ;;  %v4738_v60 = vld [vmem:[%s6190_s3 + $0x980] ss:$16 sps:$4 sm:$0xff]  }
  0xca   : > { %2334 = vmatprep.mubr.bf16.mxu0 %v1616_v6  ;;  %2416 = vmatprep.mubr.bf16.mxu1 %v1616_v6  ;;  %v4660_v6 = vld [vmem:[%s6190_s3 + $0x7e0] ss:$16 sps:$4 sm:$0xff]  }
  0xcc   : > { %2305 = vmatpush1.bf16.msra.mxu0 %v4576_v7  ;;  %2387 = vmatpush1.bf16.msra.mxu1 %v4579_v8  ;;  %v4663_v7 = vld [vmem:[%s6190_s3 + $0x7e8] ss:$16 sps:$4 sm:$0xff]   ;;  %v4668_v8 = vld [vmem:[%s6190_s3 + $0x804] ss:$16 sps:$4 sm:$0xff]  }
  0xcd   : > { %2306 = vmatprep.subr.bf16.mxu0 %v4584_v9  ;;  %2388 = vmatprep.subr.bf16.mxu1 %v4587_v10  ;;  %v4671_v9 = vld [vmem:[%s6190_s3 + $0x80c] ss:$16 sps:$4 sm:$0xff]   ;;  %v1609_v10 = vor.u32 %v1608_v4, %v1604_v3  ;;  %v4747_v3 = vld [vmem:[%s6190_s3 + $0x9a8] ss:$16 sps:$4 sm:$0xff]   ;;  %v4752_v4 = vld [vmem:[%s6190_s3 + $0x9c4] ss:$16 sps:$4 sm:$0xff]  }
  0xd0   : > { %2307 = vmatpush1.bf16.msra.mxu0 %v4582_v12  ;;  %2389 = vmatpush1.bf16.msra.mxu1 %v4585_v13  ;;  %v4666_v12 = vld [vmem:[%s6190_s3 + $0x800] ss:$16 sps:$4 sm:$0xff]   ;;  %v4669_v13 = vld [vmem:[%s6190_s3 + $0x808] ss:$16 sps:$4 sm:$0xff]  }
  0xd1   : > { %2308 = vmatprep.subr.bf16.mxu0 %v4590_v14  ;;  %2390 = vmatprep.subr.bf16.mxu1 %v4593_v15  ;;  %v4674_v14 = vld [vmem:[%s6190_s3 + $0x824] ss:$16 sps:$4 sm:$0xff]   ;;  %v4677_v15 = vld [vmem:[%s6190_s3 + $0x82c] ss:$16 sps:$4 sm:$0xff]  }
  0xd4   : > { %2309 = vmatpush1.bf16.msra.mxu0 %v4588_v16  ;;  %2391 = vmatpush1.bf16.msra.mxu1 %v4591_v17  ;;  %v2563_v16 = vrot.slane %v5138_v11, 1  ;;  %v4672_v17 = vld [vmem:[%s6190_s3 + $0x820] ss:$16 sps:$4 sm:$0xff]   ;;  %v4683_v11 = vld [vmem:[%s6190_s3 + $0x84c] ss:$16 sps:$4 sm:$0xff]  }
  0xd5   : > { %2310 = vmatprep.subr.bf16.mxu0 %v4596_v2  ;;  %2392 = vmatprep.subr.bf16.mxu1 %v4599_v19  ;;  %v4675_v2 = vld [vmem:[%s6190_s3 + $0x828] ss:$16 sps:$4 sm:$0xff]   ;;  %v4680_v19 = vld [vmem:[%s6190_s3 + $0x844] ss:$16 sps:$4 sm:$0xff]  }
  0xd8   : > { %2311 = vmatpush1.bf16.msra.mxu0 %v4594_v1  ;;  %2393 = vmatpush1.bf16.msra.mxu1 %v4597_v5  ;;  %v4678_v1 = vld [vmem:[%s6190_s3 + $0x840] ss:$16 sps:$4 sm:$0xff]   ;;  %v4681_v5 = vld [vmem:[%s6190_s3 + $0x848] ss:$16 sps:$4 sm:$0xff]  }
  0xd9   : > { %2312 = vmatprep.subr.bf16.mxu0 %v4602_v20  ;;  %2394 = vmatprep.subr.bf16.mxu1 %v4605_v21  ;;  %v4686_v20 = vld [vmem:[%s6190_s3 + $0x864] ss:$16 sps:$4 sm:$0xff]   ;;  %v4689_v21 = vld [vmem:[%s6190_s3 + $0x86c] ss:$16 sps:$4 sm:$0xff]  }
  0xdc   : > { %2313 = vmatpush1.bf16.msra.mxu0 %v4600_v22  ;;  %2395 = vmatpush1.bf16.msra.mxu1 %v4603_v23  ;;  %v4684_v22 = vld [vmem:[%s6190_s3 + $0x860] ss:$16 sps:$4 sm:$0xff]   ;;  %v4687_v23 = vld [vmem:[%s6190_s3 + $0x868] ss:$16 sps:$4 sm:$0xff]  }
  0xdd   : > { %2314 = vmatprep.subr.bf16.mxu0 %v4608_v24  ;;  %2396 = vmatprep.subr.bf16.mxu1 %v4611_v25  ;;  %v4692_v24 = vld [vmem:[%s6190_s3 + $0x884] ss:$16 sps:$4 sm:$0xff]   ;;  %v4695_v25 = vld [vmem:[%s6190_s3 + $0x88c] ss:$16 sps:$4 sm:$0xff]  }
  0xe0   : > { %2315 = vmatpush1.bf16.msra.mxu0 %v4606_v26  ;;  %2397 = vmatpush1.bf16.msra.mxu1 %v4609_v27  ;;  %v4690_v26 = vld [vmem:[%s6190_s3 + $0x880] ss:$16 sps:$4 sm:$0xff]   ;;  %v4693_v27 = vld [vmem:[%s6190_s3 + $0x888] ss:$16 sps:$4 sm:$0xff]  }
  0xe1   : > { %2316 = vmatprep.subr.bf16.mxu0 %v4614_v28  ;;  %2398 = vmatprep.subr.bf16.mxu1 %v4617_v29  ;;  %v4698_v28 = vld [vmem:[%s6190_s3 + $0x8a4] ss:$16 sps:$4 sm:$0xff]   ;;  %v4701_v29 = vld [vmem:[%s6190_s3 + $0x8ac] ss:$16 sps:$4 sm:$0xff]  }
  0xe4   : > { %2317 = vmatpush1.bf16.msra.mxu0 %v4612_v30  ;;  %2399 = vmatpush1.bf16.msra.mxu1 %v4615_v32  ;;  %v4696_v30 = vld [vmem:[%s6190_s3 + $0x8a0] ss:$16 sps:$4 sm:$0xff]   ;;  %v4699_v32 = vld [vmem:[%s6190_s3 + $0x8a8] ss:$16 sps:$4 sm:$0xff]  }
  0xe5   : > { %2318 = vmatprep.subr.bf16.mxu0 %v4620_v33  ;;  %2400 = vmatprep.subr.bf16.mxu1 %v4623_v34  ;;  %v4704_v33 = vld [vmem:[%s6190_s3 + $0x8c4] ss:$16 sps:$4 sm:$0xff]   ;;  %v4707_v34 = vld [vmem:[%s6190_s3 + $0x8cc] ss:$16 sps:$4 sm:$0xff]  }
  0xe8   : > { %2319 = vmatpush1.bf16.msra.mxu0 %v4618_v35  ;;  %2401 = vmatpush1.bf16.msra.mxu1 %v4621_v36  ;;  %v4702_v35 = vld [vmem:[%s6190_s3 + $0x8c0] ss:$16 sps:$4 sm:$0xff]   ;;  %v4705_v36 = vld [vmem:[%s6190_s3 + $0x8c8] ss:$16 sps:$4 sm:$0xff]  }
  0xe9   : > { %2320 = vmatprep.subr.bf16.mxu0 %v4626_v37  ;;  %2402 = vmatprep.subr.bf16.mxu1 %v4629_v38  ;;  %v4710_v37 = vld [vmem:[%s6190_s3 + $0x8e4] ss:$16 sps:$4 sm:$0xff]   ;;  %v4713_v38 = vld [vmem:[%s6190_s3 + $0x8ec] ss:$16 sps:$4 sm:$0xff]  }
  0xec   : > { %2321 = vmatpush1.bf16.msra.mxu0 %v4624_v39  ;;  %2403 = vmatpush1.bf16.msra.mxu1 %v4627_v40  ;;  %v4708_v39 = vld [vmem:[%s6190_s3 + $0x8e0] ss:$16 sps:$4 sm:$0xff]   ;;  %v4711_v40 = vld [vmem:[%s6190_s3 + $0x8e8] ss:$16 sps:$4 sm:$0xff]  }
  0xed   : > { %2322 = vmatprep.subr.bf16.mxu0 %v4632_v41  ;;  %2404 = vmatprep.subr.bf16.mxu1 %v4635_v42  ;;  %v4716_v41 = vld [vmem:[%s6190_s3 + $0x904] ss:$16 sps:$4 sm:$0xff]   ;;  %v4719_v42 = vld [vmem:[%s6190_s3 + $0x90c] ss:$16 sps:$4 sm:$0xff]  }
  0xf0   : > { %2323 = vmatpush1.bf16.msra.mxu0 %v4630_v43  ;;  %2405 = vmatpush1.bf16.msra.mxu1 %v4633_v44  ;;  %v4714_v43 = vld [vmem:[%s6190_s3 + $0x900] ss:$16 sps:$4 sm:$0xff]   ;;  %v4717_v44 = vld [vmem:[%s6190_s3 + $0x908] ss:$16 sps:$4 sm:$0xff]  }
  0xf1   : > { %2324 = vmatprep.subr.bf16.mxu0 %v4638_v45  ;;  %2406 = vmatprep.subr.bf16.mxu1 %v4641_v46  ;;  %v4722_v45 = vld [vmem:[%s6190_s3 + $0x924] ss:$16 sps:$4 sm:$0xff]   ;;  %v4725_v46 = vld [vmem:[%s6190_s3 + $0x92c] ss:$16 sps:$4 sm:$0xff]  }
  0xf4   : > { %2325 = vmatpush1.bf16.msra.mxu0 %v4636_v47  ;;  %2407 = vmatpush1.bf16.msra.mxu1 %v4639_v48  ;;  %v4720_v47 = vld [vmem:[%s6190_s3 + $0x920] ss:$16 sps:$4 sm:$0xff]   ;;  %v4723_v48 = vld [vmem:[%s6190_s3 + $0x928] ss:$16 sps:$4 sm:$0xff]  }
  0xf5   : > { %2326 = vmatprep.subr.bf16.mxu0 %v4644_v49  ;;  %2408 = vmatprep.subr.bf16.mxu1 %v4647_v51  ;;  %v4728_v49 = vld [vmem:[%s6190_s3 + $0x944] ss:$16 sps:$4 sm:$0xff]   ;;  %v4731_v51 = vld [vmem:[%s6190_s3 + $0x94c] ss:$16 sps:$4 sm:$0xff]  }
  0xf8   : > { %2327 = vmatpush1.bf16.msra.mxu0 %v4642_v52  ;;  %2409 = vmatpush1.bf16.msra.mxu1 %v4645_v53  ;;  %v4726_v52 = vld [vmem:[%s6190_s3 + $0x940] ss:$16 sps:$4 sm:$0xff]   ;;  %v4729_v53 = vld [vmem:[%s6190_s3 + $0x948] ss:$16 sps:$4 sm:$0xff]  }
  0xf9   : > { %2328 = vmatprep.subr.bf16.mxu0 %v4650_v54  ;;  %2410 = vmatprep.subr.bf16.mxu1 %v4653_v55  ;;  %v4734_v54 = vld [vmem:[%s6190_s3 + $0x964] ss:$16 sps:$4 sm:$0xff]   ;;  %v4737_v55 = vld [vmem:[%s6190_s3 + $0x96c] ss:$16 sps:$4 sm:$0xff]  }
  0xfc   : > { %2329 = vmatpush1.bf16.msra.mxu0 %v4648_v56  ;;  %2411 = vmatpush1.bf16.msra.mxu1 %v4651_v57  ;;  %v4732_v56 = vld [vmem:[%s6190_s3 + $0x960] ss:$16 sps:$4 sm:$0xff]   ;;  %v4735_v57 = vld [vmem:[%s6190_s3 + $0x968] ss:$16 sps:$4 sm:$0xff]  }
  0xfd   : > { %2330 = vmatprep.subr.bf16.mxu0 %v4656_v58  ;;  %2412 = vmatprep.subr.bf16.mxu1 %v4659_v59  ;;  %v4740_v58 = vld [vmem:[%s6190_s3 + $0x984] ss:$16 sps:$4 sm:$0xff]   ;;  %v4743_v59 = vld [vmem:[%s6190_s3 + $0x98c] ss:$16 sps:$4 sm:$0xff]  }
 0x100   : > { %2331 = vmatpush1.bf16.msra.mxu0 %v4654_v61  ;;  %2413 = vmatpush1.bf16.msra.mxu1 %v4657_v62  ;;  %v4741_v61 = vld [vmem:[%s6190_s3 + $0x988] ss:$16 sps:$4 sm:$0xff]   ;;  %v4746_v62 = vld [vmem:[%s6190_s3 + $0x9a4] ss:$16 sps:$4 sm:$0xff]  }
 0x101   : > { %2332 = vmatprep.subr.bf16.mxu0 %v4662_v63  ;;  %2414 = vmatprep.subr.bf16.mxu1 %v4665_v0  ;;  %v4749_v63 = vld [vmem:[%s6190_s3 + $0x9ac] ss:$16 sps:$4 sm:$0xff]   ;;  %v4744_v0 = vld [vmem:[%s6190_s3 + $0x9a0] ss:$16 sps:$4 sm:$0xff]  }
 0x104   : > { %2333 = vmatpush1.bf16.msra.mxu0 %v4660_v6  ;;  %2415 = vmatpush1.bf16.msra.mxu1 %v4663_v7  ;;  %v4755_v6 = vld [vmem:[%s6190_s3 + $0x9cc] ss:$16 sps:$4 sm:$0xff]   ;;  %v4750_v7 = vld [vmem:[%s6190_s3 + $0x9c0] ss:$16 sps:$4 sm:$0xff]  }
 0x105   : > { %3210 = vmatprep.subr.bf16.mxu0 %v4668_v8  ;;  %3292 = vmatprep.subr.bf16.mxu1 %v4671_v9  ;;  %v4753_v8 = vld [vmem:[%s6190_s3 + $0x9c8] ss:$16 sps:$4 sm:$0xff]   ;;  %v4758_v9 = vld [vmem:[%s6190_s3 + $0x9e4] ss:$16 sps:$4 sm:$0xff]  }
 0x107   : > { %2335 = vmatmul.mubr.bf16.vlgmr.msra.gmra.mrb[0].mxu0 %v1609_v10  ;;  %2417 = vmatmul.mubr.bf16.vlgmr.msra.gmra.mrb[0].mxu1 %v1609_v10  ;;  %v4761_v10 = vld [vmem:[%s6190_s3 + $0x9ec] ss:$16 sps:$4 sm:$0xff]  }
 0x108   : > { %3211 = vmatpush1.bf16.msra.mxu0 %v4666_v12  ;;  %3293 = vmatpush1.bf16.msra.mxu1 %v4669_v13  ;;  %v4756_v12 = vld [vmem:[%s6190_s3 + $0x9e0] ss:$16 sps:$4 sm:$0xff]   ;;  %v4759_v13 = vld [vmem:[%s6190_s3 + $0x9e8] ss:$16 sps:$4 sm:$0xff]  }
 0x109   : > { %3212 = vmatprep.subr.bf16.mxu0 %v4674_v14  ;;  %3294 = vmatprep.subr.bf16.mxu1 %v4677_v15  ;;  %v4764_v14 = vld [vmem:[%s6190_s3 + $0xa04] ss:$16 sps:$4 sm:$0xff]   ;;  %v4767_v15 = vld [vmem:[%s6190_s3 + $0xa0c] ss:$16 sps:$4 sm:$0xff]  }
 0x10a   : > { %3242 = vmatprep.mubr.bf16.mxu0 %v2563_v16  ;;  %3324 = vmatprep.mubr.bf16.mxu1 %v2563_v16  ;;  %v2562_v16 = vrot.slane %v5185_v31, 1  ;;  %v4773_v31 = vld [vmem:[%s6190_s3 + $0xa2c] ss:$16 sps:$4 sm:$0xff]  }
 0x10c   : > { %3213 = vmatpush1.bf16.msra.mxu0 %v4672_v17  ;;  %3295 = vmatpush1.bf16.msra.mxu1 %v4675_v2  ;;  %v4762_v17 = vld [vmem:[%s6190_s3 + $0xa00] ss:$16 sps:$4 sm:$0xff]   ;;  %v4765_v2 = vld [vmem:[%s6190_s3 + $0xa08] ss:$16 sps:$4 sm:$0xff]  }
 0x10d   : > { %3214 = vmatprep.subr.bf16.mxu0 %v4680_v19  ;;  %3296 = vmatprep.subr.bf16.mxu1 %v4683_v11  ;;  %v4770_v19 = vld [vmem:[%s6190_s3 + $0xa24] ss:$16 sps:$4 sm:$0xff]   ;;  %v2565_v11 = vrot.slane %v5295_v18, 1  ;;  %v4779_v18 = vld [vmem:[%s6190_s3 + $0xa4c] ss:$16 sps:$4 sm:$0xff]  }
 0x110   : > { %3215 = vmatpush1.bf16.msra.mxu0 %v4678_v1  ;;  %3297 = vmatpush1.bf16.msra.mxu1 %v4681_v5  ;;  %v4768_v1 = vld [vmem:[%s6190_s3 + $0xa20] ss:$16 sps:$4 sm:$0xff]   ;;  %v4771_v5 = vld [vmem:[%s6190_s3 + $0xa28] ss:$16 sps:$4 sm:$0xff]  }
 0x111   : > { %3216 = vmatprep.subr.bf16.mxu0 %v4686_v20  ;;  %3298 = vmatprep.subr.bf16.mxu1 %v4689_v21  ;;  %v4776_v20 = vld [vmem:[%s6190_s3 + $0xa44] ss:$16 sps:$4 sm:$0xff]   ;;  %v4774_v21 = vld [vmem:[%s6190_s3 + $0xa40] ss:$16 sps:$4 sm:$0xff]  }
 0x114   : > { %3217 = vmatpush1.bf16.msra.mxu0 %v4684_v22  ;;  %3299 = vmatpush1.bf16.msra.mxu1 %v4687_v23  ;;  %v4777_v22 = vld [vmem:[%s6190_s3 + $0xa48] ss:$16 sps:$4 sm:$0xff]   ;;  %v4782_v23 = vld [vmem:[%s6190_s3 + $0xa64] ss:$16 sps:$4 sm:$0xff]  }
 0x115   : > { %3218 = vmatprep.subr.bf16.mxu0 %v4692_v24  ;;  %3300 = vmatprep.subr.bf16.mxu1 %v4695_v25  ;;  %v4785_v24 = vld [vmem:[%s6190_s3 + $0xa6c] ss:$16 sps:$4 sm:$0xff]   ;;  %v4780_v25 = vld [vmem:[%s6190_s3 + $0xa60] ss:$16 sps:$4 sm:$0xff]  }
 0x118   : > { %3219 = vmatpush1.bf16.msra.mxu0 %v4690_v26  ;;  %3301 = vmatpush1.bf16.msra.mxu1 %v4693_v27  ;;  %v4783_v26 = vld [vmem:[%s6190_s3 + $0xa68] ss:$16 sps:$4 sm:$0xff]   ;;  %v4788_v27 = vld [vmem:[%s6190_s3 + $0xa84] ss:$16 sps:$4 sm:$0xff]  }
 0x119   : > { %3220 = vmatprep.subr.bf16.mxu0 %v4698_v28  ;;  %3302 = vmatprep.subr.bf16.mxu1 %v4701_v29  ;;  %v4791_v28 = vld [vmem:[%s6190_s3 + $0xa8c] ss:$16 sps:$4 sm:$0xff]   ;;  %v4786_v29 = vld [vmem:[%s6190_s3 + $0xa80] ss:$16 sps:$4 sm:$0xff]  }
 0x11c   : > { %3221 = vmatpush1.bf16.msra.mxu0 %v4696_v30  ;;  %3303 = vmatpush1.bf16.msra.mxu1 %v4699_v32  ;;  %v4789_v30 = vld [vmem:[%s6190_s3 + $0xa88] ss:$16 sps:$4 sm:$0xff]   ;;  %v4794_v32 = vld [vmem:[%s6190_s3 + $0xaa4] ss:$16 sps:$4 sm:$0xff]  }
 0x11d   : > { %3222 = vmatprep.subr.bf16.mxu0 %v4704_v33  ;;  %3304 = vmatprep.subr.bf16.mxu1 %v4707_v34  ;;  %v4797_v33 = vld [vmem:[%s6190_s3 + $0xaac] ss:$16 sps:$4 sm:$0xff]   ;;  %v4792_v34 = vld [vmem:[%s6190_s3 + $0xaa0] ss:$16 sps:$4 sm:$0xff]  }
 0x120   : > { %3223 = vmatpush1.bf16.msra.mxu0 %v4702_v35  ;;  %3305 = vmatpush1.bf16.msra.mxu1 %v4705_v36  ;;  %v4795_v35 = vld [vmem:[%s6190_s3 + $0xaa8] ss:$16 sps:$4 sm:$0xff]   ;;  %v4800_v36 = vld [vmem:[%s6190_s3 + $0xac4] ss:$16 sps:$4 sm:$0xff]  }
 0x121   : > { %3224 = vmatprep.subr.bf16.mxu0 %v4710_v37  ;;  %3306 = vmatprep.subr.bf16.mxu1 %v4713_v38  ;;  %v4803_v37 = vld [vmem:[%s6190_s3 + $0xacc] ss:$16 sps:$4 sm:$0xff]   ;;  %v4798_v38 = vld [vmem:[%s6190_s3 + $0xac0] ss:$16 sps:$4 sm:$0xff]  }
 0x124   : > { %3225 = vmatpush1.bf16.msra.mxu0 %v4708_v39  ;;  %3307 = vmatpush1.bf16.msra.mxu1 %v4711_v40  ;;  %v4801_v39 = vld [vmem:[%s6190_s3 + $0xac8] ss:$16 sps:$4 sm:$0xff]   ;;  %v4806_v40 = vld [vmem:[%s6190_s3 + $0xae4] ss:$16 sps:$4 sm:$0xff]  }
 0x125   : > { %3226 = vmatprep.subr.bf16.mxu0 %v4716_v41  ;;  %3308 = vmatprep.subr.bf16.mxu1 %v4719_v42  ;;  %v4809_v41 = vld [vmem:[%s6190_s3 + $0xaec] ss:$16 sps:$4 sm:$0xff]   ;;  %v4804_v42 = vld [vmem:[%s6190_s3 + $0xae0] ss:$16 sps:$4 sm:$0xff]  }
 0x128   : > { %3227 = vmatpush1.bf16.msra.mxu0 %v4714_v43  ;;  %3309 = vmatpush1.bf16.msra.mxu1 %v4717_v44  ;;  %v4807_v43 = vld [vmem:[%s6190_s3 + $0xae8] ss:$16 sps:$4 sm:$0xff]   ;;  %v4812_v44 = vld [vmem:[%s6190_s3 + $0xb04] ss:$16 sps:$4 sm:$0xff]  }
 0x129   : > { %3228 = vmatprep.subr.bf16.mxu0 %v4722_v45  ;;  %3310 = vmatprep.subr.bf16.mxu1 %v4725_v46  ;;  %v4815_v45 = vld [vmem:[%s6190_s3 + $0xb0c] ss:$16 sps:$4 sm:$0xff]   ;;  %v4810_v46 = vld [vmem:[%s6190_s3 + $0xb00] ss:$16 sps:$4 sm:$0xff]  }
 0x12c   : > { %3229 = vmatpush1.bf16.msra.mxu0 %v4720_v47  ;;  %3311 = vmatpush1.bf16.msra.mxu1 %v4723_v48  ;;  %v4813_v47 = vld [vmem:[%s6190_s3 + $0xb08] ss:$16 sps:$4 sm:$0xff]   ;;  %v4818_v48 = vld [vmem:[%s6190_s3 + $0xb24] ss:$16 sps:$4 sm:$0xff]  }
 0x12d   : > { %3230 = vmatprep.subr.bf16.mxu0 %v4728_v49  ;;  %3312 = vmatprep.subr.bf16.mxu1 %v4731_v51  ;;  %v4821_v49 = vld [vmem:[%s6190_s3 + $0xb2c] ss:$16 sps:$4 sm:$0xff]   ;;  %v4816_v51 = vld [vmem:[%s6190_s3 + $0xb20] ss:$16 sps:$4 sm:$0xff]  }
 0x130   : > { %3231 = vmatpush1.bf16.msra.mxu0 %v4726_v52  ;;  %3313 = vmatpush1.bf16.msra.mxu1 %v4729_v53  ;;  %v4819_v52 = vld [vmem:[%s6190_s3 + $0xb28] ss:$16 sps:$4 sm:$0xff]   ;;  %v4824_v53 = vld [vmem:[%s6190_s3 + $0xb44] ss:$16 sps:$4 sm:$0xff]  }
 0x131   : > { %3232 = vmatprep.subr.bf16.mxu0 %v4734_v54  ;;  %3314 = vmatprep.subr.bf16.mxu1 %v4737_v55  ;;  %v4827_v54 = vld [vmem:[%s6190_s3 + $0xb4c] ss:$16 sps:$4 sm:$0xff]   ;;  %v4822_v55 = vld [vmem:[%s6190_s3 + $0xb40] ss:$16 sps:$4 sm:$0xff]  }
 0x134   : > { %3233 = vmatpush1.bf16.msra.mxu0 %v4732_v56  ;;  %3315 = vmatpush1.bf16.msra.mxu1 %v4735_v57  ;;  %v4825_v56 = vld [vmem:[%s6190_s3 + $0xb48] ss:$16 sps:$4 sm:$0xff]   ;;  %v4830_v57 = vld [vmem:[%s6190_s3 + $0xb64] ss:$16 sps:$4 sm:$0xff]  }
 0x135   : > { %3234 = vmatprep.subr.bf16.mxu0 %v4740_v58  ;;  %3316 = vmatprep.subr.bf16.mxu1 %v4743_v59  ;;  %v4833_v58 = vld [vmem:[%s6190_s3 + $0xb6c] ss:$16 sps:$4 sm:$0xff]   ;;  %v4828_v59 = vld [vmem:[%s6190_s3 + $0xb60] ss:$16 sps:$4 sm:$0xff]  }
 0x138   : > { %3235 = vmatpush1.bf16.msra.mxu0 %v4738_v60  ;;  %3317 = vmatpush1.bf16.msra.mxu1 %v4741_v61  ;;  %v4831_v60 = vld [vmem:[%s6190_s3 + $0xb68] ss:$16 sps:$4 sm:$0xff]   ;;  %v4836_v61 = vld [vmem:[%s6190_s3 + $0xb84] ss:$16 sps:$4 sm:$0xff]  }
 0x139   : > { %3236 = vmatprep.subr.bf16.mxu0 %v4746_v62  ;;  %3318 = vmatprep.subr.bf16.mxu1 %v4749_v63  ;;  %v4839_v62 = vld [vmem:[%s6190_s3 + $0xb8c] ss:$16 sps:$4 sm:$0xff]   ;;  %v4834_v63 = vld [vmem:[%s6190_s3 + $0xb80] ss:$16 sps:$4 sm:$0xff]  }
 0x13c   : > { %3237 = vmatpush1.bf16.msra.mxu0 %v4744_v0  ;;  %3319 = vmatpush1.bf16.msra.mxu1 %v4747_v3  ;;  %v4837_v0 = vld [vmem:[%s6190_s3 + $0xb88] ss:$16 sps:$4 sm:$0xff]   ;;  %v4842_v3 = vld [vmem:[%s6190_s3 + $0xba4] ss:$16 sps:$4 sm:$0xff]  }
 0x13d   : > { %3238 = vmatprep.subr.bf16.mxu0 %v4752_v4  ;;  %3320 = vmatprep.subr.bf16.mxu1 %v4755_v6  ;;  %v4845_v4 = vld [vmem:[%s6190_s3 + $0xbac] ss:$16 sps:$4 sm:$0xff]   ;;  %v4840_v6 = vld [vmem:[%s6190_s3 + $0xba0] ss:$16 sps:$4 sm:$0xff]  }
 0x140   : > { %3239 = vmatpush1.bf16.msra.mxu0 %v4750_v7  ;;  %3321 = vmatpush1.bf16.msra.mxu1 %v4753_v8  ;;  %v4843_v7 = vld [vmem:[%s6190_s3 + $0xba8] ss:$16 sps:$4 sm:$0xff]   ;;  %v4848_v8 = vld [vmem:[%s6190_s3 + $0xbc4] ss:$16 sps:$4 sm:$0xff]  }
 0x141   : > { %3240 = vmatprep.subr.bf16.mxu0 %v4758_v9  ;;  %3322 = vmatprep.subr.bf16.mxu1 %v4761_v10  ;;  %v4851_v9 = vld [vmem:[%s6190_s3 + $0xbcc] ss:$16 sps:$4 sm:$0xff]   ;;  %v4846_v10 = vld [vmem:[%s6190_s3 + $0xbc0] ss:$16 sps:$4 sm:$0xff]  }
 0x144   : > { %3241 = vmatpush1.bf16.msra.mxu0 %v4756_v12  ;;  %3323 = vmatpush1.bf16.msra.mxu1 %v4759_v13  ;;  %v4849_v12 = vld [vmem:[%s6190_s3 + $0xbc8] ss:$16 sps:$4 sm:$0xff]   ;;  %v4854_v13 = vld [vmem:[%s6190_s3 + $0xbe4] ss:$16 sps:$4 sm:$0xff]  }
 0x145   : > { %3251 = vmatprep.subr.bf16.mxu0 %v4764_v14  ;;  %3333 = vmatprep.subr.bf16.mxu1 %v4767_v15  ;;  %v4857_v14 = vld [vmem:[%s6190_s3 + $0xbec] ss:$16 sps:$4 sm:$0xff]   ;;  %v4852_v15 = vld [vmem:[%s6190_s3 + $0xbe0] ss:$16 sps:$4 sm:$0xff]  }
 0x147   : > { %3243 = vmatmul.mubr.bf16.vlgmr.msra.gmra.mrb[0].mxu0 %v2562_v16  ;;  %3325 = vmatmul.mubr.bf16.vlgmr.msra.gmra.mrb[0].mxu1 %v2562_v16  ;;  %v4855_v16 = vld [vmem:[%s6190_s3 + $0xbe8] ss:$16 sps:$4 sm:$0xff]  }
 0x148   : > { %3252 = vmatpush1.bf16.msra.mxu0 %v4762_v17  ;;  %3334 = vmatpush1.bf16.msra.mxu1 %v4765_v2  ;;  %v2564_v17 = vrot.slane %v5300_v50, 1  ;;  %v504_v2 = vlaneseq }
 0x149   : > { %3253 = vmatprep.subr.bf16.mxu0 %v4770_v19  ;;  %3335 = vmatprep.subr.bf16.mxu1 %v4773_v31 }
 0x14a   : > { %3283 = vmatprep.mubr.bf16.mxu0 %v2565_v11  ;;  %3365 = vmatprep.mubr.bf16.mxu1 %v2565_v11  ;;  %v505_v19 = vshrl.u32 %v504_v2, 7 }
 0x14c   : > { %3254 = vmatpush1.bf16.msra.mxu0 %v4768_v1  ;;  %3336 = vmatpush1.bf16.msra.mxu1 %v4771_v5  ;;  %v506_v31 = vsub.s32 0, %v505_v19  ;;  %v514_v11 = vsub.s32 2, %v505_v19  ;;  %v502_v1 = vld [vmem:[%s6191_s4] sm:$0xf]  ;;  %v510_v5 = vsub.s32 1, %v505_v19 }
 0x14d   : > { %3255 = vmatprep.subr.bf16.mxu0 %v4776_v20  ;;  %3337 = vmatprep.subr.bf16.mxu1 %v4779_v18  ;;  %v518_v20 = vsub.s32 3, %v505_v19 }
 0x14e   : > { %v507_v18 = vrot.slane %v502_v1, %v506_v31 }
 0x150   : > { %3256 = vmatpush1.bf16.msra.mxu0 %v4774_v21  ;;  %3338 = vmatpush1.bf16.msra.mxu1 %v4777_v22  ;;  %v515_v21 = vrot.slane %v502_v1, %v514_v11  ;;  %v511_v22 = vrot.slane %v502_v1, %v510_v5 }
 0x151   : > { %3257 = vmatprep.subr.bf16.mxu0 %v4782_v23  ;;  %3339 = vmatprep.subr.bf16.mxu1 %v4785_v24  ;;  %v519_v23 = vrot.slane %v502_v1, %v518_v20 }
 0x154   : > { %3258 = vmatpush1.bf16.msra.mxu0 %v4780_v25  ;;  %3340 = vmatpush1.bf16.msra.mxu1 %v4783_v26 }
 0x155   : > { %3259 = vmatprep.subr.bf16.mxu0 %v4788_v27  ;;  %3341 = vmatprep.subr.bf16.mxu1 %v4791_v28 }
 0x158   : > { %3260 = vmatpush1.bf16.msra.mxu0 %v4786_v29  ;;  %3342 = vmatpush1.bf16.msra.mxu1 %v4789_v30 }
 0x159   : > { %3261 = vmatprep.subr.bf16.mxu0 %v4794_v32  ;;  %3343 = vmatprep.subr.bf16.mxu1 %v4797_v33 }
 0x15c   : > { %3262 = vmatpush1.bf16.msra.mxu0 %v4792_v34  ;;  %3344 = vmatpush1.bf16.msra.mxu1 %v4795_v35 }
 0x15d   : > { %3263 = vmatprep.subr.bf16.mxu0 %v4800_v36  ;;  %3345 = vmatprep.subr.bf16.mxu1 %v4803_v37 }
 0x160   : > { %3264 = vmatpush1.bf16.msra.mxu0 %v4798_v38  ;;  %3346 = vmatpush1.bf16.msra.mxu1 %v4801_v39 }
 0x161   : > { %3265 = vmatprep.subr.bf16.mxu0 %v4806_v40  ;;  %3347 = vmatprep.subr.bf16.mxu1 %v4809_v41 }
 0x164   : > { %3266 = vmatpush1.bf16.msra.mxu0 %v4804_v42  ;;  %3348 = vmatpush1.bf16.msra.mxu1 %v4807_v43 }
 0x165   : > { %3267 = vmatprep.subr.bf16.mxu0 %v4812_v44  ;;  %3349 = vmatprep.subr.bf16.mxu1 %v4815_v45 }
 0x168   : > { %3268 = vmatpush1.bf16.msra.mxu0 %v4810_v46  ;;  %3350 = vmatpush1.bf16.msra.mxu1 %v4813_v47 }
 0x169   : > { %3269 = vmatprep.subr.bf16.mxu0 %v4818_v48  ;;  %3351 = vmatprep.subr.bf16.mxu1 %v4821_v49 }
 0x16c   : > { %3270 = vmatpush1.bf16.msra.mxu0 %v4816_v51  ;;  %3352 = vmatpush1.bf16.msra.mxu1 %v4819_v52 }
 0x16d   : > { %3271 = vmatprep.subr.bf16.mxu0 %v4824_v53  ;;  %3353 = vmatprep.subr.bf16.mxu1 %v4827_v54 }
 0x170   : > { %3272 = vmatpush1.bf16.msra.mxu0 %v4822_v55  ;;  %3354 = vmatpush1.bf16.msra.mxu1 %v4825_v56 }
 0x171   : > { %3273 = vmatprep.subr.bf16.mxu0 %v4830_v57  ;;  %3355 = vmatprep.subr.bf16.mxu1 %v4833_v58 }
 0x174   : > { %3274 = vmatpush1.bf16.msra.mxu0 %v4828_v59  ;;  %3356 = vmatpush1.bf16.msra.mxu1 %v4831_v60 }
 0x175   : > { %3275 = vmatprep.subr.bf16.mxu0 %v4836_v61  ;;  %3357 = vmatprep.subr.bf16.mxu1 %v4839_v62 }
 0x178   : > { %3276 = vmatpush1.bf16.msra.mxu0 %v4834_v63  ;;  %3358 = vmatpush1.bf16.msra.mxu1 %v4837_v0 }
 0x179   : > { %3277 = vmatprep.subr.bf16.mxu0 %v4842_v3  ;;  %3359 = vmatprep.subr.bf16.mxu1 %v4845_v4 }
 0x17c   : > { %3278 = vmatpush1.bf16.msra.mxu0 %v4840_v6  ;;  %3360 = vmatpush1.bf16.msra.mxu1 %v4843_v7 }
 0x17d   : > { %3279 = vmatprep.subr.bf16.mxu0 %v4848_v8  ;;  %3361 = vmatprep.subr.bf16.mxu1 %v4851_v9 }
 0x180   : > { %3280 = vmatpush1.bf16.msra.mxu0 %v4846_v10  ;;  %3362 = vmatpush1.bf16.msra.mxu1 %v4849_v12 }
 0x181   : > { %3281 = vmatprep.subr.bf16.mxu0 %v4854_v13  ;;  %3363 = vmatprep.subr.bf16.mxu1 %v4857_v14 }
 0x184   : > { %3282 = vmatpush1.bf16.msra.mxu0 %v4852_v15  ;;  %3364 = vmatpush1.bf16.msra.mxu1 %v4855_v16 }
 0x187   : > { %3284 = vmatmul.mubr.bf16.vlgmr.msra.gmra.mrb[0].mxu0 %v2564_v17  ;;  %3366 = vmatmul.mubr.bf16.vlgmr.msra.gmra.mrb[0].mxu1 %v2564_v17 }
 0x25a   : > { %v3285_v24 = vpop.f32.mrb[0].mxu0  ;;  %v3367_v50 = vpop.f32.mrb[0].mxu1 }
 0x25b   : > { %v4209_v25 = vadd.f32 %v3285_v24, %v507_v18  ;;  %v4211_v26 = vadd.f32 %v3367_v50, %v515_v21  ;;  %v3287_v27 = vpop.f32.mrb[1].mxu0  ;;  %v3369_v28 = vpop.f32.mrb[1].mxu1 }
 0x25c   : > { %v4210_v29 = vadd.f32 %v3287_v27, %v511_v22  ;;  %v4212_v30 = vadd.f32 %v3369_v28, %v519_v23  ;;  %v3289_v32 = vpop.f32.mrb[2].mxu0  ;;  %v3371_v33 = vpop.f32.mrb[2].mxu1 }
 0x25d   : > { %v3378_v34 = vmax.f32 %v4209_v25, 0.0  ;;  %v3380_v35 = vmax.f32 %v4211_v26, 0.0  ;;  %v3290_v36 = vpop.f32.mrb[3].mxu0  ;;  %v3372_v37 = vpop.f32.mrb[3].mxu1 }
 0x25e   : > { %v3379_v38 = vmax.f32 %v4210_v29, 0.0  ;;  %v3381_v39 = vmax.f32 %v4212_v30, 0.0 }
 0x260   : > { %v4207_v40 = vpack.c.bf16 %v3379_v38, %v3378_v34  ;;  %v4208_v41 = vpack.c.bf16 %v3381_v39, %v3380_v35 }
 0x262   : > { %3398 = vst [vmem:[%s370_s26] sm:$0xff] %v4207_v40  ;;  %3399 = vst [vmem:[%s370_s26 + $0x8] sm:$0xff] %v4208_v41 }
 0x263 PF: > { %s15_s20 = sadd.s32 1, %s4880_s20   ;;  %s6197_s18 = smov %s4876_s19 }
 0x264   : > { %p12_p5 = scmp.ge.s32.totalorder %s15_s20, 4   ;;  %s6198_s19 = smov %s6200_s1 }
 0x266   :  { %14 = sbr.rel (!%p12_p5) target bundleno = 2 (0x2), region = 78 }

// kernel: forward.13
= control target key start
LH: loop header
LB: loop body
LE: loop exit
PB: predicated region body
PF: predicated region fallthrough
CT: control target
= control target key end

     0   :  { %11 = vsyncpa [#allocation3], 0  ;;  %s6452_s0 = inlined_call_operand.vmem [shape: bf16[2,8,512], index: 0, kind: input, shape index: {}, may-alias: {0,1,2}]   ;;  %s6453_s1 = inlined_call_operand.vmem [shape: bf16[2,8,512], index: 1, kind: input, shape index: {}, may-alias: {0,1,2}]   ;;  %s6454_s2 = inlined_call_operand.vmem [shape: bf16[2,8,512], index: 2, kind: input, shape index: {}, may-alias: {0,1,2}]   ;;  %s6455_s3 = inlined_call_operand.vmem [shape: bf16[3,512,512], index: 3, kind: input, shape index: {}]   ;;  %s6456_s4 = inlined_call_operand.vmem [shape: f32[1,512], index: 4, kind: input, shape index: {}]   ;;  %s6457_s5 = inlined_call_operand.vmem [shape: bf16[2,8,512], index: 5, kind: input, shape index: {}]   ;;  %s6458_s6 = inlined_call_operand.hbm [shape: bf16[2,8,512], index: 6, kind: output, shape index: {}]  }
   0x1   :  { %13 = vsyncpa [#allocation3 + $0x1], 0  ;;  %s5053_s21 = smov 0   ;;  %s5055_s1 = smov 0  }
   0x2   :  { %s5057_s22 = smov 0   ;;  %s5059_s2 = smov 0  }
   0x3   :  { %s5061_s23 = smov 0   ;;  %s5063_s24 = smov 0  }
   0x4 LB: > { %s3620_s25 = sadd.s32 4294967295, %s5014_s24   ;;  %s3621_s26 = sadd.s32 4294967294, %s5014_s24   ;;  %s5014_s24 = sphi %s5063_s24, %s19_s24   ;;  %s5010_s23 = sphi %s5061_s23, %s6469_s23   ;;  %s5006_s2 = sphi %s5059_s2, %s6468_s2   ;;  %s5002_s22 = sphi %s5057_s22, %s6467_s22   ;;  %s4998_s1 = sphi %s5055_s1, %s6466_s1   ;;  %s4994_s21 = sphi %s5053_s21, %s6465_s21  }
   0x5   : > { %s31_s27 = sadd.s32 1, %s5010_s23  ;;  %s206_s28 = sadd.s32 1, %s5002_s22 }
   0x6   : > { %p33_p0 = scmp.ge.s32.totalorder %s31_s27, 2  ;;  %p216_p1 = scmp.ne.s32.totalorder %s5002_s22, %s4998_s1 }
   0x7   : > { %p217_p2 = scmp.eq.s32.totalorder %s3620_s25, 1  ;;  %p222_p3 = scmp.ne.s32.totalorder %s4998_s1, %s4994_s21 }
   0x8   : > { %s6471_s27 = smov (%p33_p0, %s31_s27), 0  ;;  %p223_p5 = scmp.eq.s32.totalorder %s3621_s26, 1 }
   0x9   : > { %p5093_p4 = por %p217_p2, %p216_p1  ;;  %s201_s30 = ssub.s32 %s5010_s23, %s6471_s27 }
   0xa   : > { %p3624_p6 = scmp.ge.s32.totalorder %s5014_s24, 1  ;;  %p204_p7 = scmp.eq.s32.totalorder %s201_s30, 0 }
   0xb   : > { %p5100_p8 = por %p223_p5, %p222_p3  ;;  %p307_p9 = scmp.lt.s32.totalorder %s5014_s24, 3 }
   0xc   : > { %s5106_s8 = scalar_select %p204_p7, %s5002_s22, %s206_s28  }
   0xd   : > { %p308_p10 = pnand %p3624_p6, %p307_p9 }
   0xe   : > { %v4356_v0 = vld [vmem:[%s6455_s3 + $0x4] ss:$16 sps:$4 sm:$0xff] (!%p308_p10)   ;;  %v4360_v2 = vld [vmem:[%s6455_s3] ss:$16 sps:$4 sm:$0xff] (!%p308_p10)   ;;  %p374_p11 = scmp.lt.s32.totalorder (!%p308_p10), %s5006_s2, 1  ;;  %v5016_v42 = vmov (!%p308_p10), 0  }
   0xf   : > { %311 = sbr.rel (%p308_p10) target bundleno = 637 (0x27d), region = 44  ;;  %v4358_v1 = vld [vmem:[%s6455_s3 + $0x204] ss:$16 sps:$4 sm:$0xff] (!%p308_p10)   ;;  %1343 = vmatprep.subr.bf16.mxu0 (!%p308_p10), %v4356_v0  ;;  %v4361_v3 = vld [vmem:[%s6455_s3 + $0x200] ss:$16 sps:$4 sm:$0xff] (!%p308_p10)   ;;  %v3635_v43 = vcombine.high (!%p308_p10), %v5016_v42, %v5016_v42  ;;  %vm539_vm0 = vcmask (!%p308_p10), 1040384  }
  0x10   : > { %1384 = vmatprep.subr.bf16.mxu1 (!%p308_p10), %v4358_v1  ;;  %v4362_v4 = vld [vmem:[%s6455_s3 + $0x24] ss:$16 sps:$4 sm:$0xff] (!%p308_p10)   ;;  %1344 = vmatpush1.bf16.msra.mxu0 (!%p308_p10), %v4360_v2  ;;  %v4366_v6 = vld [vmem:[%s6455_s3 + $0x20] ss:$16 sps:$4 sm:$0xff] (!%p308_p10)   ;;  %vm546_vm1 = vcmask (!%p308_p10), 1044480   ;;  %s4299_s28 = sshll.u32 (!%p308_p10), %s5006_s2, 8 }
  0x11   : > { %1385 = vmatpush1.bf16.msra.mxu1 (!%p308_p10), %v4361_v3  ;;  %v4364_v5 = vld [vmem:[%s6455_s3 + $0x224] ss:$16 sps:$4 sm:$0xff] (!%p308_p10)   ;;  %1345 = vmatprep.subr.bf16.mxu0 (!%p308_p10), %v4362_v4  ;;  %v4367_v7 = vld [vmem:[%s6455_s3 + $0x220] ss:$16 sps:$4 sm:$0xff] (!%p308_p10)   ;;  %v452_v49 = vshrl.u32 (!%p308_p10), %v3635_v43, 16  ;;  %v524_v54 = vshll.u32 (!%p308_p10), %v3635_v43, 16  ;;  %s6403_s11 = scalar_lea.hbm (!%p308_p10), %s6458_s6, %s4299_s28 }
  0x12   : > { %1386 = vmatprep.subr.bf16.mxu1 (!%p308_p10), %v4364_v5  ;;  %v4368_v8 = vld [vmem:[%s6455_s3 + $0x44] ss:$16 sps:$4 sm:$0xff] (!%p308_p10)   ;;  %v4372_v10 = vld [vmem:[%s6455_s3 + $0x40] ss:$16 sps:$4 sm:$0xff] (!%p308_p10)   ;;  %vm540_vm2 = vsmask.f32 (!%p308_p10), 256 }
  0x13   : > { %v4370_v9 = vld [vmem:[%s6455_s3 + $0x244] ss:$16 sps:$4 sm:$0xff] (!%p308_p10)   ;;  %v4373_v11 = vld [vmem:[%s6455_s3 + $0x240] ss:$16 sps:$4 sm:$0xff] (!%p308_p10)   ;;  %vm547_vm3 = vsmask.f32 (!%p308_p10), 4352  ;;  %vm5282_vm4 = vmand (!%p308_p10), %vm539_vm0, %vm540_vm2 }
  0x14   : > { %1346 = vmatpush1.bf16.msra.mxu0 (!%p308_p10), %v4366_v6  ;;  %v4374_v12 = vld [vmem:[%s6455_s3 + $0x64] ss:$16 sps:$4 sm:$0xff] (!%p308_p10)   ;;  %v4378_v14 = vld [vmem:[%s6455_s3 + $0x60] ss:$16 sps:$4 sm:$0xff] (!%p308_p10)   ;;  %v454_v4 = vrot.slane (!%p308_p10), %v452_v49, 3  ;;  %v526_v6 = vrot.slane (!%p308_p10), %v524_v54, 4  ;;  %vm5288_vm5 = vmand (!%p308_p10), %vm546_vm1, %vm547_vm3 }
  0x15   : > { %1387 = vmatpush1.bf16.msra.mxu1 (!%p308_p10), %v4367_v7  ;;  %1347 = vmatprep.subr.bf16.mxu0 (!%p308_p10), %v4368_v8  ;;  %v4376_v13 = vld [vmem:[%s6455_s3 + $0x264] ss:$16 sps:$4 sm:$0xff] (!%p308_p10)   ;;  %v4379_v15 = vld [vmem:[%s6455_s3 + $0x260] ss:$16 sps:$4 sm:$0xff] (!%p308_p10)   ;;  %v4456_v43 = vld [vmem:[%s6455_s3 + $0x8] ss:$16 sps:$4 sm:$0xff] (!%p308_p10)  }
  0x16   : > { %1388 = vmatprep.subr.bf16.mxu1 %v4370_v9  ;;  %v4380_v16 = vld [vmem:[%s6455_s3 + $0x84] ss:$16 sps:$4 sm:$0xff]   ;;  %v4384_v18 = vld [vmem:[%s6455_s3 + $0x80] ss:$16 sps:$4 sm:$0xff]   ;;  %s5221_s19 = scalar_select %p374_p11, %s5006_s2, 1  ;;  %v3634_v9 = vcombine.low %v5016_v42, %v5016_v42 }
  0x17   : > { %v4382_v17 = vld [vmem:[%s6455_s3 + $0x284] ss:$16 sps:$4 sm:$0xff]   ;;  %v4385_v19 = vld [vmem:[%s6455_s3 + $0x280] ss:$16 sps:$4 sm:$0xff]   ;;  %v4461_v42 = vld [vmem:[%s6455_s3 + $0x20c] ss:$16 sps:$4 sm:$0xff]  }
  0x18   : > { %1348 = vmatpush1.bf16.msra.mxu0 %v4372_v10  ;;  %v4386_v20 = vld [vmem:[%s6455_s3 + $0xa4] ss:$16 sps:$4 sm:$0xff]   ;;  %v4390_v22 = vld [vmem:[%s6455_s3 + $0xa0] ss:$16 sps:$4 sm:$0xff]   ;;  %s4293_s12 = sshll.u32 %s5221_s19, 4  ;;  %s371_s19 = sand.u32 1, %s4998_s1  }
  0x19   : > { %1389 = vmatpush1.bf16.msra.mxu1 %v4373_v11  ;;  %1349 = vmatprep.subr.bf16.mxu0 %v4374_v12  ;;  %v4388_v21 = vld [vmem:[%s6455_s3 + $0x2a4] ss:$16 sps:$4 sm:$0xff]   ;;  %v4391_v23 = vld [vmem:[%s6455_s3 + $0x2a0] ss:$16 sps:$4 sm:$0xff]   ;;  %s382_s26 = scalar_lea.vmem %s6452_s0, %s4293_s12  ;;  %v4462_v49 = vld [vmem:[%s6455_s3 + $0x28] ss:$16 sps:$4 sm:$0xff]   ;;  %s421_s25 = scalar_lea.vmem %s6457_s5, %s4293_s12 }
  0x1a   : > { %1390 = vmatprep.subr.bf16.mxu1 %v4376_v13  ;;  %v4392_v24 = vld [vmem:[%s6455_s3 + $0xc4] ss:$16 sps:$4 sm:$0xff]   ;;  %v4396_v26 = vld [vmem:[%s6455_s3 + $0xc0] ss:$16 sps:$4 sm:$0xff]   ;;  %v424_v51 = vld [vmem:[%s382_s26 + $0x8] sm:$0xff]  ;;  %s3625_s12 = sshll.u32 %s371_s19, 4 }
  0x1b   : > { %v4394_v25 = vld [vmem:[%s6455_s3 + $0x2c4] ss:$16 sps:$4 sm:$0xff]   ;;  %v4397_v27 = vld [vmem:[%s6455_s3 + $0x2c0] ss:$16 sps:$4 sm:$0xff]   ;;  %v3641_v55 = vcombine.high %v424_v51, %v424_v51  ;;  %v3640_v61 = vcombine.low %v424_v51, %v424_v51  ;;  %v4470_v51 = vld [vmem:[%s6455_s3 + $0x4c] ss:$16 sps:$4 sm:$0xff]  }
  0x1c   : > { %1350 = vmatpush1.bf16.msra.mxu0 %v4378_v14  ;;  %v4398_v28 = vld [vmem:[%s6455_s3 + $0xe4] ss:$16 sps:$4 sm:$0xff]   ;;  %v4402_v30 = vld [vmem:[%s6455_s3 + $0xe0] ss:$16 sps:$4 sm:$0xff]   ;;  %v4471_v54 = vld [vmem:[%s6455_s3 + $0x248] ss:$16 sps:$4 sm:$0xff]  }
  0x1d   : > { %1391 = vmatpush1.bf16.msra.mxu1 %v4379_v15  ;;  %1351 = vmatprep.subr.bf16.mxu0 %v4380_v16  ;;  %v4400_v29 = vld [vmem:[%s6455_s3 + $0x2e4] ss:$16 sps:$4 sm:$0xff]   ;;  %v4403_v31 = vld [vmem:[%s6455_s3 + $0x2e0] ss:$16 sps:$4 sm:$0xff]   ;;  %v499_v0 = vshrl.u32 %v3641_v55, 16  ;;  %v502_v1 = vshll.u32 %v3641_v55, 16 }
  0x1e   : > { %1392 = vmatprep.subr.bf16.mxu1 %v4382_v17  ;;  %v4404_v32 = vld [vmem:[%s6455_s3 + $0x104] ss:$16 sps:$4 sm:$0xff]   ;;  %v4408_v34 = vld [vmem:[%s6455_s3 + $0x100] ss:$16 sps:$4 sm:$0xff]   ;;  %v492_v13 = vshrl.u32 %v3640_v61, 16  ;;  %s3462_s13 = scalar_lea.sflag [#allocation3], %s371_s19 }
  0x1f   : > { %v4406_v33 = vld [vmem:[%s6455_s3 + $0x304] ss:$16 sps:$4 sm:$0xff]   ;;  %v4409_v35 = vld [vmem:[%s6455_s3 + $0x300] ss:$16 sps:$4 sm:$0xff]   ;;  %v501_v8 = vrot.slane %v499_v0, 7  ;;  %s5017_s2 = smov [#allocation2]  }
  0x20   : > { %1352 = vmatpush1.bf16.msra.mxu0 %v4384_v18  ;;  %v4410_v36 = vld [vmem:[%s6455_s3 + $0x124] ss:$16 sps:$4 sm:$0xff]   ;;  %v4414_v38 = vld [vmem:[%s6455_s3 + $0x120] ss:$16 sps:$4 sm:$0xff]   ;;  %v4476_v55 = vld [vmem:[%s6455_s3 + $0x6c] ss:$16 sps:$4 sm:$0xff]  }
  0x21   : > { %1393 = vmatpush1.bf16.msra.mxu1 %v4385_v19  ;;  %1353 = vmatprep.subr.bf16.mxu0 %v4386_v20  ;;  %v4412_v37 = vld [vmem:[%s6455_s3 + $0x324] ss:$16 sps:$4 sm:$0xff]   ;;  %v4415_v39 = vld [vmem:[%s6455_s3 + $0x320] ss:$16 sps:$4 sm:$0xff]   ;;  %v504_v15 = vor.u32 %v502_v1, %v501_v8  ;;  %v4491_v0 = vld [vmem:[%s6455_s3 + $0x2ac] ss:$16 sps:$4 sm:$0xff]  }
  0x22   : > { %1394 = vmatprep.subr.bf16.mxu1 %v4388_v21  ;;  %v4416_v40 = vld [vmem:[%s6455_s3 + $0x144] ss:$16 sps:$4 sm:$0xff]   ;;  %v4420_v44 = vld [vmem:[%s6455_s3 + $0x140] ss:$16 sps:$4 sm:$0xff]   ;;  %v4486_v1 = vld [vmem:[%s6455_s3 + $0xa8] ss:$16 sps:$4 sm:$0xff]  }
  0x23   : > { %v4418_v41 = vld [vmem:[%s6455_s3 + $0x344] ss:$16 sps:$4 sm:$0xff]   ;;  %v4421_v45 = vld [vmem:[%s6455_s3 + $0x340] ss:$16 sps:$4 sm:$0xff]   ;;  %v545_v21 = vsel %vm5282_vm4, %v454_v4, %v504_v15  ;;  %v4500_v7 = vld [vmem:[%s6455_s3 + $0xec] ss:$16 sps:$4 sm:$0xff]  }
  0x24   : > { %1354 = vmatpush1.bf16.msra.mxu0 %v4390_v22  ;;  %v4422_v46 = vld [vmem:[%s6455_s3 + $0x164] ss:$16 sps:$4 sm:$0xff]   ;;  %v4426_v52 = vld [vmem:[%s6455_s3 + $0x160] ss:$16 sps:$4 sm:$0xff]   ;;  %v448_v22 = vshrl.u32 %v3634_v9, 16  ;;  %s4940_s15 = sshll.u32 %s5017_s2, 4  ;;  %s4941_s15 = int_to_ptr.vmem [resolvable:$false] %s4940_s15 }
  0x25   : > { %1395 = vmatpush1.bf16.msra.mxu1 %v4391_v23  ;;  %1355 = vmatprep.subr.bf16.mxu0 %v4392_v24  ;;  %v4424_v47 = vld [vmem:[%s6455_s3 + $0x364] ss:$16 sps:$4 sm:$0xff]   ;;  %v4427_v53 = vld [vmem:[%s6455_s3 + $0x360] ss:$16 sps:$4 sm:$0xff]   ;;  %v5314_v24 = vsel %vm5288_vm5, %v545_v21, %v526_v6  ;;  %v4503_v8 = vld [vmem:[%s6455_s3 + $0x2ec] ss:$16 sps:$4 sm:$0xff]  }
  0x26   : > { %1396 = vmatprep.subr.bf16.mxu1 %v4394_v25  ;;  %v423_v48 = vld [vmem:[%s382_s26] sm:$0xff]  ;;  %1416 = vmatprep.mubr.bf16.mxu1 %v5314_v24  ;;  %v4506_v11 = vld [vmem:[%s6455_s3 + $0x10c] ss:$16 sps:$4 sm:$0xff]   ;;  %s373_s26 = scalar_lea.vmem [#allocation2], %s3625_s12  ;;  %s4942_s16 = scalar_lea.vmem %s4941_s15, 512 }
  0x27   : > { %v3639_v50 = vcombine.high %v423_v48, %v423_v48  ;;  %v4428_v56 = vld [vmem:[%s6455_s3 + $0x184] ss:$16 sps:$4 sm:$0xff]   ;;  %v3638_v60 = vcombine.low %v423_v48, %v423_v48  ;;  %v4432_v62 = vld [vmem:[%s6455_s3 + $0x180] ss:$16 sps:$4 sm:$0xff]   ;;  %v4467_v48 = vld [vmem:[%s6455_s3 + $0x22c] ss:$16 sps:$4 sm:$0xff]  }
  0x28   : > { %1356 = vmatpush1.bf16.msra.mxu0 %v4396_v26  ;;  %v4430_v57 = vld [vmem:[%s6455_s3 + $0x384] ss:$16 sps:$4 sm:$0xff]   ;;  %v4433_v63 = vld [vmem:[%s6455_s3 + $0x380] ss:$16 sps:$4 sm:$0xff]   ;;  %v494_v26 = vrot.slane %v492_v13, 7  ;;  %s3478_s30 = sshll.u32 %s373_s26, 4  ;;  %s6405_s30 = int_to_ptr.vmem [resolvable:$true] %s3478_s30 }
  0x29   : > { %1397 = vmatpush1.bf16.msra.mxu1 %v4397_v27  ;;  %1357 = vmatprep.subr.bf16.mxu0 %v4398_v28  ;;  %v485_v58 = vshrl.u32 %v3639_v50, 16  ;;  %v488_v59 = vshll.u32 %v3639_v50, 16  ;;  %v4434_v2 = vld [vmem:[%s6455_s3 + $0x1a4] ss:$16 sps:$4 sm:$0xff]   ;;  %v478_v12 = vshrl.u32 %v3638_v60, 16  ;;  %v481_v23 = vshll.u32 %v3638_v60, 16  ;;  %p4943_p1 = scmp.lt.s32.totalorder %s6405_s30, %s4941_s15 }
  0x2a   : > { %1398 = vmatprep.subr.bf16.mxu1 %v4400_v29  ;;  %v4436_v3 = vld [vmem:[%s6455_s3 + $0x3a4] ss:$16 sps:$4 sm:$0xff]   ;;  %v4438_v14 = vld [vmem:[%s6455_s3 + $0x1a0] ss:$16 sps:$4 sm:$0xff]   ;;  %v495_v27 = vshll.u32 %v3640_v61, 16  ;;  %s4936_s14 = scalar_lea.vmem %s6405_s30, 256 }
  0x2b   : > { %v487_v5 = vrot.slane %v485_v58, 7  ;;  %v4439_v16 = vld [vmem:[%s6455_s3 + $0x3a0] ss:$16 sps:$4 sm:$0xff]   ;;  %v4440_v17 = vld [vmem:[%s6455_s3 + $0x1c4] ss:$16 sps:$4 sm:$0xff]   ;;  %v480_v25 = vrot.slane %v478_v12, 7  ;;  %p4937_p12 = scmp.ne.s32.totalorder %s6405_s30, %s4936_s14  ;;  %p4944_p2 = scmp.lt.s32.totalorder %s4942_s16, %s4936_s14 }
  0x2c   : > { %1358 = vmatpush1.bf16.msra.mxu0 %v4402_v30  ;;  %v4442_v19 = vld [vmem:[%s6455_s3 + $0x3c4] ss:$16 sps:$4 sm:$0xff]   ;;  %v4444_v28 = vld [vmem:[%s6455_s3 + $0x1c0] ss:$16 sps:$4 sm:$0xff]   ;;  %v4465_v50 = vld [vmem:[%s6455_s3 + $0x228] ss:$16 sps:$4 sm:$0xff]  }
  0x2d   : > { %1399 = vmatpush1.bf16.msra.mxu1 %v4403_v31  ;;  %1359 = vmatprep.subr.bf16.mxu0 %v4404_v32  ;;  %v490_v10 = vor.u32 %v488_v59, %v487_v5  ;;  %v4445_v29 = vld [vmem:[%s6455_s3 + $0x3c0] ss:$16 sps:$4 sm:$0xff]   ;;  %v4446_v30 = vld [vmem:[%s6455_s3 + $0x1e4] ss:$16 sps:$4 sm:$0xff]   ;;  %v520_v31 = vshll.u32 %v3634_v9, 16  ;;  %p4938_p13 = pnand %p4937_p12, %p5093_p4  ;;  %p4945_p3 = por %p4944_p2, %p4943_p1 }
  0x2e   : > { %1400 = vmatprep.subr.bf16.mxu1 %v4406_v33  ;;  %v4448_v32 = vld [vmem:[%s6455_s3 + $0x3e4] ss:$16 sps:$4 sm:$0xff]   ;;  %v450_v33 = vrot.slane %v448_v22, 3  ;;  %v4477_v58 = vld [vmem:[%s6455_s3 + $0x268] ss:$16 sps:$4 sm:$0xff]  }
  0x2f   : > { %v543_v18 = vsel %vm5282_vm4, %v454_v4, %v490_v10  ;;  %v4482_v59 = vld [vmem:[%s6455_s3 + $0x8c] ss:$16 sps:$4 sm:$0xff]   ;;  %v4480_v61 = vld [vmem:[%s6455_s3 + $0x88] ss:$16 sps:$4 sm:$0xff]   ;;  %p4939_p0 = pneg %p4938_p13 }
  0x30   : > { %1360 = vmatpush1.bf16.msra.mxu0 %v4408_v34  ;;  %v5308_v20 = vsel %vm5288_vm5, %v543_v18, %v526_v6  ;;  %v483_v34 = vor.u32 %v481_v23, %v480_v25  ;;  %v4485_v60 = vld [vmem:[%s6455_s3 + $0x28c] ss:$16 sps:$4 sm:$0xff]   ;;  %v4492_v5 = vld [vmem:[%s6455_s3 + $0xc8] ss:$16 sps:$4 sm:$0xff]  }
  0x31   : > { %1401 = vmatpush1.bf16.msra.mxu1 %v4409_v35  ;;  %1361 = vmatprep.subr.bf16.mxu0 %v4410_v36  ;;  %v497_v35 = vor.u32 %v495_v27, %v494_v26  ;;  %v4450_v36 = vld [vmem:[%s6455_s3 + $0x1e0] ss:$16 sps:$4 sm:$0xff]   ;;  %v4497_v4 = vld [vmem:[%s6455_s3 + $0x2cc] ss:$16 sps:$4 sm:$0xff]   ;;  %v4495_v6 = vld [vmem:[%s6455_s3 + $0x2c8] ss:$16 sps:$4 sm:$0xff]   ;;  %p4946_p5 = pnand %p4945_p3, %p4939_p0 }
  0x32   : > { %1402 = vmatprep.subr.bf16.mxu1 %v4412_v37  ;;  %1375 = vmatprep.mubr.bf16.mxu0 %v5308_v20  ;;  %v4451_v37 = vld [vmem:[%s6455_s3 + $0x3e0] ss:$16 sps:$4 sm:$0xff]   ;;  %v4498_v9 = vld [vmem:[%s6455_s3 + $0xe8] ss:$16 sps:$4 sm:$0xff]   ;;  %v4509_v12 = vld [vmem:[%s6455_s3 + $0x30c] ss:$16 sps:$4 sm:$0xff]  }
  0x33   : > { %v4501_v10 = vld [vmem:[%s6455_s3 + $0x2e8] ss:$16 sps:$4 sm:$0xff]   ;;  %v4512_v15 = vld [vmem:[%s6455_s3 + $0x12c] ss:$16 sps:$4 sm:$0xff]  }
  0x34   : > { %1362 = vmatpush1.bf16.msra.mxu0 %v4414_v38  ;;  %v522_v38 = vrot.slane %v520_v31, 4  ;;  %v4504_v13 = vld [vmem:[%s6455_s3 + $0x108] ss:$16 sps:$4 sm:$0xff]   ;;  %v4521_v21 = vld [vmem:[%s6455_s3 + $0x34c] ss:$16 sps:$4 sm:$0xff]  }
  0x35   : > { %1403 = vmatpush1.bf16.msra.mxu1 %v4415_v39  ;;  %1363 = vmatprep.subr.bf16.mxu0 %v4416_v40  ;;  %v4458_v39 = vld [vmem:[%s6455_s3 + $0xc] ss:$16 sps:$4 sm:$0xff]   ;;  %v542_v40 = vsel %vm5282_vm4, %v450_v33, %v483_v34  ;;  %v4513_v18 = vld [vmem:[%s6455_s3 + $0x328] ss:$16 sps:$4 sm:$0xff]  }
  0x36   : > { %1404 = vmatprep.subr.bf16.mxu1 %v4418_v41  ;;  %v544_v41 = vsel %vm5282_vm4, %v450_v33, %v497_v35  ;;  %v4516_v22 = vld [vmem:[%s6455_s3 + $0x148] ss:$16 sps:$4 sm:$0xff]   ;;  %v4524_v25 = vld [vmem:[%s6455_s3 + $0x16c] ss:$16 sps:$4 sm:$0xff]  }
  0x37   : > { %v4519_v23 = vld [vmem:[%s6455_s3 + $0x348] ss:$16 sps:$4 sm:$0xff]   ;;  %v4527_v26 = vld [vmem:[%s6455_s3 + $0x36c] ss:$16 sps:$4 sm:$0xff]  }
  0x38   : > { %1364 = vmatpush1.bf16.msra.mxu0 %v4420_v44  ;;  %v4459_v44 = vld [vmem:[%s6455_s3 + $0x208] ss:$16 sps:$4 sm:$0xff]   ;;  %v4536_v33 = vld [vmem:[%s6455_s3 + $0x1ac] ss:$16 sps:$4 sm:$0xff]  }
  0x39   : > { %1405 = vmatpush1.bf16.msra.mxu1 %v4421_v45  ;;  %1365 = vmatprep.subr.bf16.mxu0 %v4422_v46  ;;  %v5354_v45 = vsel %vm5288_vm5, %v542_v40, %v522_v38  ;;  %v5358_v46 = vsel %vm5288_vm5, %v544_v41, %v522_v38  ;;  %v4522_v27 = vld [vmem:[%s6455_s3 + $0x168] ss:$16 sps:$4 sm:$0xff]   ;;  %v4539_v34 = vld [vmem:[%s6455_s3 + $0x3ac] ss:$16 sps:$4 sm:$0xff]  }
  0x3a   : > { %1406 = vmatprep.subr.bf16.mxu1 %v4424_v47  ;;  %v4464_v47 = vld [vmem:[%s6455_s3 + $0x2c] ss:$16 sps:$4 sm:$0xff]   ;;  %v4528_v31 = vld [vmem:[%s6455_s3 + $0x188] ss:$16 sps:$4 sm:$0xff]  }
  0x3b   : > { %v4534_v35 = vld [vmem:[%s6455_s3 + $0x1a8] ss:$16 sps:$4 sm:$0xff]   ;;  %v4545_v38 = vld [vmem:[%s6455_s3 + $0x3cc] ss:$16 sps:$4 sm:$0xff]  }
  0x3c   : > { %1366 = vmatpush1.bf16.msra.mxu0 %v4426_v52  ;;  %v4473_v52 = vld [vmem:[%s6455_s3 + $0x24c] ss:$16 sps:$4 sm:$0xff]   ;;  %v4543_v40 = vld [vmem:[%s6455_s3 + $0x3c8] ss:$16 sps:$4 sm:$0xff]  }
  0x3d   : > { %1407 = vmatpush1.bf16.msra.mxu1 %v4427_v53  ;;  %1367 = vmatprep.subr.bf16.mxu0 %v4428_v56  ;;  %v4468_v53 = vld [vmem:[%s6455_s3 + $0x48] ss:$16 sps:$4 sm:$0xff]   ;;  %v4479_v56 = vld [vmem:[%s6455_s3 + $0x26c] ss:$16 sps:$4 sm:$0xff]  }
  0x3e   : > { %1408 = vmatprep.subr.bf16.mxu1 %v4430_v57  ;;  %v4474_v57 = vld [vmem:[%s6455_s3 + $0x68] ss:$16 sps:$4 sm:$0xff]   ;;  %v4548_v41 = vld [vmem:[%s6455_s3 + $0x1ec] ss:$16 sps:$4 sm:$0xff]  }
  0x40   : > { %1368 = vmatpush1.bf16.msra.mxu0 %v4432_v62  ;;  %v4483_v62 = vld [vmem:[%s6455_s3 + $0x288] ss:$16 sps:$4 sm:$0xff]  }
  0x41   : > { %1409 = vmatpush1.bf16.msra.mxu1 %v4433_v63  ;;  %1369 = vmatprep.subr.bf16.mxu0 %v4434_v2  ;;  %v4488_v63 = vld [vmem:[%s6455_s3 + $0xac] ss:$16 sps:$4 sm:$0xff]   ;;  %v4489_v2 = vld [vmem:[%s6455_s3 + $0x2a8] ss:$16 sps:$4 sm:$0xff]  }
  0x42   : > { %1410 = vmatprep.subr.bf16.mxu1 %v4436_v3  ;;  %v4494_v3 = vld [vmem:[%s6455_s3 + $0xcc] ss:$16 sps:$4 sm:$0xff]  }
  0x44   : > { %1370 = vmatpush1.bf16.msra.mxu0 %v4438_v14  ;;  %v4507_v14 = vld [vmem:[%s6455_s3 + $0x308] ss:$16 sps:$4 sm:$0xff]  }
  0x45   : > { %1411 = vmatpush1.bf16.msra.mxu1 %v4439_v16  ;;  %1371 = vmatprep.subr.bf16.mxu0 %v4440_v17  ;;  %v4515_v16 = vld [vmem:[%s6455_s3 + $0x32c] ss:$16 sps:$4 sm:$0xff]   ;;  %v4510_v17 = vld [vmem:[%s6455_s3 + $0x128] ss:$16 sps:$4 sm:$0xff]  }
  0x46   : > { %1412 = vmatprep.subr.bf16.mxu1 %v4442_v19  ;;  %v4518_v19 = vld [vmem:[%s6455_s3 + $0x14c] ss:$16 sps:$4 sm:$0xff]  }
  0x48   : > { %1372 = vmatpush1.bf16.msra.mxu0 %v4444_v28  ;;  %v4525_v28 = vld [vmem:[%s6455_s3 + $0x368] ss:$16 sps:$4 sm:$0xff]  }
  0x49   : > { %1413 = vmatpush1.bf16.msra.mxu1 %v4445_v29  ;;  %1373 = vmatprep.subr.bf16.mxu0 %v4446_v30  ;;  %v4530_v29 = vld [vmem:[%s6455_s3 + $0x18c] ss:$16 sps:$4 sm:$0xff]  }
  0x4a   : > { %1414 = vmatprep.subr.bf16.mxu1 %v4448_v32  ;;  %v4533_v30 = vld [vmem:[%s6455_s3 + $0x38c] ss:$16 sps:$4 sm:$0xff]   ;;  %v4531_v32 = vld [vmem:[%s6455_s3 + $0x388] ss:$16 sps:$4 sm:$0xff]  }
  0x4c   : > { %1374 = vmatpush1.bf16.msra.mxu0 %v4450_v36  ;;  %v4537_v36 = vld [vmem:[%s6455_s3 + $0x3a8] ss:$16 sps:$4 sm:$0xff]  }
  0x4d   : > { %1415 = vmatpush1.bf16.msra.mxu1 %v4451_v37  ;;  %1425 = vmatprep.subr.bf16.mxu0 %v4458_v39  ;;  %v4542_v37 = vld [vmem:[%s6455_s3 + $0x1cc] ss:$16 sps:$4 sm:$0xff]   ;;  %v4540_v39 = vld [vmem:[%s6455_s3 + $0x1c8] ss:$16 sps:$4 sm:$0xff]  }
  0x4e   : > { %1466 = vmatprep.subr.bf16.mxu1 %v4461_v42  ;;  %v4551_v42 = vld [vmem:[%s6455_s3 + $0x3ec] ss:$16 sps:$4 sm:$0xff]  }
  0x4f   : > { %1376 = vmatmul.mubr.bf16.vlgmr.msra.gmra.mrb[0].mxu0 %v5354_v45 }
  0x50   : > { %1417 = vmatmul.mubr.bf16.vlgmr.msra.gmra.mrb[0].mxu1 %v5358_v46  ;;  %1426 = vmatpush1.bf16.msra.mxu0 %v4456_v43  ;;  %v1650_v43 = vshll.u32 %v5308_v20, 16 }
  0x51   : > { %1467 = vmatpush1.bf16.msra.mxu1 %v4459_v44  ;;  %1427 = vmatprep.subr.bf16.mxu0 %v4464_v47  ;;  %v1664_v44 = vshll.u32 %v5314_v24, 16  ;;  %v4546_v47 = vld [vmem:[%s6455_s3 + $0x1e8] ss:$16 sps:$4 sm:$0xff]  }
  0x52   : > { %1468 = vmatprep.subr.bf16.mxu1 %v4467_v48  ;;  %1457 = vmatprep.mubr.bf16.mxu0 %v5308_v20  ;;  %v4549_v48 = vld [vmem:[%s6455_s3 + $0x3e8] ss:$16 sps:$4 sm:$0xff]  }
  0x53   : > { %1498 = vmatprep.mubr.bf16.mxu1 %v5314_v24 }
  0x54   : > { %1428 = vmatpush1.bf16.msra.mxu0 %v4462_v49  ;;  %v4554_v49 = vld [vmem:[%s6455_s3 + $0x404] ss:$16 sps:$4 sm:$0xff]  }
  0x55   : > { %1469 = vmatpush1.bf16.msra.mxu1 %v4465_v50  ;;  %1429 = vmatprep.subr.bf16.mxu0 %v4470_v51  ;;  %v4557_v50 = vld [vmem:[%s6455_s3 + $0x604] ss:$16 sps:$4 sm:$0xff]   ;;  %v1648_v51 = vshrl.u32 %v5308_v20, 16 }
  0x56   : > { %1470 = vmatprep.subr.bf16.mxu1 %v4473_v52  ;;  %v1652_v52 = vrot.slane %v1650_v43, 1  ;;  %v4624_v43 = vld [vmem:[%s6455_s3 + $0x580] ss:$16 sps:$4 sm:$0xff]  }
  0x58   : > { %1430 = vmatpush1.bf16.msra.mxu0 %v4468_v53  ;;  %v1662_v53 = vshrl.u32 %v5314_v24, 16 }
  0x59   : > { %1471 = vmatpush1.bf16.msra.mxu1 %v4471_v54  ;;  %1431 = vmatprep.subr.bf16.mxu0 %v4476_v55  ;;  %v1666_v54 = vrot.slane %v1664_v44, 1  ;;  %v4552_v55 = vld [vmem:[%s6455_s3 + $0x400] ss:$16 sps:$4 sm:$0xff]  }
  0x5a   : > { %1472 = vmatprep.subr.bf16.mxu1 %v4479_v56  ;;  %v4555_v56 = vld [vmem:[%s6455_s3 + $0x600] ss:$16 sps:$4 sm:$0xff]  }
  0x5b   : > { %v4627_v44 = vld [vmem:[%s6455_s3 + $0x780] ss:$16 sps:$4 sm:$0xff]  }
  0x5c   : > { %1432 = vmatpush1.bf16.msra.mxu0 %v4474_v57  ;;  %v4560_v57 = vld [vmem:[%s6455_s3 + $0x424] ss:$16 sps:$4 sm:$0xff]  }
  0x5d   : > { %1473 = vmatpush1.bf16.msra.mxu1 %v4477_v58  ;;  %1433 = vmatprep.subr.bf16.mxu0 %v4482_v59  ;;  %v4563_v58 = vld [vmem:[%s6455_s3 + $0x624] ss:$16 sps:$4 sm:$0xff]   ;;  %v5566_v59 = vor.u32 %v1652_v52, %v1648_v51 }
  0x5e   : > { %1474 = vmatprep.subr.bf16.mxu1 %v4485_v60  ;;  %v5568_v60 = vor.u32 %v1666_v54, %v1662_v53  ;;  %v4638_v51 = vld [vmem:[%s6455_s3 + $0x5c4] ss:$16 sps:$4 sm:$0xff]   ;;  %v1643_v53 = vshll.u32 %v5354_v45, 16  ;;  %v4636_v54 = vld [vmem:[%s6455_s3 + $0x5c0] ss:$16 sps:$4 sm:$0xff]  }
  0x5f   : > { %v4641_v52 = vld [vmem:[%s6455_s3 + $0x7c4] ss:$16 sps:$4 sm:$0xff]  }
  0x60   : > { %1434 = vmatpush1.bf16.msra.mxu0 %v4480_v61  ;;  %v4558_v61 = vld [vmem:[%s6455_s3 + $0x420] ss:$16 sps:$4 sm:$0xff]  }
  0x61   : > { %1475 = vmatpush1.bf16.msra.mxu1 %v4483_v62  ;;  %1435 = vmatprep.subr.bf16.mxu0 %v4488_v63  ;;  %v4561_v62 = vld [vmem:[%s6455_s3 + $0x620] ss:$16 sps:$4 sm:$0xff]   ;;  %v4566_v63 = vld [vmem:[%s6455_s3 + $0x444] ss:$16 sps:$4 sm:$0xff]  }
  0x62   : > { %1476 = vmatprep.subr.bf16.mxu1 %v4491_v0  ;;  %v4569_v0 = vld [vmem:[%s6455_s3 + $0x644] ss:$16 sps:$4 sm:$0xff]  }
  0x64   : > { %1436 = vmatpush1.bf16.msra.mxu0 %v4486_v1  ;;  %v4564_v1 = vld [vmem:[%s6455_s3 + $0x440] ss:$16 sps:$4 sm:$0xff]  }
  0x65   : > { %1477 = vmatpush1.bf16.msra.mxu1 %v4489_v2  ;;  %1437 = vmatprep.subr.bf16.mxu0 %v4494_v3  ;;  %v4567_v2 = vld [vmem:[%s6455_s3 + $0x640] ss:$16 sps:$4 sm:$0xff]   ;;  %v4572_v3 = vld [vmem:[%s6455_s3 + $0x464] ss:$16 sps:$4 sm:$0xff]  }
  0x66   : > { %1478 = vmatprep.subr.bf16.mxu1 %v4497_v4  ;;  %v4575_v4 = vld [vmem:[%s6455_s3 + $0x664] ss:$16 sps:$4 sm:$0xff]  }
  0x68   : > { %1438 = vmatpush1.bf16.msra.mxu0 %v4492_v5  ;;  %v4570_v5 = vld [vmem:[%s6455_s3 + $0x460] ss:$16 sps:$4 sm:$0xff]  }
  0x69   : > { %1479 = vmatpush1.bf16.msra.mxu1 %v4495_v6  ;;  %1439 = vmatprep.subr.bf16.mxu0 %v4500_v7  ;;  %v4573_v6 = vld [vmem:[%s6455_s3 + $0x660] ss:$16 sps:$4 sm:$0xff]   ;;  %v4578_v7 = vld [vmem:[%s6455_s3 + $0x484] ss:$16 sps:$4 sm:$0xff]  }
  0x6a   : > { %1480 = vmatprep.subr.bf16.mxu1 %v4503_v8  ;;  %v4581_v8 = vld [vmem:[%s6455_s3 + $0x684] ss:$16 sps:$4 sm:$0xff]  }
  0x6c   : > { %1440 = vmatpush1.bf16.msra.mxu0 %v4498_v9  ;;  %v4576_v9 = vld [vmem:[%s6455_s3 + $0x480] ss:$16 sps:$4 sm:$0xff]  }
  0x6d   : > { %1481 = vmatpush1.bf16.msra.mxu1 %v4501_v10  ;;  %1441 = vmatprep.subr.bf16.mxu0 %v4506_v11  ;;  %v4579_v10 = vld [vmem:[%s6455_s3 + $0x680] ss:$16 sps:$4 sm:$0xff]   ;;  %v4584_v11 = vld [vmem:[%s6455_s3 + $0x4a4] ss:$16 sps:$4 sm:$0xff]  }
  0x6e   : > { %1482 = vmatprep.subr.bf16.mxu1 %v4509_v12  ;;  %v4587_v12 = vld [vmem:[%s6455_s3 + $0x6a4] ss:$16 sps:$4 sm:$0xff]  }
  0x70   : > { %1442 = vmatpush1.bf16.msra.mxu0 %v4504_v13  ;;  %v4582_v13 = vld [vmem:[%s6455_s3 + $0x4a0] ss:$16 sps:$4 sm:$0xff]  }
  0x71   : > { %1483 = vmatpush1.bf16.msra.mxu1 %v4507_v14  ;;  %1443 = vmatprep.subr.bf16.mxu0 %v4512_v15  ;;  %v4585_v14 = vld [vmem:[%s6455_s3 + $0x6a0] ss:$16 sps:$4 sm:$0xff]   ;;  %v4590_v15 = vld [vmem:[%s6455_s3 + $0x4c4] ss:$16 sps:$4 sm:$0xff]  }
  0x72   : > { %1484 = vmatprep.subr.bf16.mxu1 %v4515_v16  ;;  %v4593_v16 = vld [vmem:[%s6455_s3 + $0x6c4] ss:$16 sps:$4 sm:$0xff]  }
  0x74   : > { %1444 = vmatpush1.bf16.msra.mxu0 %v4510_v17  ;;  %v4588_v17 = vld [vmem:[%s6455_s3 + $0x4c0] ss:$16 sps:$4 sm:$0xff]  }
  0x75   : > { %1485 = vmatpush1.bf16.msra.mxu1 %v4513_v18  ;;  %1445 = vmatprep.subr.bf16.mxu0 %v4518_v19  ;;  %v4591_v18 = vld [vmem:[%s6455_s3 + $0x6c0] ss:$16 sps:$4 sm:$0xff]   ;;  %v4596_v19 = vld [vmem:[%s6455_s3 + $0x4e4] ss:$16 sps:$4 sm:$0xff]  }
  0x76   : > { %1486 = vmatprep.subr.bf16.mxu1 %v4521_v21  ;;  %v4599_v21 = vld [vmem:[%s6455_s3 + $0x6e4] ss:$16 sps:$4 sm:$0xff]  }
  0x78   : > { %1446 = vmatpush1.bf16.msra.mxu0 %v4516_v22  ;;  %v4594_v22 = vld [vmem:[%s6455_s3 + $0x4e0] ss:$16 sps:$4 sm:$0xff]  }
  0x79   : > { %1487 = vmatpush1.bf16.msra.mxu1 %v4519_v23  ;;  %1447 = vmatprep.subr.bf16.mxu0 %v4524_v25  ;;  %v4597_v23 = vld [vmem:[%s6455_s3 + $0x6e0] ss:$16 sps:$4 sm:$0xff]   ;;  %v4602_v25 = vld [vmem:[%s6455_s3 + $0x504] ss:$16 sps:$4 sm:$0xff]  }
  0x7a   : > { %1488 = vmatprep.subr.bf16.mxu1 %v4527_v26  ;;  %v4605_v26 = vld [vmem:[%s6455_s3 + $0x704] ss:$16 sps:$4 sm:$0xff]  }
  0x7c   : > { %1448 = vmatpush1.bf16.msra.mxu0 %v4522_v27  ;;  %v4600_v27 = vld [vmem:[%s6455_s3 + $0x500] ss:$16 sps:$4 sm:$0xff]  }
  0x7d   : > { %1489 = vmatpush1.bf16.msra.mxu1 %v4525_v28  ;;  %1449 = vmatprep.subr.bf16.mxu0 %v4530_v29  ;;  %v4603_v28 = vld [vmem:[%s6455_s3 + $0x700] ss:$16 sps:$4 sm:$0xff]   ;;  %v4608_v29 = vld [vmem:[%s6455_s3 + $0x524] ss:$16 sps:$4 sm:$0xff]  }
  0x7e   : > { %1490 = vmatprep.subr.bf16.mxu1 %v4533_v30  ;;  %v4611_v30 = vld [vmem:[%s6455_s3 + $0x724] ss:$16 sps:$4 sm:$0xff]  }
  0x80   : > { %1450 = vmatpush1.bf16.msra.mxu0 %v4528_v31  ;;  %v4606_v31 = vld [vmem:[%s6455_s3 + $0x520] ss:$16 sps:$4 sm:$0xff]  }
  0x81   : > { %1491 = vmatpush1.bf16.msra.mxu1 %v4531_v32  ;;  %1451 = vmatprep.subr.bf16.mxu0 %v4536_v33  ;;  %v4609_v32 = vld [vmem:[%s6455_s3 + $0x720] ss:$16 sps:$4 sm:$0xff]   ;;  %v4614_v33 = vld [vmem:[%s6455_s3 + $0x544] ss:$16 sps:$4 sm:$0xff]  }
  0x82   : > { %1492 = vmatprep.subr.bf16.mxu1 %v4539_v34  ;;  %v4617_v34 = vld [vmem:[%s6455_s3 + $0x744] ss:$16 sps:$4 sm:$0xff]  }
  0x84   : > { %1452 = vmatpush1.bf16.msra.mxu0 %v4534_v35  ;;  %v4612_v35 = vld [vmem:[%s6455_s3 + $0x540] ss:$16 sps:$4 sm:$0xff]  }
  0x85   : > { %1493 = vmatpush1.bf16.msra.mxu1 %v4537_v36  ;;  %1453 = vmatprep.subr.bf16.mxu0 %v4542_v37  ;;  %v4615_v36 = vld [vmem:[%s6455_s3 + $0x740] ss:$16 sps:$4 sm:$0xff]   ;;  %v4620_v37 = vld [vmem:[%s6455_s3 + $0x564] ss:$16 sps:$4 sm:$0xff]  }
  0x86   : > { %1494 = vmatprep.subr.bf16.mxu1 %v4545_v38  ;;  %v4623_v38 = vld [vmem:[%s6455_s3 + $0x764] ss:$16 sps:$4 sm:$0xff]  }
  0x88   : > { %1454 = vmatpush1.bf16.msra.mxu0 %v4540_v39  ;;  %v4618_v39 = vld [vmem:[%s6455_s3 + $0x560] ss:$16 sps:$4 sm:$0xff]  }
  0x89   : > { %1495 = vmatpush1.bf16.msra.mxu1 %v4543_v40  ;;  %1455 = vmatprep.subr.bf16.mxu0 %v4548_v41  ;;  %v4621_v40 = vld [vmem:[%s6455_s3 + $0x760] ss:$16 sps:$4 sm:$0xff]   ;;  %v4626_v41 = vld [vmem:[%s6455_s3 + $0x584] ss:$16 sps:$4 sm:$0xff]  }
  0x8a   : > { %1496 = vmatprep.subr.bf16.mxu1 %v4551_v42  ;;  %v4629_v42 = vld [vmem:[%s6455_s3 + $0x784] ss:$16 sps:$4 sm:$0xff]  }
  0x8c   : > { %1456 = vmatpush1.bf16.msra.mxu0 %v4546_v47  ;;  %v4632_v47 = vld [vmem:[%s6455_s3 + $0x5a4] ss:$16 sps:$4 sm:$0xff]  }
  0x8d   : > { %1497 = vmatpush1.bf16.msra.mxu1 %v4549_v48  ;;  %2312 = vmatprep.subr.bf16.mxu0 %v4554_v49  ;;  %v4635_v48 = vld [vmem:[%s6455_s3 + $0x7a4] ss:$16 sps:$4 sm:$0xff]   ;;  %v4630_v49 = vld [vmem:[%s6455_s3 + $0x5a0] ss:$16 sps:$4 sm:$0xff]  }
  0x8e   : > { %2353 = vmatprep.subr.bf16.mxu1 %v4557_v50  ;;  %v4633_v50 = vld [vmem:[%s6455_s3 + $0x7a0] ss:$16 sps:$4 sm:$0xff]  }
  0x8f   : > { %1458 = vmatmul.mubr.bf16.vlgmr.msra.gmra.mrb[4].mxu0 %v5354_v45 }
  0x90   : > { %1499 = vmatmul.mubr.bf16.vlgmr.msra.gmra.mrb[4].mxu1 %v5358_v46  ;;  %2313 = vmatpush1.bf16.msra.mxu0 %v4552_v55  ;;  %v4639_v55 = vld [vmem:[%s6455_s3 + $0x7c0] ss:$16 sps:$4 sm:$0xff]  }
  0x91   : > { %2354 = vmatpush1.bf16.msra.mxu1 %v4555_v56  ;;  %2314 = vmatprep.subr.bf16.mxu0 %v4560_v57  ;;  %v1657_v56 = vshll.u32 %v5358_v46, 16  ;;  %v4644_v57 = vld [vmem:[%s6455_s3 + $0x5e4] ss:$16 sps:$4 sm:$0xff]  }
  0x92   : > { %2355 = vmatprep.subr.bf16.mxu1 %v4563_v58  ;;  %2344 = vmatprep.mubr.bf16.mxu0 %v5566_v59  ;;  %v4647_v58 = vld [vmem:[%s6455_s3 + $0x7e4] ss:$16 sps:$4 sm:$0xff]  }
  0x93   : > { %2385 = vmatprep.mubr.bf16.mxu1 %v5568_v60 }
  0x94   : > { %2315 = vmatpush1.bf16.msra.mxu0 %v4558_v61  ;;  %v1641_v61 = vshrl.u32 %v5354_v45, 16 }
  0x95   : > { %2356 = vmatpush1.bf16.msra.mxu1 %v4561_v62  ;;  %2316 = vmatprep.subr.bf16.mxu0 %v4566_v63  ;;  %v1645_v62 = vrot.slane %v1643_v53, 1  ;;  %v4642_v63 = vld [vmem:[%s6455_s3 + $0x5e0] ss:$16 sps:$4 sm:$0xff]   ;;  %v4705_v53 = vld [vmem:[%s6455_s3 + $0x728] ss:$16 sps:$4 sm:$0xff]  }
  0x96   : > { %2357 = vmatprep.subr.bf16.mxu1 %v4569_v0  ;;  %v1655_v0 = vshrl.u32 %v5358_v46, 16 }
  0x98   : > { %2317 = vmatpush1.bf16.msra.mxu0 %v4564_v1  ;;  %v1659_v1 = vrot.slane %v1657_v56, 1  ;;  %v4708_v56 = vld [vmem:[%s6455_s3 + $0x548] ss:$16 sps:$4 sm:$0xff]  }
  0x99   : > { %2358 = vmatpush1.bf16.msra.mxu1 %v4567_v2  ;;  %2318 = vmatprep.subr.bf16.mxu0 %v4572_v3  ;;  %v4645_v2 = vld [vmem:[%s6455_s3 + $0x7e0] ss:$16 sps:$4 sm:$0xff]   ;;  %v4650_v3 = vld [vmem:[%s6455_s3 + $0x40c] ss:$16 sps:$4 sm:$0xff]  }
  0x9a   : > { %2359 = vmatprep.subr.bf16.mxu1 %v4575_v4  ;;  %v4653_v4 = vld [vmem:[%s6455_s3 + $0x60c] ss:$16 sps:$4 sm:$0xff]  }
  0x9c   : > { %2319 = vmatpush1.bf16.msra.mxu0 %v4570_v5  ;;  %v5758_v5 = vor.u32 %v1645_v62, %v1641_v61  ;;  %v4719_v61 = vld [vmem:[%s6455_s3 + $0x76c] ss:$16 sps:$4 sm:$0xff]   ;;  %v4714_v62 = vld [vmem:[%s6455_s3 + $0x568] ss:$16 sps:$4 sm:$0xff]  }
  0x9d   : > { %2360 = vmatpush1.bf16.msra.mxu1 %v4573_v6  ;;  %2320 = vmatprep.subr.bf16.mxu0 %v4578_v7  ;;  %v5760_v6 = vor.u32 %v1659_v1, %v1655_v0  ;;  %v4648_v7 = vld [vmem:[%s6455_s3 + $0x408] ss:$16 sps:$4 sm:$0xff]   ;;  %v4722_v0 = vld [vmem:[%s6455_s3 + $0x58c] ss:$16 sps:$4 sm:$0xff]  }
  0x9e   : > { %2361 = vmatprep.subr.bf16.mxu1 %v4581_v8  ;;  %v4651_v8 = vld [vmem:[%s6455_s3 + $0x608] ss:$16 sps:$4 sm:$0xff]   ;;  %v4725_v1 = vld [vmem:[%s6455_s3 + $0x78c] ss:$16 sps:$4 sm:$0xff]  }
  0xa0   : > { %2321 = vmatpush1.bf16.msra.mxu0 %v4576_v9  ;;  %v4656_v9 = vld [vmem:[%s6455_s3 + $0x42c] ss:$16 sps:$4 sm:$0xff]  }
  0xa1   : > { %2362 = vmatpush1.bf16.msra.mxu1 %v4579_v10  ;;  %2322 = vmatprep.subr.bf16.mxu0 %v4584_v11  ;;  %v4659_v10 = vld [vmem:[%s6455_s3 + $0x62c] ss:$16 sps:$4 sm:$0xff]   ;;  %v4654_v11 = vld [vmem:[%s6455_s3 + $0x428] ss:$16 sps:$4 sm:$0xff]  }
  0xa2   : > { %2363 = vmatprep.subr.bf16.mxu1 %v4587_v12  ;;  %v4657_v12 = vld [vmem:[%s6455_s3 + $0x628] ss:$16 sps:$4 sm:$0xff]  }
  0xa4   : > { %2323 = vmatpush1.bf16.msra.mxu0 %v4582_v13  ;;  %v4662_v13 = vld [vmem:[%s6455_s3 + $0x44c] ss:$16 sps:$4 sm:$0xff]  }
  0xa5   : > { %2364 = vmatpush1.bf16.msra.mxu1 %v4585_v14  ;;  %2324 = vmatprep.subr.bf16.mxu0 %v4590_v15  ;;  %v4665_v14 = vld [vmem:[%s6455_s3 + $0x64c] ss:$16 sps:$4 sm:$0xff]   ;;  %v4660_v15 = vld [vmem:[%s6455_s3 + $0x448] ss:$16 sps:$4 sm:$0xff]  }
  0xa6   : > { %2365 = vmatprep.subr.bf16.mxu1 %v4593_v16  ;;  %v4663_v16 = vld [vmem:[%s6455_s3 + $0x648] ss:$16 sps:$4 sm:$0xff]  }
  0xa8   : > { %2325 = vmatpush1.bf16.msra.mxu0 %v4588_v17  ;;  %v4668_v17 = vld [vmem:[%s6455_s3 + $0x46c] ss:$16 sps:$4 sm:$0xff]  }
  0xa9   : > { %2366 = vmatpush1.bf16.msra.mxu1 %v4591_v18  ;;  %2326 = vmatprep.subr.bf16.mxu0 %v4596_v19  ;;  %v4669_v18 = vld [vmem:[%s6455_s3 + $0x668] ss:$16 sps:$4 sm:$0xff]   ;;  %v4674_v19 = vld [vmem:[%s6455_s3 + $0x48c] ss:$16 sps:$4 sm:$0xff]  }
  0xaa   : > { %2367 = vmatprep.subr.bf16.mxu1 %v4599_v21  ;;  %v4677_v21 = vld [vmem:[%s6455_s3 + $0x68c] ss:$16 sps:$4 sm:$0xff]  }
  0xac   : > { %2327 = vmatpush1.bf16.msra.mxu0 %v4594_v22  ;;  %v4672_v22 = vld [vmem:[%s6455_s3 + $0x488] ss:$16 sps:$4 sm:$0xff]  }
  0xad   : > { %2368 = vmatpush1.bf16.msra.mxu1 %v4597_v23  ;;  %2328 = vmatprep.subr.bf16.mxu0 %v4602_v25  ;;  %v4675_v23 = vld [vmem:[%s6455_s3 + $0x688] ss:$16 sps:$4 sm:$0xff]   ;;  %v555_v25 = vlaneseq }
  0xae   : > { %2369 = vmatprep.subr.bf16.mxu1 %v4605_v26  ;;  %v4680_v26 = vld [vmem:[%s6455_s3 + $0x4ac] ss:$16 sps:$4 sm:$0xff]  }
  0xb0   : > { %2329 = vmatpush1.bf16.msra.mxu0 %v4600_v27  ;;  %v4683_v27 = vld [vmem:[%s6455_s3 + $0x6ac] ss:$16 sps:$4 sm:$0xff]  }
  0xb1   : > { %2370 = vmatpush1.bf16.msra.mxu1 %v4603_v28  ;;  %2330 = vmatprep.subr.bf16.mxu0 %v4608_v29  ;;  %v4678_v28 = vld [vmem:[%s6455_s3 + $0x4a8] ss:$16 sps:$4 sm:$0xff]  }
  0xb2   : > { %2371 = vmatprep.subr.bf16.mxu1 %v4611_v30  ;;  %v4681_v29 = vld [vmem:[%s6455_s3 + $0x6a8] ss:$16 sps:$4 sm:$0xff]   ;;  %v5832_v30 = vshrl.u32 %v555_v25, 7  ;;  %v2616_v25 = vrot.slane %v5314_v24, 1  ;;  %v4863_v24 = vld [vmem:[%s6455_s3 + $0xa6c] ss:$16 sps:$4 sm:$0xff]  }
  0xb4   : > { %2331 = vmatpush1.bf16.msra.mxu0 %v4606_v31  ;;  %v4686_v31 = vld [vmem:[%s6455_s3 + $0x4cc] ss:$16 sps:$4 sm:$0xff]  }
  0xb5   : > { %2372 = vmatpush1.bf16.msra.mxu1 %v4609_v32  ;;  %2332 = vmatprep.subr.bf16.mxu0 %v4614_v33  ;;  %v4689_v32 = vld [vmem:[%s6455_s3 + $0x6cc] ss:$16 sps:$4 sm:$0xff]   ;;  %v4684_v33 = vld [vmem:[%s6455_s3 + $0x4c8] ss:$16 sps:$4 sm:$0xff]  }
  0xb6   : > { %2373 = vmatprep.subr.bf16.mxu1 %v4617_v34  ;;  %v565_v34 = vsub.s32 2, %v5832_v30 }
  0xb8   : > { %2333 = vmatpush1.bf16.msra.mxu0 %v4612_v35  ;;  %v5847_v35 = vld [vmem:[%s6456_s4] sm:$0xf] }
  0xb9   : > { %2374 = vmatpush1.bf16.msra.mxu1 %v4615_v36  ;;  %2334 = vmatprep.subr.bf16.mxu0 %v4620_v37  ;;  %v569_v36 = vsub.s32 3, %v5832_v30  ;;  %v4687_v37 = vld [vmem:[%s6455_s3 + $0x6c8] ss:$16 sps:$4 sm:$0xff]  }
  0xba   : > { %2375 = vmatprep.subr.bf16.mxu1 %v4623_v38  ;;  %v5854_v38 = vrot.slane %v5847_v35, %v565_v34  ;;  %v4765_v34 = vld [vmem:[%s6455_s3 + $0xa60] ss:$16 sps:$4 sm:$0xff]  }
  0xbc   : > { %2335 = vmatpush1.bf16.msra.mxu0 %v4618_v39  ;;  %v4692_v39 = vld [vmem:[%s6455_s3 + $0x4ec] ss:$16 sps:$4 sm:$0xff]  }
  0xbd   : > { %2376 = vmatpush1.bf16.msra.mxu1 %v4621_v40  ;;  %2336 = vmatprep.subr.bf16.mxu0 %v4626_v41  ;;  %v4695_v40 = vld [vmem:[%s6455_s3 + $0x6ec] ss:$16 sps:$4 sm:$0xff]   ;;  %v5863_v41 = vrot.slane %v5847_v35, %v569_v36  ;;  %v4770_v36 = vld [vmem:[%s6455_s3 + $0x884] ss:$16 sps:$4 sm:$0xff]  }
  0xbe   : > { %2377 = vmatprep.subr.bf16.mxu1 %v4629_v42  ;;  %v4690_v42 = vld [vmem:[%s6455_s3 + $0x4e8] ss:$16 sps:$4 sm:$0xff]  }
  0xc0   : > { %2337 = vmatpush1.bf16.msra.mxu0 %v4624_v43  ;;  %v4693_v43 = vld [vmem:[%s6455_s3 + $0x6e8] ss:$16 sps:$4 sm:$0xff]  }
  0xc1   : > { %2378 = vmatpush1.bf16.msra.mxu1 %v4627_v44  ;;  %2338 = vmatprep.subr.bf16.mxu0 %v4632_v47  ;;  %v4698_v44 = vld [vmem:[%s6455_s3 + $0x50c] ss:$16 sps:$4 sm:$0xff]  }
  0xc2   : > { %2379 = vmatprep.subr.bf16.mxu1 %v4635_v48  ;;  %v4701_v47 = vld [vmem:[%s6455_s3 + $0x70c] ss:$16 sps:$4 sm:$0xff]   ;;  %v4696_v48 = vld [vmem:[%s6455_s3 + $0x508] ss:$16 sps:$4 sm:$0xff]  }
  0xc4   : > { %2339 = vmatpush1.bf16.msra.mxu0 %v4630_v49  ;;  %v4699_v49 = vld [vmem:[%s6455_s3 + $0x708] ss:$16 sps:$4 sm:$0xff]  }
  0xc5   : > { %2380 = vmatpush1.bf16.msra.mxu1 %v4633_v50  ;;  %2340 = vmatprep.subr.bf16.mxu0 %v4638_v51  ;;  %v4704_v50 = vld [vmem:[%s6455_s3 + $0x52c] ss:$16 sps:$4 sm:$0xff]  }
  0xc6   : > { %2381 = vmatprep.subr.bf16.mxu1 %v4641_v52  ;;  %v4707_v51 = vld [vmem:[%s6455_s3 + $0x72c] ss:$16 sps:$4 sm:$0xff]   ;;  %v4702_v52 = vld [vmem:[%s6455_s3 + $0x528] ss:$16 sps:$4 sm:$0xff]  }
  0xc8   : > { %2341 = vmatpush1.bf16.msra.mxu0 %v4636_v54  ;;  %v4710_v54 = vld [vmem:[%s6455_s3 + $0x54c] ss:$16 sps:$4 sm:$0xff]  }
  0xc9   : > { %2382 = vmatpush1.bf16.msra.mxu1 %v4639_v55  ;;  %2342 = vmatprep.subr.bf16.mxu0 %v4644_v57  ;;  %v4713_v55 = vld [vmem:[%s6455_s3 + $0x74c] ss:$16 sps:$4 sm:$0xff]   ;;  %v4711_v57 = vld [vmem:[%s6455_s3 + $0x748] ss:$16 sps:$4 sm:$0xff]  }
  0xca   : > { %2383 = vmatprep.subr.bf16.mxu1 %v4647_v58  ;;  %v4716_v58 = vld [vmem:[%s6455_s3 + $0x56c] ss:$16 sps:$4 sm:$0xff]  }
  0xcc   : > { %2343 = vmatpush1.bf16.msra.mxu0 %v4642_v63  ;;  %v4717_v63 = vld [vmem:[%s6455_s3 + $0x768] ss:$16 sps:$4 sm:$0xff]  }
  0xcd   : > { %2384 = vmatpush1.bf16.msra.mxu1 %v4645_v2  ;;  %2394 = vmatprep.subr.bf16.mxu0 %v4650_v3  ;;  %v4720_v2 = vld [vmem:[%s6455_s3 + $0x588] ss:$16 sps:$4 sm:$0xff]  }
  0xce   : > { %2435 = vmatprep.subr.bf16.mxu1 %v4653_v4  ;;  %v4723_v3 = vld [vmem:[%s6455_s3 + $0x788] ss:$16 sps:$4 sm:$0xff]   ;;  %v4728_v4 = vld [vmem:[%s6455_s3 + $0x5ac] ss:$16 sps:$4 sm:$0xff]  }
  0xcf   : > { %2345 = vmatmul.mubr.bf16.vlgmr.msra.gmra.mrb[8].mxu0 %v5758_v5 }
  0xd0   : > { %2386 = vmatmul.mubr.bf16.vlgmr.msra.gmra.mrb[8].mxu1 %v5760_v6  ;;  %2395 = vmatpush1.bf16.msra.mxu0 %v4648_v7  ;;  %v4731_v7 = vld [vmem:[%s6455_s3 + $0x7ac] ss:$16 sps:$4 sm:$0xff]  }
  0xd1   : > { %2436 = vmatpush1.bf16.msra.mxu1 %v4651_v8  ;;  %2396 = vmatprep.subr.bf16.mxu0 %v4656_v9  ;;  %v4726_v8 = vld [vmem:[%s6455_s3 + $0x5a8] ss:$16 sps:$4 sm:$0xff]  }
  0xd2   : > { %2437 = vmatprep.subr.bf16.mxu1 %v4659_v10  ;;  %2426 = vmatprep.mubr.bf16.mxu0 %v5566_v59  ;;  %v4671_v59 = vld [vmem:[%s6455_s3 + $0x66c] ss:$16 sps:$4 sm:$0xff]   ;;  %v4729_v9 = vld [vmem:[%s6455_s3 + $0x7a8] ss:$16 sps:$4 sm:$0xff]  }
  0xd3   : > { %2467 = vmatprep.mubr.bf16.mxu1 %v5568_v60  ;;  %v4666_v60 = vld [vmem:[%s6455_s3 + $0x468] ss:$16 sps:$4 sm:$0xff]   ;;  %v4734_v10 = vld [vmem:[%s6455_s3 + $0x5cc] ss:$16 sps:$4 sm:$0xff]  }
  0xd4   : > { %2397 = vmatpush1.bf16.msra.mxu0 %v4654_v11  ;;  %v4737_v11 = vld [vmem:[%s6455_s3 + $0x7cc] ss:$16 sps:$4 sm:$0xff]  }
  0xd5   : > { %2438 = vmatpush1.bf16.msra.mxu1 %v4657_v12  ;;  %2398 = vmatprep.subr.bf16.mxu0 %v4662_v13  ;;  %v4732_v12 = vld [vmem:[%s6455_s3 + $0x5c8] ss:$16 sps:$4 sm:$0xff]  }
  0xd6   : > { %2439 = vmatprep.subr.bf16.mxu1 %v4665_v14  ;;  %v4735_v13 = vld [vmem:[%s6455_s3 + $0x7c8] ss:$16 sps:$4 sm:$0xff]   ;;  %v4740_v14 = vld [vmem:[%s6455_s3 + $0x5ec] ss:$16 sps:$4 sm:$0xff]  }
  0xd8   : > { %2399 = vmatpush1.bf16.msra.mxu0 %v4660_v15  ;;  %v4743_v15 = vld [vmem:[%s6455_s3 + $0x7ec] ss:$16 sps:$4 sm:$0xff]  }
  0xd9   : > { %2440 = vmatpush1.bf16.msra.mxu1 %v4663_v16  ;;  %2400 = vmatprep.subr.bf16.mxu0 %v4668_v17  ;;  %v4738_v16 = vld [vmem:[%s6455_s3 + $0x5e8] ss:$16 sps:$4 sm:$0xff]  }
  0xda   : > { %2441 = vmatprep.subr.bf16.mxu1 %v4671_v59  ;;  %v4741_v17 = vld [vmem:[%s6455_s3 + $0x7e8] ss:$16 sps:$4 sm:$0xff]   ;;  %v4746_v59 = vld [vmem:[%s6455_s3 + $0x804] ss:$16 sps:$4 sm:$0xff]  }
  0xdc   : > { %2401 = vmatpush1.bf16.msra.mxu0 %v4666_v60  ;;  %v4749_v60 = vld [vmem:[%s6455_s3 + $0xa04] ss:$16 sps:$4 sm:$0xff]  }
  0xdd   : > { %2442 = vmatpush1.bf16.msra.mxu1 %v4669_v18  ;;  %2402 = vmatprep.subr.bf16.mxu0 %v4674_v19  ;;  %v4744_v18 = vld [vmem:[%s6455_s3 + $0x800] ss:$16 sps:$4 sm:$0xff]  }
  0xde   : > { %2443 = vmatprep.subr.bf16.mxu1 %v4677_v21  ;;  %v4747_v19 = vld [vmem:[%s6455_s3 + $0xa00] ss:$16 sps:$4 sm:$0xff]   ;;  %v4752_v21 = vld [vmem:[%s6455_s3 + $0x824] ss:$16 sps:$4 sm:$0xff]  }
  0xe0   : > { %2403 = vmatpush1.bf16.msra.mxu0 %v4672_v22  ;;  %v4755_v22 = vld [vmem:[%s6455_s3 + $0xa24] ss:$16 sps:$4 sm:$0xff]  }
  0xe1   : > { %2444 = vmatpush1.bf16.msra.mxu1 %v4675_v23  ;;  %2404 = vmatprep.subr.bf16.mxu0 %v4680_v26  ;;  %v2614_v23 = vrot.slane %v5308_v20, 1  ;;  %v4750_v26 = vld [vmem:[%s6455_s3 + $0x820] ss:$16 sps:$4 sm:$0xff]   ;;  %v4860_v20 = vld [vmem:[%s6455_s3 + $0x86c] ss:$16 sps:$4 sm:$0xff]  }
  0xe2   : > { %2445 = vmatprep.subr.bf16.mxu1 %v4683_v27  ;;  %v4753_v27 = vld [vmem:[%s6455_s3 + $0xa20] ss:$16 sps:$4 sm:$0xff]  }
  0xe4   : > { %2405 = vmatpush1.bf16.msra.mxu0 %v4678_v28  ;;  %v4758_v28 = vld [vmem:[%s6455_s3 + $0x844] ss:$16 sps:$4 sm:$0xff]  }
  0xe5   : > { %2446 = vmatpush1.bf16.msra.mxu1 %v4681_v29  ;;  %2406 = vmatprep.subr.bf16.mxu0 %v4686_v31  ;;  %v4759_v29 = vld [vmem:[%s6455_s3 + $0xa40] ss:$16 sps:$4 sm:$0xff]   ;;  %v4764_v31 = vld [vmem:[%s6455_s3 + $0x864] ss:$16 sps:$4 sm:$0xff]  }
  0xe6   : > { %2447 = vmatprep.subr.bf16.mxu1 %v4689_v32  ;;  %v4767_v32 = vld [vmem:[%s6455_s3 + $0xa64] ss:$16 sps:$4 sm:$0xff]  }
  0xe8   : > { %2407 = vmatpush1.bf16.msra.mxu0 %v4684_v33  ;;  %v4762_v33 = vld [vmem:[%s6455_s3 + $0x860] ss:$16 sps:$4 sm:$0xff]  }
  0xe9   : > { %2448 = vmatpush1.bf16.msra.mxu1 %v4687_v37  ;;  %2408 = vmatprep.subr.bf16.mxu0 %v4692_v39  ;;  %v4773_v37 = vld [vmem:[%s6455_s3 + $0xa84] ss:$16 sps:$4 sm:$0xff]   ;;  %v4768_v39 = vld [vmem:[%s6455_s3 + $0x880] ss:$16 sps:$4 sm:$0xff]  }
  0xea   : > { %2449 = vmatprep.subr.bf16.mxu1 %v4695_v40  ;;  %v4771_v40 = vld [vmem:[%s6455_s3 + $0xa80] ss:$16 sps:$4 sm:$0xff]  }
  0xec   : > { %2409 = vmatpush1.bf16.msra.mxu0 %v4690_v42  ;;  %v4776_v42 = vld [vmem:[%s6455_s3 + $0x8a4] ss:$16 sps:$4 sm:$0xff]  }
  0xed   : > { %2450 = vmatpush1.bf16.msra.mxu1 %v4693_v43  ;;  %2410 = vmatprep.subr.bf16.mxu0 %v4698_v44  ;;  %v4779_v43 = vld [vmem:[%s6455_s3 + $0xaa4] ss:$16 sps:$4 sm:$0xff]   ;;  %v4774_v44 = vld [vmem:[%s6455_s3 + $0x8a0] ss:$16 sps:$4 sm:$0xff]  }
  0xee   : > { %2451 = vmatprep.subr.bf16.mxu1 %v4701_v47  ;;  %v4777_v47 = vld [vmem:[%s6455_s3 + $0xaa0] ss:$16 sps:$4 sm:$0xff]  }
  0xf0   : > { %2411 = vmatpush1.bf16.msra.mxu0 %v4696_v48  ;;  %v4782_v48 = vld [vmem:[%s6455_s3 + $0x8c4] ss:$16 sps:$4 sm:$0xff]  }
  0xf1   : > { %2452 = vmatpush1.bf16.msra.mxu1 %v4699_v49  ;;  %2412 = vmatprep.subr.bf16.mxu0 %v4704_v50  ;;  %v4785_v49 = vld [vmem:[%s6455_s3 + $0xac4] ss:$16 sps:$4 sm:$0xff]  }
  0xf2   : > { %2453 = vmatprep.subr.bf16.mxu1 %v4707_v51 }
  0xf4   : > { %2413 = vmatpush1.bf16.msra.mxu0 %v4702_v52 }
  0xf5   : > { %2454 = vmatpush1.bf16.msra.mxu1 %v4705_v53  ;;  %2414 = vmatprep.subr.bf16.mxu0 %v4710_v54 }
  0xf6   : > { %2455 = vmatprep.subr.bf16.mxu1 %v4713_v55 }
  0xf8   : > { %2415 = vmatpush1.bf16.msra.mxu0 %v4708_v56 }
  0xf9   : > { %2456 = vmatpush1.bf16.msra.mxu1 %v4711_v57  ;;  %2416 = vmatprep.subr.bf16.mxu0 %v4716_v58  ;;  %v4780_v58 = vld [vmem:[%s6455_s3 + $0x8c0] ss:$16 sps:$4 sm:$0xff]  }
  0xfa   : > { %2457 = vmatprep.subr.bf16.mxu1 %v4719_v61  ;;  %v4783_v61 = vld [vmem:[%s6455_s3 + $0xac0] ss:$16 sps:$4 sm:$0xff]  }
  0xfc   : > { %2417 = vmatpush1.bf16.msra.mxu0 %v4714_v62 }
  0xfd   : > { %2458 = vmatpush1.bf16.msra.mxu1 %v4717_v63  ;;  %2418 = vmatprep.subr.bf16.mxu0 %v4722_v0  ;;  %v4788_v0 = vld [vmem:[%s6455_s3 + $0x8e4] ss:$16 sps:$4 sm:$0xff]  }
  0xfe   : > { %2459 = vmatprep.subr.bf16.mxu1 %v4725_v1  ;;  %v4791_v1 = vld [vmem:[%s6455_s3 + $0xae4] ss:$16 sps:$4 sm:$0xff]  }
 0x100   : > { %2419 = vmatpush1.bf16.msra.mxu0 %v4720_v2  ;;  %v4786_v2 = vld [vmem:[%s6455_s3 + $0x8e0] ss:$16 sps:$4 sm:$0xff]  }
 0x101   : > { %2460 = vmatpush1.bf16.msra.mxu1 %v4723_v3  ;;  %2420 = vmatprep.subr.bf16.mxu0 %v4728_v4  ;;  %v4789_v3 = vld [vmem:[%s6455_s3 + $0xae0] ss:$16 sps:$4 sm:$0xff]   ;;  %v4794_v4 = vld [vmem:[%s6455_s3 + $0x904] ss:$16 sps:$4 sm:$0xff]  }
 0x102   : > { %2461 = vmatprep.subr.bf16.mxu1 %v4731_v7  ;;  %v4797_v7 = vld [vmem:[%s6455_s3 + $0xb04] ss:$16 sps:$4 sm:$0xff]  }
 0x104   : > { %2421 = vmatpush1.bf16.msra.mxu0 %v4726_v8  ;;  %v4792_v8 = vld [vmem:[%s6455_s3 + $0x900] ss:$16 sps:$4 sm:$0xff]  }
 0x105   : > { %2462 = vmatpush1.bf16.msra.mxu1 %v4729_v9  ;;  %2422 = vmatprep.subr.bf16.mxu0 %v4734_v10  ;;  %v4795_v9 = vld [vmem:[%s6455_s3 + $0xb00] ss:$16 sps:$4 sm:$0xff]   ;;  %v4800_v10 = vld [vmem:[%s6455_s3 + $0x924] ss:$16 sps:$4 sm:$0xff]  }
 0x106   : > { %2463 = vmatprep.subr.bf16.mxu1 %v4737_v11  ;;  %v4803_v11 = vld [vmem:[%s6455_s3 + $0xb24] ss:$16 sps:$4 sm:$0xff]  }
 0x108   : > { %2423 = vmatpush1.bf16.msra.mxu0 %v4732_v12  ;;  %v4798_v12 = vld [vmem:[%s6455_s3 + $0x920] ss:$16 sps:$4 sm:$0xff]  }
 0x109   : > { %2464 = vmatpush1.bf16.msra.mxu1 %v4735_v13  ;;  %2424 = vmatprep.subr.bf16.mxu0 %v4740_v14  ;;  %v4801_v13 = vld [vmem:[%s6455_s3 + $0xb20] ss:$16 sps:$4 sm:$0xff]   ;;  %v4806_v14 = vld [vmem:[%s6455_s3 + $0x944] ss:$16 sps:$4 sm:$0xff]  }
 0x10a   : > { %2465 = vmatprep.subr.bf16.mxu1 %v4743_v15  ;;  %v4809_v15 = vld [vmem:[%s6455_s3 + $0xb44] ss:$16 sps:$4 sm:$0xff]  }
 0x10c   : > { %2425 = vmatpush1.bf16.msra.mxu0 %v4738_v16  ;;  %v4804_v16 = vld [vmem:[%s6455_s3 + $0x940] ss:$16 sps:$4 sm:$0xff]  }
 0x10d   : > { %2466 = vmatpush1.bf16.msra.mxu1 %v4741_v17  ;;  %3261 = vmatprep.subr.bf16.mxu0 %v4746_v59  ;;  %v4807_v17 = vld [vmem:[%s6455_s3 + $0xb40] ss:$16 sps:$4 sm:$0xff]   ;;  %v4812_v59 = vld [vmem:[%s6455_s3 + $0x964] ss:$16 sps:$4 sm:$0xff]  }
 0x10e   : > { %3302 = vmatprep.subr.bf16.mxu1 %v4749_v60  ;;  %v4815_v60 = vld [vmem:[%s6455_s3 + $0xb64] ss:$16 sps:$4 sm:$0xff]  }
 0x10f   : > { %2427 = vmatmul.mubr.bf16.vlgmr.msra.gmra.mrb[12].mxu0 %v5758_v5  ;;  %v4761_v5 = vld [vmem:[%s6455_s3 + $0xa44] ss:$16 sps:$4 sm:$0xff]  }
 0x110   : > { %2468 = vmatmul.mubr.bf16.vlgmr.msra.gmra.mrb[12].mxu1 %v5760_v6  ;;  %3262 = vmatpush1.bf16.msra.mxu0 %v4744_v18  ;;  %v4756_v6 = vld [vmem:[%s6455_s3 + $0x840] ss:$16 sps:$4 sm:$0xff]  }
 0x111   : > { %3303 = vmatpush1.bf16.msra.mxu1 %v4747_v19  ;;  %3263 = vmatprep.subr.bf16.mxu0 %v4752_v21  ;;  %v4810_v18 = vld [vmem:[%s6455_s3 + $0x960] ss:$16 sps:$4 sm:$0xff]   ;;  %v4818_v21 = vld [vmem:[%s6455_s3 + $0x984] ss:$16 sps:$4 sm:$0xff]  }
 0x112   : > { %3304 = vmatprep.subr.bf16.mxu1 %v4755_v22  ;;  %3293 = vmatprep.mubr.bf16.mxu0 %v2614_v23  ;;  %v4813_v19 = vld [vmem:[%s6455_s3 + $0xb60] ss:$16 sps:$4 sm:$0xff]   ;;  %v4821_v22 = vld [vmem:[%s6455_s3 + $0xb84] ss:$16 sps:$4 sm:$0xff]  }
 0x113   : > { %3334 = vmatprep.mubr.bf16.mxu1 %v2616_v25 }
 0x114   : > { %3264 = vmatpush1.bf16.msra.mxu0 %v4750_v26  ;;  %v4816_v26 = vld [vmem:[%s6455_s3 + $0x980] ss:$16 sps:$4 sm:$0xff]  }
 0x115   : > { %3305 = vmatpush1.bf16.msra.mxu1 %v4753_v27  ;;  %3265 = vmatprep.subr.bf16.mxu0 %v4758_v28  ;;  %v4819_v27 = vld [vmem:[%s6455_s3 + $0xb80] ss:$16 sps:$4 sm:$0xff]   ;;  %v4824_v28 = vld [vmem:[%s6455_s3 + $0x9a4] ss:$16 sps:$4 sm:$0xff]  }
 0x116   : > { %3306 = vmatprep.subr.bf16.mxu1 %v4761_v5  ;;  %v4827_v5 = vld [vmem:[%s6455_s3 + $0xba4] ss:$16 sps:$4 sm:$0xff]  }
 0x118   : > { %3266 = vmatpush1.bf16.msra.mxu0 %v4756_v6  ;;  %v4822_v6 = vld [vmem:[%s6455_s3 + $0x9a0] ss:$16 sps:$4 sm:$0xff]  }
 0x119   : > { %3307 = vmatpush1.bf16.msra.mxu1 %v4759_v29  ;;  %3267 = vmatprep.subr.bf16.mxu0 %v4764_v31  ;;  %v4825_v29 = vld [vmem:[%s6455_s3 + $0xba0] ss:$16 sps:$4 sm:$0xff]   ;;  %v4830_v31 = vld [vmem:[%s6455_s3 + $0x9c4] ss:$16 sps:$4 sm:$0xff]  }
 0x11a   : > { %3308 = vmatprep.subr.bf16.mxu1 %v4767_v32  ;;  %v4833_v32 = vld [vmem:[%s6455_s3 + $0xbc4] ss:$16 sps:$4 sm:$0xff]  }
 0x11c   : > { %3268 = vmatpush1.bf16.msra.mxu0 %v4762_v33  ;;  %v4828_v33 = vld [vmem:[%s6455_s3 + $0x9c0] ss:$16 sps:$4 sm:$0xff]  }
 0x11d   : > { %3309 = vmatpush1.bf16.msra.mxu1 %v4765_v34  ;;  %3269 = vmatprep.subr.bf16.mxu0 %v4770_v36  ;;  %v4831_v34 = vld [vmem:[%s6455_s3 + $0xbc0] ss:$16 sps:$4 sm:$0xff]   ;;  %v4836_v36 = vld [vmem:[%s6455_s3 + $0x9e4] ss:$16 sps:$4 sm:$0xff]  }
 0x11e   : > { %3310 = vmatprep.subr.bf16.mxu1 %v4773_v37  ;;  %v4839_v37 = vld [vmem:[%s6455_s3 + $0xbe4] ss:$16 sps:$4 sm:$0xff]  }
 0x120   : > { %3270 = vmatpush1.bf16.msra.mxu0 %v4768_v39  ;;  %v4834_v39 = vld [vmem:[%s6455_s3 + $0x9e0] ss:$16 sps:$4 sm:$0xff]  }
 0x121   : > { %3311 = vmatpush1.bf16.msra.mxu1 %v4771_v40  ;;  %3271 = vmatprep.subr.bf16.mxu0 %v4776_v42  ;;  %v4837_v40 = vld [vmem:[%s6455_s3 + $0xbe0] ss:$16 sps:$4 sm:$0xff]   ;;  %v4842_v42 = vld [vmem:[%s6455_s3 + $0x80c] ss:$16 sps:$4 sm:$0xff]  }
 0x122   : > { %3312 = vmatprep.subr.bf16.mxu1 %v4779_v43  ;;  %v1377_v50 = vpop.f32.mrb[0].mxu0  ;;  %v4845_v43 = vld [vmem:[%s6455_s3 + $0xa0c] ss:$16 sps:$4 sm:$0xff]  }
 0x123   : > { %v1418_v51 = vpop.f32.mrb[0].mxu1  ;;  %v1379_v53 = vpop.f32.mrb[1].mxu0 }
 0x124   : > { %v6053_v52 = vadd.f32 %v1418_v51, %v1377_v50  ;;  %v1420_v54 = vpop.f32.mrb[1].mxu1  ;;  %v1381_v56 = vpop.f32.mrb[2].mxu0  ;;  %3272 = vmatpush1.bf16.msra.mxu0 %v4774_v44  ;;  %v2613_v44 = vrot.slane %v5354_v45, 1  ;;  %v4848_v50 = vld [vmem:[%s6455_s3 + $0x82c] ss:$16 sps:$4 sm:$0xff]  }
 0x125   : > { %v6055_v55 = vadd.f32 %v1420_v54, %v1379_v53  ;;  %v1422_v57 = vpop.f32.mrb[2].mxu1  ;;  %3313 = vmatpush1.bf16.msra.mxu1 %v4777_v47  ;;  %v1382_v62 = vpop.f32.mrb[3].mxu0  ;;  %3273 = vmatprep.subr.bf16.mxu0 %v4782_v48  ;;  %v2615_v47 = vrot.slane %v5358_v46, 1  ;;  %v4840_v48 = vld [vmem:[%s6455_s3 + $0x808] ss:$16 sps:$4 sm:$0xff]  }
 0x126   : > { %v1423_v63 = vpop.f32.mrb[3].mxu1  ;;  %3314 = vmatprep.subr.bf16.mxu1 %v4785_v49  ;;  %v4843_v49 = vld [vmem:[%s6455_s3 + $0xa08] ss:$16 sps:$4 sm:$0xff]   ;;  %v4851_v51 = vld [vmem:[%s6455_s3 + $0xa2c] ss:$16 sps:$4 sm:$0xff]  }
 0x127   : > { %v4846_v53 = vld [vmem:[%s6455_s3 + $0x828] ss:$16 sps:$4 sm:$0xff]   ;;  %v4854_v56 = vld [vmem:[%s6455_s3 + $0x84c] ss:$16 sps:$4 sm:$0xff]  }
 0x128   : > { %3274 = vmatpush1.bf16.msra.mxu0 %v4780_v58  ;;  %v4849_v54 = vld [vmem:[%s6455_s3 + $0xa28] ss:$16 sps:$4 sm:$0xff]   ;;  %v4857_v57 = vld [vmem:[%s6455_s3 + $0xa4c] ss:$16 sps:$4 sm:$0xff]  }
 0x129   : > { %3315 = vmatpush1.bf16.msra.mxu1 %v4783_v61  ;;  %3275 = vmatprep.subr.bf16.mxu0 %v4788_v0  ;;  %v4852_v58 = vld [vmem:[%s6455_s3 + $0x848] ss:$16 sps:$4 sm:$0xff]   ;;  %v4866_v62 = vld [vmem:[%s6455_s3 + $0x88c] ss:$16 sps:$4 sm:$0xff]  }
 0x12a   : > { %3316 = vmatprep.subr.bf16.mxu1 %v4791_v1  ;;  %v4855_v61 = vld [vmem:[%s6455_s3 + $0xa48] ss:$16 sps:$4 sm:$0xff]   ;;  %v4869_v63 = vld [vmem:[%s6455_s3 + $0xa8c] ss:$16 sps:$4 sm:$0xff]  }
 0x12b   : > { %v4864_v0 = vld [vmem:[%s6455_s3 + $0x888] ss:$16 sps:$4 sm:$0xff]  }
 0x12c   : > { %3276 = vmatpush1.bf16.msra.mxu0 %v4786_v2  ;;  %v4867_v1 = vld [vmem:[%s6455_s3 + $0xa88] ss:$16 sps:$4 sm:$0xff]   ;;  %v4872_v2 = vld [vmem:[%s6455_s3 + $0x8ac] ss:$16 sps:$4 sm:$0xff]  }
 0x12d   : > { %3317 = vmatpush1.bf16.msra.mxu1 %v4789_v3  ;;  %3277 = vmatprep.subr.bf16.mxu0 %v4794_v4  ;;  %v4875_v3 = vld [vmem:[%s6455_s3 + $0xaac] ss:$16 sps:$4 sm:$0xff]   ;;  %v4870_v4 = vld [vmem:[%s6455_s3 + $0x8a8] ss:$16 sps:$4 sm:$0xff]  }
 0x12e   : > { %3318 = vmatprep.subr.bf16.mxu1 %v4797_v7  ;;  %v4873_v7 = vld [vmem:[%s6455_s3 + $0xaa8] ss:$16 sps:$4 sm:$0xff]  }
 0x130   : > { %3278 = vmatpush1.bf16.msra.mxu0 %v4792_v8  ;;  %v4878_v8 = vld [vmem:[%s6455_s3 + $0x8cc] ss:$16 sps:$4 sm:$0xff]  }
 0x131   : > { %3319 = vmatpush1.bf16.msra.mxu1 %v4795_v9  ;;  %3279 = vmatprep.subr.bf16.mxu0 %v4800_v10  ;;  %v4881_v9 = vld [vmem:[%s6455_s3 + $0xacc] ss:$16 sps:$4 sm:$0xff]  }
 0x132   : > { %3320 = vmatprep.subr.bf16.mxu1 %v4803_v11 }
 0x134   : > { %3280 = vmatpush1.bf16.msra.mxu0 %v4798_v12 }
 0x135   : > { %3321 = vmatpush1.bf16.msra.mxu1 %v4801_v13  ;;  %3281 = vmatprep.subr.bf16.mxu0 %v4806_v14 }
 0x136   : > { %3322 = vmatprep.subr.bf16.mxu1 %v4809_v15 }
 0x138   : > { %3282 = vmatpush1.bf16.msra.mxu0 %v4804_v16 }
 0x139   : > { %3323 = vmatpush1.bf16.msra.mxu1 %v4807_v17  ;;  %3283 = vmatprep.subr.bf16.mxu0 %v4812_v59  ;;  %v4876_v59 = vld [vmem:[%s6455_s3 + $0x8c8] ss:$16 sps:$4 sm:$0xff]  }
 0x13a   : > { %3324 = vmatprep.subr.bf16.mxu1 %v4815_v60  ;;  %v4879_v60 = vld [vmem:[%s6455_s3 + $0xac8] ss:$16 sps:$4 sm:$0xff]  }
 0x13c   : > { %3284 = vmatpush1.bf16.msra.mxu0 %v4810_v18 }
 0x13d   : > { %3325 = vmatpush1.bf16.msra.mxu1 %v4813_v19  ;;  %3285 = vmatprep.subr.bf16.mxu0 %v4818_v21 }
 0x13e   : > { %3326 = vmatprep.subr.bf16.mxu1 %v4821_v22  ;;  %v4884_v22 = vld [vmem:[%s6455_s3 + $0x8ec] ss:$16 sps:$4 sm:$0xff]  }
 0x140   : > { %3286 = vmatpush1.bf16.msra.mxu0 %v4816_v26  ;;  %v4887_v26 = vld [vmem:[%s6455_s3 + $0xaec] ss:$16 sps:$4 sm:$0xff]  }
 0x141   : > { %3327 = vmatpush1.bf16.msra.mxu1 %v4819_v27  ;;  %3287 = vmatprep.subr.bf16.mxu0 %v4824_v28  ;;  %v4885_v28 = vld [vmem:[%s6455_s3 + $0xae8] ss:$16 sps:$4 sm:$0xff]  }
 0x142   : > { %3328 = vmatprep.subr.bf16.mxu1 %v4827_v5  ;;  %v4890_v5 = vld [vmem:[%s6455_s3 + $0x90c] ss:$16 sps:$4 sm:$0xff]  }
 0x144   : > { %3288 = vmatpush1.bf16.msra.mxu0 %v4822_v6  ;;  %v4888_v6 = vld [vmem:[%s6455_s3 + $0x908] ss:$16 sps:$4 sm:$0xff]  }
 0x145   : > { %3329 = vmatpush1.bf16.msra.mxu1 %v4825_v29  ;;  %3289 = vmatprep.subr.bf16.mxu0 %v4830_v31  ;;  %v4891_v29 = vld [vmem:[%s6455_s3 + $0xb08] ss:$16 sps:$4 sm:$0xff]   ;;  %v4896_v31 = vld [vmem:[%s6455_s3 + $0x92c] ss:$16 sps:$4 sm:$0xff]  }
 0x146   : > { %3330 = vmatprep.subr.bf16.mxu1 %v4833_v32  ;;  %v4899_v32 = vld [vmem:[%s6455_s3 + $0xb2c] ss:$16 sps:$4 sm:$0xff]  }
 0x148   : > { %3290 = vmatpush1.bf16.msra.mxu0 %v4828_v33  ;;  %v4894_v33 = vld [vmem:[%s6455_s3 + $0x928] ss:$16 sps:$4 sm:$0xff]  }
 0x149   : > { %3331 = vmatpush1.bf16.msra.mxu1 %v4831_v34  ;;  %3291 = vmatprep.subr.bf16.mxu0 %v4836_v36  ;;  %v4897_v34 = vld [vmem:[%s6455_s3 + $0xb28] ss:$16 sps:$4 sm:$0xff]   ;;  %v4902_v36 = vld [vmem:[%s6455_s3 + $0x94c] ss:$16 sps:$4 sm:$0xff]  }
 0x14a   : > { %3332 = vmatprep.subr.bf16.mxu1 %v4839_v37  ;;  %v4905_v37 = vld [vmem:[%s6455_s3 + $0xb4c] ss:$16 sps:$4 sm:$0xff]  }
 0x14c   : > { %3292 = vmatpush1.bf16.msra.mxu0 %v4834_v39  ;;  %v4900_v39 = vld [vmem:[%s6455_s3 + $0x948] ss:$16 sps:$4 sm:$0xff]  }
 0x14d   : > { %3333 = vmatpush1.bf16.msra.mxu1 %v4837_v40  ;;  %3343 = vmatprep.subr.bf16.mxu0 %v4842_v42  ;;  %v4903_v40 = vld [vmem:[%s6455_s3 + $0xb48] ss:$16 sps:$4 sm:$0xff]   ;;  %v4908_v42 = vld [vmem:[%s6455_s3 + $0x96c] ss:$16 sps:$4 sm:$0xff]  }
 0x14e   : > { %3384 = vmatprep.subr.bf16.mxu1 %v4845_v43  ;;  %v4911_v43 = vld [vmem:[%s6455_s3 + $0xb6c] ss:$16 sps:$4 sm:$0xff]  }
 0x14f   : > { %3294 = vmatmul.mubr.bf16.vlgmr.msra.gmra.mrb[16].mxu0 %v2613_v44 }
 0x150   : > { %3335 = vmatmul.mubr.bf16.vlgmr.msra.gmra.mrb[16].mxu1 %v2615_v47  ;;  %3344 = vmatpush1.bf16.msra.mxu0 %v4840_v48  ;;  %v4906_v48 = vld [vmem:[%s6455_s3 + $0x968] ss:$16 sps:$4 sm:$0xff]  }
 0x151   : > { %3385 = vmatpush1.bf16.msra.mxu1 %v4843_v49  ;;  %3345 = vmatprep.subr.bf16.mxu0 %v4848_v50  ;;  %v4909_v49 = vld [vmem:[%s6455_s3 + $0xb68] ss:$16 sps:$4 sm:$0xff]   ;;  %v4914_v50 = vld [vmem:[%s6455_s3 + $0x98c] ss:$16 sps:$4 sm:$0xff]  }
 0x152   : > { %3386 = vmatprep.subr.bf16.mxu1 %v4851_v51  ;;  %3375 = vmatprep.mubr.bf16.mxu0 %v2614_v23  ;;  %v4858_v23 = vld [vmem:[%s6455_s3 + $0x868] ss:$16 sps:$4 sm:$0xff]   ;;  %v4917_v51 = vld [vmem:[%s6455_s3 + $0xb8c] ss:$16 sps:$4 sm:$0xff]  }
 0x153   : > { %3416 = vmatprep.mubr.bf16.mxu1 %v2616_v25  ;;  %v4861_v25 = vld [vmem:[%s6455_s3 + $0xa68] ss:$16 sps:$4 sm:$0xff]  }
 0x154   : > { %3346 = vmatpush1.bf16.msra.mxu0 %v4846_v53  ;;  %v4912_v53 = vld [vmem:[%s6455_s3 + $0x988] ss:$16 sps:$4 sm:$0xff]  }
 0x155   : > { %3387 = vmatpush1.bf16.msra.mxu1 %v4849_v54  ;;  %3347 = vmatprep.subr.bf16.mxu0 %v4854_v56  ;;  %v4915_v54 = vld [vmem:[%s6455_s3 + $0xb88] ss:$16 sps:$4 sm:$0xff]   ;;  %v4920_v56 = vld [vmem:[%s6455_s3 + $0x9ac] ss:$16 sps:$4 sm:$0xff]  }
 0x156   : > { %3388 = vmatprep.subr.bf16.mxu1 %v4857_v57  ;;  %v4923_v57 = vld [vmem:[%s6455_s3 + $0xbac] ss:$16 sps:$4 sm:$0xff]  }
 0x158   : > { %3348 = vmatpush1.bf16.msra.mxu0 %v4852_v58  ;;  %v4918_v58 = vld [vmem:[%s6455_s3 + $0x9a8] ss:$16 sps:$4 sm:$0xff]  }
 0x159   : > { %3389 = vmatpush1.bf16.msra.mxu1 %v4855_v61  ;;  %3349 = vmatprep.subr.bf16.mxu0 %v4860_v20  ;;  %v4921_v61 = vld [vmem:[%s6455_s3 + $0xba8] ss:$16 sps:$4 sm:$0xff]   ;;  %v4926_v20 = vld [vmem:[%s6455_s3 + $0x9cc] ss:$16 sps:$4 sm:$0xff]  }
 0x15a   : > { %3390 = vmatprep.subr.bf16.mxu1 %v4863_v24  ;;  %v4929_v24 = vld [vmem:[%s6455_s3 + $0xbcc] ss:$16 sps:$4 sm:$0xff]  }
 0x15c   : > { %3350 = vmatpush1.bf16.msra.mxu0 %v4858_v23  ;;  %v4924_v23 = vld [vmem:[%s6455_s3 + $0x9c8] ss:$16 sps:$4 sm:$0xff]  }
 0x15d   : > { %3391 = vmatpush1.bf16.msra.mxu1 %v4861_v25  ;;  %3351 = vmatprep.subr.bf16.mxu0 %v4866_v62  ;;  %v4927_v25 = vld [vmem:[%s6455_s3 + $0xbc8] ss:$16 sps:$4 sm:$0xff]   ;;  %v4932_v62 = vld [vmem:[%s6455_s3 + $0x9ec] ss:$16 sps:$4 sm:$0xff]  }
 0x15e   : > { %3392 = vmatprep.subr.bf16.mxu1 %v4869_v63  ;;  %v4935_v63 = vld [vmem:[%s6455_s3 + $0xbec] ss:$16 sps:$4 sm:$0xff]  }
 0x160   : > { %3352 = vmatpush1.bf16.msra.mxu0 %v4864_v0  ;;  %v4930_v0 = vld [vmem:[%s6455_s3 + $0x9e8] ss:$16 sps:$4 sm:$0xff]  }
 0x161   : > { %3393 = vmatpush1.bf16.msra.mxu1 %v4867_v1  ;;  %3353 = vmatprep.subr.bf16.mxu0 %v4872_v2  ;;  %v4933_v1 = vld [vmem:[%s6455_s3 + $0xbe8] ss:$16 sps:$4 sm:$0xff]   ;;  %v557_v2 = vsub.s32 0, %v5832_v30 }
 0x162   : > { %3394 = vmatprep.subr.bf16.mxu1 %v4875_v3  ;;  %v1459_v10 = vpop.f32.mrb[4].mxu0  ;;  %v561_v3 = vsub.s32 1, %v5832_v30 }
 0x163   : > { %v1500_v11 = vpop.f32.mrb[4].mxu1  ;;  %v1461_v13 = vpop.f32.mrb[5].mxu0 }
 0x164   : > { %v1501_v12 = vadd.f32 %v1500_v11, %v1459_v10  ;;  %v1502_v14 = vpop.f32.mrb[5].mxu1  ;;  %v1463_v16 = vpop.f32.mrb[6].mxu0  ;;  %3354 = vmatpush1.bf16.msra.mxu0 %v4870_v4  ;;  %v558_v4 = vrot.slane %v5847_v35, %v557_v2 }
 0x165   : > { %v1503_v15 = vadd.f32 %v1502_v14, %v1461_v13  ;;  %v1504_v17 = vpop.f32.mrb[6].mxu1  ;;  %3395 = vmatpush1.bf16.msra.mxu1 %v4873_v7  ;;  %v1464_v19 = vpop.f32.mrb[7].mxu0  ;;  %3355 = vmatprep.subr.bf16.mxu0 %v4878_v8  ;;  %v562_v7 = vrot.slane %v5847_v35, %v561_v3 }
 0x166   : > { %v6266_v18 = vadd.f32 %v1501_v12, %v5854_v38  ;;  %v1505_v21 = vpop.f32.mrb[7].mxu1  ;;  %3396 = vmatprep.subr.bf16.mxu1 %v4881_v9  ;;  %v4882_v38 = vld [vmem:[%s6455_s3 + $0x8e8] ss:$16 sps:$4 sm:$0xff]   ;;  %v1507_v10 = vadd.f32 %v6053_v52, %v558_v4 }
 0x167   : > { %v6275_v27 = vadd.f32 %v1503_v15, %v5863_v41  ;;  %v4893_v41 = vld [vmem:[%s6455_s3 + $0xb0c] ss:$16 sps:$4 sm:$0xff]   ;;  %v1508_v45 = vadd.f32 %v6055_v55, %v562_v7 }
 0x168   : > { %3356 = vmatpush1.bf16.msra.mxu0 %v4876_v59 }
 0x169   : > { %3397 = vmatpush1.bf16.msra.mxu1 %v4879_v60  ;;  %3357 = vmatprep.subr.bf16.mxu0 %v4884_v22 }
 0x16a   : > { %3398 = vmatprep.subr.bf16.mxu1 %v4887_v26 }
 0x16c   : > { %3358 = vmatpush1.bf16.msra.mxu0 %v4882_v38 }
 0x16d   : > { %3399 = vmatpush1.bf16.msra.mxu1 %v4885_v28  ;;  %3359 = vmatprep.subr.bf16.mxu0 %v4890_v5  ;;  %v3429_v5 = vld [vmem:[%s421_s25] sm:$0xff] }
 0x16e   : > { %3400 = vmatprep.subr.bf16.mxu1 %v4893_v41 }
 0x170   : > { %3360 = vmatpush1.bf16.msra.mxu0 %v4888_v6 }
 0x171   : > { %3401 = vmatpush1.bf16.msra.mxu1 %v4891_v29  ;;  %3361 = vmatprep.subr.bf16.mxu0 %v4896_v31  ;;  %v3431_v31 = vunpack.c.l.bf16 %v3429_v5 }
 0x172   : > { %3402 = vmatprep.subr.bf16.mxu1 %v4899_v32 }
 0x174   : > { %3362 = vmatpush1.bf16.msra.mxu0 %v4894_v33 }
 0x175   : > { %3403 = vmatpush1.bf16.msra.mxu1 %v4897_v34  ;;  %3363 = vmatprep.subr.bf16.mxu0 %v4902_v36 }
 0x176   : > { %3404 = vmatprep.subr.bf16.mxu1 %v4905_v37 }
 0x178   : > { %3364 = vmatpush1.bf16.msra.mxu0 %v4900_v39 }
 0x179   : > { %3405 = vmatpush1.bf16.msra.mxu1 %v4903_v40  ;;  %3365 = vmatprep.subr.bf16.mxu0 %v4908_v42 }
 0x17a   : > { %3406 = vmatprep.subr.bf16.mxu1 %v4911_v43 }
 0x17c   : > { %3366 = vmatpush1.bf16.msra.mxu0 %v4906_v48 }
 0x17d   : > { %3407 = vmatpush1.bf16.msra.mxu1 %v4909_v49  ;;  %3367 = vmatprep.subr.bf16.mxu0 %v4914_v50 }
 0x17e   : > { %3408 = vmatprep.subr.bf16.mxu1 %v4917_v51 }
 0x180   : > { %3368 = vmatpush1.bf16.msra.mxu0 %v4912_v53  ;;  %v3430_v53 = vld [vmem:[%s421_s25 + $0x8] sm:$0xff] }
 0x181   : > { %3409 = vmatpush1.bf16.msra.mxu1 %v4915_v54  ;;  %3369 = vmatprep.subr.bf16.mxu0 %v4920_v56 }
 0x182   : > { %3410 = vmatprep.subr.bf16.mxu1 %v4923_v57 }
 0x184   : > { %3370 = vmatpush1.bf16.msra.mxu0 %v4918_v58  ;;  %v3433_v58 = vunpack.c.l.bf16 %v3430_v53 }
 0x185   : > { %3411 = vmatpush1.bf16.msra.mxu1 %v4921_v61  ;;  %3371 = vmatprep.subr.bf16.mxu0 %v4926_v20 }
 0x186   : > { %3412 = vmatprep.subr.bf16.mxu1 %v4929_v24 }
 0x188   : > { %3372 = vmatpush1.bf16.msra.mxu0 %v4924_v23  ;;  %v3434_v23 = vunpack.c.h.bf16 %v3430_v53 }
 0x189   : > { %3413 = vmatpush1.bf16.msra.mxu1 %v4927_v25  ;;  %3373 = vmatprep.subr.bf16.mxu0 %v4932_v62 }
 0x18a   : > { %3414 = vmatprep.subr.bf16.mxu1 %v4935_v63 }
 0x18c   : > { %3374 = vmatpush1.bf16.msra.mxu0 %v4930_v0 }
 0x18d   : > { %3415 = vmatpush1.bf16.msra.mxu1 %v4933_v1 }
 0x18f   : > { %3376 = vmatmul.mubr.bf16.vlgmr.msra.gmra.mrb[20].mxu0 %v2613_v44 }
 0x190   : > { %3417 = vmatmul.mubr.bf16.vlgmr.msra.gmra.mrb[20].mxu1 %v2615_v47 }
 0x1a2   : > { %v2346_v8 = vpop.f32.mrb[8].mxu0 }
 0x1a3   : > { %v2387_v9 = vpop.f32.mrb[8].mxu1  ;;  %v2348_v12 = vpop.f32.mrb[9].mxu0 }
 0x1a4   : > { %v2388_v11 = vadd.f32 %v2387_v9, %v2346_v8  ;;  %v2389_v13 = vpop.f32.mrb[9].mxu1  ;;  %v2350_v46 = vpop.f32.mrb[10].mxu0 }
 0x1a5   : > { %v2390_v44 = vadd.f32 %v2389_v13, %v2348_v12  ;;  %v2391_v47 = vpop.f32.mrb[10].mxu1  ;;  %v2351_v15 = vpop.f32.mrb[11].mxu0 }
 0x1a6   : > { %v2476_v14 = vadd.f32 %v2388_v11, %v1507_v10  ;;  %v2392_v30 = vpop.f32.mrb[11].mxu1 }
 0x1a7   : > { %v2477_v16 = vadd.f32 %v2390_v44, %v1508_v45 }
 0x1e2   : > { %v2428_v17 = vpop.f32.mrb[12].mxu0 }
 0x1e3   : > { %v2469_v59 = vpop.f32.mrb[12].mxu1  ;;  %v2430_v60 = vpop.f32.mrb[13].mxu0 }
 0x1e4   : > { %v2470_v35 = vadd.f32 %v2469_v59, %v2428_v17  ;;  %v2471_v19 = vpop.f32.mrb[13].mxu1  ;;  %v2432_v52 = vpop.f32.mrb[14].mxu0 }
 0x1e5   : > { %v2472_v21 = vadd.f32 %v2471_v19, %v2430_v60  ;;  %v2473_v22 = vpop.f32.mrb[14].mxu1  ;;  %v2433_v38 = vpop.f32.mrb[15].mxu0 }
 0x1e6   : > { %v2478_v26 = vadd.f32 %v2470_v35, %v6266_v18  ;;  %v2474_v55 = vpop.f32.mrb[15].mxu1  ;;  %v3432_v18 = vunpack.c.h.bf16 %v3429_v5 }
 0x1e7   : > { %v2479_v28 = vadd.f32 %v2472_v21, %v6275_v27 }
 0x222   : > { %v3295_v41 = vpop.f32.mrb[16].mxu0 }
 0x223   : > { %v3336_v6 = vpop.f32.mrb[16].mxu1  ;;  %v3297_v32 = vpop.f32.mrb[17].mxu0 }
 0x224   : > { %v3337_v29 = vadd.f32 %v3336_v6, %v3295_v41  ;;  %v3338_v33 = vpop.f32.mrb[17].mxu1  ;;  %v3299_v36 = vpop.f32.mrb[18].mxu0 }
 0x225   : > { %v3339_v34 = vadd.f32 %v3338_v33, %v3297_v32  ;;  %v3340_v37 = vpop.f32.mrb[18].mxu1  ;;  %v3300_v27 = vpop.f32.mrb[19].mxu0 }
 0x226   : > { %v3425_v39 = vadd.f32 %v3337_v29, %v2476_v14  ;;  %v3341_v40 = vpop.f32.mrb[19].mxu1 }
 0x227   : > { %v3426_v42 = vadd.f32 %v3339_v34, %v2477_v16 }
 0x228   : > { %v3435_v43 = vadd.f32 %v3431_v31, %v3425_v39 }
 0x229   : > { %v3436_v48 = vadd.f32 %v3432_v18, %v3426_v42 }
 0x22a   : > { %v3439_v49 = vmax.f32 %v3435_v43, 0.0 }
 0x22b   : > { %v3440_v50 = vmax.f32 %v3436_v48, 0.0 }
 0x22d   : > { %v4297_v51 = vpack.c.bf16 %v3440_v50, %v3439_v49 }
 0x22f   : > { %3459 = vst [vmem:[%s373_s26] sm:$0xff] %v4297_v51 }
 0x262   : > { %v3377_v54 = vpop.f32.mrb[20].mxu0 }
 0x263   : > { %v3418_v56 = vpop.f32.mrb[20].mxu1  ;;  %v3379_v61 = vpop.f32.mrb[21].mxu0 }
 0x264   : > { %v3419_v57 = vadd.f32 %v3418_v56, %v3377_v54  ;;  %v3420_v20 = vpop.f32.mrb[21].mxu1  ;;  %v3381_v25 = vpop.f32.mrb[22].mxu0 }
 0x265   : > { %v3421_v24 = vadd.f32 %v3420_v20, %v3379_v61  ;;  %v3422_v62 = vpop.f32.mrb[22].mxu1  ;;  %v3382_v0 = vpop.f32.mrb[23].mxu0 }
 0x266   : > { %v3427_v63 = vadd.f32 %v3419_v57, %v2478_v26  ;;  %v3423_v1 = vpop.f32.mrb[23].mxu1 }
 0x267   : > { %v3428_v2 = vadd.f32 %v3421_v24, %v2479_v28 }
 0x268   : > { %v3437_v3 = vadd.f32 %v3433_v58, %v3427_v63 }
 0x269   : > { %v3438_v4 = vadd.f32 %v3434_v23, %v3428_v2 }
 0x26a   : > { %v3441_v7 = vmax.f32 %v3437_v3, 0.0 }
 0x26b   : > { %v3442_v8 = vmax.f32 %v3438_v4, 0.0 }
 0x26d   : > { %v4298_v9 = vpack.c.bf16 %v3442_v8, %v3441_v7 }
 0x26f   : > { %3460 = vst [vmem:[%s373_s26 + $0x8] sm:$0xff] %v4298_v9 }
 0x270   : > { %4949 = shalt.err (!%p4946_p5)
}
 0x271   : > { %s4950_s17 = scalar_lea.hbm %s6403_s11, 256  ;;  %s4954_s25 = scalar_lea.hbm %s6458_s6, 512 }
 0x272   : > { %p4951_p6 = scmp.ne.s32.totalorder %s6403_s11, %s4950_s17  ;;  %p4955_p10 = scmp.lt.u32.totalorder %s6403_s11, %s6458_s6 }
 0x273   : > { %p4956_p11 = scmp.lt.u32.totalorder %s4954_s25, %s4950_s17  ;;  %p4958_p13 = scmp.lt.u32.totalorder %s4950_s17, %s6403_s11 }
 0x274   : > { %p4952_p7 = pnand %p4951_p6, %p5093_p4 }
 0x275   : > { %p4957_p12 = por %p4956_p11, %p4955_p10 }
 0x276   : > { %p4953_p9 = pneg %p4952_p7 }
 0x277   : > { %p4959_p0 = por %p4958_p13, %p4957_p12 }
 0x279   : > { %p4960_p1 = pnand %p4959_p0, %p4953_p9 }
 0x27b   : > { %4963 = shalt.err (!%p4960_p1)
}
 0x27c   : > { %4300 = dma.vmem_to_hbm [thread:$0]  (%p5093_p4), %s6405_s30, 256, %s6403_s11, %s3462_s13  }
 0x27d PF: > { %p4306_p2 = scmp.ge.s32.totalorder %s5014_s24, 2  ;;  %s3490_s26 = sand.u32 1, %s4994_s21  }
 0x27e   : > { %s3491_s28 = scalar_lea.sflag [#allocation3], %s3490_s26 }
 0x27f   : > { %p4303_p3 = pnand %p4306_p2, %p5100_p8 }
 0x281   : > { %4989 = dma.done.wait (!%p4303_p3), %s3491_s28, 256  }
 0x282   : > { %4991 = vsyncadd (!%p4303_p3), %s3491_s28, 4294967040  ;;  %s19_s24 = sadd.s32 1, %s5014_s24   ;;  %s6465_s21 = smov %s4998_s1 }
 0x283   : > { %p16_p5 = scmp.ge.s32.totalorder %s19_s24, 4   ;;  %s6466_s1 = smov %s5002_s22 }
 0x284   : > { %s6467_s22 = smov %s5106_s8  ;;  %s6468_s2 = smov %s5010_s23 }
 0x285   : > { %s6469_s23 = smov %s6471_s27  ;;  %18 = sbr.rel (!%p16_p5) target bundleno = 4 (0x4), region = 90 }
 0x28c   :  { %3496 = vsyncpa [#allocation3], 1 }
 0x28d   :  { %3498 = vsyncpa [#allocation3 + $0x1], 1 }

</bundles_post_ra>
